<compile_context>
chip_gen: v5e
topology: v5e:2x2
jax: 0.10.0
libtpu: 0.0.40
codegen_flags: <defaults>
</compile_context>

<pallas_src>
import functools
import math

import jax
import jax.numpy as jnp
from jax.experimental import pallas as pl
from jax.experimental.pallas import tpu as pltpu


# ---------------------------------------------------------------------------
# Fused Pallas kernel: conv1 + conv2 + residual / projection, one batch image
# per grid step.
# ---------------------------------------------------------------------------

def _fused_preact_block_kernel(xp_ref, w1_ref, b1_ref, w2_ref, b2_ref, o_ref,
                               xa_ref, col1_ref, ha_ref, col2_ref,
                               *, H, W, slope, proj):
    """Refs:
      xp_ref : (1, H+2, W+2, Cin)  reflection-padded input (f32)
      w1_ref : (9*Cin, Cmid)       conv1 taps stacked along K (bf16)
      b1_ref : (1, Cmid)           conv1 bias (f32)
      w2_ref : (9*Cmid[+Cin], Cout) conv2 taps (+ stacked 1x1 shortcut) (bf16)
      b2_ref : (1, Cout)           conv2 bias (f32)
      o_ref  : (1, H*W, Cout)      block output (f32)
      xa_ref : (H+2, W+2, Cin)     scratch: LeakyReLU(padded x), f32
      col1_ref: (H*W, 9*Cin)       scratch: conv1 im2col operand, bf16
      ha_ref : (H+2, W+2, Cmid)    scratch: reflection-padded LeakyReLU(h), f32
      col2_ref: (H*W, 9*Cmid[+Cin]) scratch: conv2 im2col operand, bf16
    """
    Cin = xp_ref.shape[-1]
    Cmid = w1_ref.shape[-1]
    Hp, Wp = H + 2, W + 2

    # ---- conv1: pre-activation applied ONCE (not per tap) --------------------
    x = xp_ref[0]                                            # (Hp, Wp, Cin) f32
    xa_ref[...] = jnp.where(x >= 0.0, x, x * slope)

    # im2col in VMEM: 9 shifted windows -> one (H*W, 9*Cin) bf16 operand.
    for di in range(3):
        for dj in range(3):
            tap = di * 3 + dj
            win = xa_ref[pl.ds(di, H), pl.ds(dj, W), :]      # (H, W, Cin)
            col1_ref[:, pl.ds(tap * Cin, Cin)] = (
                win.reshape(H * W, Cin).astype(jnp.bfloat16))

    # single K = 9*Cin MXU matmul, f32 accumulation.
    h = jnp.dot(col1_ref[...], w1_ref[...],
                preferred_element_type=jnp.float32) + b1_ref[...]   # (H*W, Cmid)

    # ---- conv2 pre-activation + in-kernel reflection halo (pad = 1) ----------
    ha = jnp.where(h >= 0.0, h, h * slope).reshape(H, W, Cmid)
    ha_ref[pl.ds(1, H), pl.ds(1, W), :] = ha                 # interior
    # reflection pad: padded[0] = padded[2], padded[-1] = padded[-3]
    ha_ref[pl.ds(0, 1), :, :] = ha_ref[pl.ds(2, 1), :, :]
    ha_ref[pl.ds(Hp - 1, 1), :, :] = ha_ref[pl.ds(Hp - 3, 1), :, :]
    ha_ref[:, pl.ds(0, 1), :] = ha_ref[:, pl.ds(2, 1), :]
    ha_ref[:, pl.ds(Wp - 1, 1), :] = ha_ref[:, pl.ds(Wp - 3, 1), :]

    # ---- conv2 im2col (+ 1x1 shortcut folded in as an extra K block) ---------
    for di in range(3):
        for dj in range(3):
            tap = di * 3 + dj
            win = ha_ref[pl.ds(di, H), pl.ds(dj, W), :]      # (H, W, Cmid)
            col2_ref[:, pl.ds(tap * Cmid, Cmid)] = (
                win.reshape(H * W, Cmid).astype(jnp.bfloat16))

    xres = xp_ref[0, pl.ds(1, H), pl.ds(1, W), :].reshape(H * W, Cin)  # raw x

    if proj:
        # shortcut = x @ ws folded into the same matmul (ws stacked under w2).
        col2_ref[:, pl.ds(9 * Cmid, Cin)] = xres.astype(jnp.bfloat16)
        acc = jnp.dot(col2_ref[...], w2_ref[...],
                      preferred_element_type=jnp.float32) + b2_ref[...]
    else:
        acc = jnp.dot(col2_ref[...], w2_ref[...],
                      preferred_element_type=jnp.float32) + b2_ref[...]
        acc = acc + xres                                     # identity residual (f32)

    o_ref[0] = acc.astype(o_ref.dtype)


# ---------------------------------------------------------------------------
# pallas_call wrapper
# ---------------------------------------------------------------------------

def _fused_block_call(xp, w1s, b1, w2s, b2, H, W, slope, proj):
    """xp: (B, H+2, W+2, Cin) f32; w1s: (9*Cin, Cmid) bf16;
    w2s: (9*Cmid[+Cin], Cout) bf16 -> (B, H*W, Cout) f32."""
    B, Hp, Wp, Cin = xp.shape
    K1, Cmid = w1s.shape
    K2, Cout = w2s.shape

    kern = functools.partial(_fused_preact_block_kernel,
                             H=H, W=W, slope=slope, proj=proj)

    flops = 2 * B * H * W * (K1 * Cmid + K2 * Cout)
    bytes_accessed = (B * Hp * Wp * Cin * 4 + K1 * Cmid * 2 + K2 * Cout * 2
                      + (Cmid + Cout) * 4 + B * H * W * Cout * 4)

    return pl.pallas_call(
        kern,
        out_shape=jax.ShapeDtypeStruct((B, H * W, Cout), jnp.float32),
        grid=(B,),
        in_specs=[
            pl.BlockSpec((1, Hp, Wp, Cin), lambda b: (b, 0, 0, 0)),
            pl.BlockSpec((K1, Cmid), lambda b: (0, 0)),
            pl.BlockSpec((1, Cmid), lambda b: (0, 0)),
            pl.BlockSpec((K2, Cout), lambda b: (0, 0)),
            pl.BlockSpec((1, Cout), lambda b: (0, 0)),
        ],
        out_specs=pl.BlockSpec((1, H * W, Cout), lambda b: (b, 0, 0)),
        scratch_shapes=[
            pltpu.VMEM((Hp, Wp, Cin), jnp.float32),      # LeakyReLU(x_padded)
            pltpu.VMEM((H * W, K1), jnp.bfloat16),       # conv1 im2col
            pltpu.VMEM((Hp, Wp, Cmid), jnp.float32),     # padded LeakyReLU(h)
            pltpu.VMEM((H * W, K2), jnp.bfloat16),       # conv2 im2col (+res)
        ],
        compiler_params=pltpu.CompilerParams(
            dimension_semantics=("parallel",)),
        cost_estimate=pl.CostEstimate(flops=flops, transcendentals=0,
                                      bytes_accessed=bytes_accessed),
    )(xp, w1s, b1.reshape(1, Cmid), w2s, b2.reshape(1, Cout))


# ---------------------------------------------------------------------------
# Public forward (NCHW in / NCHW out, like the PyTorch module)
# TODO(synk): in a full network keep activations NHWC end-to-end and hoist the
#             transposes out of the per-block path.
# ---------------------------------------------------------------------------

def preact_resnet_block(params, x_nchw, slope=0.2):
    x = jnp.transpose(x_nchw, (0, 2, 3, 1)).astype(jnp.float32)     # NHWC
    B, H, W, Cin = x.shape
    assert H >= 2 and W >= 2, "ReflectionPad2d(1) needs H, W >= 2"

    w1, b1 = params["w1"], params["b1"]          # (3,3,Cin,Cin), (Cin,)
    w2, b2 = params["w2"], params["b2"]          # (3,3,Cin,Cout), (Cout,)
    ws = params.get("ws")                        # (Cin,Cout) or None
    Cmid = w1.shape[-1]
    Cout = w2.shape[-1]
    proj = ws is not None

    # Stack conv taps along K (tap-major, channel-minor) as im2col weights.
    w1s = w1.reshape(9 * Cin, Cmid).astype(jnp.bfloat16)
    w2s = w2.reshape(9 * Cmid, Cout).astype(jnp.bfloat16)
    if proj:
        w2s = jnp.concatenate([w2s, ws.astype(jnp.bfloat16)], axis=0)

    # Reflect-pad commutes with elementwise LeakyReLU -> pad the raw input here
    # (cheap JAX glue) and fuse the activation inside the kernel.
    xp = jnp.pad(x, ((0, 0), (1, 1), (1, 1), (0, 0)), mode="reflect")

    out = _fused_block_call(xp, w1s, b1.astype(jnp.float32), w2s,
                            b2.astype(jnp.float32), H, W, slope, proj)
    out = out.reshape(B, H, W, Cout)
    return jnp.transpose(out, (0, 3, 1, 2))                         # NCHW


# ---------------------------------------------------------------------------
# Pure-JAX reference (same bf16-operand / f32-accumulation numerics)
# ---------------------------------------------------------------------------

def preact_resnet_block_reference(params, x_nchw, slope=0.2):
    x = jnp.transpose(x_nchw, (0, 2, 3, 1)).astype(jnp.float32)     # NHWC

    def conv3x3_reflect(inp, w, b):
        p = jnp.pad(inp, ((0, 0), (1, 1), (1, 1), (0, 0)), mode="reflect")
        out = jax.lax.conv_general_dilated(
            p.astype(jnp.bfloat16), w.astype(jnp.bfloat16),
            window_strides=(1, 1), padding="VALID",
            dimension_numbers=("NHWC", "HWIO", "NHWC"),
            preferred_element_type=jnp.float32)
        return out + b

    h = jnp.where(x >= 0, x, slope * x)
    h = conv3x3_reflect(h, params["w1"], params["b1"])
    h = jnp.where(h >= 0, h, slope * h)
    h = conv3x3_reflect(h, params["w2"], params["b2"])

    ws = params.get("ws")
    if ws is None:
        sc = x
    else:
        sc = jnp.einsum("bhwc,cd->bhwd", x.astype(jnp.bfloat16),
                        ws.astype(jnp.bfloat16),
                        preferred_element_type=jnp.float32)
    return jnp.transpose(sc + h, (0, 3, 1, 2))


# ---------------------------------------------------------------------------
# Deterministic synthetic parameters
# ---------------------------------------------------------------------------

def init_params(key, in_nc, out_nc=None):
    if out_nc is None:
        out_nc = in_nc
    k1, k2, k3, k4, k5 = jax.random.split(key, 5)

    def conv_w(k, kh, kw, cin, cout):
        w = jax.random.normal(k, (kh, kw, cin, cout), jnp.float32)
        return w * (1.0 / math.sqrt(kh * kw * cin))

    return {
        "w1": conv_w(k1, 3, 3, in_nc, in_nc),
        "b1": 0.1 * jax.random.normal(k2, (in_nc,), jnp.float32),
        "w2": conv_w(k3, 3, 3, in_nc, out_nc),
        "b2": 0.1 * jax.random.normal(k4, (out_nc,), jnp.float32),
        "ws": (None if in_nc == out_nc
               else conv_w(k5, 1, 1, in_nc, out_nc).reshape(in_nc, out_nc)),
    }


# ---------------------------------------------------------------------------
# Demo / self-check
# ---------------------------------------------------------------------------

if __name__ == "__main__":
    key = jax.random.PRNGKey(0)
    kx, kp1, kp2 = jax.random.split(key, 3)

    B, H, W = 2, 16, 16
    in_nc = 64
    x = jax.random.normal(kx, (B, in_nc, H, W), jnp.float32)        # NCHW input

    fwd = jax.jit(preact_resnet_block)
    ref_fwd = jax.jit(preact_resnet_block_reference)

    # Case 1: in_nc == out_nc  (identity shortcut)
    params1 = init_params(kp1, in_nc, in_nc)
    out1 = jax.block_until_ready(fwd(params1, x))
    ref1 = jax.block_until_ready(ref_fwd(params1, x))
    assert out1.shape == (B, in_nc, H, W), out1.shape
    assert bool(jnp.all(jnp.isfinite(out1)))
    err1 = float(jnp.max(jnp.abs(out1 - ref1)))
    assert err1 < 5e-2, f"identity-shortcut mismatch: max abs err {err1}"

    # Case 2: in_nc != out_nc  (1x1-conv shortcut folded into the conv2 matmul)
    out_nc = 128
    params2 = init_params(kp2, in_nc, out_nc)
    out2 = jax.block_until_ready(fwd(params2, x))
    ref2 = jax.block_until_ready(ref_fwd(params2, x))
    assert out2.shape == (B, out_nc, H, W), out2.shape
    assert bool(jnp.all(jnp.isfinite(out2)))
    err2 = float(jnp.max(jnp.abs(out2 - ref2)))
    assert err2 < 5e-2, f"projection-shortcut mismatch: max abs err {err2}"

    print("KERNEL_OK")
</pallas_src>

<mosaic_0001>
module attributes {stable_mosaic.version = 11 : i64} {
  func.func @_fused_preact_block_kernel(%arg0: i32, %arg1: memref<1x18x18x64xf32, #tpu.memory_space<vmem>>, %arg2: memref<576x64xbf16, #tpu.memory_space<vmem>>, %arg3: memref<1x64xf32, #tpu.memory_space<vmem>>, %arg4: memref<576x64xbf16, #tpu.memory_space<vmem>>, %arg5: memref<1x64xf32, #tpu.memory_space<vmem>>, %arg6: memref<1x256x64xf32, #tpu.memory_space<vmem>>, %arg7: memref<18x18x64xf32, #tpu.memory_space<vmem>>, %arg8: memref<256x576xbf16, #tpu.memory_space<vmem>>, %arg9: memref<18x18x64xf32, #tpu.memory_space<vmem>>, %arg10: memref<256x576xbf16, #tpu.memory_space<vmem>>) attributes {dimension_semantics = [#tpu.dimension_semantics<parallel>], iteration_bounds = array<i64: 2>, scalar_prefetch = 0 : i64, scratch_operands = 4 : i64, tpu.core_type = #tpu.core_type<tc>, window_params = [{transform_indices = @transform_0, window_bounds = array<i64: 1, 18, 18, 64>}, {pipeline_mode = #tpu.pipeline_mode<synchronous>, transform_indices = @transform_1, window_bounds = array<i64: 576, 64>}, {pipeline_mode = #tpu.pipeline_mode<synchronous>, transform_indices = @transform_2, window_bounds = array<i64: 1, 64>}, {pipeline_mode = #tpu.pipeline_mode<synchronous>, transform_indices = @transform_3, window_bounds = array<i64: 576, 64>}, {pipeline_mode = #tpu.pipeline_mode<synchronous>, transform_indices = @transform_4, window_bounds = array<i64: 1, 64>}, {transform_indices = @transform_5, window_bounds = array<i64: 1, 256, 64>}]} {
    %c0 = arith.constant 0 : index
    %c0_0 = arith.constant 0 : index
    %c0_1 = arith.constant 0 : index
    %c0_2 = arith.constant 0 : index
    %0 = vector.load %arg1[%c0, %c0_0, %c0_1, %c0_2] : memref<1x18x18x64xf32, #tpu.memory_space<vmem>>, vector<1x18x18x64xf32>
    %1 = vector.shape_cast %0 : vector<1x18x18x64xf32> to vector<18x18x64xf32>
    %cst = arith.constant 0.000000e+00 : f32
    %2 = vector.broadcast %cst : f32 to vector<18x18x64xf32>
    %3 = arith.cmpf oge, %1, %2 : vector<18x18x64xf32>
    %cst_3 = arith.constant 2.000000e-01 : f32
    %4 = vector.broadcast %cst_3 : f32 to vector<18x18x64xf32>
    %5 = arith.mulf %1, %4 : vector<18x18x64xf32>
    %6 = arith.select %3, %1, %5 : vector<18x18x64xi1>, vector<18x18x64xf32>
    %c0_4 = arith.constant 0 : index
    %c0_5 = arith.constant 0 : index
    %c0_6 = arith.constant 0 : index
    %7 = vector.load %arg7[%c0_4, %c0_5, %c0_6] : memref<18x18x64xf32, #tpu.memory_space<vmem>>, vector<18x18x64xf32>
    tpu.vector_store %arg7[%c0_4, %c0_5, %c0_6], %6 {strides = array<i32>} : memref<18x18x64xf32, #tpu.memory_space<vmem>>, vector<18x18x64xf32>,
    %c0_7 = arith.constant 0 : index
    %c0_8 = arith.constant 0 : index
    %c0_9 = arith.constant 0 : index
    %8 = vector.load %arg7[%c0_7, %c0_8, %c0_9] : memref<18x18x64xf32, #tpu.memory_space<vmem>>, vector<16x16x64xf32>
    %9 = vector.shape_cast %8 : vector<16x16x64xf32> to vector<256x64xf32>
    %10 = arith.truncf %9 : vector<256x64xf32> to vector<256x64xbf16>
    %c0_10 = arith.constant 0 : index
    %c0_11 = arith.constant 0 : index
    %11 = vector.load %arg8[%c0_10, %c0_11] : memref<256x576xbf16, #tpu.memory_space<vmem>>, vector<256x64xbf16>
    tpu.vector_store %arg8[%c0_10, %c0_11], %10 {strides = array<i32>} : memref<256x576xbf16, #tpu.memory_space<vmem>>, vector<256x64xbf16>,
    %c0_12 = arith.constant 0 : index
    %c1 = arith.constant 1 : index
    %c0_13 = arith.constant 0 : index
    %12 = vector.load %arg7[%c0_12, %c1, %c0_13] : memref<18x18x64xf32, #tpu.memory_space<vmem>>, vector<16x16x64xf32>
    %13 = vector.shape_cast %12 : vector<16x16x64xf32> to vector<256x64xf32>
    %14 = arith.truncf %13 : vector<256x64xf32> to vector<256x64xbf16>
    %c0_14 = arith.constant 0 : index
    %c64 = arith.constant 64 : index
    %15 = vector.load %arg8[%c0_14, %c64] : memref<256x576xbf16, #tpu.memory_space<vmem>>, vector<256x64xbf16>
    tpu.vector_store %arg8[%c0_14, %c64], %14 {strides = array<i32>} : memref<256x576xbf16, #tpu.memory_space<vmem>>, vector<256x64xbf16>,
    %c0_15 = arith.constant 0 : index
    %c2 = arith.constant 2 : index
    %c0_16 = arith.constant 0 : index
    %16 = vector.load %arg7[%c0_15, %c2, %c0_16] : memref<18x18x64xf32, #tpu.memory_space<vmem>>, vector<16x16x64xf32>
    %17 = vector.shape_cast %16 : vector<16x16x64xf32> to vector<256x64xf32>
    %18 = arith.truncf %17 : vector<256x64xf32> to vector<256x64xbf16>
    %c0_17 = arith.constant 0 : index
    %c128 = arith.constant 128 : index
    %19 = vector.load %arg8[%c0_17, %c128] : memref<256x576xbf16, #tpu.memory_space<vmem>>, vector<256x64xbf16>
    tpu.vector_store %arg8[%c0_17, %c128], %18 {strides = array<i32>} : memref<256x576xbf16, #tpu.memory_space<vmem>>, vector<256x64xbf16>,
    %c1_18 = arith.constant 1 : index
    %c0_19 = arith.constant 0 : index
    %c0_20 = arith.constant 0 : index
    %20 = vector.load %arg7[%c1_18, %c0_19, %c0_20] : memref<18x18x64xf32, #tpu.memory_space<vmem>>, vector<16x16x64xf32>
    %21 = vector.shape_cast %20 : vector<16x16x64xf32> to vector<256x64xf32>
    %22 = arith.truncf %21 : vector<256x64xf32> to vector<256x64xbf16>
    %c0_21 = arith.constant 0 : index
    %c192 = arith.constant 192 : index
    %23 = vector.load %arg8[%c0_21, %c192] : memref<256x576xbf16, #tpu.memory_space<vmem>>, vector<256x64xbf16>
    tpu.vector_store %arg8[%c0_21, %c192], %22 {strides = array<i32>} : memref<256x576xbf16, #tpu.memory_space<vmem>>, vector<256x64xbf16>,
    %c1_22 = arith.constant 1 : index
    %c1_23 = arith.constant 1 : index
    %c0_24 = arith.constant 0 : index
    %24 = vector.load %arg7[%c1_22, %c1_23, %c0_24] : memref<18x18x64xf32, #tpu.memory_space<vmem>>, vector<16x16x64xf32>
    %25 = vector.shape_cast %24 : vector<16x16x64xf32> to vector<256x64xf32>
    %26 = arith.truncf %25 : vector<256x64xf32> to vector<256x64xbf16>
    %c0_25 = arith.constant 0 : index
    %c256 = arith.constant 256 : index
    %27 = vector.load %arg8[%c0_25, %c256] : memref<256x576xbf16, #tpu.memory_space<vmem>>, vector<256x64xbf16>
    tpu.vector_store %arg8[%c0_25, %c256], %26 {strides = array<i32>} : memref<256x576xbf16, #tpu.memory_space<vmem>>, vector<256x64xbf16>,
    %c1_26 = arith.constant 1 : index
    %c2_27 = arith.constant 2 : index
    %c0_28 = arith.constant 0 : index
    %28 = vector.load %arg7[%c1_26, %c2_27, %c0_28] : memref<18x18x64xf32, #tpu.memory_space<vmem>>, vector<16x16x64xf32>
    %29 = vector.shape_cast %28 : vector<16x16x64xf32> to vector<256x64xf32>
    %30 = arith.truncf %29 : vector<256x64xf32> to vector<256x64xbf16>
    %c0_29 = arith.constant 0 : index
    %c320 = arith.constant 320 : index
    %31 = vector.load %arg8[%c0_29, %c320] : memref<256x576xbf16, #tpu.memory_space<vmem>>, vector<256x64xbf16>
    tpu.vector_store %arg8[%c0_29, %c320], %30 {strides = array<i32>} : memref<256x576xbf16, #tpu.memory_space<vmem>>, vector<256x64xbf16>,
    %c2_30 = arith.constant 2 : index
    %c0_31 = arith.constant 0 : index
    %c0_32 = arith.constant 0 : index
    %32 = vector.load %arg7[%c2_30, %c0_31, %c0_32] : memref<18x18x64xf32, #tpu.memory_space<vmem>>, vector<16x16x64xf32>
    %33 = vector.shape_cast %32 : vector<16x16x64xf32> to vector<256x64xf32>
    %34 = arith.truncf %33 : vector<256x64xf32> to vector<256x64xbf16>
    %c0_33 = arith.constant 0 : index
    %c384 = arith.constant 384 : index
    %35 = vector.load %arg8[%c0_33, %c384] : memref<256x576xbf16, #tpu.memory_space<vmem>>, vector<256x64xbf16>
    tpu.vector_store %arg8[%c0_33, %c384], %34 {strides = array<i32>} : memref<256x576xbf16, #tpu.memory_space<vmem>>, vector<256x64xbf16>,
    %c2_34 = arith.constant 2 : index
    %c1_35 = arith.constant 1 : index
    %c0_36 = arith.constant 0 : index
    %36 = vector.load %arg7[%c2_34, %c1_35, %c0_36] : memref<18x18x64xf32, #tpu.memory_space<vmem>>, vector<16x16x64xf32>
    %37 = vector.shape_cast %36 : vector<16x16x64xf32> to vector<256x64xf32>
    %38 = arith.truncf %37 : vector<256x64xf32> to vector<256x64xbf16>
    %c0_37 = arith.constant 0 : index
    %c448 = arith.constant 448 : index
    %39 = vector.load %arg8[%c0_37, %c448] : memref<256x576xbf16, #tpu.memory_space<vmem>>, vector<256x64xbf16>
    tpu.vector_store %arg8[%c0_37, %c448], %38 {strides = array<i32>} : memref<256x576xbf16, #tpu.memory_space<vmem>>, vector<256x64xbf16>,
    %c2_38 = arith.constant 2 : index
    %c2_39 = arith.constant 2 : index
    %c0_40 = arith.constant 0 : index
    %40 = vector.load %arg7[%c2_38, %c2_39, %c0_40] : memref<18x18x64xf32, #tpu.memory_space<vmem>>, vector<16x16x64xf32>
    %41 = vector.shape_cast %40 : vector<16x16x64xf32> to vector<256x64xf32>
    %42 = arith.truncf %41 : vector<256x64xf32> to vector<256x64xbf16>
    %c0_41 = arith.constant 0 : index
    %c512 = arith.constant 512 : index
    %43 = vector.load %arg8[%c0_41, %c512] : memref<256x576xbf16, #tpu.memory_space<vmem>>, vector<256x64xbf16>
    tpu.vector_store %arg8[%c0_41, %c512], %42 {strides = array<i32>} : memref<256x576xbf16, #tpu.memory_space<vmem>>, vector<256x64xbf16>,
    %c0_42 = arith.constant 0 : index
    %c0_43 = arith.constant 0 : index
    %44 = vector.load %arg8[%c0_42, %c0_43] : memref<256x576xbf16, #tpu.memory_space<vmem>>, vector<256x576xbf16>
    %c0_44 = arith.constant 0 : index
    %c0_45 = arith.constant 0 : index
    %45 = vector.load %arg2[%c0_44, %c0_45] : memref<576x64xbf16, #tpu.memory_space<vmem>>, vector<576x64xbf16>
    %cst_46 = arith.constant dense<0.000000e+00> : vector<256x64xf32>
    %46 = tpu.matmul %44, %45, %cst_46 {dimension_numbers = #tpu.dot_dimension_numbers<[1], [0], [0], [1], [0, 0, 1, 1], [], []>} : vector<256x576xbf16>, vector<576x64xbf16>, vector<256x64xf32> -> vector<256x64xf32>
    %c0_47 = arith.constant 0 : index
    %c0_48 = arith.constant 0 : index
    %47 = vector.load %arg3[%c0_47, %c0_48] : memref<1x64xf32, #tpu.memory_space<vmem>>, vector<1x64xf32>
    %48 = vector.broadcast %47 : vector<1x64xf32> to vector<256x64xf32>
    %49 = arith.addf %46, %48 : vector<256x64xf32>
    %cst_49 = arith.constant 0.000000e+00 : f32
    %50 = vector.broadcast %cst_49 : f32 to vector<256x64xf32>
    %51 = arith.cmpf oge, %49, %50 : vector<256x64xf32>
    %cst_50 = arith.constant 2.000000e-01 : f32
    %52 = vector.broadcast %cst_50 : f32 to vector<256x64xf32>
    %53 = arith.mulf %49, %52 : vector<256x64xf32>
    %54 = arith.select %51, %49, %53 : vector<256x64xi1>, vector<256x64xf32>
    %55 = vector.shape_cast %54 : vector<256x64xf32> to vector<16x16x64xf32>
    %c1_51 = arith.constant 1 : index
    %c1_52 = arith.constant 1 : index
    %c0_53 = arith.constant 0 : index
    %56 = vector.load %arg9[%c1_51, %c1_52, %c0_53] : memref<18x18x64xf32, #tpu.memory_space<vmem>>, vector<16x16x64xf32>
    tpu.vector_store %arg9[%c1_51, %c1_52, %c0_53], %55 {strides = array<i32>} : memref<18x18x64xf32, #tpu.memory_space<vmem>>, vector<16x16x64xf32>,
    %c2_54 = arith.constant 2 : index
    %c0_55 = arith.constant 0 : index
    %c0_56 = arith.constant 0 : index
    %57 = vector.load %arg9[%c2_54, %c0_55, %c0_56] : memref<18x18x64xf32, #tpu.memory_space<vmem>>, vector<1x18x64xf32>
    %c0_57 = arith.constant 0 : index
    %c0_58 = arith.constant 0 : index
    %c0_59 = arith.constant 0 : index
    %58 = vector.load %arg9[%c0_57, %c0_58, %c0_59] : memref<18x18x64xf32, #tpu.memory_space<vmem>>, vector<1x18x64xf32>
    tpu.vector_store %arg9[%c0_57, %c0_58, %c0_59], %57 {strides = array<i32>} : memref<18x18x64xf32, #tpu.memory_space<vmem>>, vector<1x18x64xf32>,
    %c15 = arith.constant 15 : index
    %c0_60 = arith.constant 0 : index
    %c0_61 = arith.constant 0 : index
    %59 = vector.load %arg9[%c15, %c0_60, %c0_61] : memref<18x18x64xf32, #tpu.memory_space<vmem>>, vector<1x18x64xf32>
    %c17 = arith.constant 17 : index
    %c0_62 = arith.constant 0 : index
    %c0_63 = arith.constant 0 : index
    %60 = vector.load %arg9[%c17, %c0_62, %c0_63] : memref<18x18x64xf32, #tpu.memory_space<vmem>>, vector<1x18x64xf32>
    tpu.vector_store %arg9[%c17, %c0_62, %c0_63], %59 {strides = array<i32>} : memref<18x18x64xf32, #tpu.memory_space<vmem>>, vector<1x18x64xf32>,
    %c0_64 = arith.constant 0 : index
    %c2_65 = arith.constant 2 : index
    %c0_66 = arith.constant 0 : index
    %61 = vector.load %arg9[%c0_64, %c2_65, %c0_66] : memref<18x18x64xf32, #tpu.memory_space<vmem>>, vector<18x1x64xf32>
    %c0_67 = arith.constant 0 : index
    %c0_68 = arith.constant 0 : index
    %c0_69 = arith.constant 0 : index
    %62 = vector.load %arg9[%c0_67, %c0_68, %c0_69] : memref<18x18x64xf32, #tpu.memory_space<vmem>>, vector<18x1x64xf32>
    tpu.vector_store %arg9[%c0_67, %c0_68, %c0_69], %61 {strides = array<i32>} : memref<18x18x64xf32, #tpu.memory_space<vmem>>, vector<18x1x64xf32>,
    %c0_70 = arith.constant 0 : index
    %c15_71 = arith.constant 15 : index
    %c0_72 = arith.constant 0 : index
    %63 = vector.load %arg9[%c0_70, %c15_71, %c0_72] : memref<18x18x64xf32, #tpu.memory_space<vmem>>, vector<18x1x64xf32>
    %c0_73 = arith.constant 0 : index
    %c17_74 = arith.constant 17 : index
    %c0_75 = arith.constant 0 : index
    %64 = vector.load %arg9[%c0_73, %c17_74, %c0_75] : memref<18x18x64xf32, #tpu.memory_space<vmem>>, vector<18x1x64xf32>
    tpu.vector_store %arg9[%c0_73, %c17_74, %c0_75], %63 {strides = array<i32>} : memref<18x18x64xf32, #tpu.memory_space<vmem>>, vector<18x1x64xf32>,
    %c0_76 = arith.constant 0 : index
    %c0_77 = arith.constant 0 : index
    %c0_78 = arith.constant 0 : index
    %65 = vector.load %arg9[%c0_76, %c0_77, %c0_78] : memref<18x18x64xf32, #tpu.memory_space<vmem>>, vector<16x16x64xf32>
    %66 = vector.shape_cast %65 : vector<16x16x64xf32> to vector<256x64xf32>
    %67 = arith.truncf %66 : vector<256x64xf32> to vector<256x64xbf16>
    %c0_79 = arith.constant 0 : index
    %c0_80 = arith.constant 0 : index
    %68 = vector.load %arg10[%c0_79, %c0_80] : memref<256x576xbf16, #tpu.memory_space<vmem>>, vector<256x64xbf16>
    tpu.vector_store %arg10[%c0_79, %c0_80], %67 {strides = array<i32>} : memref<256x576xbf16, #tpu.memory_space<vmem>>, vector<256x64xbf16>,
    %c0_81 = arith.constant 0 : index
    %c1_82 = arith.constant 1 : index
    %c0_83 = arith.constant 0 : index
    %69 = vector.load %arg9[%c0_81, %c1_82, %c0_83] : memref<18x18x64xf32, #tpu.memory_space<vmem>>, vector<16x16x64xf32>
    %70 = vector.shape_cast %69 : vector<16x16x64xf32> to vector<256x64xf32>
    %71 = arith.truncf %70 : vector<256x64xf32> to vector<256x64xbf16>
    %c0_84 = arith.constant 0 : index
    %c64_85 = arith.constant 64 : index
    %72 = vector.load %arg10[%c0_84, %c64_85] : memref<256x576xbf16, #tpu.memory_space<vmem>>, vector<256x64xbf16>
    tpu.vector_store %arg10[%c0_84, %c64_85], %71 {strides = array<i32>} : memref<256x576xbf16, #tpu.memory_space<vmem>>, vector<256x64xbf16>,
    %c0_86 = arith.constant 0 : index
    %c2_87 = arith.constant 2 : index
    %c0_88 = arith.constant 0 : index
    %73 = vector.load %arg9[%c0_86, %c2_87, %c0_88] : memref<18x18x64xf32, #tpu.memory_space<vmem>>, vector<16x16x64xf32>
    %74 = vector.shape_cast %73 : vector<16x16x64xf32> to vector<256x64xf32>
    %75 = arith.truncf %74 : vector<256x64xf32> to vector<256x64xbf16>
    %c0_89 = arith.constant 0 : index
    %c128_90 = arith.constant 128 : index
    %76 = vector.load %arg10[%c0_89, %c128_90] : memref<256x576xbf16, #tpu.memory_space<vmem>>, vector<256x64xbf16>
    tpu.vector_store %arg10[%c0_89, %c128_90], %75 {strides = array<i32>} : memref<256x576xbf16, #tpu.memory_space<vmem>>, vector<256x64xbf16>,
    %c1_91 = arith.constant 1 : index
    %c0_92 = arith.constant 0 : index
    %c0_93 = arith.constant 0 : index
    %77 = vector.load %arg9[%c1_91, %c0_92, %c0_93] : memref<18x18x64xf32, #tpu.memory_space<vmem>>, vector<16x16x64xf32>
    %78 = vector.shape_cast %77 : vector<16x16x64xf32> to vector<256x64xf32>
    %79 = arith.truncf %78 : vector<256x64xf32> to vector<256x64xbf16>
    %c0_94 = arith.constant 0 : index
    %c192_95 = arith.constant 192 : index
    %80 = vector.load %arg10[%c0_94, %c192_95] : memref<256x576xbf16, #tpu.memory_space<vmem>>, vector<256x64xbf16>
    tpu.vector_store %arg10[%c0_94, %c192_95], %79 {strides = array<i32>} : memref<256x576xbf16, #tpu.memory_space<vmem>>, vector<256x64xbf16>,
    %c1_96 = arith.constant 1 : index
    %c1_97 = arith.constant 1 : index
    %c0_98 = arith.constant 0 : index
    %81 = vector.load %arg9[%c1_96, %c1_97, %c0_98] : memref<18x18x64xf32, #tpu.memory_space<vmem>>, vector<16x16x64xf32>
    %82 = vector.shape_cast %81 : vector<16x16x64xf32> to vector<256x64xf32>
    %83 = arith.truncf %82 : vector<256x64xf32> to vector<256x64xbf16>
    %c0_99 = arith.constant 0 : index
    %c256_100 = arith.constant 256 : index
    %84 = vector.load %arg10[%c0_99, %c256_100] : memref<256x576xbf16, #tpu.memory_space<vmem>>, vector<256x64xbf16>
    tpu.vector_store %arg10[%c0_99, %c256_100], %83 {strides = array<i32>} : memref<256x576xbf16, #tpu.memory_space<vmem>>, vector<256x64xbf16>,
    %c1_101 = arith.constant 1 : index
    %c2_102 = arith.constant 2 : index
    %c0_103 = arith.constant 0 : index
    %85 = vector.load %arg9[%c1_101, %c2_102, %c0_103] : memref<18x18x64xf32, #tpu.memory_space<vmem>>, vector<16x16x64xf32>
    %86 = vector.shape_cast %85 : vector<16x16x64xf32> to vector<256x64xf32>
    %87 = arith.truncf %86 : vector<256x64xf32> to vector<256x64xbf16>
    %c0_104 = arith.constant 0 : index
    %c320_105 = arith.constant 320 : index
    %88 = vector.load %arg10[%c0_104, %c320_105] : memref<256x576xbf16, #tpu.memory_space<vmem>>, vector<256x64xbf16>
    tpu.vector_store %arg10[%c0_104, %c320_105], %87 {strides = array<i32>} : memref<256x576xbf16, #tpu.memory_space<vmem>>, vector<256x64xbf16>,
    %c2_106 = arith.constant 2 : index
    %c0_107 = arith.constant 0 : index
    %c0_108 = arith.constant 0 : index
    %89 = vector.load %arg9[%c2_106, %c0_107, %c0_108] : memref<18x18x64xf32, #tpu.memory_space<vmem>>, vector<16x16x64xf32>
    %90 = vector.shape_cast %89 : vector<16x16x64xf32> to vector<256x64xf32>
    %91 = arith.truncf %90 : vector<256x64xf32> to vector<256x64xbf16>
    %c0_109 = arith.constant 0 : index
    %c384_110 = arith.constant 384 : index
    %92 = vector.load %arg10[%c0_109, %c384_110] : memref<256x576xbf16, #tpu.memory_space<vmem>>, vector<256x64xbf16>
    tpu.vector_store %arg10[%c0_109, %c384_110], %91 {strides = array<i32>} : memref<256x576xbf16, #tpu.memory_space<vmem>>, vector<256x64xbf16>,
    %c2_111 = arith.constant 2 : index
    %c1_112 = arith.constant 1 : index
    %c0_113 = arith.constant 0 : index
    %93 = vector.load %arg9[%c2_111, %c1_112, %c0_113] : memref<18x18x64xf32, #tpu.memory_space<vmem>>, vector<16x16x64xf32>
    %94 = vector.shape_cast %93 : vector<16x16x64xf32> to vector<256x64xf32>
    %95 = arith.truncf %94 : vector<256x64xf32> to vector<256x64xbf16>
    %c0_114 = arith.constant 0 : index
    %c448_115 = arith.constant 448 : index
    %96 = vector.load %arg10[%c0_114, %c448_115] : memref<256x576xbf16, #tpu.memory_space<vmem>>, vector<256x64xbf16>
    tpu.vector_store %arg10[%c0_114, %c448_115], %95 {strides = array<i32>} : memref<256x576xbf16, #tpu.memory_space<vmem>>, vector<256x64xbf16>,
    %c2_116 = arith.constant 2 : index
    %c2_117 = arith.constant 2 : index
    %c0_118 = arith.constant 0 : index
    %97 = vector.load %arg9[%c2_116, %c2_117, %c0_118] : memref<18x18x64xf32, #tpu.memory_space<vmem>>, vector<16x16x64xf32>
    %98 = vector.shape_cast %97 : vector<16x16x64xf32> to vector<256x64xf32>
    %99 = arith.truncf %98 : vector<256x64xf32> to vector<256x64xbf16>
    %c0_119 = arith.constant 0 : index
    %c512_120 = arith.constant 512 : index
    %100 = vector.load %arg10[%c0_119, %c512_120] : memref<256x576xbf16, #tpu.memory_space<vmem>>, vector<256x64xbf16>
    tpu.vector_store %arg10[%c0_119, %c512_120], %99 {strides = array<i32>} : memref<256x576xbf16, #tpu.memory_space<vmem>>, vector<256x64xbf16>,
    %c0_121 = arith.constant 0 : index
    %c1_122 = arith.constant 1 : index
    %c1_123 = arith.constant 1 : index
    %c0_124 = arith.constant 0 : index
    %101 = vector.load %arg1[%c0_121, %c1_122, %c1_123, %c0_124] : memref<1x18x18x64xf32, #tpu.memory_space<vmem>>, vector<1x16x16x64xf32>
    %102 = vector.shape_cast %101 : vector<1x16x16x64xf32> to vector<16x16x64xf32>
    %103 = vector.shape_cast %102 : vector<16x16x64xf32> to vector<256x64xf32>
    %c0_125 = arith.constant 0 : index
    %c0_126 = arith.constant 0 : index
    %104 = vector.load %arg10[%c0_125, %c0_126] : memref<256x576xbf16, #tpu.memory_space<vmem>>, vector<256x576xbf16>
    %c0_127 = arith.constant 0 : index
    %c0_128 = arith.constant 0 : index
    %105 = vector.load %arg4[%c0_127, %c0_128] : memref<576x64xbf16, #tpu.memory_space<vmem>>, vector<576x64xbf16>
    %cst_129 = arith.constant dense<0.000000e+00> : vector<256x64xf32>
    %106 = tpu.matmul %104, %105, %cst_129 {dimension_numbers = #tpu.dot_dimension_numbers<[1], [0], [0], [1], [0, 0, 1, 1], [], []>} : vector<256x576xbf16>, vector<576x64xbf16>, vector<256x64xf32> -> vector<256x64xf32>
    %c0_130 = arith.constant 0 : index
    %c0_131 = arith.constant 0 : index
    %107 = vector.load %arg5[%c0_130, %c0_131] : memref<1x64xf32, #tpu.memory_space<vmem>>, vector<1x64xf32>
    %108 = vector.broadcast %107 : vector<1x64xf32> to vector<256x64xf32>
    %109 = arith.addf %106, %108 : vector<256x64xf32>
    %110 = arith.addf %109, %103 : vector<256x64xf32>
    %c0_132 = arith.constant 0 : index
    %c0_133 = arith.constant 0 : index
    %c0_134 = arith.constant 0 : index
    %111 = vector.load %arg6[%c0_132, %c0_133, %c0_134] : memref<1x256x64xf32, #tpu.memory_space<vmem>>, vector<1x256x64xf32>
    %112 = vector.shape_cast %111 : vector<1x256x64xf32> to vector<256x64xf32>
    %113 = vector.shape_cast %110 : vector<256x64xf32> to vector<1x256x64xf32>
    tpu.vector_store %arg6[%c0_132, %c0_133, %c0_134], %113 {strides = array<i32>} : memref<1x256x64xf32, #tpu.memory_space<vmem>>, vector<1x256x64xf32>,
    return
  }
  func.func @transform_0(%arg0: i32) -> (i32, i32, i32, i32) {
    %c0_i32 = arith.constant 0 : i32
    %c0_i32_0 = arith.constant 0 : i32
    %c0_i32_1 = arith.constant 0 : i32
    %c0_i32_2 = arith.constant 0 : i32
    return %arg0, %c0_i32, %c0_i32_0, %c0_i32_1 : i32, i32, i32, i32
  }
  func.func @transform_1(%arg0: i32) -> (i32, i32) {
    %c0_i32 = arith.constant 0 : i32
    %c0_i32_0 = arith.constant 0 : i32
    %c0_i32_1 = arith.constant 0 : i32
    return %c0_i32, %c0_i32_0 : i32, i32
  }
  func.func @transform_2(%arg0: i32) -> (i32, i32) {
    %c0_i32 = arith.constant 0 : i32
    %c0_i32_0 = arith.constant 0 : i32
    %c0_i32_1 = arith.constant 0 : i32
    return %c0_i32, %c0_i32_0 : i32, i32
  }
  func.func @transform_3(%arg0: i32) -> (i32, i32) {
    %c0_i32 = arith.constant 0 : i32
    %c0_i32_0 = arith.constant 0 : i32
    %c0_i32_1 = arith.constant 0 : i32
    return %c0_i32, %c0_i32_0 : i32, i32
  }
  func.func @transform_4(%arg0: i32) -> (i32, i32) {
    %c0_i32 = arith.constant 0 : i32
    %c0_i32_0 = arith.constant 0 : i32
    %c0_i32_1 = arith.constant 0 : i32
    return %c0_i32, %c0_i32_0 : i32, i32
  }
  func.func @transform_5(%arg0: i32) -> (i32, i32, i32) {
    %c0_i32 = arith.constant 0 : i32
    %c0_i32_0 = arith.constant 0 : i32
    %c0_i32_1 = arith.constant 0 : i32
    return %arg0, %c0_i32, %c0_i32_0 : i32, i32, i32
  }
}

</mosaic_0001>

<bundles_post_ra>
// kernel: preact_resnet_block.1
= control target key start
LH: loop header
LB: loop body
LE: loop exit
PB: predicated region body
PF: predicated region fallthrough
CT: control target
= control target key end

     0   :  { %10 = vsyncpa [#allocation7], 0  ;;  %s9788_s0 = inlined_call_operand.vmem [shape: f32[2,18,18,64], index: 0, kind: input, shape index: {}]   ;;  %s9789_s1 = inlined_call_operand.vmem [shape: bf16[576,64], index: 1, kind: input, shape index: {}]   ;;  %s9790_s2 = inlined_call_operand.vmem [shape: f32[1,64], index: 2, kind: input, shape index: {}]   ;;  %s9791_s3 = inlined_call_operand.vmem [shape: bf16[576,64], index: 3, kind: input, shape index: {}]   ;;  %s9792_s4 = inlined_call_operand.vmem [shape: f32[1,64], index: 4, kind: input, shape index: {}]   ;;  %s9793_s5 = inlined_call_operand.hbm [shape: f32[2,256,64], index: 5, kind: output, shape index: {}]  }
   0x1   :  { %12 = vsyncpa [#allocation7 + $0x1], 0  ;;  %s7602_s18 = smov 0   ;;  %s7604_s19 = smov 0  }
   0x2   :  { %s7606_s20 = smov 0   ;;  %s7608_s21 = smov 0  }
   0x3 LB: > { %s7623_s22 = sadd.s32 4294967295, %s7567_s21   ;;  %s6206_s23 = sadd.s32 4294967294, %s7567_s21   ;;  %s7567_s21 = sphi %s7608_s21, %s9871_s21   ;;  %s7563_s20 = sphi %s7606_s20, %s9870_s20   ;;  %s7559_s19 = sphi %s7604_s19, %s9869_s19   ;;  %s7555_s18 = sphi %s7602_s18, %s9868_s18  }
   0x4   : > { %s7627_s24 = sadd.s32 1, %s7567_s21   ;;  %s135_s25 = sadd.s32 1, %s7563_s20 }
   0x5   : > { %s132_s26 = ssub.s32 %s7567_s21, %s7627_s24  ;;  %p145_p0 = scmp.ne.s32.totalorder %s7563_s20, %s7559_s19 }
   0x6   : > { %p133_p1 = scmp.eq.s32.totalorder %s132_s26, 0  ;;  %p146_p2 = scmp.eq.s32.totalorder %s7623_s22, 1 }
   0x7   : > { %p151_p3 = scmp.ne.s32.totalorder %s7559_s19, %s7555_s18  ;;  %p152_p4 = scmp.eq.s32.totalorder %s6206_s23, 1 }
   0x8   : > { %s7638_s27 = scalar_select %p133_p1, %s7563_s20, %s135_s25  }
   0x9   : > { %p7640_p5 = por %p146_p2, %p145_p0  ;;  %p7644_p6 = por %p152_p4, %p151_p3 }
   0xa   : > { %p6209_p7 = scmp.ge.s32.totalorder %s7567_s21, 1  ;;  %p190_p8 = scmp.lt.s32.totalorder %s7567_s21, 3 }
   0xc   : > { %p191_p9 = pnand %p6209_p7, %p190_p8 }
   0xe   : > { %194 = sbr.rel (%p191_p9) target bundleno = 1373 (0x55d), region = 40 }
  0x13   : > { %p218_p10 = scmp.lt.s32.totalorder %s7623_s22, 1  ;;  %vm440_vm0 = vcmask 523264   ;;  %vm443_vm1 = vcmask 517120   ;;  %s7569_s10 = smov 64  }
  0x14   : > { %s7441_s11 = sshll.u32 %s7623_s22, 8 }
  0x15   : > { %s219_s30 = scalar_select %p218_p10, %s7623_s22, 1 }
  0x16   : > { %s6140_s14 = scalar_lea.hbm %s9793_s5, %s7441_s11 }
  0x17   : > { %s7458_s6 = smul.u32 432, %s219_s30  ;;  %s215_s30 = sand.u32 1, %s7559_s19  }
  0x18   : > { %s6143_s16 = sshll.u32 %s6140_s14, 4  ;;  %s6129_s22 = scalar_lea.sflag [#allocation7], %s215_s30  ;;  %s6144_s16 = int_to_ptr.hbm [resolvable:$true] %s6143_s16 }
  0x19   : > { %s7655_s9 = scalar_lea.vmem %s9788_s0, %s7458_s6  ;;  %s6210_s6 = sshll.u32 %s215_s30, 8 }
  0x1a   : > { %v251_v0 = vld [vmem:[%s7655_s9 + $0xd8] sm:$0xff]  ;;  %v248_v1 = vld [vmem:[%s7655_s9 + $0xc0] sm:$0xff]  ;;  %v249_v2 = vld [vmem:[%s7655_s9 + $0xc8] sm:$0xff]  ;;  %s9542_s7 = scalar_lea.vmem [#allocation6], %s6210_s6  ;;  %s7519_s17 = sshra.s32 %s6144_s16, 4  ;;  %s7520_s17 = int_to_ptr.hbm [resolvable:$true] %s7519_s17 }
  0x1b   : > { %vm305_vm2 = vcmp.ge.f32.partialorder %v251_v0, 0.0  ;;  %v359_v3 = vmul.f32 0.2, %v251_v0  ;;  %vm302_vm3 = vcmp.ge.f32.partialorder %v248_v1, 0.0  ;;  %vm303_vm4 = vcmp.ge.f32.partialorder %v249_v2, 0.0  ;;  %v252_v4 = vld [vmem:[%s7655_s9 + $0xe0] sm:$0xff]  ;;  %p7526_p0 = scmp.lt.s32.totalorder %s7520_s17, %s9793_s5 }
  0x1c   : > { %v356_v5 = vmul.f32 0.2, %v248_v1  ;;  %v357_v6 = vmul.f32 0.2, %v249_v2  ;;  %vm306_vm5 = vcmp.ge.f32.partialorder %v252_v4, 0.0  ;;  %v224_v7 = vld [vmem:[%s7655_s9] sm:$0xff] }
  0x1d   : > { %v413_v8 = vsel %vm305_vm2, %v251_v0, %v359_v3  ;;  %v360_v9 = vmul.f32 0.2, %v252_v4  ;;  %v250_v10 = vld [vmem:[%s7655_s9 + $0xd0] sm:$0x3]  ;;  %v225_v11 = vld [vmem:[%s7655_s9 + $0x8] sm:$0xff]  ;;  %vm278_vm6 = vcmp.ge.f32.partialorder %v224_v7, 0.0 }
  0x1e   : > { %469 = vst.msk [vmem:[#allocation2 + $0xd8] sm:$0xff] %vm440_vm0, %v413_v8  ;;  %v410_v12 = vsel %vm302_vm3, %v248_v1, %v356_v5  ;;  %v411_v13 = vsel %vm303_vm4, %v249_v2, %v357_v6  ;;  %vm304_vm7 = vcmp.ge.f32.partialorder %v250_v10, 0.0  ;;  %v358_v14 = vmul.f32 0.2, %v250_v10  ;;  %v253_v15 = vld [vmem:[%s7655_s9 + $0xe8] sm:$0x3] }
  0x1f   : > { %466 = vst.msk [vmem:[#allocation2 + $0xc0] sm:$0xff] %vm440_vm0, %v410_v12  ;;  %v414_v16 = vsel %vm306_vm5, %v252_v4, %v360_v9  ;;  %vm279_vm8 = vcmp.ge.f32.partialorder %v225_v11, 0.0  ;;  %v332_v17 = vmul.f32 0.2, %v224_v7  ;;  %v333_v18 = vmul.f32 0.2, %v225_v11 }
  0x20   : > { %467 = vst.msk [vmem:[#allocation2 + $0xc8] sm:$0xff] %vm440_vm0, %v411_v13  ;;  %v412_v19 = vsel %vm304_vm7, %v250_v10, %v358_v14  ;;  %vm307_vm9 = vcmp.ge.f32.partialorder %v253_v15, 0.0  ;;  %v361_v20 = vmul.f32 0.2, %v253_v15  ;;  %v226_v21 = vld [vmem:[%s7655_s9 + $0x10] sm:$0x3] }
  0x21   : > { %470 = vst.msk [vmem:[#allocation2 + $0xe0] sm:$0xff] %vm440_vm0, %v414_v16  ;;  %v386_v22 = vsel %vm278_vm6, %v224_v7, %v332_v17  ;;  %v387_v23 = vsel %vm279_vm8, %v225_v11, %v333_v18  ;;  %vm280_vm10 = vcmp.ge.f32.partialorder %v226_v21, 0.0  ;;  %v334_v24 = vmul.f32 0.2, %v226_v21  ;;  %v255_v25 = vld [vmem:[%s7655_s9 + $0xf8] sm:$0xff]  ;;  %v228_v29 = vld [vmem:[%s7655_s9 + $0x20] sm:$0xff] }
  0x22   : > { %v227_v26 = vld [vmem:[%s7655_s9 + $0x18] sm:$0xff]  ;;  %468 = vst.msk [vmem:[#allocation2 + $0xd0] sm:$0x3] %vm443_vm1, %v412_v19  ;;  %v415_v27 = vsel %vm307_vm9, %v253_v15, %v361_v20  ;;  %vm309_vm11 = vcmp.ge.f32.partialorder %v255_v25, 0.0  ;;  %v363_v28 = vmul.f32 0.2, %v255_v25 }
  0x23   : > { %441 = vst.msk [vmem:[#allocation2] sm:$0xff] %vm440_vm0, %v386_v22  ;;  %v388_v30 = vsel %vm280_vm10, %v226_v21, %v334_v24  ;;  %vm281_vm12 = vcmp.ge.f32.partialorder %v227_v26, 0.0  ;;  %vm282_vm13 = vcmp.ge.f32.partialorder %v228_v29, 0.0  ;;  %v335_v31 = vmul.f32 0.2, %v227_v26  ;;  %v254_v32 = vld [vmem:[%s7655_s9 + $0xf0] sm:$0xff] }
  0x24   : > { %442 = vst.msk [vmem:[#allocation2 + $0x8] sm:$0xff] %vm440_vm0, %v387_v23  ;;  %v417_v33 = vsel %vm309_vm11, %v255_v25, %v363_v28  ;;  %v336_v34 = vmul.f32 0.2, %v228_v29  ;;  %vm308_vm14 = vcmp.ge.f32.partialorder %v254_v32, 0.0  ;;  %v362_v35 = vmul.f32 0.2, %v254_v32 }
  0x25   : > { %v931_v36 = vld [vmem:[#allocation2 + $0xd8] sm:$0xff]  ;;  %471 = vst.msk [vmem:[#allocation2 + $0xe8] sm:$0x3] %vm443_vm1, %v415_v27  ;;  %v389_v37 = vsel %vm281_vm12, %v227_v26, %v335_v31  ;;  %v256_v38 = vld [vmem:[%s7655_s9 + $0x100] sm:$0x3]  ;;  %v258_v39 = vld [vmem:[%s7655_s9 + $0x110] sm:$0xff] }
  0x26   : > { %v7681_v40 = vpack.c.bf16 %v931_v36, %v931_v36  ;;  %444 = vst.msk [vmem:[#allocation2 + $0x10] sm:$0x3] %vm443_vm1, %v388_v30  ;;  %v390_v41 = vsel %vm282_vm13, %v228_v29, %v336_v34  ;;  %vm310_vm15 = vcmp.ge.f32.partialorder %v256_v38, 0.0  ;;  %v230_v42 = vld [vmem:[%s7655_s9 + $0x30] sm:$0xff]  ;;  %v231_v43 = vld [vmem:[%s7655_s9 + $0x38] sm:$0xff]  ;;  %v416_v45 = vsel %vm308_vm14, %v254_v32, %v362_v35  ;;  %v257_v60 = vld [vmem:[%s7655_s9 + $0x108] sm:$0xff] }
  0x27   : > { %v609_v44 = vld [vmem:[#allocation2 + $0xc1] sm:$0xff]  ;;  %473 = vst.msk [vmem:[#allocation2 + $0xf8] sm:$0xff] %vm440_vm0, %v417_v33  ;;  %v364_v46 = vmul.f32 0.2, %v256_v38  ;;  %vm312_vm2 = vcmp.ge.f32.partialorder %v258_v39, 0.0  ;;  %vm284_vm3 = vcmp.ge.f32.partialorder %v230_v42, 0.0 }
  0x28   : > { %1043 = vrot.lane.b32.xlu1 %v7681_v40, %s7569_s10  ;;  %v641_v47 = vpack.c.bf16 %v609_v44, %v609_v44  ;;  %445 = vst.msk [vmem:[#allocation2 + $0x18] sm:$0xff] %vm440_vm0, %v389_v37  ;;  %v366_v48 = vmul.f32 0.2, %v258_v39  ;;  %v932_v49 = vld [vmem:[#allocation2 + $0xe0] sm:$0xff]  ;;  %vm285_vm4 = vcmp.ge.f32.partialorder %v231_v43, 0.0  ;;  %vm311_vm5 = vcmp.ge.f32.partialorder %v257_v60, 0.0 }
  0x29   : > { %446 = vst.msk [vmem:[#allocation2 + $0x20] sm:$0xff] %vm440_vm0, %v390_v41  ;;  %v418_v50 = vsel %vm310_vm15, %v256_v38, %v364_v46  ;;  %v338_v51 = vmul.f32 0.2, %v230_v42  ;;  %v339_v53 = vmul.f32 0.2, %v231_v43  ;;  %v610_v54 = vld [vmem:[#allocation2 + $0xc9] sm:$0xff]  ;;  %v7695_v57 = vpack.c.bf16 %v932_v49, %v932_v49 }
  0x2a   : > { %721 = vrot.lane.b32.xlu0 %v641_v47, %s7569_s10  ;;  %472 = vst.msk [vmem:[#allocation2 + $0xf0] sm:$0xff] %vm440_vm0, %v416_v45  ;;  %v420_v52 = vsel %vm312_vm2, %v258_v39, %v366_v48  ;;  %v259_v61 = vld [vmem:[%s7655_s9 + $0x118] sm:$0x3]  ;;  %v365_v62 = vmul.f32 0.2, %v257_v60  ;;  %v642_v0 = vpack.c.bf16 %v610_v54, %v610_v54  ;;  %v261_v11 = vld [vmem:[%s7655_s9 + $0x128] sm:$0xff] }
  0x2b   : > { %v593_v55 = vld [vmem:[#allocation2 + $0x1] sm:$0xff]  ;;  %474 = vst.msk [vmem:[#allocation2 + $0x100] sm:$0x3] %vm443_vm1, %v418_v50  ;;  %v392_v56 = vsel %vm284_vm3, %v230_v42, %v338_v51  ;;  %v393_v59 = vsel %vm285_vm4, %v231_v43, %v339_v53  ;;  %v367_v63 = vmul.f32 0.2, %v259_v61  ;;  %vm313_vm6 = vcmp.ge.f32.partialorder %v259_v61, 0.0 }
  0x2c   : > { %v625_v58 = vpack.c.bf16 %v593_v55, %v593_v55  ;;  %476 = vst.msk [vmem:[#allocation2 + $0x110] sm:$0xff] %vm440_vm0, %v420_v52  ;;  %v229_v1 = vld [vmem:[%s7655_s9 + $0x28] sm:$0x3]  ;;  %v419_v3 = vsel %vm311_vm5, %v257_v60, %v365_v62  ;;  %v611_v9 = vld [vmem:[#allocation2 + $0xd9] sm:$0xff]  ;;  %v234_v13 = vld [vmem:[%s7655_s9 + $0x50] sm:$0xff]  ;;  %vm315_vm8 = vcmp.ge.f32.partialorder %v261_v11, 0.0 }
  0x2d   : > { %448 = vst.msk [vmem:[#allocation2 + $0x30] sm:$0xff] %vm440_vm0, %v392_v56  ;;  %v594_v2 = vld [vmem:[#allocation2 + $0x9] sm:$0xff]  ;;  %v421_v4 = vsel %vm313_vm6, %v259_v61, %v367_v63  ;;  %vm283_vm7 = vcmp.ge.f32.partialorder %v229_v1, 0.0  ;;  %v337_v5 = vmul.f32 0.2, %v229_v1  ;;  %v612_v6 = vld [vmem:[#allocation2 + $0xe1] sm:$0xff]  ;;  %v643_v16 = vpack.c.bf16 %v611_v9, %v611_v9 }
  0x2e   : > { %689 = vrot.lane.b32.xlu2 %v625_v58, %s7569_s10  ;;  %449 = vst.msk [vmem:[#allocation2 + $0x38] sm:$0xff] %vm440_vm0, %v393_v59  ;;  %v626_v7 = vpack.c.bf16 %v594_v2, %v594_v2  ;;  %v644_v10 = vpack.c.bf16 %v612_v6, %v612_v6  ;;  %v233_v12 = vld [vmem:[%s7655_s9 + $0x48] sm:$0xff]  ;;  %v369_v14 = vmul.f32 0.2, %v261_v11  ;;  %vm288_vm10 = vcmp.ge.f32.partialorder %v234_v13, 0.0  ;;  %v934_v24 = vld [vmem:[#allocation2 + $0xf8] sm:$0xff] }
  0x2f   : > { %475 = vst.msk [vmem:[#allocation2 + $0x108] sm:$0xff] %vm440_vm0, %v419_v3  ;;  %v391_v8 = vsel %vm283_vm7, %v229_v1, %v337_v5  ;;  %v341_v15 = vmul.f32 0.2, %v233_v12  ;;  %vm287_vm9 = vcmp.ge.f32.partialorder %v233_v12, 0.0  ;;  %v342_v19 = vmul.f32 0.2, %v234_v13 }
  0x30   : > { %1045 = vrot.lane.b32.xlu1 %v7695_v57, %s7569_s10  ;;  %477 = vst.msk [vmem:[#allocation2 + $0x118] sm:$0x3] %vm443_vm1, %v421_v4  ;;  %v423_v18 = vsel %vm315_vm8, %v261_v11, %v369_v14  ;;  %v595_v21 = vld [vmem:[#allocation2 + $0x19] sm:$0xff]  ;;  %v262_v27 = vld [vmem:[%s7655_s9 + $0x130] sm:$0x3]  ;;  %v7724_v32 = vpack.c.bf16 %v934_v24, %v934_v24  ;;  %v237_v44 = vld [vmem:[%s7655_s9 + $0x68] sm:$0xff] }
  0x31   : > { %447 = vst.msk [vmem:[#allocation2 + $0x28] sm:$0x3] %vm443_vm1, %v391_v8  ;;  %v933_v17 = vld [vmem:[#allocation2 + $0xf0] sm:$0xff]  ;;  %v395_v20 = vsel %vm287_vm9, %v233_v12, %v341_v15  ;;  %v396_v22 = vsel %vm288_vm10, %v234_v13, %v342_v19  ;;  %v627_v25 = vpack.c.bf16 %v595_v21, %v595_v21  ;;  %v260_v26 = vld [vmem:[%s7655_s9 + $0x120] sm:$0xff]  ;;  %v370_v30 = vmul.f32 0.2, %v262_v27 }
  0x32   : > { %723 = vrot.lane.b32.xlu0 %v642_v0, %s7569_s10  ;;  %479 = vst.msk [vmem:[#allocation2 + $0x128] sm:$0xff] %vm440_vm0, %v423_v18  ;;  %v7718_v23 = vpack.c.bf16 %v933_v17, %v933_v17  ;;  %v232_v28 = vld [vmem:[%s7655_s9 + $0x40] sm:$0x3]  ;;  %v368_v29 = vmul.f32 0.2, %v260_v26  ;;  %vm314_vm11 = vcmp.ge.f32.partialorder %v260_v26, 0.0 }
  0x33   : > { %451 = vst.msk [vmem:[#allocation2 + $0x48] sm:$0xff] %vm440_vm0, %v395_v20  ;;  %v340_v31 = vmul.f32 0.2, %v232_v28  ;;  %vm316_vm12 = vcmp.ge.f32.partialorder %v262_v27, 0.0  ;;  %vm286_vm13 = vcmp.ge.f32.partialorder %v232_v28, 0.0  ;;  %v614_v37 = vld [vmem:[#allocation2 + $0xf9] sm:$0xff] }
  0x34   : > { %452 = vst.msk [vmem:[#allocation2 + $0x50] sm:$0xff] %vm440_vm0, %v396_v22  ;;  %v422_v34 = vsel %vm314_vm11, %v260_v26, %v368_v29  ;;  %v424_v35 = vsel %vm316_vm12, %v262_v27, %v370_v30  ;;  %v613_v39 = vld [vmem:[#allocation2 + $0xf1] sm:$0xff]  ;;  %v646_v41 = vpack.c.bf16 %v614_v37, %v614_v37  ;;  %v264_v42 = vld [vmem:[%s7655_s9 + $0x140] sm:$0xff]  ;;  %v345_v47 = vmul.f32 0.2, %v237_v44  ;;  %s6141_s15 = sshll.u32 %s9542_s7, 4  ;;  %s6142_s15 = int_to_ptr.vmem [resolvable:$true] %s6141_s15 }
  0x35   : > { %v394_v36 = vsel %vm286_vm13, %v232_v28, %v340_v31  ;;  %478 = vst.msk [vmem:[#allocation2 + $0x120] sm:$0xff] %vm440_vm0, %v422_v34  ;;  %v236_v43 = vld [vmem:[%s7655_s9 + $0x60] sm:$0xff]  ;;  %v372_v45 = vmul.f32 0.2, %v264_v42  ;;  %v645_v48 = vpack.c.bf16 %v613_v39, %v613_v39  ;;  %vm318_vm14 = vcmp.ge.f32.partialorder %v264_v42, 0.0  ;;  %v597_v53 = vld [vmem:[#allocation2 + $0x31] sm:$0xff] }
  0x36   : > { %691 = vrot.lane.b32.xlu2 %v626_v7, %s7569_s10  ;;  %480 = vst.msk [vmem:[#allocation2 + $0x130] sm:$0x3] %vm443_vm1, %v424_v35  ;;  %v344_v46 = vmul.f32 0.2, %v236_v43  ;;  %vm290_vm15 = vcmp.ge.f32.partialorder %v236_v43, 0.0  ;;  %vm291_vm2 = vcmp.ge.f32.partialorder %v237_v44, 0.0  ;;  %v7745_v56 = vpack.c.bf16 %v597_v53, %v597_v53 }
  0x37   : > { %450 = vst.msk [vmem:[#allocation2 + $0x40] sm:$0x3] %vm443_vm1, %v394_v36  ;;  %v935_v49 = vld [vmem:[#allocation2 + $0x108] sm:$0xff]  ;;  %v426_v50 = vsel %vm318_vm14, %v264_v42, %v372_v45  ;;  %v399_v52 = vsel %vm291_vm2, %v237_v44, %v345_v47  ;;  %v936_v55 = vld [vmem:[#allocation2 + $0x110] sm:$0xff]  ;;  %v263_v58 = vld [vmem:[%s7655_s9 + $0x138] sm:$0xff]  ;;  %s7521_s23 = scalar_lea.hbm %s7520_s17, 256 }
  0x38   : > { %727 = vrot.lane.b32.xlu1 %v644_v10, %s7569_s10  ;;  %v596_v33 = vld [vmem:[#allocation2 + $0x21] sm:$0xff]  ;;  %v398_v51 = vsel %vm290_vm15, %v236_v43, %v344_v46  ;;  %482 = vst.msk [vmem:[#allocation2 + $0x140] sm:$0xff] %vm440_vm0, %v426_v50  ;;  %v7742_v54 = vpack.c.bf16 %v935_v49, %v935_v49  ;;  %v235_v60 = vld [vmem:[%s7655_s9 + $0x58] sm:$0x3]  ;;  %v371_v61 = vmul.f32 0.2, %v263_v58  ;;  %v968_v0 = vpack.c.bf16 %v936_v55, %v936_v55  ;;  %p7522_p11 = scmp.ne.s32.totalorder %s7520_s17, %s7521_s23 }
  0x39   : > { %v628_v38 = vpack.c.bf16 %v596_v33, %v596_v33  ;;  %454 = vst.msk [vmem:[#allocation2 + $0x60] sm:$0xff] %vm440_vm0, %v398_v51  ;;  %v265_v59 = vld [vmem:[%s7655_s9 + $0x148] sm:$0x3]  ;;  %v343_v63 = vmul.f32 0.2, %v235_v60  ;;  %vm317_vm3 = vcmp.ge.f32.partialorder %v263_v58, 0.0 }
  0x3a   : > { %725 = vrot.lane.b32.xlu0 %v643_v16, %s7569_s10  ;;  %455 = vst.msk [vmem:[#allocation2 + $0x68] sm:$0xff] %vm440_vm0, %v399_v52  ;;  %v373_v62 = vmul.f32 0.2, %v265_v59  ;;  %vm319_vm4 = vcmp.ge.f32.partialorder %v265_v59, 0.0  ;;  %vm289_vm5 = vcmp.ge.f32.partialorder %v235_v60, 0.0  ;;  %v425_v2 = vsel %vm317_vm3, %v263_v58, %v371_v61  ;;  %v616_v5 = vld [vmem:[#allocation2 + $0x111] sm:$0xff]  ;;  %p7523_p12 = pnand %p7522_p11, %p7640_p5 }
  0x3b   : > { %v397_v4 = vsel %vm289_vm5, %v235_v60, %v343_v63  ;;  %481 = vst.msk [vmem:[#allocation2 + $0x138] sm:$0xff] %vm440_vm0, %v425_v2  ;;  %v615_v7 = vld [vmem:[#allocation2 + $0x109] sm:$0xff]  ;;  %v648_v8 = vpack.c.bf16 %v616_v5, %v616_v5  ;;  %v267_v9 = vld [vmem:[%s7655_s9 + $0x158] sm:$0xff]  ;;  %v240_v11 = vld [vmem:[%s7655_s9 + $0x80] sm:$0xff]  ;;  %vm560_vm15 = vcmask 519168   ;;  %s7525_s6 = scalar_lea.hbm %s9793_s5, 512 }
  0x3c   : > { %v427_v3 = vsel %vm319_vm4, %v265_v59, %v373_v62  ;;  %453 = vst.msk [vmem:[#allocation2 + $0x58] sm:$0x3] %vm443_vm1, %v397_v4  ;;  %v239_v10 = vld [vmem:[%s7655_s9 + $0x78] sm:$0xff]  ;;  %v375_v12 = vmul.f32 0.2, %v267_v9  ;;  %v647_v15 = vpack.c.bf16 %v615_v7, %v615_v7  ;;  %vm321_vm6 = vcmp.ge.f32.partialorder %v267_v9, 0.0  ;;  %p7524_p13 = pneg %p7523_p12  ;;  %p7527_p1 = scmp.lt.s32.totalorder %s7525_s6, %s7521_s23 }
  0x3d   : > { %483 = vst.msk [vmem:[#allocation2 + $0x148] sm:$0x3] %vm443_vm1, %v427_v3  ;;  %v347_v13 = vmul.f32 0.2, %v239_v10  ;;  %v348_v14 = vmul.f32 0.2, %v240_v11 }
  0x3e   : > { %1047 = vrot.lane.b32.xlu2 %v7718_v23, %s7569_s10  ;;  %v598_v1 = vld [vmem:[#allocation2 + $0x39] sm:$0xff]  ;;  %vm293_vm7 = vcmp.ge.f32.partialorder %v239_v10, 0.0  ;;  %vm294_vm8 = vcmp.ge.f32.partialorder %v240_v11, 0.0  ;;  %v429_v17 = vsel %vm321_vm6, %v267_v9, %v375_v12  ;;  %v599_v20 = vld [vmem:[#allocation2 + $0x49] sm:$0xff]  ;;  %580 = vst.msk [vmem:[#allocation3 + $0x17c] sm:$0xf] %vm560_vm15, %v7695_v57  ;;  %p7528_p2 = por %p7527_p1, %p7526_p0 }
  0x3f   : > { %v7757_v6 = vpack.c.bf16 %v598_v1, %v598_v1  ;;  %v937_v16 = vld [vmem:[#allocation2 + $0x120] sm:$0xff]  ;;  %v401_v18 = vsel %vm293_vm7, %v239_v10, %v347_v13  ;;  %v402_v19 = vsel %vm294_vm8, %v240_v11, %v348_v14  ;;  %485 = vst.msk [vmem:[#allocation2 + $0x158] sm:$0xff] %vm440_vm0, %v429_v17  ;;  %v938_v22 = vld [vmem:[#allocation2 + $0x128] sm:$0xff]  ;;  %v7772_v24 = vpack.c.bf16 %v599_v20, %v599_v20  ;;  %v238_v27 = vld [vmem:[%s7655_s9 + $0x70] sm:$0x3] }
  0x40   : > { %693 = vrot.lane.b32.xlu1 %v627_v25, %s7569_s10  ;;  %457 = vst.msk [vmem:[#allocation2 + $0x78] sm:$0xff] %vm440_vm0, %v401_v18  ;;  %v7769_v21 = vpack.c.bf16 %v937_v16, %v937_v16  ;;  %v266_v25 = vld [vmem:[%s7655_s9 + $0x150] sm:$0xff]  ;;  %v268_v26 = vld [vmem:[%s7655_s9 + $0x160] sm:$0x3]  ;;  %v346_v30 = vmul.f32 0.2, %v238_v27  ;;  %v970_v31 = vpack.c.bf16 %v938_v22, %v938_v22  ;;  %p7529_p3 = pnand %p7528_p2, %p7524_p13 }
  0x41   : > { %458 = vst.msk [vmem:[#allocation2 + $0x80] sm:$0xff] %vm440_vm0, %v402_v19  ;;  %v374_v28 = vmul.f32 0.2, %v266_v25  ;;  %v376_v29 = vmul.f32 0.2, %v268_v26  ;;  %vm320_vm9 = vcmp.ge.f32.partialorder %v266_v25, 0.0 }
  0x42   : > { %1049 = vrot.lane.b32.xlu0 %v7724_v32, %s7569_s10  ;;  %vm322_vm10 = vcmp.ge.f32.partialorder %v268_v26, 0.0  ;;  %vm292_vm11 = vcmp.ge.f32.partialorder %v238_v27, 0.0  ;;  %v618_v37 = vld [vmem:[#allocation2 + $0x129] sm:$0xff]  ;;  %v7296_v39 = vld [vmem:[%s9789_s1 + $0x38] sm:$0xff]  ;;  %v601_v58 = vld [vmem:[#allocation2 + $0x61] sm:$0xff] }
  0x43   : > { %v600_v33 = vld [vmem:[#allocation2 + $0x51] sm:$0xff]  ;;  %v428_v34 = vsel %vm320_vm9, %v266_v25, %v374_v28  ;;  %v430_v35 = vsel %vm322_vm10, %v268_v26, %v376_v29  ;;  %v400_v36 = vsel %vm292_vm11, %v238_v27, %v346_v30  ;;  %v650_v43 = vpack.c.bf16 %v618_v37, %v618_v37  ;;  %2712 = vmatpush.bf16.msra.mxu0 %v7296_v39  ;;  %v7294_v60 = vld [vmem:[%s9789_s1 + $0x28] sm:$0xff]  ;;  %v940_v62 = vld [vmem:[#allocation2 + $0x140] sm:$0xff] }
  0x44   : > { %484 = vst.msk [vmem:[#allocation2 + $0x150] sm:$0xff] %vm440_vm0, %v428_v34  ;;  %v7295_v42 = vld [vmem:[%s9789_s1 + $0x30] sm:$0xff]  ;;  %7442 = vmatpush.bf16.msra.mxu2 %v7296_v39  ;;  %v243_v46 = vld [vmem:[%s7655_s9 + $0x98] sm:$0xff]  ;;  %v7293_v63 = vld [vmem:[%s9789_s1 + $0x20] sm:$0xff]  ;;  %v633_v1 = vpack.c.bf16 %v601_v58, %v601_v58  ;;  %v972_v10 = vpack.c.bf16 %v940_v62, %v940_v62  ;;  %vm785_vm9 = vcmask 1043968  }
  0x45   : > { %486 = vst.msk [vmem:[#allocation2 + $0x160] sm:$0x3] %vm443_vm1, %v430_v35  ;;  %v270_v44 = vld [vmem:[%s7655_s9 + $0x170] sm:$0xff]  ;;  %v351_v49 = vmul.f32 0.2, %v243_v46  ;;  %vm297_vm14 = vcmp.ge.f32.partialorder %v243_v46, 0.0 }
  0x46   : > { %695 = vrot.lane.b32.xlu2 %v628_v38, %s7569_s10  ;;  %v7784_v38 = vpack.c.bf16 %v600_v33, %v600_v33  ;;  %456 = vst.msk [vmem:[#allocation2 + $0x70] sm:$0x3] %vm443_vm1, %v400_v36  ;;  %v242_v45 = vld [vmem:[%s7655_s9 + $0x90] sm:$0xff]  ;;  %v378_v47 = vmul.f32 0.2, %v270_v44  ;;  %vm324_vm12 = vcmp.ge.f32.partialorder %v270_v44, 0.0 }
  0x47   : > { %vm296_vm13 = vcmp.ge.f32.partialorder %v242_v45, 0.0  ;;  %v939_v51 = vld [vmem:[#allocation2 + $0x138] sm:$0xff]  ;;  %v405_v55 = vsel %vm297_vm14, %v243_v46, %v351_v49  ;;  %2713 = vmatpush.bf16.msra.mxu0 %v7295_v42  ;;  %v269_v3 = vld [vmem:[%s7655_s9 + $0x168] sm:$0xff]  ;;  %579 = vst.msk [vmem:[#allocation3 + $0x168] sm:$0xf] %vm560_vm15, %v7681_v40  ;;  %v7303_v17 = vld [vmem:[%s9789_s1 + $0x70] sm:$0xff] }
  0x48   : > { %731 = vrot.lane.b32.xlu1 %v646_v41, %s7569_s10  ;;  %v617_v41 = vld [vmem:[#allocation2 + $0x121] sm:$0xff]  ;;  %v432_v52 = vsel %vm324_vm12, %v270_v44, %v378_v47  ;;  %7443 = vmatpush.bf16.msra.mxu2 %v7295_v42  ;;  %v7802_v59 = vpack.c.bf16 %v939_v51, %v939_v51  ;;  %v7304_v61 = vld [vmem:[%s9789_s1 + $0x78] sm:$0xff]  ;;  %461 = vst.msk [vmem:[#allocation2 + $0x98] sm:$0xff] %vm440_vm0, %v405_v55  ;;  %v377_v7 = vmul.f32 0.2, %v269_v3  ;;  %vm323_vm2 = vcmp.ge.f32.partialorder %v269_v3, 0.0 }
  0x49   : > { %v649_v50 = vpack.c.bf16 %v617_v41, %v617_v41  ;;  %488 = vst.msk [vmem:[#allocation2 + $0x170] sm:$0xff] %vm440_vm0, %v432_v52  ;;  %7450 = vmatpush.bf16.msra.mxu3 %v7304_v61  ;;  %v271_v4 = vld [vmem:[%s7655_s9 + $0x178] sm:$0x3]  ;;  %v241_v5 = vld [vmem:[%s7655_s9 + $0x88] sm:$0x3]  ;;  %2801 = vmatpush.bf16.msra.mxu1 %v7304_v61  ;;  %v7291_v18 = vld [vmem:[%s9789_s1 + $0x10] sm:$0xff] }
  0x4a   : > { %729 = vrot.lane.b32.xlu0 %v645_v48, %s7569_s10  ;;  %v350_v48 = vmul.f32 0.2, %v242_v45  ;;  %v349_v9 = vmul.f32 0.2, %v241_v5  ;;  %vm325_vm3 = vcmp.ge.f32.partialorder %v271_v4, 0.0  ;;  %vm295_vm4 = vcmp.ge.f32.partialorder %v241_v5, 0.0 }
  0x4b   : > { %2714 = vmatpush.bf16.msra.mxu0 %v7294_v60  ;;  %v431_v11 = vsel %vm323_vm2, %v269_v3, %v377_v7  ;;  %v620_v14 = vld [vmem:[#allocation2 + $0x141] sm:$0xff]  ;;  %v7292_v40 = vld [vmem:[%s9789_s1 + $0x18] sm:$0xff]  ;;  %581 = vst.msk [vmem:[#allocation3 + $0x190] sm:$0xf] %vm560_vm15, %v7718_v23  ;;  %v246_v28 = vld [vmem:[%s7655_s9 + $0xb0] sm:$0xff]  ;;  %vm3319_vm14 = vcmask 516096  }
  0x4c   : > { %v404_v53 = vsel %vm296_vm13, %v242_v45, %v350_v48  ;;  %7444 = vmatpush.bf16.msra.mxu2 %v7294_v60  ;;  %v403_v13 = vsel %vm295_vm4, %v241_v5, %v349_v9  ;;  %487 = vst.msk [vmem:[#allocation2 + $0x168] sm:$0xff] %vm440_vm0, %v431_v11  ;;  %v7302_v19 = vld [vmem:[%s9789_s1 + $0x68] sm:$0xff]  ;;  %v652_v22 = vpack.c.bf16 %v620_v14, %v620_v14  ;;  %vm300_vm7 = vcmp.ge.f32.partialorder %v246_v28, 0.0  ;;  %v941_v23 = vld [vmem:[#allocation2 + $0x150] sm:$0xff]  ;;  %v512_v37 = vld [vmem:[#allocation2 + $0xc0] sm:$0xff] }
  0x4d   : > { %460 = vst.msk [vmem:[#allocation2 + $0x90] sm:$0xff] %vm440_vm0, %v404_v53  ;;  %v602_v57 = vld [vmem:[#allocation2 + $0x69] sm:$0xff]  ;;  %7451 = vmatpush.bf16.msra.mxu3 %v7303_v17  ;;  %2802 = vmatpush.bf16.msra.mxu1 %v7303_v17  ;;  %v973_v39 = vpack.c.bf16 %v941_v23, %v941_v23  ;;  %v942_v44 = vld [vmem:[#allocation2 + $0x158] sm:$0xff]  ;;  %v244_v47 = vld [vmem:[%s7655_s9 + $0xa0] sm:$0x3] }
  0x4e   : > { %1051 = vrot.lane.b32.xlu2 %v7742_v54, %s7569_s10  ;;  %v7828_v16 = vpack.c.bf16 %v602_v57, %v602_v57  ;;  %459 = vst.msk [vmem:[#allocation2 + $0x88] sm:$0x3] %vm443_vm1, %v403_v13  ;;  %v497_v20 = vld [vmem:[#allocation2 + $0x8] sm:$0xff]  ;;  %v7289_v48 = vld [vmem:[%s9789_s1] sm:$0xff]  ;;  %v7300_v49 = vld [vmem:[%s9789_s1 + $0x58] sm:$0xff]  ;;  %v974_v51 = vpack.c.bf16 %v942_v44, %v942_v44  ;;  %vm298_vm8 = vcmp.ge.f32.partialorder %v244_v47, 0.0 }
  0x4f   : > { %2715 = vmatpush.bf16.msra.mxu0 %v7293_v63  ;;  %v529_v25 = vpack.c.bf16 %v497_v20, %v497_v20  ;;  %v273_v26 = vld [vmem:[%s7655_s9 + $0x188] sm:$0xff]  ;;  %582 = vst.msk [vmem:[#allocation3 + $0x1a4] sm:$0xf] %vm560_vm15, %v7724_v32  ;;  %v603_v32 = vld [vmem:[#allocation2 + $0x79] sm:$0xff]  ;;  %v7299_v62 = vld [vmem:[%s9789_s1 + $0x50] sm:$0xff] }
  0x50   : > { %697 = vrot.lane.b32.xlu1 %v7745_v56, %s7569_s10  ;;  %7445 = vmatpush.bf16.msra.mxu2 %v7293_v63  ;;  %v245_v27 = vld [vmem:[%s7655_s9 + $0xa8] sm:$0xff]  ;;  %v381_v29 = vmul.f32 0.2, %v273_v26  ;;  %vm327_vm5 = vcmp.ge.f32.partialorder %v273_v26, 0.0  ;;  %583 = vst.msk [vmem:[#allocation3 + $0x1b8] sm:$0xf] %vm560_vm15, %v7742_v54  ;;  %v635_v46 = vpack.c.bf16 %v603_v32, %v603_v32 }
  0x51   : > { %v353_v30 = vmul.f32 0.2, %v245_v27  ;;  %562 = vst.msk [vmem:[#allocation3 + $0x14] sm:$0xf] %vm560_vm15, %v529_v25  ;;  %vm299_vm6 = vcmp.ge.f32.partialorder %v245_v27, 0.0  ;;  %7452 = vmatpush.bf16.msra.mxu3 %v7302_v19  ;;  %v7290_v41 = vld [vmem:[%s9789_s1 + $0x8] sm:$0xff]  ;;  %2803 = vmatpush.bf16.msra.mxu1 %v7302_v19 }
  0x52   : > { %1053 = vrot.lane.b32.xlu0 %v968_v0, %s7569_s10  ;;  %v496_v0 = vld [vmem:[#allocation2] sm:$0xff]  ;;  %v435_v34 = vsel %vm327_vm5, %v273_v26, %v381_v29  ;;  %585 = vst.msk [vmem:[#allocation3 + $0x1e0] sm:$0xf] %vm560_vm15, %v7769_v21  ;;  %v835_v60 = vld [vmem:[#allocation2 + $0xca] sm:$0xff]  ;;  %v247_v13 = vld [vmem:[%s7655_s9 + $0xb8] sm:$0x3] }
  0x53   : > { %v528_v2 = vpack.c.bf16 %v496_v0, %v496_v0  ;;  %2716 = vmatpush.bf16.msra.mxu0 %v7292_v40  ;;  %v407_v35 = vsel %vm299_vm6, %v245_v27, %v353_v30  ;;  %491 = vst.msk [vmem:[#allocation2 + $0x188] sm:$0xff] %vm440_vm0, %v435_v34  ;;  %v7301_v54 = vld [vmem:[%s9789_s1 + $0x60] sm:$0xff]  ;;  %v943_v52 = vld [vmem:[#allocation2 + $0x168] sm:$0xff]  ;;  %v867_v63 = vpack.c.bf16 %v835_v60, %v835_v60  ;;  %v944_v11 = vld [vmem:[#allocation2 + $0x170] sm:$0xff]  ;;  %vm301_vm11 = vcmp.ge.f32.partialorder %v247_v13, 0.0 }
  0x54   : > { %7446 = vmatpush.bf16.msra.mxu2 %v7292_v40  ;;  %463 = vst.msk [vmem:[#allocation2 + $0xa8] sm:$0xff] %vm440_vm0, %v407_v35  ;;  %v834_v42 = vld [vmem:[#allocation2 + $0xc2] sm:$0xff]  ;;  %v975_v55 = vpack.c.bf16 %v943_v52, %v943_v52  ;;  %v622_v58 = vld [vmem:[#allocation2 + $0x159] sm:$0xff]  ;;  %v976_v40 = vpack.c.bf16 %v944_v11, %v944_v11  ;;  %v7311_v52 = vld [vmem:[%s9789_s1 + $0xb0] sm:$0xff] }
  0x55   : > { %561 = vst.msk [vmem:[#allocation3] sm:$0xf] %vm560_vm15, %v528_v2  ;;  %v866_v45 = vpack.c.bf16 %v834_v42, %v834_v42  ;;  %7453 = vmatpush.bf16.msra.mxu3 %v7301_v54  ;;  %2804 = vmatpush.bf16.msra.mxu1 %v7301_v54  ;;  %v513_v61 = vld [vmem:[#allocation2 + $0xc8] sm:$0xff]  ;;  %v654_v2 = vpack.c.bf16 %v622_v58, %v622_v58  ;;  %v272_v3 = vld [vmem:[%s7655_s9 + $0x180] sm:$0xff]  ;;  %v7312_v19 = vld [vmem:[%s9789_s1 + $0xb8] sm:$0xff] }
  0x56   : > { %699 = vrot.lane.b32.xlu2 %v7757_v6, %s7569_s10  ;;  %587 = vst.msk [vmem:[#allocation3 + $0x208] sm:$0xf] %vm560_vm15, %v7802_v59  ;;  %v545_v0 = vpack.c.bf16 %v513_v61, %v513_v61  ;;  %v380_v5 = vmul.f32 0.2, %v272_v3  ;;  %vm326_vm10 = vcmp.ge.f32.partialorder %v272_v3, 0.0  ;;  %v7297_v57 = vld [vmem:[%s9789_s1 + $0x40] sm:$0xff] }
  0x57   : > { %2717 = vmatpush.bf16.msra.mxu0 %v7291_v18  ;;  %898 = vst.msk [vmem:[#allocation3 + $0x144] sm:$0xf] %vm560_vm15, %v866_v45  ;;  %v836_v14 = vld [vmem:[#allocation2 + $0xda] sm:$0xff]  ;;  %v837_v29 = vld [vmem:[#allocation2 + $0xe2] sm:$0xff] }
  0x58   : > { %735 = vrot.lane.b32.xlu1 %v648_v8, %s7569_s10  ;;  %v379_v8 = vmul.f32 0.2, %v271_v4  ;;  %7447 = vmatpush.bf16.msra.mxu2 %v7291_v18  ;;  %589 = vst.msk [vmem:[#allocation3 + $0x230] sm:$0xf] %vm560_vm15, %v973_v39  ;;  %v868_v18 = vpack.c.bf16 %v836_v14, %v836_v14  ;;  %v7320_v20 = vld [vmem:[%s9789_s1 + $0xf8] sm:$0xff]  ;;  %v499_v30 = vld [vmem:[#allocation2 + $0x20] sm:$0xff] }
  0x59   : > { %7454 = vmatpush.bf16.msra.mxu3 %v7300_v49  ;;  %591 = vst.msk [vmem:[#allocation3 + $0x258] sm:$0xf] %vm560_vm15, %v975_v55  ;;  %2805 = vmatpush.bf16.msra.mxu1 %v7300_v49  ;;  %v7923_v23 = vpack.c.bf16 %v499_v30, %v499_v30  ;;  %v623_v34 = vld [vmem:[#allocation2 + $0x169] sm:$0xff]  ;;  %v838_v49 = vld [vmem:[#allocation2 + $0xf2] sm:$0xff]  ;;  %v1238_v30 = vld [vmem:[#allocation2 + $0x3a] sm:$0xff] }
  0x5a   : > { %733 = vrot.lane.b32.xlu0 %v647_v15, %s7569_s10  ;;  %v433_v12 = vsel %vm325_vm3, %v271_v4, %v379_v8  ;;  %v619_v15 = vld [vmem:[#allocation2 + $0x139] sm:$0xff]  ;;  %899 = vst.msk [vmem:[#allocation3 + $0x158] sm:$0xf] %vm560_vm15, %v867_v63  ;;  %v7298_v4 = vld [vmem:[%s9789_s1 + $0x48] sm:$0xff]  ;;  %v434_v8 = vsel %vm326_vm10, %v272_v3, %v380_v5  ;;  %v655_v32 = vpack.c.bf16 %v623_v34, %v623_v34  ;;  %v503_v34 = vld [vmem:[#allocation2 + $0x50] sm:$0xff] }
  0x5b   : > { %489 = vst.msk [vmem:[#allocation2 + $0x178] sm:$0x3] %vm443_vm1, %v433_v12  ;;  %v651_v33 = vpack.c.bf16 %v619_v15, %v619_v15  ;;  %2718 = vmatpush.bf16.msra.mxu0 %v7290_v41  ;;  %v355_v15 = vmul.f32 0.2, %v247_v13  ;;  %v1236_v61 = vld [vmem:[#allocation2 + $0x22] sm:$0xff]  ;;  %v501_v63 = vld [vmem:[#allocation2 + $0x38] sm:$0xff] }
  0x5c   : > { %7448 = vmatpush.bf16.msra.mxu2 %v7290_v41  ;;  %578 = vst.msk [vmem:[#allocation3 + $0x154] sm:$0xf] %vm560_vm15, %v545_v0  ;;  %v7956_v3 = vpack.c.bf16 %v501_v63, %v501_v63  ;;  %v843_v63 = vld [vmem:[#allocation2 + $0x12a] sm:$0xff] }
  0x5d   : > { %7455 = vmatpush.bf16.msra.mxu3 %v7299_v62  ;;  %2806 = vmatpush.bf16.msra.mxu1 %v7299_v62  ;;  %490 = vst.msk [vmem:[#allocation2 + $0x180] sm:$0xff] %vm440_vm0, %v434_v8  ;;  %v409_v27 = vsel %vm301_vm11, %v247_v13, %v355_v15  ;;  %v839_v62 = vld [vmem:[#allocation2 + $0xfa] sm:$0xff]  ;;  %v519_v13 = vld [vmem:[#allocation2 + $0x110] sm:$0xff] }
  0x5e   : > { %1055 = vrot.lane.b32.xlu2 %v7769_v21, %s7569_s10  ;;  %v604_v21 = vld [vmem:[#allocation2 + $0x81] sm:$0xff]  ;;  %900 = vst.msk [vmem:[#allocation3 + $0x16c] sm:$0xf] %vm560_vm15, %v868_v18 }
  0x5f   : > { %2719 = vmatpush.bf16.msra.mxu0 %v7289_v48  ;;  %465 = vst.msk [vmem:[#allocation2 + $0xb8] sm:$0x3] %vm443_vm1, %v409_v27  ;;  %v919_v27 = vld [vmem:[#allocation2 + $0x48] sm:$0xff] }
  0x60   : > { %701 = vrot.lane.b32.xlu1 %v7772_v24, %s7569_s10  ;;  %7449 = vmatpush.bf16.msra.mxu2 %v7289_v48  ;;  %564 = vst.msk [vmem:[#allocation3 + $0x3c] sm:$0xf] %vm560_vm15, %v7923_v23 }
  0x61   : > { %7456 = vmatpush.bf16.msra.mxu3 %v7298_v4  ;;  %2807 = vmatpush.bf16.msra.mxu1 %v7298_v4  ;;  %v1235_v4 = vld [vmem:[#allocation2 + $0x1a] sm:$0xff]  ;;  %566 = vst.msk [vmem:[#allocation3 + $0x64] sm:$0xf] %vm560_vm15, %v7956_v3 }
  0x62   : > { %1057 = vrot.lane.b32.xlu0 %v970_v31, %s7569_s10  ;;  %v354_v31 = vmul.f32 0.2, %v246_v28  ;;  %v1267_v8 = vpack.c.bf16 %v1235_v4, %v1235_v4  ;;  %1525 = vst.msk [vmem:[#allocation3 + $0x20] sm:$0xf] %vm560_vm15, %v7956_v3  ;;  %v505_v4 = vld [vmem:[#allocation2 + $0x68] sm:$0xff] }
  0x64   : > { %v408_v36 = vsel %vm300_vm7, %v246_v28, %v354_v31  ;;  %v624_v28 = vld [vmem:[#allocation2 + $0x171] sm:$0xff]  ;;  %2890 = vmatpush.bf16.msrb.mxu2 %v7312_v19 }
  0x65   : > { %464 = vst.msk [vmem:[#allocation2 + $0xb0] sm:$0xff] %vm440_vm0, %v408_v36  ;;  %7457 = vmatpush.bf16.msra.mxu3 %v7297_v57  ;;  %2808 = vmatpush.bf16.msra.mxu1 %v7297_v57  ;;  %v656_v35 = vpack.c.bf16 %v624_v28, %v624_v28  ;;  %v7324_v36 = vld [vmem:[%s9789_s1 + $0x118] sm:$0xff]  ;;  %v840_v19 = vld [vmem:[#allocation2 + $0x10a] sm:$0xff] }
  0x66   : > { %703 = vrot.lane.b32.xlu2 %v7784_v38, %s7569_s10  ;;  %3072 = vmatpush.bf16.msrb.mxu0 %v7324_v36  ;;  %v1237_v36 = vld [vmem:[#allocation2 + $0x32] sm:$0xff] }
  0x68   : > { %739 = vrot.lane.b32.xlu1 %v650_v43, %s7569_s10  ;;  %v544_v43 = vpack.c.bf16 %v512_v37, %v512_v37  ;;  %2891 = vmatpush.bf16.msrb.mxu2 %v7311_v52  ;;  %v842_v52 = vld [vmem:[#allocation2 + $0x122] sm:$0xff] }
  0x69   : > { %2979 = vmatpush.bf16.msrb.mxu3 %v7320_v20  ;;  %v872_v20 = vpack.c.bf16 %v840_v19, %v840_v19 }
  0x6a   : > { %737 = vrot.lane.b32.xlu0 %v649_v50, %s7569_s10  ;;  %577 = vst.msk [vmem:[#allocation3 + $0x140] sm:$0xf] %vm560_vm15, %v544_v43  ;;  %v352_v50 = vmul.f32 0.2, %v244_v47 }
  0x6b   : > { %904 = vst.msk [vmem:[#allocation3 + $0x1bc] sm:$0xf] %vm560_vm15, %v872_v20 }
  0x6c   : > { %v406_v53 = vsel %vm298_vm8, %v244_v47, %v352_v50  ;;  %v607_v42 = vld [vmem:[#allocation2 + $0xa9] sm:$0xff] }
  0x6d   : > { %462 = vst.msk [vmem:[#allocation2 + $0xa0] sm:$0x3] %vm443_vm1, %v406_v53  ;;  %v639_v48 = vpack.c.bf16 %v607_v42, %v607_v42  ;;  %v7319_v53 = vld [vmem:[%s9789_s1 + $0xf0] sm:$0xff] }
  0x6e   : > { %1059 = vrot.lane.b32.xlu2 %v7802_v59, %s7569_s10  ;;  %v7884_v59 = vpack.c.bf16 %v604_v21, %v604_v21  ;;  %v870_v21 = vpack.c.bf16 %v838_v49, %v838_v49  ;;  %2980 = vmatpush.bf16.msrb.mxu3 %v7319_v53  ;;  %v874_v53 = vpack.c.bf16 %v842_v52, %v842_v52 }
  0x70   : > { %705 = vrot.lane.b32.xlu1 %v633_v1, %s7569_s10  ;;  %v621_v1 = vld [vmem:[#allocation2 + $0x151] sm:$0xff]  ;;  %902 = vst.msk [vmem:[#allocation3 + $0x194] sm:$0xf] %vm560_vm15, %v870_v21 }
  0x71   : > { %v653_v7 = vpack.c.bf16 %v621_v1, %v621_v1  ;;  %906 = vst.msk [vmem:[#allocation3 + $0x1e4] sm:$0xf] %vm560_vm15, %v874_v53 }
  0x72   : > { %1061 = vrot.lane.b32.xlu0 %v972_v10, %s7569_s10  ;;  %v605_v10 = vld [vmem:[#allocation2 + $0x91] sm:$0xff] }
  0x73   : > { %v637_v12 = vpack.c.bf16 %v605_v10, %v605_v10 }
  0x74   : > { %v606_v17 = vld [vmem:[#allocation2 + $0x99] sm:$0xff] }
  0x75   : > { %v7919_v31 = vpack.c.bf16 %v606_v17, %v606_v17  ;;  %v551_v17 = vpack.c.bf16 %v519_v13, %v519_v13 }
  0x76   : > { %707 = vrot.lane.b32.xlu2 %v7828_v16, %s7569_s10 }
  0x77   : > { %584 = vst.msk [vmem:[#allocation3 + $0x1cc] sm:$0xf] %vm560_vm15, %v551_v17  ;;  %v523_v17 = vld [vmem:[#allocation2 + $0x140] sm:$0xff] }
  0x78   : > { %743 = vrot.lane.b32.xlu1 %v652_v22, %s7569_s10  ;;  %v915_v22 = vld [vmem:[#allocation2 + $0x18] sm:$0xff] }
  0x79   : > { %v7915_v26 = vpack.c.bf16 %v915_v22, %v915_v22  ;;  %v7310_v22 = vld [vmem:[%s9789_s1 + $0xa8] sm:$0xff] }
  0x7a   : > { %741 = vrot.lane.b32.xlu0 %v651_v33, %s7569_s10  ;;  %v869_v33 = vpack.c.bf16 %v837_v29, %v837_v29  ;;  %v841_v29 = vld [vmem:[#allocation2 + $0x112] sm:$0xff]  ;;  %2892 = vmatpush.bf16.msrb.mxu2 %v7310_v22  ;;  %v555_v22 = vpack.c.bf16 %v523_v17, %v523_v17 }
  0x7b   : > { %563 = vst.msk [vmem:[#allocation3 + $0x28] sm:$0xf] %vm560_vm15, %v7915_v26 }
  0x7c   : > { %901 = vst.msk [vmem:[#allocation3 + $0x180] sm:$0xf] %vm560_vm15, %v869_v33  ;;  %v873_v33 = vpack.c.bf16 %v841_v29, %v841_v29 }
  0x7d   : > { %588 = vst.msk [vmem:[#allocation3 + $0x21c] sm:$0xf] %vm560_vm15, %v555_v22 }
  0x7e   : > { %1063 = vrot.lane.b32.xlu2 %v973_v39, %s7569_s10  ;;  %v945_v39 = vld [vmem:[#allocation2 + $0x180] sm:$0xff]  ;;  %905 = vst.msk [vmem:[#allocation3 + $0x1d0] sm:$0xf] %vm560_vm15, %v873_v33  ;;  %v7316_v33 = vld [vmem:[%s9789_s1 + $0xd8] sm:$0xff] }
  0x7f   : > { %v977_v45 = vpack.c.bf16 %v945_v39, %v945_v39  ;;  %v7323_v39 = vld [vmem:[%s9789_s1 + $0x110] sm:$0xff] }
  0x80   : > { %709 = vrot.lane.b32.xlu1 %v635_v46, %s7569_s10  ;;  %v946_v46 = vld [vmem:[#allocation2 + $0x188] sm:$0xff]  ;;  %3073 = vmatpush.bf16.msrb.mxu0 %v7323_v39 }
  0x81   : > { %v978_v50 = vpack.c.bf16 %v946_v46, %v946_v46  ;;  %v521_v46 = vld [vmem:[#allocation2 + $0x128] sm:$0xff] }
  0x82   : > { %1065 = vrot.lane.b32.xlu0 %v974_v51, %s7569_s10  ;;  %v608_v51 = vld [vmem:[#allocation2 + $0xb1] sm:$0xff] }
  0x83   : > { %v7952_v1 = vpack.c.bf16 %v608_v51, %v608_v51 }
  0x86   : > { %711 = vrot.lane.b32.xlu2 %v7884_v59, %s7569_s10 }
  0x88   : > { %747 = vrot.lane.b32.xlu1 %v654_v2, %s7569_s10  ;;  %v690_v9 = vpop.permute.xlu2 %689  ;;  %v871_v2 = vpack.c.bf16 %v839_v62, %v839_v62 }
  0x89   : > { %786 = vst.msk [vmem:[#allocation3] sm:$0xf] %vm785_vm9, %v690_v9 }
  0x8a   : > { %745 = vrot.lane.b32.xlu0 %v653_v7, %s7569_s10  ;;  %v1268_v7 = vpack.c.bf16 %v1236_v61, %v1236_v61  ;;  %903 = vst.msk [vmem:[#allocation3 + $0x1a8] sm:$0xf] %vm560_vm15, %v871_v2  ;;  %v921_v61 = vld [vmem:[#allocation2 + $0x60] sm:$0xff]  ;;  %v875_v2 = vpack.c.bf16 %v843_v63, %v843_v63  ;;  %v846_v63 = vld [vmem:[#allocation2 + $0x152] sm:$0xff] }
  0x8c   : > { %907 = vst.msk [vmem:[#allocation3 + $0x1f8] sm:$0xf] %vm560_vm15, %v875_v2  ;;  %v7307_v2 = vld [vmem:[%s9789_s1 + $0x90] sm:$0xff] }
  0x8e   : > { %1067 = vrot.lane.b32.xlu2 %v975_v55, %s7569_s10  ;;  %v917_v55 = vld [vmem:[#allocation2 + $0x30] sm:$0xff] }
  0x8f   : > { %v7948_v60 = vpack.c.bf16 %v917_v55, %v917_v55  ;;  %v7309_v55 = vld [vmem:[%s9789_s1 + $0xa0] sm:$0xff] }
  0x90   : > { %713 = vrot.lane.b32.xlu1 %v637_v12, %s7569_s10  ;;  %v692_v25 = vpop.permute.xlu2 %691  ;;  %v6214_v37 = vld [vmem:[#allocation3] sm:$0xf]  ;;  %2893 = vmatpush.bf16.msrb.mxu2 %v7309_v55 }
  0x91   : > { %787 = vst.msk [vmem:[#allocation3 + $0x14] sm:$0xf] %vm785_vm9, %v692_v25  ;;  %v7318_v25 = vld [vmem:[%s9789_s1 + $0xe8] sm:$0xff] }
  0x92   : > { %1069 = vrot.lane.b32.xlu0 %v976_v40, %s7569_s10  ;;  %565 = vst.msk [vmem:[#allocation3 + $0x50] sm:$0xf] %vm560_vm15, %v7948_v60  ;;  %2981 = vmatpush.bf16.msrb.mxu3 %v7318_v25 }
  0x93   : > { %1524 = vst.msk [vmem:[#allocation3 + $0xc] sm:$0xf] %vm560_vm15, %v7948_v60 }
  0x96   : > { %715 = vrot.lane.b32.xlu2 %v7919_v31, %s7569_s10 }
  0x98   : > { %751 = vrot.lane.b32.xlu1 %v656_v35, %s7569_s10  ;;  %v7211_v41 = vld [vmem:[#allocation3 + $0x10] sm:$0xf0]  ;;  %v1048_v54 = vpop.permute.xlu2 %1047 }
  0x99   : > { %v6215_v43 = vor.u32 %v7211_v41, %v6214_v37  ;;  %1125 = vst.msk [vmem:[#allocation3 + $0x16c] sm:$0xf] %vm785_vm9, %v1048_v54  ;;  %v1270_v37 = vpack.c.bf16 %v1238_v30, %v1238_v30  ;;  %v7308_v30 = vld [vmem:[%s9789_s1 + $0x98] sm:$0xff] }
  0x9a   : > { %749 = vrot.lane.b32.xlu0 %v655_v32, %s7569_s10  ;;  %v1044_v44 = vpop.permute.xlu1 %1043  ;;  %2894 = vmatpush.bf16.msrb.mxu2 %v7308_v30 }
  0x9b   : > { %1123 = vst.msk [vmem:[#allocation3 + $0x144] sm:$0xf] %vm785_vm9, %v1044_v44  ;;  %2720 = vmatmul.bf16.vlgmr.msra.gmra.mxu0 %v6215_v43 }
  0x9c   : > { %v722_v47 = vpop.permute.xlu0 %721 }
  0x9d   : > { %802 = vst.msk [vmem:[#allocation3 + $0x140] sm:$0xf] %vm785_vm9, %v722_v47 }
  0x9e   : > { %1071 = vrot.lane.b32.xlu2 %v977_v45, %s7569_s10  ;;  %2895 = vmatpush.bf16.msrb.mxu2 %v7307_v2 }
  0xa0   : > { %717 = vrot.lane.b32.xlu1 %v639_v48, %s7569_s10  ;;  %v696_v58 = vpop.permute.xlu2 %695  ;;  %v7254_v48 = vld [vmem:[#allocation3 + $0x16c] sm:$0xf] }
  0xa1   : > { %789 = vst.msk [vmem:[#allocation3 + $0x3c] sm:$0xf] %vm785_vm9, %v696_v58  ;;  %v7317_v58 = vld [vmem:[%s9789_s1 + $0xe0] sm:$0xff] }
  0xa2   : > { %1073 = vrot.lane.b32.xlu0 %v978_v50, %s7569_s10  ;;  %v1046_v0 = vpop.permute.xlu1 %1045  ;;  %v7249_v57 = vld [vmem:[#allocation3 + $0x144] sm:$0xf]  ;;  %v553_v50 = vpack.c.bf16 %v521_v46, %v521_v46  ;;  %2982 = vmatpush.bf16.msrb.mxu3 %v7317_v58 }
  0xa3   : > { %1124 = vst.msk [vmem:[#allocation3 + $0x158] sm:$0xf] %vm785_vm9, %v1046_v0  ;;  %v1240_v0 = vld [vmem:[#allocation2 + $0x52] sm:$0xff] }
  0xa4   : > { %v724_v5 = vpop.permute.xlu0 %723  ;;  %v6374_v15 = vld [vmem:[#allocation3 + $0x140] sm:$0xf]  ;;  %586 = vst.msk [vmem:[#allocation3 + $0x1f4] sm:$0xf] %vm560_vm15, %v553_v50 }
  0xa5   : > { %803 = vst.msk [vmem:[#allocation3 + $0x154] sm:$0xf] %vm785_vm9, %v724_v5 }
  0xa6   : > { %719 = vrot.lane.b32.xlu2 %v7952_v1, %s7569_s10  ;;  %2983 = vmatpush.bf16.msrb.mxu3 %v7316_v33 }
  0xa8   : > { %1333 = vrot.lane.b32.xlu1 %v1268_v7, %s7569_s10  ;;  %v1052_v9 = vpop.permute.xlu2 %1051  ;;  %v7216_v41 = vld [vmem:[#allocation3 + $0x38] sm:$0xf0] }
  0xa9   : > { %1127 = vst.msk [vmem:[#allocation3 + $0x194] sm:$0xf] %vm785_vm9, %v1052_v9  ;;  %v1239_v7 = vld [vmem:[#allocation2 + $0x4a] sm:$0xff]  ;;  %v1272_v9 = vpack.c.bf16 %v1240_v0, %v1240_v0  ;;  %v878_v0 = vpack.c.bf16 %v846_v63, %v846_v63 }
  0xaa   : > { %1331 = vrot.lane.b32.xlu0 %v1267_v8, %s7569_s10  ;;  %v728_v10 = vpop.permute.xlu1 %727  ;;  %v6376_v11 = vld [vmem:[#allocation3 + $0x154] sm:$0xf0] }
  0xab   : > { %805 = vst.msk [vmem:[#allocation3 + $0x17c] sm:$0xf] %vm785_vm9, %v728_v10  ;;  %v6379_v12 = vor.u32 %v7249_v57, %v6376_v11  ;;  %v1560_v10 = vld [vmem:[#allocation2 + $0x61] sm:$0xff]  ;;  %v1271_v57 = vpack.c.bf16 %v1239_v7, %v1239_v7 }
  0xac   : > { %v726_v14 = vpop.permute.xlu0 %725  ;;  %v7251_v40 = vld [vmem:[#allocation3 + $0x150] sm:$0xf0]  ;;  %910 = vst.msk [vmem:[#allocation3 + $0x234] sm:$0xf] %vm560_vm15, %v878_v0 }
  0xad   : > { %804 = vst.msk [vmem:[#allocation3 + $0x168] sm:$0xf] %vm785_vm9, %v726_v14  ;;  %v6375_v18 = vor.u32 %v7251_v40, %v6374_v15  ;;  %2849 = vmatmul.bf16.vlgmr.msra.gmra.mxu3 %v6379_v12  ;;  %v1592_v12 = vpack.c.bf16 %v1560_v10, %v1560_v10  ;;  %v1244_v10 = vld [vmem:[#allocation2 + $0x82] sm:$0xff] }
  0xae   : > { %1652 = vrot.lane.b32.xlu2 %v7745_v56, %s7569_s10  ;;  %v7986_v56 = vpack.c.bf16 %v919_v27, %v919_v27 }
  0xaf   : > { %2760 = vmatmul.bf16.vlgmr.msra.gmra.mxu2 %v6375_v18  ;;  %1209 = vst.msk [vmem:[#allocation3 + $0x80] sm:$0xf] %vm560_vm15, %v1592_v12 }
  0xb0   : > { %1011 = vrot.lane.b32.xlu1 %v7915_v26, %s7569_s10  ;;  %v700_v28 = vpop.permute.xlu2 %699  ;;  %567 = vst.msk [vmem:[#allocation3 + $0x78] sm:$0xf] %vm560_vm15, %v7986_v56  ;;  %v7993_v26 = vpack.c.bf16 %v503_v34, %v503_v34  ;;  %v7259_v19 = vld [vmem:[#allocation3 + $0x194] sm:$0xf]  ;;  %v923_v34 = vld [vmem:[#allocation2 + $0x78] sm:$0xff] }
  0xb1   : > { %791 = vst.msk [vmem:[#allocation3 + $0x64] sm:$0xf] %vm785_vm9, %v700_v28  ;;  %v844_v28 = vld [vmem:[#allocation2 + $0x13a] sm:$0xff] }
  0xb2   : > { %1654 = vrot.lane.b32.xlu0 %v7757_v6, %s7569_s10  ;;  %v694_v35 = vpop.permute.xlu1 %693  ;;  %v1269_v6 = vpack.c.bf16 %v1237_v36, %v1237_v36  ;;  %568 = vst.msk [vmem:[#allocation3 + $0x8c] sm:$0xf] %vm560_vm15, %v7993_v26  ;;  %v7256_v44 = vld [vmem:[#allocation3 + $0x178] sm:$0xf0]  ;;  %v876_v29 = vpack.c.bf16 %v844_v28, %v844_v28  ;;  %v8063_v36 = vpack.c.bf16 %v923_v34, %v923_v34 }
  0xb3   : > { %788 = vst.msk [vmem:[#allocation3 + $0x28] sm:$0xf] %vm785_vm9, %v694_v35 }
  0xb4   : > { %v1050_v32 = vpop.permute.xlu0 %1049  ;;  %1526 = vst.msk [vmem:[#allocation3 + $0x34] sm:$0xf] %vm560_vm15, %v7986_v56  ;;  %v6394_v43 = vld [vmem:[#allocation3 + $0x168] sm:$0xf] }
  0xb5   : > { %1126 = vst.msk [vmem:[#allocation3 + $0x180] sm:$0xf] %vm785_vm9, %v1050_v32  ;;  %v6395_v51 = vor.u32 %v7256_v44, %v6394_v43  ;;  %v845_v32 = vld [vmem:[#allocation2 + $0x142] sm:$0xff]  ;;  %v1562_v43 = vld [vmem:[#allocation2 + $0x79] sm:$0xff] }
  0xb6   : > { %1013 = vrot.lane.b32.xlu2 %v7923_v23, %s7569_s10  ;;  %1527 = vst.msk [vmem:[#allocation3 + $0x48] sm:$0xf] %vm560_vm15, %v7993_v26  ;;  %v877_v39 = vpack.c.bf16 %v845_v32, %v845_v32 }
  0xb7   : > { %908 = vst.msk [vmem:[#allocation3 + $0x20c] sm:$0xf] %vm560_vm15, %v876_v29 }
  0xb8   : > { %1337 = vrot.lane.b32.xlu1 %v1270_v37, %s7569_s10  ;;  %v1056_v54 = vpop.permute.xlu2 %1055  ;;  %v1242_v37 = vld [vmem:[#allocation2 + $0x6a] sm:$0xff]  ;;  %571 = vst.msk [vmem:[#allocation3 + $0xc8] sm:$0xf] %vm560_vm15, %v8063_v36 }
  0xb9   : > { %1129 = vst.msk [vmem:[#allocation3 + $0x1bc] sm:$0xf] %vm785_vm9, %v1056_v54  ;;  %v1241_v54 = vld [vmem:[#allocation2 + $0x62] sm:$0xff] }
  0xba   : > { %1335 = vrot.lane.b32.xlu0 %v1269_v6, %s7569_s10  ;;  %v732_v42 = vpop.permute.xlu1 %731  ;;  %v6234_v23 = vld [vmem:[#allocation3 + $0x28] sm:$0xf]  ;;  %v507_v6 = vld [vmem:[#allocation2 + $0x80] sm:$0xff]  ;;  %909 = vst.msk [vmem:[#allocation3 + $0x220] sm:$0xf] %vm560_vm15, %v877_v39  ;;  %v1273_v44 = vpack.c.bf16 %v1241_v54, %v1241_v54  ;;  %v7314_v39 = vld [vmem:[%s9789_s1 + $0xc8] sm:$0xff] }
  0xbb   : > { %807 = vst.msk [vmem:[#allocation3 + $0x1a4] sm:$0xf] %vm785_vm9, %v732_v42  ;;  %v6235_v45 = vor.u32 %v7216_v41, %v6234_v23  ;;  %v1274_v23 = vpack.c.bf16 %v1242_v37, %v1242_v37  ;;  %v7306_v37 = vld [vmem:[%s9789_s1 + $0x88] sm:$0xff] }
  0xbc   : > { %v730_v47 = vpop.permute.xlu0 %729  ;;  %v6396_v49 = vld [vmem:[#allocation3 + $0x17c] sm:$0xf0]  ;;  %1530 = vst.msk [vmem:[#allocation3 + $0x84] sm:$0xf] %vm560_vm15, %v8063_v36  ;;  %2896 = vmatpush.bf16.msrb.mxu2 %v7306_v37  ;;  %v1142_v37 = vld [vmem:[#allocation2 + $0x39] sm:$0xff] }
  0xbd   : > { %806 = vst.msk [vmem:[#allocation3 + $0x190] sm:$0xf] %vm785_vm9, %v730_v47  ;;  %2725 = vmatmul.bf16.gmra.mxu0 %v6235_v45  ;;  %v6399_v21 = vor.u32 %v7254_v48, %v6396_v49  ;;  %v1594_v47 = vpack.c.bf16 %v1562_v43, %v1562_v43 }
  0xbe   : > { %1656 = vrot.lane.b32.xlu2 %v7772_v24, %s7569_s10  ;;  %v8026_v24 = vpack.c.bf16 %v921_v61, %v921_v61 }
  0xbf   : > { %2765 = vmatmul.bf16.gmra.mxu2 %v6395_v51  ;;  %2854 = vmatmul.bf16.gmra.mxu3 %v6399_v21  ;;  %1211 = vst.msk [vmem:[#allocation3 + $0xa8] sm:$0xf] %vm560_vm15, %v1594_v47  ;;  %v525_v21 = vld [vmem:[#allocation2 + $0x158] sm:$0xff] }
  0xc0   : > { %1015 = vrot.lane.b32.xlu1 %v7948_v60, %s7569_s10  ;;  %v704_v62 = vpop.permute.xlu2 %703  ;;  %569 = vst.msk [vmem:[#allocation3 + $0xa0] sm:$0xf] %vm560_vm15, %v8026_v24  ;;  %v8033_v60 = vpack.c.bf16 %v505_v4, %v505_v4  ;;  %v7264_v53 = vld [vmem:[#allocation3 + $0x1bc] sm:$0xf]  ;;  %v557_v58 = vpack.c.bf16 %v525_v21, %v525_v21  ;;  %v7315_v4 = vld [vmem:[%s9789_s1 + $0xd0] sm:$0xff] }
  0xc1   : > { %793 = vst.msk [vmem:[#allocation3 + $0x8c] sm:$0xf] %vm785_vm9, %v704_v62  ;;  %2984 = vmatpush.bf16.msrb.mxu3 %v7315_v4 }
  0xc2   : > { %1658 = vrot.lane.b32.xlu0 %v7784_v38, %s7569_s10  ;;  %v698_v5 = vpop.permute.xlu1 %697  ;;  %570 = vst.msk [vmem:[#allocation3 + $0xb4] sm:$0xf] %vm560_vm15, %v8033_v60  ;;  %v7221_v38 = vld [vmem:[#allocation3 + $0x60] sm:$0xf0] }
  0xc3   : > { %790 = vst.msk [vmem:[#allocation3 + $0x50] sm:$0xf] %vm785_vm9, %v698_v5  ;;  %v7261_v13 = vld [vmem:[#allocation3 + $0x1a0] sm:$0xf0] }
  0xc4   : > { %v1054_v8 = vpop.permute.xlu0 %1053  ;;  %1528 = vst.msk [vmem:[#allocation3 + $0x5c] sm:$0xf] %vm560_vm15, %v8026_v24  ;;  %v6414_v15 = vld [vmem:[#allocation3 + $0x190] sm:$0xf]  ;;  %v925_v5 = vld [vmem:[#allocation2 + $0x90] sm:$0xff] }
  0xc5   : > { %1128 = vst.msk [vmem:[#allocation3 + $0x1a8] sm:$0xf] %vm785_vm9, %v1054_v8  ;;  %v6415_v25 = vor.u32 %v7261_v13, %v6414_v15  ;;  %v8103_v8 = vpack.c.bf16 %v925_v5, %v925_v5  ;;  %2985 = vmatpush.bf16.msrb.mxu3 %v7314_v39 }
  0xc6   : > { %1017 = vrot.lane.b32.xlu2 %v7956_v3, %s7569_s10  ;;  %1529 = vst.msk [vmem:[#allocation3 + $0x70] sm:$0xf] %vm560_vm15, %v8033_v60 }
  0xc7   : > { %590 = vst.msk [vmem:[#allocation3 + $0x244] sm:$0xf] %vm560_vm15, %v557_v58  ;;  %v1139_v58 = vld [vmem:[#allocation2 + $0x19] sm:$0xff] }
  0xc8   : > { %1341 = vrot.lane.b32.xlu1 %v1272_v9, %s7569_s10  ;;  %v1060_v11 = vpop.permute.xlu2 %1059  ;;  %v7226_v45 = vld [vmem:[#allocation3 + $0x88] sm:$0xf0]  ;;  %573 = vst.msk [vmem:[#allocation3 + $0xf0] sm:$0xf] %vm560_vm15, %v8103_v8  ;;  %v1171_v2 = vpack.c.bf16 %v1139_v58, %v1139_v58 }
  0xc9   : > { %1131 = vst.msk [vmem:[#allocation3 + $0x1e4] sm:$0xf] %vm785_vm9, %v1060_v11  ;;  %v847_v9 = vld [vmem:[#allocation2 + $0x15a] sm:$0xff] }
  0xca   : > { %1339 = vrot.lane.b32.xlu0 %v1271_v57, %s7569_s10  ;;  %v736_v3 = vpop.permute.xlu1 %735  ;;  %v6254_v14 = vld [vmem:[#allocation3 + $0x50] sm:$0xf]  ;;  %v879_v57 = vpack.c.bf16 %v847_v9, %v847_v9  ;;  %1532 = vst.msk [vmem:[#allocation3 + $0xac] sm:$0xf] %vm560_vm15, %v8103_v8 }
  0xcb   : > { %809 = vst.msk [vmem:[#allocation3 + $0x1cc] sm:$0xf] %vm785_vm9, %v736_v3  ;;  %v6255_v40 = vor.u32 %v7221_v38, %v6254_v14  ;;  %v509_v38 = vld [vmem:[#allocation2 + $0x98] sm:$0xff]  ;;  %v1276_v3 = vpack.c.bf16 %v1244_v10, %v1244_v10  ;;  %v7305_v9 = vld [vmem:[%s9789_s1 + $0x80] sm:$0xff] }
  0xcc   : > { %v734_v18 = vpop.permute.xlu0 %733  ;;  %v6416_v20 = vld [vmem:[#allocation3 + $0x1a4] sm:$0xf0]  ;;  %911 = vst.msk [vmem:[#allocation3 + $0x248] sm:$0xf] %vm560_vm15, %v879_v57  ;;  %v7313_v10 = vld [vmem:[%s9789_s1 + $0xc0] sm:$0xff]  ;;  %2897 = vmatpush.bf16.msrb.mxu2 %v7305_v9 }
  0xcd   : > { %808 = vst.msk [vmem:[#allocation3 + $0x1b8] sm:$0xf] %vm785_vm9, %v734_v18  ;;  %2730 = vmatmul.bf16.gmra.mxu0 %v6255_v40  ;;  %v6419_v27 = vor.u32 %v7259_v19, %v6416_v20  ;;  %v1564_v14 = vld [vmem:[#allocation2 + $0x91] sm:$0xff]  ;;  %2986 = vmatpush.bf16.msrb.mxu3 %v7313_v10  ;;  %v1570_v58 = vld [vmem:[#allocation2 + $0xd9] sm:$0xff]  ;;  %v1571_v9 = vld [vmem:[#allocation2 + $0xe1] sm:$0xff] }
  0xce   : > { %1660 = vrot.lane.b32.xlu2 %v1592_v12, %s7569_s10  ;;  %v1243_v12 = vld [vmem:[#allocation2 + $0x7a] sm:$0xff]  ;;  %v1596_v17 = vpack.c.bf16 %v1564_v14, %v1564_v14  ;;  %1203 = vst.msk [vmem:[#allocation3 + $0x8] sm:$0xf] %vm560_vm15, %v1171_v2 }
  0xcf   : > { %2770 = vmatmul.bf16.gmra.mxu2 %v6415_v25  ;;  %2859 = vmatmul.bf16.gmra.mxu3 %v6419_v27  ;;  %v1275_v15 = vpack.c.bf16 %v1243_v12, %v1243_v12  ;;  %v527_v25 = vld [vmem:[#allocation2 + $0x170] sm:$0xff] }
  0xd0   : > { %1019 = vrot.lane.b32.xlu1 %v7986_v56, %s7569_s10  ;;  %v708_v35 = vpop.permute.xlu2 %707  ;;  %v8070_v56 = vpack.c.bf16 %v507_v6, %v507_v6  ;;  %1213 = vst.msk [vmem:[#allocation3 + $0xd0] sm:$0xf] %vm560_vm15, %v1596_v17  ;;  %v7269_v28 = vld [vmem:[#allocation3 + $0x1e4] sm:$0xf]  ;;  %v559_v30 = vpack.c.bf16 %v527_v25, %v527_v25  ;;  %v927_v6 = vld [vmem:[#allocation2 + $0xa8] sm:$0xff] }
  0xd1   : > { %795 = vst.msk [vmem:[#allocation3 + $0xb4] sm:$0xf] %vm785_vm9, %v708_v35  ;;  %v848_v35 = vld [vmem:[#allocation2 + $0x16a] sm:$0xff]  ;;  %v8140_v54 = vpack.c.bf16 %v927_v6, %v927_v6 }
  0xd2   : > { %1662 = vrot.lane.b32.xlu0 %v7828_v16, %s7569_s10  ;;  %v702_v41 = vpop.permute.xlu1 %701  ;;  %v7322_v16 = vld [vmem:[%s9789_s1 + $0x108] sm:$0xff]  ;;  %572 = vst.msk [vmem:[#allocation3 + $0xdc] sm:$0xf] %vm560_vm15, %v8070_v56  ;;  %v7266_v48 = vld [vmem:[#allocation3 + $0x1c8] sm:$0xf0]  ;;  %v880_v32 = vpack.c.bf16 %v848_v35, %v848_v35  ;;  %v929_v35 = vld [vmem:[#allocation2 + $0xc0] sm:$0xff] }
  0xd3   : > { %792 = vst.msk [vmem:[#allocation3 + $0x78] sm:$0xf] %vm785_vm9, %v702_v41  ;;  %3074 = vmatpush.bf16.msrb.mxu0 %v7322_v16  ;;  %v511_v16 = vld [vmem:[#allocation2 + $0xb0] sm:$0xff] }
  0xd4   : > { %v1058_v42 = vpop.permute.xlu0 %1057  ;;  %1531 = vst.msk [vmem:[#allocation3 + $0x98] sm:$0xf] %vm560_vm15, %v8070_v56  ;;  %v6434_v50 = vld [vmem:[#allocation3 + $0x1b8] sm:$0xf] }
  0xd5   : > { %1130 = vst.msk [vmem:[#allocation3 + $0x1d0] sm:$0xf] %vm785_vm9, %v1058_v42  ;;  %v6435_v61 = vor.u32 %v7266_v48, %v6434_v50  ;;  %v849_v42 = vld [vmem:[#allocation2 + $0x172] sm:$0xff]  ;;  %v1566_v48 = vld [vmem:[#allocation2 + $0xa9] sm:$0xff] }
  0xd6   : > { %1021 = vrot.lane.b32.xlu2 %v7993_v26, %s7569_s10  ;;  %592 = vst.msk [vmem:[#allocation3 + $0x26c] sm:$0xf] %vm560_vm15, %v559_v30  ;;  %v881_v43 = vpack.c.bf16 %v849_v42, %v849_v42  ;;  %v819_v12 = vld [vmem:[#allocation2 + $0xa] sm:$0xff]  ;;  %v1174_v42 = vpack.c.bf16 %v1142_v37, %v1142_v37 }
  0xd7   : > { %912 = vst.msk [vmem:[#allocation3 + $0x25c] sm:$0xf] %vm560_vm15, %v880_v32  ;;  %v851_v14 = vpack.c.bf16 %v819_v12, %v819_v12  ;;  %v1141_v30 = vld [vmem:[#allocation2 + $0x31] sm:$0xff] }
  0xd8   : > { %1345 = vrot.lane.b32.xlu1 %v1274_v23, %s7569_s10  ;;  %v1064_v46 = vpop.permute.xlu2 %1063  ;;  %v1246_v23 = vld [vmem:[#allocation2 + $0x9a] sm:$0xff]  ;;  %575 = vst.msk [vmem:[#allocation3 + $0x118] sm:$0xf] %vm560_vm15, %v8140_v54  ;;  %v1173_v32 = vpack.c.bf16 %v1141_v30, %v1141_v30 }
  0xd9   : > { %1133 = vst.msk [vmem:[#allocation3 + $0x20c] sm:$0xf] %vm785_vm9, %v1064_v46 }
  0xda   : > { %1343 = vrot.lane.b32.xlu0 %v1273_v44, %s7569_s10  ;;  %v740_v26 = vpop.permute.xlu1 %739  ;;  %v6274_v49 = vld [vmem:[#allocation3 + $0x78] sm:$0xf]  ;;  %913 = vst.msk [vmem:[#allocation3 + $0x270] sm:$0xf] %vm560_vm15, %v881_v43 }
  0xdb   : > { %811 = vst.msk [vmem:[#allocation3 + $0x1f4] sm:$0xf] %vm785_vm9, %v740_v26  ;;  %v6275_v51 = vor.u32 %v7226_v45, %v6274_v49  ;;  %v1245_v45 = vld [vmem:[#allocation2 + $0x92] sm:$0xff] }
  0xdc   : > { %v738_v52 = vpop.permute.xlu0 %737  ;;  %v6436_v55 = vld [vmem:[#allocation3 + $0x1cc] sm:$0xf0]  ;;  %v1277_v26 = vpack.c.bf16 %v1245_v45, %v1245_v45  ;;  %1534 = vst.msk [vmem:[#allocation3 + $0xd4] sm:$0xf] %vm560_vm15, %v8140_v54 }
  0xdd   : > { %810 = vst.msk [vmem:[#allocation3 + $0x1e0] sm:$0xf] %vm785_vm9, %v738_v52  ;;  %2735 = vmatmul.bf16.gmra.mxu0 %v6275_v51  ;;  %v6439_v62 = vor.u32 %v7264_v53, %v6436_v55  ;;  %v1598_v51 = vpack.c.bf16 %v1566_v48, %v1566_v48  ;;  %v821_v48 = vld [vmem:[#allocation2 + $0x22] sm:$0xff] }
  0xde   : > { %1664 = vrot.lane.b32.xlu2 %v1594_v47, %s7569_s10  ;;  %v1278_v47 = vpack.c.bf16 %v1246_v23, %v1246_v23  ;;  %883 = vst.msk [vmem:[#allocation3 + $0x18] sm:$0xf] %vm560_vm15, %v851_v14  ;;  %v1143_v14 = vld [vmem:[#allocation2 + $0x49] sm:$0xff] }
  0xdf   : > { %2775 = vmatmul.bf16.gmra.mxu2 %v6435_v61  ;;  %2864 = vmatmul.bf16.gmra.mxu3 %v6439_v62  ;;  %1215 = vst.msk [vmem:[#allocation3 + $0xf8] sm:$0xf] %vm560_vm15, %v1598_v51  ;;  %v1140_v61 = vld [vmem:[#allocation2 + $0x21] sm:$0xff] }
  0xe0   : > { %1023 = vrot.lane.b32.xlu1 %v8026_v24, %s7569_s10  ;;  %v712_v7 = vpop.permute.xlu2 %711  ;;  %v8110_v24 = vpack.c.bf16 %v509_v38, %v509_v38  ;;  %v7274_v63 = vld [vmem:[#allocation3 + $0x20c] sm:$0xf]  ;;  %v1172_v4 = vpack.c.bf16 %v1140_v61, %v1140_v61  ;;  %v1248_v38 = vld [vmem:[#allocation2 + $0xb2] sm:$0xff]  ;;  %1205 = vst.msk [vmem:[#allocation3 + $0x30] sm:$0xf] %vm560_vm15, %v1173_v32 }
  0xe1   : > { %797 = vst.msk [vmem:[#allocation3 + $0xdc] sm:$0xf] %vm785_vm9, %v712_v7 }
  0xe2   : > { %1666 = vrot.lane.b32.xlu0 %v7884_v59, %s7569_s10  ;;  %v706_v11 = vpop.permute.xlu1 %705  ;;  %574 = vst.msk [vmem:[#allocation3 + $0x104] sm:$0xf] %vm560_vm15, %v8110_v24  ;;  %v7231_v59 = vld [vmem:[#allocation3 + $0xb0] sm:$0xf0] }
  0xe3   : > { %794 = vst.msk [vmem:[#allocation3 + $0xa0] sm:$0xf] %vm785_vm9, %v706_v11  ;;  %v7271_v18 = vld [vmem:[#allocation3 + $0x1f0] sm:$0xf0] }
  0xe4   : > { %v1062_v13 = vpop.permute.xlu0 %1061  ;;  %1533 = vst.msk [vmem:[#allocation3 + $0xc0] sm:$0xf] %vm560_vm15, %v8110_v24  ;;  %v6454_v20 = vld [vmem:[#allocation3 + $0x1e0] sm:$0xf]  ;;  %v818_v11 = vld [vmem:[#allocation2 + $0x2] sm:$0xff] }
  0xe5   : > { %1132 = vst.msk [vmem:[#allocation3 + $0x1f8] sm:$0xf] %vm785_vm9, %v1062_v13  ;;  %v6455_v33 = vor.u32 %v7271_v18, %v6454_v20 }
  0xe6   : > { %1025 = vrot.lane.b32.xlu2 %v8033_v60, %s7569_s10  ;;  %1204 = vst.msk [vmem:[#allocation3 + $0x1c] sm:$0xf] %vm560_vm15, %v1172_v4 }
  0xe7   : > { %1206 = vst.msk [vmem:[#allocation3 + $0x44] sm:$0xf] %vm560_vm15, %v1174_v42 }
  0xe8   : > { %1349 = vrot.lane.b32.xlu1 %v1276_v3, %s7569_s10  ;;  %v1068_v40 = vpop.permute.xlu2 %1067  ;;  %v7236_v49 = vld [vmem:[#allocation3 + $0xd8] sm:$0xf0]  ;;  %v850_v3 = vpack.c.bf16 %v818_v11, %v818_v11 }
  0xe9   : > { %1135 = vst.msk [vmem:[#allocation3 + $0x234] sm:$0xf] %vm785_vm9, %v1068_v40  ;;  %v1280_v40 = vpack.c.bf16 %v1248_v38, %v1248_v38 }
  0xea   : > { %1347 = vrot.lane.b32.xlu0 %v1275_v15, %s7569_s10  ;;  %v744_v60 = vpop.permute.xlu1 %743  ;;  %v6294_v19 = vld [vmem:[#allocation3 + $0xa0] sm:$0xf]  ;;  %882 = vst.msk [vmem:[#allocation3 + $0x4] sm:$0xf] %vm560_vm15, %v850_v3 }
  0xeb   : > { %813 = vst.msk [vmem:[#allocation3 + $0x21c] sm:$0xf] %vm785_vm9, %v744_v60  ;;  %v6295_v22 = vor.u32 %v7231_v59, %v6294_v19  ;;  %v1247_v15 = vld [vmem:[#allocation2 + $0xaa] sm:$0xff] }
  0xec   : > { %v742_v27 = vpop.permute.xlu0 %741  ;;  %v6456_v29 = vld [vmem:[#allocation3 + $0x1f4] sm:$0xf0]  ;;  %v1279_v19 = vpack.c.bf16 %v1247_v15, %v1247_v15  ;;  %v1144_v3 = vld [vmem:[#allocation2 + $0x51] sm:$0xff]  ;;  %v1603_v15 = vpack.c.bf16 %v1571_v9, %v1571_v9 }
  0xed   : > { %812 = vst.msk [vmem:[#allocation3 + $0x208] sm:$0xf] %vm785_vm9, %v742_v27  ;;  %2740 = vmatmul.bf16.gmra.mxu0 %v6295_v22  ;;  %v6459_v34 = vor.u32 %v7269_v28, %v6456_v29 }
  0xee   : > { %1668 = vrot.lane.b32.xlu2 %v1596_v17, %s7569_s10  ;;  %v1781_v17 = vld [vmem:[#allocation2 + $0x3a] sm:$0xff] }
  0xef   : > { %2780 = vmatmul.bf16.gmra.mxu2 %v6455_v33  ;;  %2869 = vmatmul.bf16.gmra.mxu3 %v6459_v34  ;;  %v1813_v60 = vpack.c.bf16 %v1781_v17, %v1781_v17  ;;  %v1569_v34 = vld [vmem:[#allocation2 + $0xc9] sm:$0xff] }
  0xf0   : > { %1027 = vrot.lane.b32.xlu1 %v8063_v36, %s7569_s10  ;;  %v716_v41 = vpop.permute.xlu2 %715  ;;  %v8147_v36 = vpack.c.bf16 %v511_v16, %v511_v16  ;;  %v7279_v6 = vld [vmem:[#allocation3 + $0x234] sm:$0xf]  ;;  %v1601_v16 = vpack.c.bf16 %v1569_v34, %v1569_v34  ;;  %v1253_v34 = vld [vmem:[#allocation2 + $0xf2] sm:$0xff] }
  0xf1   : > { %799 = vst.msk [vmem:[#allocation3 + $0x104] sm:$0xf] %vm785_vm9, %v716_v41 }
  0xf2   : > { %1670 = vrot.lane.b32.xlu0 %v7919_v31, %s7569_s10  ;;  %v710_v44 = vpop.permute.xlu1 %709  ;;  %v7321_v31 = vld [vmem:[%s9789_s1 + $0x100] sm:$0xff]  ;;  %576 = vst.msk [vmem:[#allocation3 + $0x12c] sm:$0xf] %vm560_vm15, %v8147_v36  ;;  %v7276_v21 = vld [vmem:[#allocation3 + $0x218] sm:$0xf0] }
  0xf3   : > { %796 = vst.msk [vmem:[#allocation3 + $0xc8] sm:$0xf] %vm785_vm9, %v710_v44  ;;  %3075 = vmatpush.bf16.msrb.mxu0 %v7321_v31  ;;  %v8198_v44 = vpack.c.bf16 %v929_v35, %v929_v35  ;;  %v1572_v35 = vld [vmem:[#allocation2 + $0xf1] sm:$0xff] }
  0xf4   : > { %v1066_v46 = vpop.permute.xlu0 %1065  ;;  %1535 = vst.msk [vmem:[#allocation3 + $0xe8] sm:$0xf] %vm560_vm15, %v8147_v36  ;;  %v6474_v53 = vld [vmem:[#allocation3 + $0x208] sm:$0xf] }
  0xf5   : > { %1134 = vst.msk [vmem:[#allocation3 + $0x220] sm:$0xf] %vm785_vm9, %v1066_v46  ;;  %v6475_v5 = vor.u32 %v7276_v21, %v6474_v53  ;;  %v1250_v46 = vld [vmem:[#allocation2 + $0xca] sm:$0xff] }
  0xf6   : > { %1029 = vrot.lane.b32.xlu2 %v8070_v56, %s7569_s10  ;;  %1845 = vst.msk [vmem:[#allocation3 + $0x24] sm:$0xf] %vm560_vm15, %v1813_v60  ;;  %v1782_v21 = vld [vmem:[#allocation2 + $0x4a] sm:$0xff] }
  0xf7   : > { %887 = vst.msk [vmem:[#allocation3 + $0x68] sm:$0xf] %vm560_vm15, %v1813_v60 }
  0xf8   : > { %1353 = vrot.lane.b32.xlu1 %v1278_v47, %s7569_s10  ;;  %v1072_v50 = vpop.permute.xlu2 %1071  ;;  %v7241_v20 = vld [vmem:[#allocation3 + $0x100] sm:$0xf0]  ;;  %1536 = vst.msk [vmem:[#allocation3 + $0xfc] sm:$0xf] %vm560_vm15, %v8198_v44  ;;  %v820_v47 = vld [vmem:[#allocation2 + $0x1a] sm:$0xff] }
  0xf9   : > { %1137 = vst.msk [vmem:[#allocation3 + $0x25c] sm:$0xf] %vm785_vm9, %v1072_v50  ;;  %v1249_v50 = vld [vmem:[#allocation2 + $0xc2] sm:$0xff] }
  0xfa   : > { %1351 = vrot.lane.b32.xlu0 %v1277_v26, %s7569_s10  ;;  %v748_v56 = vpop.permute.xlu1 %747  ;;  %v6314_v52 = vld [vmem:[#allocation3 + $0xc8] sm:$0xf]  ;;  %v852_v26 = vpack.c.bf16 %v820_v47, %v820_v47  ;;  %v1785_v47 = vld [vmem:[#allocation2 + $0x6a] sm:$0xff] }
  0xfb   : > { %815 = vst.msk [vmem:[#allocation3 + $0x244] sm:$0xf] %vm785_vm9, %v748_v56  ;;  %v6315_v55 = vor.u32 %v7236_v49, %v6314_v52  ;;  %v853_v49 = vpack.c.bf16 %v821_v48, %v821_v48  ;;  %v1783_v56 = vld [vmem:[#allocation2 + $0x52] sm:$0xff]  ;;  %v1814_v52 = vpack.c.bf16 %v1782_v21, %v1782_v21 }
  0xfc   : > { %v746_v62 = vpop.permute.xlu0 %745  ;;  %v6476_v0 = vld [vmem:[#allocation3 + $0x21c] sm:$0xf0]  ;;  %884 = vst.msk [vmem:[#allocation3 + $0x2c] sm:$0xf] %vm560_vm15, %v852_v26  ;;  %v1815_v53 = vpack.c.bf16 %v1783_v56, %v1783_v56 }
  0xfd   : > { %814 = vst.msk [vmem:[#allocation3 + $0x230] sm:$0xf] %vm785_vm9, %v746_v62  ;;  %2745 = vmatmul.bf16.gmra.mxu0 %v6315_v55  ;;  %v6479_v7 = vor.u32 %v7274_v63, %v6476_v0  ;;  %v1281_v55 = vpack.c.bf16 %v1249_v50, %v1249_v50  ;;  %v930_v0 = vld [vmem:[#allocation2 + $0xc8] sm:$0xff] }
  0xfe   : > { %1672 = vrot.lane.b32.xlu2 %v1598_v51, %s7569_s10  ;;  %v1282_v51 = vpack.c.bf16 %v1250_v46, %v1250_v46  ;;  %885 = vst.msk [vmem:[#allocation3 + $0x40] sm:$0xf] %vm560_vm15, %v853_v49  ;;  %v962_v11 = vpack.c.bf16 %v930_v0, %v930_v0  ;;  %v1784_v46 = vld [vmem:[#allocation2 + $0x62] sm:$0xff] }
  0xff   : > { %2785 = vmatmul.bf16.gmra.mxu2 %v6475_v5  ;;  %2874 = vmatmul.bf16.gmra.mxu3 %v6479_v7  ;;  %1846 = vst.msk [vmem:[#allocation3 + $0x38] sm:$0xf] %vm560_vm15, %v1814_v52  ;;  %v1602_v5 = vpack.c.bf16 %v1570_v58, %v1570_v58  ;;  %v1146_v26 = vld [vmem:[#allocation2 + $0x69] sm:$0xff]  ;;  %v1816_v49 = vpack.c.bf16 %v1784_v46, %v1784_v46  ;;  %v1576_v0 = vld [vmem:[#allocation2 + $0x121] sm:$0xff] }
 0x100   : > { %1031 = vrot.lane.b32.xlu1 %v8103_v8, %s7569_s10  ;;  %v720_v57 = vpop.permute.xlu2 %719  ;;  %v1780_v8 = vld [vmem:[#allocation2 + $0x32] sm:$0xff]  ;;  %1847 = vst.msk [vmem:[#allocation3 + $0x4c] sm:$0xf] %vm560_vm15, %v1815_v53 }
 0x101   : > { %801 = vst.msk [vmem:[#allocation3 + $0x12c] sm:$0xf] %vm785_vm9, %v720_v57  ;;  %v1812_v18 = vpack.c.bf16 %v1780_v8, %v1780_v8  ;;  %v7284_v57 = vld [vmem:[#allocation3 + $0x25c] sm:$0xf]  ;;  %v1252_v8 = vld [vmem:[#allocation2 + $0xe2] sm:$0xff] }
 0x102   : > { %1674 = vrot.lane.b32.xlu0 %v7952_v1, %s7569_s10  ;;  %v714_v13 = vpop.permute.xlu1 %713  ;;  %v1568_v1 = vld [vmem:[#allocation2 + $0xc1] sm:$0xff]  ;;  %v7281_v27 = vld [vmem:[#allocation3 + $0x240] sm:$0xf0]  ;;  %888 = vst.msk [vmem:[#allocation3 + $0x7c] sm:$0xf] %vm560_vm15, %v1814_v52 }
 0x103   : > { %798 = vst.msk [vmem:[#allocation3 + $0xf0] sm:$0xf] %vm785_vm9, %v714_v13  ;;  %v8258_v52 = vld [vmem:[%s9790_s2] ss:$0 sm:$0xff] }
 0x104   : > { %v1070_v59 = vpop.permute.xlu0 %1069  ;;  %1844 = vst.msk [vmem:[#allocation3 + $0x10] sm:$0xf] %vm560_vm15, %v1812_v18  ;;  %v6494_v25 = vld [vmem:[#allocation3 + $0x230] sm:$0xf] }
 0x105   : > { %1136 = vst.msk [vmem:[#allocation3 + $0x248] sm:$0xf] %vm785_vm9, %v1070_v59  ;;  %v6495_v23 = vor.u32 %v7281_v27, %v6494_v25  ;;  %v1176_v59 = vpack.c.bf16 %v1144_v3, %v1144_v3 }
 0x106   : > { %1033 = vrot.lane.b32.xlu2 %v8110_v24, %s7569_s10  ;;  %v1600_v24 = vpack.c.bf16 %v1568_v1, %v1568_v1  ;;  %886 = vst.msk [vmem:[#allocation3 + $0x54] sm:$0xf] %vm560_vm15, %v1812_v18  ;;  %v1574_v18 = vld [vmem:[#allocation2 + $0x109] sm:$0xff]  ;;  %v1251_v1 = vld [vmem:[#allocation2 + $0xda] sm:$0xff] }
 0x107   : > { %889 = vst.msk [vmem:[#allocation3 + $0x90] sm:$0xf] %vm560_vm15, %v1815_v53  ;;  %v1283_v25 = vpack.c.bf16 %v1251_v1, %v1251_v1  ;;  %v1575_v53 = vld [vmem:[#allocation2 + $0x111] sm:$0xff]  ;;  %v7218_v9 = vld [vmem:[#allocation3 + $0x48] sm:$0xf0] }
 0x108   : > { %1357 = vrot.lane.b32.xlu1 %v1280_v40, %s7569_s10  ;;  %v1653_v22 = vpop.permute.xlu2 %1652  ;;  %1217 = vst.msk [vmem:[#allocation3 + $0x120] sm:$0xf] %vm560_vm15, %v1600_v24  ;;  %v7246_v61 = vld [vmem:[#allocation3 + $0x128] sm:$0xf0]  ;;  %v1175_v40 = vpack.c.bf16 %v1143_v14, %v1143_v14 }
 0x109   : > { %1748 = vst.msk [vmem:[#allocation3 + $0xc] sm:$0xf] %vm785_vm9, %v1653_v22  ;;  %v8235_v22 = vpack.c.bf16 %v1574_v18, %v1574_v18 }
 0x10a   : > { %1355 = vrot.lane.b32.xlu0 %v1279_v19, %s7569_s10  ;;  %v752_v28 = vpop.permute.xlu1 %751  ;;  %v6334_v29 = vld [vmem:[#allocation3 + $0xf0] sm:$0xf]  ;;  %1537 = vst.msk [vmem:[#allocation3 + $0x110] sm:$0xf] %vm560_vm15, %v962_v11  ;;  %v1284_v19 = vpack.c.bf16 %v1252_v8, %v1252_v8 }
 0x10b   : > { %817 = vst.msk [vmem:[#allocation3 + $0x26c] sm:$0xf] %vm785_vm9, %v752_v28  ;;  %v6335_v33 = vor.u32 %v7241_v20, %v6334_v29  ;;  %v6230_v27 = vld [vmem:[#allocation3 + $0x10] sm:$0xf]  ;;  %v7213_v28 = vld [vmem:[#allocation3 + $0x20] sm:$0xf0] }
 0x10c   : > { %v750_v39 = vpop.permute.xlu0 %749  ;;  %v6496_v41 = vld [vmem:[#allocation3 + $0x244] sm:$0xf0]  ;;  %1219 = vst.msk [vmem:[#allocation3 + $0x148] sm:$0xf] %vm560_vm15, %v1602_v5 }
 0x10d   : > { %816 = vst.msk [vmem:[#allocation3 + $0x258] sm:$0xf] %vm785_vm9, %v750_v39  ;;  %2750 = vmatmul.bf16.gmra.mxu0 %v6335_v33  ;;  %v6499_v43 = vor.u32 %v7279_v6, %v6496_v41  ;;  %v6231_v33 = vor.u32 %v7213_v28, %v6230_v27  ;;  %v1604_v41 = vpack.c.bf16 %v1572_v35, %v1572_v35  ;;  %v1786_v27 = vld [vmem:[#allocation2 + $0x7a] sm:$0xff]  ;;  %v1787_v28 = vld [vmem:[#allocation2 + $0x82] sm:$0xff] }
 0x10e   : > { %1676 = vrot.lane.b32.xlu2 %v1600_v24, %s7569_s10  ;;  %1208 = vst.msk [vmem:[#allocation3 + $0x6c] sm:$0xf] %vm560_vm15, %v1176_v59  ;;  %v1819_v35 = vpack.c.bf16 %v1787_v28, %v1787_v28 }
 0x10f   : > { %2790 = vmatmul.bf16.gmra.mxu2 %v6495_v23  ;;  %2879 = vmatmul.bf16.gmra.mxu3 %v6499_v43  ;;  %1207 = vst.msk [vmem:[#allocation3 + $0x58] sm:$0xf] %vm560_vm15, %v1175_v40  ;;  %v1573_v43 = vld [vmem:[#allocation2 + $0xf9] sm:$0xff] }
 0x110   : > { %1035 = vrot.lane.b32.xlu1 %v8140_v54, %s7569_s10  ;;  %v1014_v45 = vpop.permute.xlu2 %1013  ;;  %1859 = vst.msk [vmem:[#allocation3 + $0x13c] sm:$0xf] %vm560_vm15, %v1284_v19  ;;  %v7210_v23 = vld [vmem:[#allocation3 + $0xc] sm:$0xf]  ;;  %v1605_v50 = vpack.c.bf16 %v1573_v43, %v1573_v43 }
 0x111   : > { %1108 = vst.msk [vmem:[#allocation3 + $0x18] sm:$0xf] %vm785_vm9, %v1014_v45  ;;  %v1285_v45 = vpack.c.bf16 %v1253_v34, %v1253_v34 }
 0x112   : > { %1678 = vrot.lane.b32.xlu0 %v1601_v16, %s7569_s10  ;;  %v718_v31 = vpop.permute.xlu1 %717  ;;  %v7286_v63 = vld [vmem:[#allocation3 + $0x268] sm:$0xf0]  ;;  %1223 = vst.msk [vmem:[#allocation3 + $0x198] sm:$0xf] %vm560_vm15, %v8235_v22 }
 0x113   : > { %800 = vst.msk [vmem:[#allocation3 + $0x118] sm:$0xf] %vm785_vm9, %v718_v31 }
 0x114   : > { %v1074_v54 = vpop.permute.xlu0 %1073  ;;  %1221 = vst.msk [vmem:[#allocation3 + $0x170] sm:$0xf] %vm560_vm15, %v1604_v41 }
 0x115   : > { %1138 = vst.msk [vmem:[#allocation3 + $0x270] sm:$0xf] %vm785_vm9, %v1074_v54  ;;  %v1178_v54 = vpack.c.bf16 %v1146_v26, %v1146_v26 }
 0x116   : > { %1037 = vrot.lane.b32.xlu2 %v8147_v36, %s7569_s10  ;;  %v6514_v36 = vld [vmem:[#allocation3 + $0x258] sm:$0xf]  ;;  %1848 = vst.msk [vmem:[#allocation3 + $0x60] sm:$0xf] %vm560_vm15, %v1816_v49 }
 0x117   : > { %v6515_v12 = vor.u32 %v7286_v63, %v6514_v36  ;;  %1210 = vst.msk [vmem:[#allocation3 + $0x94] sm:$0xf] %vm560_vm15, %v1178_v54 }
 0x118   : > { %1361 = vrot.lane.b32.xlu1 %v1282_v51, %s7569_s10  ;;  %v1657_v62 = vpop.permute.xlu2 %1656  ;;  %v6216_v29 = vld [vmem:[#allocation3 + $0x14] sm:$0xf0]  ;;  %v8243_v30 = vpop.f32.mrf.mxu0  ;;  %v1817_v51 = vpack.c.bf16 %v1785_v47, %v1785_v47  ;;  %890 = vst.msk [vmem:[#allocation3 + $0xa4] sm:$0xf] %vm560_vm15, %v1816_v49 }
 0x119   : > { %1750 = vst.msk [vmem:[#allocation3 + $0x34] sm:$0xf] %vm785_vm9, %v1657_v62 }
 0x11a   : > { %1359 = vrot.lane.b32.xlu0 %v1281_v55, %s7569_s10  ;;  %v1334_v2 = vpop.permute.xlu1 %1333  ;;  %v6354_v4 = vld [vmem:[#allocation3 + $0x118] sm:$0xf]  ;;  %1849 = vst.msk [vmem:[#allocation3 + $0x74] sm:$0xf] %vm560_vm15, %v1817_v51 }
 0x11b   : > { %1428 = vst.msk [vmem:[#allocation3 + $0x1c] sm:$0xf] %vm785_vm9, %v1334_v2  ;;  %v6355_v7 = vor.u32 %v7246_v61, %v6354_v4  ;;  %v1256_v61 = vld [vmem:[#allocation2 + $0x112] sm:$0xff]  ;;  %v1607_v4 = vpack.c.bf16 %v1575_v53, %v1575_v53 }
 0x11c   : > { %v1332_v10 = vpop.permute.xlu0 %1331  ;;  %v6516_v38 = vld [vmem:[#allocation3 + $0x26c] sm:$0xf0]  ;;  %891 = vst.msk [vmem:[#allocation3 + $0xb8] sm:$0xf] %vm560_vm15, %v1817_v51 }
 0x11d   : > { %1427 = vst.msk [vmem:[#allocation3 + $0x8] sm:$0xf] %vm785_vm9, %v1332_v10  ;;  %2755 = vmatmul.bf16.gmra.mxu0 %v6355_v7  ;;  %v6519_v13 = vor.u32 %v7284_v57, %v6516_v38  ;;  %v6250_v7 = vld [vmem:[#allocation3 + $0x38] sm:$0xf]  ;;  %v1608_v10 = vpack.c.bf16 %v1576_v0, %v1576_v0  ;;  %v1254_v57 = vld [vmem:[#allocation2 + $0xfa] sm:$0xff] }
 0x11e   : > { %1680 = vrot.lane.b32.xlu2 %v1602_v5, %s7569_s10  ;;  %v1288_v5 = vpack.c.bf16 %v1256_v61, %v1256_v61  ;;  %1851 = vst.msk [vmem:[#allocation3 + $0x9c] sm:$0xf] %vm560_vm15, %v1819_v35 }
 0x11f   : > { %2795 = vmatmul.bf16.gmra.mxu2 %v6515_v12  ;;  %2884 = vmatmul.bf16.gmra.mxu3 %v6519_v13  ;;  %v1286_v13 = vpack.c.bf16 %v1254_v57, %v1254_v57  ;;  %1225 = vst.msk [vmem:[#allocation3 + $0x1c0] sm:$0xf] %vm560_vm15, %v1608_v10 }
 0x120   : > { %1039 = vrot.lane.b32.xlu1 %v8198_v44, %s7569_s10  ;;  %v1018_v17 = vpop.permute.xlu2 %1017  ;;  %v8263_v62 = vpop.f32.mrf.mxu0  ;;  %1863 = vst.msk [vmem:[#allocation3 + $0x18c] sm:$0xf] %vm560_vm15, %v1288_v5 }
 0x121   : > { %1110 = vst.msk [vmem:[#allocation3 + $0x40] sm:$0xf] %vm785_vm9, %v1018_v17 }
 0x122   : > { %1682 = vrot.lane.b32.xlu0 %v1603_v15, %s7569_s10  ;;  %v1012_v60 = vpop.permute.xlu1 %1011  ;;  %v7212_v6 = vld [vmem:[#allocation3 + $0x18] sm:$0xf0]  ;;  %v6251_v15 = vor.u32 %v7218_v9, %v6250_v7  ;;  %1861 = vst.msk [vmem:[#allocation3 + $0x164] sm:$0xf] %vm560_vm15, %v1286_v13  ;;  %v1579_v7 = vld [vmem:[#allocation2 + $0x141] sm:$0xff] }
 0x123   : > { %1107 = vst.msk [vmem:[#allocation3 + $0x4] sm:$0xf] %vm785_vm9, %v1012_v60 }
 0x124   : > { %v1655_v20 = vpop.permute.xlu0 %1654  ;;  %v6222_v39 = vld [vmem:[#allocation3 + $0x8] sm:$0xf]  ;;  %893 = vst.msk [vmem:[#allocation3 + $0xe0] sm:$0xf] %vm560_vm15, %v1819_v35 }
 0x125   : > { %1749 = vst.msk [vmem:[#allocation3 + $0x20] sm:$0xf] %vm785_vm9, %v1655_v20  ;;  %v6223_v48 = vor.u32 %v7212_v6, %v6222_v39  ;;  %v1255_v39 = vld [vmem:[#allocation2 + $0x10a] sm:$0xff] }
 0x126   : > { %1041 = vrot.lane.b32.xlu2 %v962_v11, %s7569_s10 }
 0x128   : > { %1365 = vrot.lane.b32.xlu1 %v1284_v19, %s7569_s10  ;;  %v1661_v24 = vpop.permute.xlu2 %1660  ;;  %v6236_v11 = vld [vmem:[#allocation3 + $0x3c] sm:$0xf0]  ;;  %v7215_v19 = vld [vmem:[#allocation3 + $0x34] sm:$0xf] }
 0x129   : > { %1752 = vst.msk [vmem:[#allocation3 + $0x5c] sm:$0xf] %vm785_vm9, %v1661_v24  ;;  %v1148_v24 = vld [vmem:[#allocation2 + $0x81] sm:$0xff] }
 0x12a   : > { %1363 = vrot.lane.b32.xlu0 %v1283_v25, %s7569_s10  ;;  %v1338_v32 = vpop.permute.xlu1 %1337  ;;  %v7209_v37 = vld [vmem:[#allocation3 + $0x4] sm:$0xf]  ;;  %v1180_v34 = vpack.c.bf16 %v1148_v24, %v1148_v24 }
 0x12b   : > { %1430 = vst.msk [vmem:[#allocation3 + $0x44] sm:$0xf] %vm785_vm9, %v1338_v32  ;;  %v6219_v42 = vor.u32 %v7209_v37, %v6216_v29  ;;  %v1258_v37 = vld [vmem:[#allocation2 + $0x12a] sm:$0xff] }
 0x12c   : > { %v1336_v16 = vpop.permute.xlu0 %1335  ;;  %v6224_v44 = vld [vmem:[#allocation3 + $0x1c] sm:$0xf0]  ;;  %1212 = vst.msk [vmem:[#allocation3 + $0xbc] sm:$0xf] %vm560_vm15, %v1180_v34  ;;  %v1290_v46 = vpack.c.bf16 %v1258_v37, %v1258_v37 }
 0x12d   : > { %1429 = vst.msk [vmem:[#allocation3 + $0x30] sm:$0xf] %vm785_vm9, %v1336_v16  ;;  %2809 = vmatmul.bf16.vlgmr.msra.gmra.mxu1 %v6219_v42  ;;  %v6227_v31 = vor.u32 %v7210_v23, %v6224_v44  ;;  %6676 = vmatmul.msk.bf16.vlgmr.msrb.gmra.mxu0 %vm440_vm0, %v6231_v33  ;;  %v1818_v33 = vpack.c.bf16 %v1786_v27, %v1786_v27  ;;  %v1257_v44 = vld [vmem:[#allocation2 + $0x122] sm:$0xff] }
 0x12e   : > { %1684 = vrot.lane.b32.xlu2 %v1604_v41, %s7569_s10  ;;  %v1287_v42 = vpack.c.bf16 %v1255_v39, %v1255_v39  ;;  %v1289_v26 = vpack.c.bf16 %v1257_v44, %v1257_v44  ;;  %1865 = vst.msk [vmem:[#allocation3 + $0x1b4] sm:$0xf] %vm560_vm15, %v1290_v46 }
 0x12f   : > { %2898 = vmatmul.bf16.vlgmr.msrb.gmra.mxu2 %v6223_v48  ;;  %2987 = vmatmul.bf16.vlgmr.msrb.gmra.mxu3 %v6227_v31  ;;  %1850 = vst.msk [vmem:[#allocation3 + $0x88] sm:$0xf] %vm560_vm15, %v1818_v33  ;;  %v6270_v48 = vld [vmem:[#allocation3 + $0x60] sm:$0xf]  ;;  %v7223_v31 = vld [vmem:[#allocation3 + $0x70] sm:$0xf0] }
 0x130   : > { %v2850_v21 = vpop.f32.mrf.mxu3  ;;  %1367 = vrot.lane.b32.xlu1 %v1285_v45, %s7569_s10  ;;  %v1022_v56 = vpop.permute.xlu2 %1021  ;;  %892 = vst.msk [vmem:[#allocation3 + $0xcc] sm:$0xf] %vm560_vm15, %v1818_v33  ;;  %v7228_v33 = vld [vmem:[#allocation3 + $0x98] sm:$0xf0] }
 0x131   : > { %1112 = vst.msk [vmem:[#allocation3 + $0x68] sm:$0xf] %vm785_vm9, %v1022_v56  ;;  %v1577_v56 = vld [vmem:[#allocation2 + $0x129] sm:$0xff] }
 0x132   : > { %v2761_v55 = vpop.f32.mrf.mxu2  ;;  %1686 = vrot.lane.b32.xlu0 %v1605_v50, %s7569_s10  ;;  %v1016_v58 = vpop.permute.xlu1 %1015  ;;  %v7217_v14 = vld [vmem:[#allocation3 + $0x40] sm:$0xf0]  ;;  %1862 = vst.msk [vmem:[#allocation3 + $0x178] sm:$0xf] %vm560_vm15, %v1287_v42  ;;  %v1609_v61 = vpack.c.bf16 %v1577_v56, %v1577_v56 }
 0x133   : > { %v2762_v63 = vadd.f32 %v8258_v52, %v2761_v55  ;;  %1109 = vst.msk [vmem:[#allocation3 + $0x2c] sm:$0xf] %vm785_vm9, %v1016_v58  ;;  %v7220_v58 = vld [vmem:[#allocation3 + $0x5c] sm:$0xf] }
 0x134   : > { %v1659_v2 = vpop.permute.xlu0 %1658  ;;  %v6242_v3 = vld [vmem:[#allocation3 + $0x30] sm:$0xf]  ;;  %1226 = vst.msk [vmem:[#allocation3 + $0x1d4] sm:$0xf] %vm560_vm15, %v1609_v61 }
 0x135   : > { %v8268_v36 = vadd.f32 %v2850_v21, %v2762_v63  ;;  %1751 = vst.msk [vmem:[#allocation3 + $0x48] sm:$0xf] %vm785_vm9, %v1659_v2  ;;  %v6243_v20 = vor.u32 %v7217_v14, %v6242_v3  ;;  %v6271_v21 = vor.u32 %v7223_v31, %v6270_v48  ;;  %v1150_v3 = vld [vmem:[#allocation2 + $0x99] sm:$0xff] }
 0x136   : > { %1369 = vrot.lane.b32.xlu2 %v1286_v13, %s7569_s10  ;;  %v6290_v24 = vld [vmem:[#allocation3 + $0x88] sm:$0xf] }
 0x137   : > { %v6291_v39 = vor.u32 %v7228_v33, %v6290_v24 }
 0x138   : > { %v2852_v38 = vpop.f32.mrf.mxu3  ;;  %1690 = vrot.lane.b32.xlu1 %v1607_v4, %s7569_s10  ;;  %v1665_v12 = vpop.permute.xlu2 %1664  ;;  %v6256_v51 = vld [vmem:[#allocation3 + $0x64] sm:$0xf0] }
 0x139   : > { %1754 = vst.msk [vmem:[#allocation3 + $0x84] sm:$0xf] %vm785_vm9, %v1665_v12 }
 0x13a   : > { %v2763_v59 = vpop.f32.mrf.mxu2  ;;  %v1342_v40 = vpop.permute.xlu1 %1341  ;;  %v7214_v8 = vld [vmem:[#allocation3 + $0x2c] sm:$0xf]  ;;  %1688 = vrot.lane.b32.xlu0 %v8235_v22, %s7569_s10 }
 0x13b   : > { %v2764_v17 = vadd.f32 %v8258_v52, %v2763_v59  ;;  %1432 = vst.msk [vmem:[#allocation3 + $0x6c] sm:$0xf] %vm785_vm9, %v1342_v40  ;;  %v8282_v18 = vpop.f32.mrf.mxu0  ;;  %v6239_v60 = vor.u32 %v7214_v8, %v6236_v11  ;;  %v1789_v11 = vld [vmem:[#allocation2 + $0x9a] sm:$0xff]  ;;  %v1182_v59 = vpack.c.bf16 %v1150_v3, %v1150_v3 }
 0x13c   : > { %v1340_v1 = vpop.permute.xlu0 %1339  ;;  %v6244_v25 = vld [vmem:[#allocation3 + $0x44] sm:$0xf0]  ;;  %v1821_v40 = vpack.c.bf16 %v1789_v11, %v1789_v11 }
 0x13d   : > { %v8284_v29 = vadd.f32 %v2852_v38, %v2764_v17  ;;  %1431 = vst.msk [vmem:[#allocation3 + $0x58] sm:$0xf] %vm785_vm9, %v1340_v1  ;;  %2814 = vmatmul.bf16.gmra.mxu1 %v6239_v60  ;;  %v6247_v22 = vor.u32 %v7215_v19, %v6244_v25  ;;  %6677 = vmatmul.msk.bf16.gmra.mxu0 %vm440_vm0, %v6251_v15  ;;  %v1788_v38 = vld [vmem:[#allocation2 + $0x92] sm:$0xff]  ;;  %v1259_v8 = vld [vmem:[#allocation2 + $0x13a] sm:$0xff] }
 0x13e   : > { %1371 = vrot.lane.b32.xlu2 %v1287_v42, %s7569_s10  ;;  %v1820_v14 = vpack.c.bf16 %v1788_v38, %v1788_v38  ;;  %v1611_v15 = vpack.c.bf16 %v1579_v7, %v1579_v7  ;;  %1214 = vst.msk [vmem:[#allocation3 + $0xe4] sm:$0xf] %vm560_vm15, %v1182_v59  ;;  %v1291_v60 = vpack.c.bf16 %v1259_v8, %v1259_v8 }
 0x13f   : > { %2903 = vmatmul.bf16.gmra.mxu2 %v6243_v20  ;;  %2992 = vmatmul.bf16.gmra.mxu3 %v6247_v22  ;;  %1853 = vst.msk [vmem:[#allocation3 + $0xc4] sm:$0xf] %vm560_vm15, %v1821_v40 }
 0x140   : > { %1692 = vrot.lane.b32.xlu1 %v1608_v10, %s7569_s10  ;;  %v1026_v32 = vpop.permute.xlu2 %1025  ;;  %1852 = vst.msk [vmem:[#allocation3 + $0xb0] sm:$0xf] %vm560_vm15, %v1820_v14 }
 0x141   : > { %1114 = vst.msk [vmem:[#allocation3 + $0x90] sm:$0xf] %vm785_vm9, %v1026_v32 }
 0x142   : > { %v2766_v6 = vpop.f32.mrf.mxu2  ;;  %v2855_v41 = vpop.f32.mrf.mxu3  ;;  %1373 = vrot.lane.b32.xlu0 %v1288_v5, %s7569_s10  ;;  %v7222_v50 = vld [vmem:[#allocation3 + $0x68] sm:$0xf0]  ;;  %894 = vst.msk [vmem:[#allocation3 + $0xf4] sm:$0xf] %vm560_vm15, %v1820_v14 }
 0x143   : > { %v2767_v23 = vadd.f32 %v8258_v52, %v2766_v6  ;;  %v1020_v43 = vpop.permute.xlu1 %1019  ;;  %v8295_v16 = vpop.f32.mrf.mxu0  ;;  %895 = vst.msk [vmem:[#allocation3 + $0x108] sm:$0xf] %vm560_vm15, %v1821_v40  ;;  %v1578_v6 = vld [vmem:[#allocation2 + $0x139] sm:$0xff] }
 0x144   : > { %1111 = vst.msk [vmem:[#allocation3 + $0x54] sm:$0xf] %vm785_vm9, %v1020_v43  ;;  %v1663_v45 = vpop.permute.xlu0 %1662  ;;  %v6262_v49 = vld [vmem:[#allocation3 + $0x58] sm:$0xf]  ;;  %v1610_v43 = vpack.c.bf16 %v1578_v6, %v1578_v6 }
 0x145   : > { %v8300_v47 = vadd.f32 %v2855_v41, %v2767_v23  ;;  %1753 = vst.msk [vmem:[#allocation3 + $0x70] sm:$0xf] %vm785_vm9, %v1663_v45  ;;  %v6263_v5 = vor.u32 %v7222_v50, %v6262_v49  ;;  %v7225_v23 = vld [vmem:[#allocation3 + $0x84] sm:$0xf] }
 0x146   : > { %1694 = vrot.lane.b32.xlu2 %v1609_v61, %s7569_s10  ;;  %1866 = vst.msk [vmem:[#allocation3 + $0x1c8] sm:$0xf] %vm560_vm15, %v1291_v60  ;;  %v7233_v11 = vld [vmem:[#allocation3 + $0xc0] sm:$0xf0] }
 0x147   : > { %1227 = vst.msk [vmem:[#allocation3 + $0x1e8] sm:$0xf] %vm560_vm15, %v1610_v43  ;;  %v6310_v38 = vld [vmem:[#allocation3 + $0xb0] sm:$0xf] }
 0x148   : > { %v1669_v54 = vpop.permute.xlu2 %1668  ;;  %1377 = vrot.lane.b32.xlu1 %v1290_v46, %s7569_s10  ;;  %v6276_v37 = vld [vmem:[#allocation3 + $0x8c] sm:$0xf0]  ;;  %v6311_v8 = vor.u32 %v7233_v11, %v6310_v38 }
 0x149   : > { %1756 = vst.msk [vmem:[#allocation3 + $0xac] sm:$0xf] %vm785_vm9, %v1669_v54  ;;  %v1790_v54 = vld [vmem:[#allocation2 + $0xaa] sm:$0xff] }
 0x14a   : > { %v2768_v53 = vpop.f32.mrf.mxu2  ;;  %v2857_v55 = vpop.f32.mrf.mxu3  ;;  %1375 = vrot.lane.b32.xlu0 %v1289_v26, %s7569_s10 }
 0x14b   : > { %v2769_v63 = vadd.f32 %v8258_v52, %v2768_v53  ;;  %v1346_v0 = vpop.permute.xlu1 %1345  ;;  %v8310_v2 = vpop.f32.mrf.mxu0  ;;  %v7219_v4 = vld [vmem:[#allocation3 + $0x54] sm:$0xf]  ;;  %v1152_v53 = vld [vmem:[#allocation2 + $0xb1] sm:$0xff] }
 0x14c   : > { %1434 = vst.msk [vmem:[#allocation3 + $0x94] sm:$0xf] %vm785_vm9, %v1346_v0  ;;  %v1344_v9 = vpop.permute.xlu0 %1343  ;;  %v6259_v10 = vor.u32 %v7219_v4, %v6256_v51  ;;  %v6264_v57 = vld [vmem:[#allocation3 + $0x6c] sm:$0xf0]  ;;  %v1791_v51 = vld [vmem:[#allocation2 + $0xb2] sm:$0xff] }
 0x14d   : > { %v8314_v12 = vadd.f32 %v2857_v55, %v2769_v63  ;;  %1433 = vst.msk [vmem:[#allocation3 + $0x80] sm:$0xf] %vm785_vm9, %v1344_v9  ;;  %v6267_v13 = vor.u32 %v7220_v58, %v6264_v57  ;;  %6678 = vmatmul.msk.bf16.gmra.mxu0 %vm440_vm0, %v6271_v21  ;;  %v1822_v55 = vpack.c.bf16 %v1790_v54, %v1790_v54 }
 0x14e   : > { %2819 = vmatmul.bf16.gmra.mxu1 %v6259_v10  ;;  %1696 = vrot.lane.b32.xlu2 %v1610_v43, %s7569_s10  ;;  %v1184_v58 = vpack.c.bf16 %v1152_v53, %v1152_v53  ;;  %v1823_v61 = vpack.c.bf16 %v1791_v51, %v1791_v51  ;;  %v1475_v51 = vld [vmem:[#allocation2 + $0xe0] sm:$0xff] }
 0x14f   : > { %2908 = vmatmul.bf16.gmra.mxu2 %v6263_v5  ;;  %2997 = vmatmul.bf16.gmra.mxu3 %v6267_v13  ;;  %1854 = vst.msk [vmem:[#allocation3 + $0xd8] sm:$0xf] %vm560_vm15, %v1822_v55  ;;  %v1260_v13 = vld [vmem:[#allocation2 + $0x142] sm:$0xff]  ;;  %v1507_v53 = vpack.c.bf16 %v1475_v51, %v1475_v51 }
 0x150   : > { %v1030_v17 = vpop.permute.xlu2 %1029  ;;  %1379 = vrot.lane.b32.xlu1 %v1291_v60, %s7569_s10  ;;  %1216 = vst.msk [vmem:[#allocation3 + $0x10c] sm:$0xf] %vm560_vm15, %v1184_v58  ;;  %v1292_v59 = vpack.c.bf16 %v1260_v13, %v1260_v13 }
 0x151   : > { %1116 = vst.msk [vmem:[#allocation3 + $0xb8] sm:$0xf] %vm785_vm9, %v1030_v17 }
 0x152   : > { %v2771_v19 = vpop.f32.mrf.mxu2  ;;  %v2860_v1 = vpop.f32.mrf.mxu3  ;;  %1698 = vrot.lane.b32.xlu0 %v1611_v15, %s7569_s10  ;;  %1855 = vst.msk [vmem:[#allocation3 + $0xec] sm:$0xf] %vm560_vm15, %v1823_v61 }
 0x153   : > { %v2772_v20 = vadd.f32 %v8258_v52, %v2771_v19  ;;  %v1024_v25 = vpop.permute.xlu1 %1023  ;;  %v8326_v27 = vpop.f32.mrf.mxu0  ;;  %v7227_v35 = vld [vmem:[#allocation3 + $0x90] sm:$0xf0]  ;;  %896 = vst.msk [vmem:[#allocation3 + $0x11c] sm:$0xf] %vm560_vm15, %v1822_v55  ;;  %v7230_v19 = vld [vmem:[#allocation3 + $0xac] sm:$0xf] }
 0x154   : > { %1113 = vst.msk [vmem:[#allocation3 + $0x7c] sm:$0xf] %vm785_vm9, %v1024_v25  ;;  %v1667_v28 = vpop.permute.xlu0 %1666  ;;  %v6282_v34 = vld [vmem:[#allocation3 + $0x80] sm:$0xf] }
 0x155   : > { %v8330_v22 = vadd.f32 %v2860_v1, %v2772_v20  ;;  %1755 = vst.msk [vmem:[#allocation3 + $0x98] sm:$0xf] %vm785_vm9, %v1667_v28  ;;  %v6283_v31 = vor.u32 %v7227_v35, %v6282_v34 }
 0x156   : > { %897 = vst.msk [vmem:[#allocation3 + $0x130] sm:$0xf] %vm560_vm15, %v1823_v61  ;;  %1381 = vrot.lane.b32.xlu2 %v1292_v59, %s7569_s10  ;;  %v6330_v58 = vld [vmem:[#allocation3 + $0xd8] sm:$0xf] }
 0x157   : > { %1867 = vst.msk [vmem:[#allocation3 + $0x1dc] sm:$0xf] %vm560_vm15, %v1292_v59 }
 0x158   : > { %v1673_v32 = vpop.permute.xlu2 %1672  ;;  %v6296_v40 = vld [vmem:[#allocation3 + $0xb4] sm:$0xf0]  ;;  %1539 = vst.msk [vmem:[#allocation3 + $0x138] sm:$0xf] %vm560_vm15, %v1507_v53 }
 0x159   : > { %1758 = vst.msk [vmem:[#allocation3 + $0xd4] sm:$0xf] %vm785_vm9, %v1673_v32  ;;  %v1792_v32 = vld [vmem:[#allocation2 + $0xc2] sm:$0xff]  ;;  %v7238_v61 = vld [vmem:[#allocation3 + $0xe8] sm:$0xf0] }
 0x15a   : > { %v2773_v41 = vpop.f32.mrf.mxu2  ;;  %v2862_v42 = vpop.f32.mrf.mxu3 }
 0x15b   : > { %v2774_v44 = vadd.f32 %v8258_v52, %v2773_v41  ;;  %v1350_v45 = vpop.permute.xlu1 %1349  ;;  %v8337_v46 = vpop.f32.mrf.mxu0  ;;  %v7224_v48 = vld [vmem:[#allocation3 + $0x7c] sm:$0xf] }
 0x15c   : > { %1436 = vst.msk [vmem:[#allocation3 + $0xbc] sm:$0xf] %vm785_vm9, %v1350_v45  ;;  %v1348_v26 = vpop.permute.xlu0 %1347  ;;  %v6279_v49 = vor.u32 %v7224_v48, %v6276_v37  ;;  %v6284_v50 = vld [vmem:[#allocation3 + $0x94] sm:$0xf0] }
 0x15d   : > { %v8341_v21 = vadd.f32 %v2862_v42, %v2774_v44  ;;  %1435 = vst.msk [vmem:[#allocation3 + $0xa8] sm:$0xf] %vm785_vm9, %v1348_v26  ;;  %v6287_v56 = vor.u32 %v7225_v23, %v6284_v50  ;;  %6679 = vmatmul.msk.bf16.gmra.mxu0 %vm440_vm0, %v6291_v39  ;;  %v1793_v37 = vld [vmem:[#allocation2 + $0xca] sm:$0xff]  ;;  %v1474_v42 = vld [vmem:[#allocation2 + $0xd8] sm:$0xff]  ;;  %v1824_v23 = vpack.c.bf16 %v1792_v32, %v1792_v32 }
 0x15e   : > { %2824 = vmatmul.bf16.gmra.mxu1 %v6279_v49  ;;  %v1154_v41 = vld [vmem:[#allocation2 + $0xc9] sm:$0xff]  ;;  %v1506_v44 = vpack.c.bf16 %v1474_v42, %v1474_v42  ;;  %v1825_v45 = vpack.c.bf16 %v1793_v37, %v1793_v37 }
 0x15f   : > { %2913 = vmatmul.bf16.gmra.mxu2 %v6283_v31  ;;  %3002 = vmatmul.bf16.gmra.mxu3 %v6287_v56  ;;  %v1186_v43 = vpack.c.bf16 %v1154_v41, %v1154_v41  ;;  %1856 = vst.msk [vmem:[#allocation3 + $0x100] sm:$0xf] %vm560_vm15, %v1824_v23  ;;  %v1477_v41 = vld [vmem:[#allocation2 + $0xf8] sm:$0xff]  ;;  %v1476_v42 = vld [vmem:[#allocation2 + $0xf0] sm:$0xff] }
 0x160   : > { %v1034_v63 = vpop.permute.xlu2 %1033  ;;  %1538 = vst.msk [vmem:[#allocation3 + $0x124] sm:$0xf] %vm560_vm15, %v1506_v44  ;;  %v7235_v11 = vld [vmem:[#allocation3 + $0xd4] sm:$0xf]  ;;  %v1508_v44 = vpack.c.bf16 %v1476_v42, %v1476_v42 }
 0x161   : > { %1118 = vst.msk [vmem:[#allocation3 + $0xe0] sm:$0xf] %vm785_vm9, %v1034_v63 }
 0x162   : > { %v2776_v0 = vpop.f32.mrf.mxu2  ;;  %v2865_v4 = vpop.f32.mrf.mxu3  ;;  %1218 = vst.msk [vmem:[#allocation3 + $0x134] sm:$0xf] %vm560_vm15, %v1186_v43  ;;  %v1509_v43 = vpack.c.bf16 %v1477_v41, %v1477_v41 }
 0x163   : > { %v2777_v5 = vadd.f32 %v8258_v52, %v2776_v0  ;;  %v1028_v7 = vpop.permute.xlu1 %1027  ;;  %v8351_v9 = vpop.f32.mrf.mxu0  ;;  %v7232_v14 = vld [vmem:[#allocation3 + $0xb8] sm:$0xf0]  ;;  %1857 = vst.msk [vmem:[#allocation3 + $0x114] sm:$0xf] %vm560_vm15, %v1825_v45 }
 0x164   : > { %1115 = vst.msk [vmem:[#allocation3 + $0xa4] sm:$0xf] %vm785_vm9, %v1028_v7  ;;  %v1671_v10 = vpop.permute.xlu0 %1670  ;;  %v6302_v3 = vld [vmem:[#allocation3 + $0xa8] sm:$0xf]  ;;  %v6331_v7 = vor.u32 %v7238_v61, %v6330_v58 }
 0x165   : > { %v8355_v57 = vadd.f32 %v2865_v4, %v2777_v5  ;;  %1757 = vst.msk [vmem:[#allocation3 + $0xc0] sm:$0xf] %vm785_vm9, %v1671_v10  ;;  %v6303_v24 = vor.u32 %v7232_v14, %v6302_v3 }
 0x166   : > { %1541 = vst.msk [vmem:[#allocation3 + $0x160] sm:$0xf] %vm560_vm15, %v1509_v43 }
 0x167   : > { %1540 = vst.msk [vmem:[#allocation3 + $0x14c] sm:$0xf] %vm560_vm15, %v1508_v44 }
 0x168   : > { %v1677_v15 = vpop.permute.xlu2 %1676  ;;  %v6316_v5 = vld [vmem:[#allocation3 + $0xdc] sm:$0xf0] }
 0x169   : > { %1760 = vst.msk [vmem:[#allocation3 + $0xfc] sm:$0xf] %vm785_vm9, %v1677_v15 }
 0x16a   : > { %v2778_v17 = vpop.f32.mrf.mxu2  ;;  %v2867_v60 = vpop.f32.mrf.mxu3 }
 0x16b   : > { %v2779_v1 = vadd.f32 %v8258_v52, %v2778_v17  ;;  %v1354_v20 = vpop.permute.xlu1 %1353  ;;  %v8363_v25 = vpop.f32.mrf.mxu0  ;;  %v7229_v28 = vld [vmem:[#allocation3 + $0xa4] sm:$0xf] }
 0x16c   : > { %1438 = vst.msk [vmem:[#allocation3 + $0xe4] sm:$0xf] %vm785_vm9, %v1354_v20  ;;  %v1352_v33 = vpop.permute.xlu0 %1351  ;;  %v6299_v34 = vor.u32 %v7229_v28, %v6296_v40  ;;  %v6304_v35 = vld [vmem:[#allocation3 + $0xbc] sm:$0xf0] }
 0x16d   : > { %v8366_v39 = vadd.f32 %v2867_v60, %v2779_v1  ;;  %1437 = vst.msk [vmem:[#allocation3 + $0xd0] sm:$0xf] %vm785_vm9, %v1352_v33  ;;  %v6307_v6 = vor.u32 %v7230_v19, %v6304_v35  ;;  %6680 = vmatmul.msk.bf16.gmra.mxu0 %vm440_vm0, %v6311_v8  ;;  %v1794_v60 = vld [vmem:[#allocation2 + $0xda] sm:$0xff] }
 0x16e   : > { %2829 = vmatmul.bf16.gmra.mxu1 %v6299_v34  ;;  %v1826_v20 = vpack.c.bf16 %v1794_v60, %v1794_v60 }
 0x16f   : > { %2918 = vmatmul.bf16.gmra.mxu2 %v6303_v24  ;;  %3007 = vmatmul.bf16.gmra.mxu3 %v6307_v6  ;;  %v1156_v24 = vld [vmem:[#allocation2 + $0xe1] sm:$0xff] }
 0x170   : > { %v1038_v48 = vpop.permute.xlu2 %1037  ;;  %1858 = vst.msk [vmem:[#allocation3 + $0x128] sm:$0xf] %vm560_vm15, %v1826_v20  ;;  %v1188_v35 = vpack.c.bf16 %v1156_v24, %v1156_v24  ;;  %v7240_v61 = vld [vmem:[#allocation3 + $0xfc] sm:$0xf] }
 0x171   : > { %1120 = vst.msk [vmem:[#allocation3 + $0x108] sm:$0xf] %vm785_vm9, %v1038_v48  ;;  %v6350_v48 = vld [vmem:[#allocation3 + $0x100] sm:$0xf]  ;;  %v1478_v24 = vld [vmem:[#allocation2 + $0x108] sm:$0xff] }
 0x172   : > { %v2781_v31 = vpop.f32.mrf.mxu2  ;;  %v2870_v26 = vpop.f32.mrf.mxu3  ;;  %1220 = vst.msk [vmem:[#allocation3 + $0x15c] sm:$0xf] %vm560_vm15, %v1188_v35 }
 0x173   : > { %v2782_v49 = vadd.f32 %v8258_v52, %v2781_v31  ;;  %v1032_v50 = vpop.permute.xlu1 %1031  ;;  %v8375_v54 = vpop.f32.mrf.mxu0  ;;  %v7237_v0 = vld [vmem:[#allocation3 + $0xe0] sm:$0xf0]  ;;  %v7243_v31 = vld [vmem:[#allocation3 + $0x110] sm:$0xf0] }
 0x174   : > { %1117 = vst.msk [vmem:[#allocation3 + $0xcc] sm:$0xf] %vm785_vm9, %v1032_v50  ;;  %v1675_v56 = vpop.permute.xlu0 %1674  ;;  %v6322_v63 = vld [vmem:[#allocation3 + $0xd0] sm:$0xf] }
 0x175   : > { %v8379_v55 = vadd.f32 %v2870_v26, %v2782_v49  ;;  %1759 = vst.msk [vmem:[#allocation3 + $0xe8] sm:$0xf] %vm785_vm9, %v1675_v56  ;;  %v6323_v59 = vor.u32 %v7237_v0, %v6322_v63  ;;  %v6351_v56 = vor.u32 %v7243_v31, %v6350_v48 }
 0x177   : > { %v6370_v42 = vld [vmem:[#allocation3 + $0x128] sm:$0xf] }
 0x178   : > { %v1681_v4 = vpop.permute.xlu2 %1680  ;;  %v6336_v51 = vld [vmem:[#allocation3 + $0x104] sm:$0xf0] }
 0x179   : > { %1762 = vst.msk [vmem:[#allocation3 + $0x124] sm:$0xf] %vm785_vm9, %v1681_v4 }
 0x17a   : > { %v2783_v10 = vpop.f32.mrf.mxu2  ;;  %v2872_v38 = vpop.f32.mrf.mxu3 }
 0x17b   : > { %v2784_v13 = vadd.f32 %v8258_v52, %v2783_v10  ;;  %v1358_v3 = vpop.permute.xlu1 %1357  ;;  %v8385_v14 = vpop.f32.mrf.mxu0  ;;  %v7234_v15 = vld [vmem:[#allocation3 + $0xcc] sm:$0xf] }
 0x17c   : > { %1440 = vst.msk [vmem:[#allocation3 + $0x10c] sm:$0xf] %vm785_vm9, %v1358_v3  ;;  %v1356_v40 = vpop.permute.xlu0 %1355  ;;  %v6319_v8 = vor.u32 %v7234_v15, %v6316_v5  ;;  %v6324_v17 = vld [vmem:[#allocation3 + $0xe4] sm:$0xf0] }
 0x17d   : > { %v8388_v19 = vadd.f32 %v2872_v38, %v2784_v13  ;;  %1439 = vst.msk [vmem:[#allocation3 + $0xf8] sm:$0xf] %vm785_vm9, %v1356_v40  ;;  %v6327_v1 = vor.u32 %v7235_v11, %v6324_v17  ;;  %6681 = vmatmul.msk.bf16.gmra.mxu0 %vm440_vm0, %v6331_v7  ;;  %v1796_v13 = vld [vmem:[#allocation2 + $0xf2] sm:$0xff] }
 0x17e   : > { %2834 = vmatmul.bf16.gmra.mxu1 %v6319_v8  ;;  %v1158_v40 = vld [vmem:[#allocation2 + $0xf9] sm:$0xff] }
 0x17f   : > { %2923 = vmatmul.bf16.gmra.mxu2 %v6323_v59  ;;  %3012 = vmatmul.bf16.gmra.mxu3 %v6327_v1  ;;  %v1828_v59 = vpack.c.bf16 %v1796_v13, %v1796_v13  ;;  %v1190_v60 = vpack.c.bf16 %v1158_v40, %v1158_v40 }
 0x180   : > { %v1042_v28 = vpop.permute.xlu2 %1041 }
 0x181   : > { %1122 = vst.msk [vmem:[#allocation3 + $0x130] sm:$0xf] %vm785_vm9, %v1042_v28 }
 0x182   : > { %v2786_v33 = vpop.f32.mrf.mxu2  ;;  %v2875_v34 = vpop.f32.mrf.mxu3  ;;  %1860 = vst.msk [vmem:[#allocation3 + $0x150] sm:$0xf] %vm560_vm15, %v1828_v59 }
 0x183   : > { %v2787_v32 = vadd.f32 %v8258_v52, %v2786_v33  ;;  %v1036_v37 = vpop.permute.xlu1 %1035  ;;  %v8395_v6 = vpop.f32.mrf.mxu0  ;;  %v7242_v49 = vld [vmem:[#allocation3 + $0x108] sm:$0xf0]  ;;  %v1479_v33 = vld [vmem:[#allocation2 + $0x110] sm:$0xff]  ;;  %1222 = vst.msk [vmem:[#allocation3 + $0x184] sm:$0xf] %vm560_vm15, %v1190_v60  ;;  %v1480_v60 = vld [vmem:[#allocation2 + $0x120] sm:$0xff] }
 0x184   : > { %1119 = vst.msk [vmem:[#allocation3 + $0xf4] sm:$0xf] %vm785_vm9, %v1036_v37  ;;  %v1679_v23 = vpop.permute.xlu0 %1678  ;;  %v6342_v26 = vld [vmem:[#allocation3 + $0xf8] sm:$0xf]  ;;  %v1511_v41 = vpack.c.bf16 %v1479_v33, %v1479_v33 }
 0x185   : > { %v8398_v45 = vadd.f32 %v2875_v34, %v2787_v32  ;;  %1761 = vst.msk [vmem:[#allocation3 + $0x110] sm:$0xf] %vm785_vm9, %v1679_v23  ;;  %v6343_v7 = vor.u32 %v7242_v49, %v6342_v26  ;;  %v1510_v32 = vpack.c.bf16 %v1478_v24, %v1478_v24  ;;  %v7248_v23 = vld [vmem:[#allocation3 + $0x138] sm:$0xf0]  ;;  %v1512_v24 = vpack.c.bf16 %v1480_v60, %v1480_v60 }
 0x186   : > { %v6371_v31 = vor.u32 %v7248_v23, %v6370_v42  ;;  %1543 = vst.msk [vmem:[#allocation3 + $0x188] sm:$0xf] %vm560_vm15, %v1511_v41  ;;  %v7253_v42 = vld [vmem:[#allocation3 + $0x160] sm:$0xf0] }
 0x187   : > { %1542 = vst.msk [vmem:[#allocation3 + $0x174] sm:$0xf] %vm560_vm15, %v1510_v32 }
 0x188   : > { %v1685_v50 = vpop.permute.xlu2 %1684  ;;  %v6356_v48 = vld [vmem:[#allocation3 + $0x12c] sm:$0xf0]  ;;  %1544 = vst.msk [vmem:[#allocation3 + $0x19c] sm:$0xf] %vm560_vm15, %v1512_v24 }
 0x189   : > { %1764 = vst.msk [vmem:[#allocation3 + $0x14c] sm:$0xf] %vm785_vm9, %v1685_v50  ;;  %v7245_v50 = vld [vmem:[#allocation3 + $0x124] sm:$0xf]  ;;  %v6390_v41 = vld [vmem:[#allocation3 + $0x150] sm:$0xf] }
 0x18a   : > { %v2788_v53 = vpop.f32.mrf.mxu2  ;;  %v2877_v58 = vpop.f32.mrf.mxu3 }
 0x18b   : > { %v2789_v63 = vadd.f32 %v8258_v52, %v2788_v53  ;;  %v1362_v0 = vpop.permute.xlu1 %1361  ;;  %v8406_v4 = vpop.f32.mrf.mxu0  ;;  %v7239_v5 = vld [vmem:[#allocation3 + $0xf4] sm:$0xf] }
 0x18c   : > { %1442 = vst.msk [vmem:[#allocation3 + $0x134] sm:$0xf] %vm785_vm9, %v1362_v0  ;;  %v1360_v10 = vpop.permute.xlu0 %1359  ;;  %v6339_v38 = vor.u32 %v7239_v5, %v6336_v51  ;;  %v6344_v11 = vld [vmem:[#allocation3 + $0x10c] sm:$0xf0] }
 0x18d   : > { %v8409_v3 = vadd.f32 %v2877_v58, %v2789_v63  ;;  %1441 = vst.msk [vmem:[#allocation3 + $0x120] sm:$0xf] %vm785_vm9, %v1360_v10  ;;  %v6347_v15 = vor.u32 %v7240_v61, %v6344_v11  ;;  %6682 = vmatmul.msk.bf16.gmra.mxu0 %vm440_vm0, %v6351_v56  ;;  %v1160_v11 = vld [vmem:[#allocation2 + $0x111] sm:$0xff] }
 0x18e   : > { %2839 = vmatmul.bf16.gmra.mxu1 %v6339_v38  ;;  %v1192_v59 = vpack.c.bf16 %v1160_v11, %v1160_v11 }
 0x18f   : > { %2928 = vmatmul.bf16.gmra.mxu2 %v6343_v7  ;;  %3017 = vmatmul.bf16.gmra.mxu3 %v6347_v15 }
 0x190   : > { %v1370_v35 = vpop.permute.xlu2 %1369  ;;  %1224 = vst.msk [vmem:[#allocation3 + $0x1ac] sm:$0xf] %vm560_vm15, %v1192_v59  ;;  %v2722_v59 = vadd.f32 %v8258_v52, %v8243_v30  ;;  %v6410_v30 = vld [vmem:[#allocation3 + $0x178] sm:$0xf] }
 0x191   : > { %1446 = vst.msk [vmem:[#allocation3 + $0x184] sm:$0xf] %vm785_vm9, %v1370_v35 }
 0x192   : > { %v2791_v8 = vpop.f32.mrf.mxu2  ;;  %v2880_v17 = vpop.f32.mrf.mxu3 }
 0x193   : > { %v2792_v1 = vadd.f32 %v8258_v52, %v2791_v8  ;;  %v1040_v20 = vpop.permute.xlu1 %1039  ;;  %v8415_v28 = vpop.f32.mrf.mxu0  ;;  %v7247_v44 = vld [vmem:[#allocation3 + $0x130] sm:$0xf0] }
 0x194   : > { %1121 = vst.msk [vmem:[#allocation3 + $0x11c] sm:$0xf] %vm785_vm9, %v1040_v20  ;;  %v1683_v34 = vpop.permute.xlu0 %1682  ;;  %v6362_v43 = vld [vmem:[#allocation3 + $0x120] sm:$0xf] }
 0x195   : > { %v8418_v37 = vadd.f32 %v2880_v17, %v2792_v1  ;;  %1763 = vst.msk [vmem:[#allocation3 + $0x138] sm:$0xf] %vm785_vm9, %v1683_v34  ;;  %v6363_v58 = vor.u32 %v7247_v44, %v6362_v43  ;;  %v1580_v1 = vld [vmem:[#allocation2 + $0x151] sm:$0xff]  ;;  %v1481_v34 = vld [vmem:[#allocation2 + $0x128] sm:$0xff] }
 0x196   : > { %v1612_v33 = vpack.c.bf16 %v1580_v1, %v1580_v1  ;;  %v1513_v32 = vpack.c.bf16 %v1481_v34, %v1481_v34  ;;  %v1582_v34 = vld [vmem:[#allocation2 + $0x169] sm:$0xff] }
 0x198   : > { %v1372_v38 = vpop.permute.xlu2 %1371  ;;  %1700 = vrot.lane.b32.xlu2 %v1612_v33, %s7569_s10  ;;  %1545 = vst.msk [vmem:[#allocation3 + $0x1b0] sm:$0xf] %vm560_vm15, %v1513_v32  ;;  %v1483_v33 = vld [vmem:[#allocation2 + $0x140] sm:$0xff]  ;;  %v1482_v32 = vld [vmem:[#allocation2 + $0x138] sm:$0xff] }
 0x199   : > { %1447 = vst.msk [vmem:[#allocation3 + $0x198] sm:$0xf] %vm785_vm9, %v1372_v38  ;;  %v1800_v38 = vld [vmem:[#allocation2 + $0x122] sm:$0xff] }
 0x19a   : > { %v2793_v26 = vpop.f32.mrf.mxu2  ;;  %v2882_v49 = vpop.f32.mrf.mxu3 }
 0x19b   : > { %v2794_v51 = vadd.f32 %v8258_v52, %v2793_v26  ;;  %v8426_v56 = vpop.f32.mrf.mxu0  ;;  %v7244_v53 = vld [vmem:[#allocation3 + $0x11c] sm:$0xf]  ;;  %v1366_v61 = vpop.permute.xlu1 %1365 }
 0x19c   : > { %v1364_v63 = vpop.permute.xlu0 %1363  ;;  %v6359_v0 = vor.u32 %v7244_v53, %v6356_v48  ;;  %v6364_v5 = vld [vmem:[#allocation3 + $0x134] sm:$0xf0]  ;;  %1444 = vst.msk [vmem:[#allocation3 + $0x15c] sm:$0xf] %vm785_vm9, %v1366_v61  ;;  %v6391_v48 = vor.u32 %v7253_v42, %v6390_v41  ;;  %v1262_v61 = vld [vmem:[#allocation2 + $0x15a] sm:$0xff] }
 0x19d   : > { %v8429_v7 = vadd.f32 %v2882_v49, %v2794_v51  ;;  %1443 = vst.msk [vmem:[#allocation3 + $0x148] sm:$0xf] %vm785_vm9, %v1364_v63  ;;  %v6367_v10 = vor.u32 %v7245_v50, %v6364_v5  ;;  %6683 = vmatmul.msk.bf16.gmra.mxu0 %vm440_vm0, %v6371_v31  ;;  %v7250_v49 = vld [vmem:[#allocation3 + $0x14c] sm:$0xf] }
 0x19e   : > { %2844 = vmatmul.bf16.gmra.mxu1 %v6359_v0 }
 0x19f   : > { %2933 = vmatmul.bf16.gmra.mxu2 %v6363_v58  ;;  %3022 = vmatmul.bf16.gmra.mxu3 %v6367_v10  ;;  %v1294_v10 = vpack.c.bf16 %v1262_v61, %v1262_v61 }
 0x1a0   : > { %v1695_v23 = vpop.permute.xlu2 %1694 }
 0x1a1   : > { %1769 = vst.msk [vmem:[#allocation3 + $0x1b0] sm:$0xf] %vm785_vm9, %v1695_v23  ;;  %1385 = vrot.lane.b32.xlu2 %v1294_v10, %s7569_s10  ;;  %v1515_v23 = vpack.c.bf16 %v1483_v33, %v1483_v33 }
 0x1a2   : > { %v2796_v13 = vpop.f32.mrf.mxu2  ;;  %v2885_v15 = vpop.f32.mrf.mxu3 }
 0x1a3   : > { %v2797_v40 = vadd.f32 %v8258_v52, %v2796_v13  ;;  %v8435_v8 = vpop.f32.mrf.mxu0  ;;  %v1368_v17 = vpop.permute.xlu1 %1367  ;;  %v7252_v44 = vld [vmem:[#allocation3 + $0x158] sm:$0xf0]  ;;  %1547 = vst.msk [vmem:[#allocation3 + $0x1d8] sm:$0xf] %vm560_vm15, %v1515_v23 }
 0x1a4   : > { %v1687_v20 = vpop.permute.xlu0 %1686  ;;  %1445 = vst.msk [vmem:[#allocation3 + $0x170] sm:$0xf] %vm785_vm9, %v1368_v17  ;;  %v6382_v43 = vld [vmem:[#allocation3 + $0x148] sm:$0xf] }
 0x1a5   : > { %v8438_v35 = vadd.f32 %v2885_v15, %v2797_v40  ;;  %1765 = vst.msk [vmem:[#allocation3 + $0x160] sm:$0xf] %vm785_vm9, %v1687_v20  ;;  %v6383_v58 = vor.u32 %v7252_v44, %v6382_v43  ;;  %v1832_v15 = vpack.c.bf16 %v1800_v38, %v1800_v38  ;;  %v1614_v43 = vpack.c.bf16 %v1582_v34, %v1582_v34 }
 0x1a6   : > { %v1514_v44 = vpack.c.bf16 %v1482_v32, %v1482_v32 }
 0x1a7   : > { %9818 = vst [vmem:[#allocation9_spill] sm:$0xff] %v8438_v35 }
 0x1a8   : > { %1864 = vst.msk [vmem:[#allocation3 + $0x1a0] sm:$0xf] %vm560_vm15, %v1832_v15 }
 0x1a9   : > { %1704 = vrot.lane.b32.xlu2 %v1614_v43, %s7569_s10  ;;  %1546 = vst.msk [vmem:[#allocation3 + $0x1c4] sm:$0xf] %vm560_vm15, %v1514_v44 }
 0x1aa   : > { %v2798_v31 = vpop.f32.mrf.mxu2  ;;  %v2887_v26 = vpop.f32.mrf.mxu3 }
 0x1ab   : > { %v2799_v50 = vadd.f32 %v8258_v52, %v2798_v31  ;;  %v2810_v51 = vpop.f32.mrf.mxu1  ;;  %v3077_v53 = vpop.f32.mrf.mxu0  ;;  %v7258_v31 = vld [vmem:[#allocation3 + $0x188] sm:$0xf0] }
 0x1ac   : > { %v6384_v63 = vld [vmem:[#allocation3 + $0x15c] sm:$0xf0]  ;;  %v1689_v0 = vpop.permute.xlu0 %1688  ;;  %v1691_v5 = vpop.permute.xlu1 %1690  ;;  %v2811_v40 = vadd.f32 %v2810_v51, %v2722_v59  ;;  %v6402_v51 = vld [vmem:[#allocation3 + $0x170] sm:$0xf]  ;;  %v6411_v10 = vor.u32 %v7258_v31, %v6410_v30 }
 0x1ad   : > { %v8447_v11 = vadd.f32 %v2887_v26, %v2799_v50  ;;  %v6387_v13 = vor.u32 %v7250_v49, %v6384_v63  ;;  %1766 = vst.msk [vmem:[#allocation3 + $0x174] sm:$0xf] %vm785_vm9, %v1689_v0  ;;  %6684 = vmatmul.msk.bf16.gmra.mxu0 %vm440_vm0, %v6391_v48  ;;  %v1697_v26 = vpop.permute.xlu2 %1696  ;;  %v2724_v49 = vadd.f32 %v8258_v52, %v8263_v62 }
 0x1ae   : > { %1767 = vst.msk [vmem:[#allocation3 + $0x188] sm:$0xf] %vm785_vm9, %v1691_v5 }
 0x1af   : > { %9819 = vst [vmem:[#allocation10_spill] sm:$0xff] %v8447_v11  ;;  %2938 = vmatmul.bf16.gmra.mxu2 %v6383_v58  ;;  %3027 = vmatmul.bf16.gmra.mxu3 %v6387_v13  ;;  %v7257_v58 = vld [vmem:[#allocation3 + $0x180] sm:$0xf0] }
 0x1b0   : > { %1770 = vst.msk [vmem:[#allocation3 + $0x1c4] sm:$0xf] %vm785_vm9, %v1697_v26 }
 0x1b2   : > { %v2899_v17 = vpop.f32.mrf.mxu2  ;;  %v2988_v60 = vpop.f32.mrf.mxu3 }
 0x1b3   : > { %v2900_v1 = vadd.f32 %v2899_v17, %v2811_v40  ;;  %v2812_v20 = vpop.f32.mrf.mxu1  ;;  %v3079_v24 = vpop.f32.mrf.mxu0  ;;  %v6403_v40 = vor.u32 %v7257_v58, %v6402_v51 }
 0x1b4   : > { %v1374_v41 = vpop.permute.xlu0 %1373  ;;  %v1693_v42 = vpop.permute.xlu1 %1692  ;;  %v7255_v61 = vld [vmem:[#allocation3 + $0x174] sm:$0xf]  ;;  %v2813_v5 = vadd.f32 %v2812_v20, %v2724_v49  ;;  %v2727_v20 = vadd.f32 %v8258_v52, %v8282_v18  ;;  %v6430_v18 = vld [vmem:[#allocation3 + $0x1a0] sm:$0xf] }
 0x1b5   : > { %v2989_v48 = vadd.f32 %v2988_v60, %v2900_v1  ;;  %1448 = vst.msk [vmem:[#allocation3 + $0x1ac] sm:$0xf] %vm785_vm9, %v1374_v41  ;;  %v6404_v63 = vld [vmem:[#allocation3 + $0x184] sm:$0xf0] }
 0x1b6   : > { %1768 = vst.msk [vmem:[#allocation3 + $0x19c] sm:$0xf] %vm785_vm9, %v1693_v42  ;;  %v6407_v17 = vor.u32 %v7255_v61, %v6404_v63  ;;  %v1264_v60 = vld [vmem:[#allocation2 + $0x172] sm:$0xff]  ;;  %v1584_v61 = vld [vmem:[#allocation2 + $0x181] sm:$0xff]  ;;  %v1382_v63 = vpop.permute.xlu2 %1381 }
 0x1b7   : > { %v3078_v50 = vadd.f32 %v3077_v53, %v2989_v48  ;;  %v1296_v34 = vpack.c.bf16 %v1264_v60, %v1264_v60  ;;  %v1164_v48 = vld [vmem:[#allocation2 + $0x141] sm:$0xff] }
 0x1b9   : > { %vm3157_vm12 = vcmp.ge.f32.partialorder %v3078_v50, 0.0  ;;  %v3189_v0 = vmul.f32 0.2, %v3078_v50  ;;  %1389 = vrot.lane.b32.xlu2 %v1296_v34, %s7569_s10 }
 0x1ba   : > { %v2901_v38 = vpop.f32.mrf.mxu2  ;;  %v2990_v13 = vpop.f32.mrf.mxu3 }
 0x1bb   : > { %v3221_v15 = vsel %vm3157_vm12, %v3078_v50, %v3189_v0  ;;  %v2902_v59 = vadd.f32 %v2901_v38, %v2813_v5  ;;  %v2815_v62 = vpop.f32.mrf.mxu1  ;;  %v3082_v53 = vpop.f32.mrf.mxu0  ;;  %v1196_v50 = vpack.c.bf16 %v1164_v48, %v1164_v48  ;;  %v1616_v0 = vpack.c.bf16 %v1584_v61, %v1584_v61  ;;  %v7263_v5 = vld [vmem:[#allocation3 + $0x1b0] sm:$0xf0] }
 0x1bc   : > { %3254 = vst.msk [vmem:[#allocation4 + $0x19] sm:$0xff] %vm440_vm0, %v3221_v15  ;;  %v1376_v1 = vpop.permute.xlu0 %1375  ;;  %v1378_v33 = vpop.permute.xlu1 %1377  ;;  %v2816_v23 = vadd.f32 %v2815_v62, %v2727_v20  ;;  %v6422_v62 = vld [vmem:[#allocation3 + $0x198] sm:$0xf]  ;;  %v6431_v34 = vor.u32 %v7263_v5, %v6430_v18  ;;  %v1581_v18 = vld [vmem:[#allocation2 + $0x159] sm:$0xff] }
 0x1bd   : > { %v2991_v32 = vadd.f32 %v2990_v13, %v2902_v59  ;;  %6685 = vmatmul.msk.bf16.gmra.mxu0 %vm440_vm0, %v6411_v10  ;;  %1449 = vst.msk [vmem:[#allocation3 + $0x1c0] sm:$0xf] %vm785_vm9, %v1376_v1  ;;  %v8477_v13 = vld [vmem:[%s9790_s2] ss:$0 sm:$0xff]  ;;  %v7260_v60 = vld [vmem:[#allocation3 + $0x19c] sm:$0xf] }
 0x1be   : > { %1450 = vst.msk [vmem:[#allocation3 + $0x1d4] sm:$0xf] %vm785_vm9, %v1378_v33  ;;  %v2729_v15 = vadd.f32 %v8477_v13, %v8295_v16  ;;  %v2732_v61 = vadd.f32 %v8477_v13, %v8310_v2  ;;  %v1261_v2 = vld [vmem:[#allocation2 + $0x152] sm:$0xff] }
 0x1bf   : > { %v3080_v41 = vadd.f32 %v3079_v24, %v2991_v32  ;;  %2943 = vmatmul.bf16.gmra.mxu2 %v6403_v40  ;;  %3032 = vmatmul.bf16.gmra.mxu3 %v6407_v17  ;;  %v6424_v40 = vld [vmem:[#allocation3 + $0x1ac] sm:$0xf0]  ;;  %1228 = vst.msk [vmem:[#allocation3 + $0x1fc] sm:$0xf] %vm560_vm15, %v1196_v50  ;;  %v7262_v17 = vld [vmem:[#allocation3 + $0x1a8] sm:$0xf0] }
 0x1c0   : > { %1452 = vst.msk [vmem:[#allocation3 + $0x1fc] sm:$0xf] %vm785_vm9, %v1382_v63 }
 0x1c1   : > { %vm3158_vm13 = vcmp.ge.f32.partialorder %v3080_v41, 0.0  ;;  %v3190_v42 = vmul.f32 0.2, %v3080_v41  ;;  %1708 = vrot.lane.b32.xlu2 %v1616_v0, %s7569_s10 }
 0x1c2   : > { %v2904_v43 = vpop.f32.mrf.mxu2  ;;  %v2993_v44 = vpop.f32.mrf.mxu3 }
 0x1c3   : > { %v3222_v30 = vsel %vm3158_vm13, %v3080_v41, %v3190_v42  ;;  %v2905_v31 = vadd.f32 %v2904_v43, %v2816_v23  ;;  %v2817_v26 = vpop.f32.mrf.mxu1  ;;  %v3084_v49 = vpop.f32.mrf.mxu0  ;;  %v4014_v51 = vld [vmem:[#allocation4 + $0x19] sm:$0xff]  ;;  %v6423_v42 = vor.u32 %v7262_v17, %v6422_v62  ;;  %v6427_v23 = vor.u32 %v7260_v60, %v6424_v40 }
 0x1c4   : > { %3255 = vst.msk [vmem:[#allocation4 + $0x21] sm:$0xff] %vm440_vm0, %v3222_v30  ;;  %v1699_v58 = vpop.permute.xlu0 %1698  ;;  %v1380_v24 = vpop.permute.xlu1 %1379  ;;  %v3302_v10 = vld [vmem:[#allocation4 + $0x1a] sm:$0x1]  ;;  %v4046_v38 = vpack.c.bf16 %v4014_v51, %v4014_v51  ;;  %v2818_v33 = vadd.f32 %v2817_v26, %v2729_v15 }
 0x1c5   : > { %v2994_v52 = vadd.f32 %v2993_v44, %v2905_v31  ;;  %1771 = vst.msk [vmem:[#allocation3 + $0x1d8] sm:$0xf] %vm785_vm9, %v1699_v58 }
 0x1c6   : > { %1451 = vst.msk [vmem:[#allocation3 + $0x1e8] sm:$0xf] %vm785_vm9, %v1380_v24  ;;  %v8499_v24 = vpack.c.bf16 %v1581_v18, %v1581_v18 }
 0x1c7   : > { %v3083_v59 = vadd.f32 %v3082_v53, %v2994_v52  ;;  %3321 = vst.msk [vmem:[#allocation4 + $0x18] sm:$0x1] %vm3319_vm14, %v3302_v10 }
 0x1c8   : > { %4078 = vst.msk [vmem:[#allocation5 + $0x8] sm:$0xf] %vm560_vm15, %v4046_v38 }
 0x1c9   : > { %vm3159_vm2 = vcmp.ge.f32.partialorder %v3083_v59, 0.0  ;;  %v3191_v1 = vmul.f32 0.2, %v3083_v59  ;;  %1230 = vst.msk [vmem:[#allocation3 + $0x224] sm:$0xf] %vm560_vm15, %v8499_v24 }
 0x1ca   : > { %v2906_v32 = vpop.f32.mrf.mxu2  ;;  %v2995_v20 = vpop.f32.mrf.mxu3 }
 0x1cb   : > { %v3223_v16 = vsel %vm3159_vm2, %v3083_v59, %v3191_v1  ;;  %v2907_v53 = vadd.f32 %v2906_v32, %v2818_v33  ;;  %v2820_v41 = vpop.f32.mrf.mxu1  ;;  %v3087_v43 = vpop.f32.mrf.mxu0  ;;  %v3377_v44 = vld [vmem:[#allocation4 + $0x20] sm:$0xff]  ;;  %v8510_v32 = vpack.c.bf16 %v1261_v2, %v1261_v2 }
 0x1cc   : > { %v3339_v48 = vld [vmem:[#allocation4 + $0x27] sm:$0x1]  ;;  %3256 = vst.msk [vmem:[#allocation4 + $0x31] sm:$0xff] %vm440_vm0, %v3223_v16  ;;  %v8487_v30 = vpack.c.bf16 %v3377_v44, %v3377_v44  ;;  %v4110_v31 = vld [vmem:[#allocation4 + $0x1a] sm:$0xff]  ;;  %v2821_v5 = vadd.f32 %v2820_v41, %v2732_v61 }
 0x1cd   : > { %v4015_v26 = vld [vmem:[#allocation4 + $0x21] sm:$0xff]  ;;  %v2996_v50 = vadd.f32 %v2995_v20, %v2907_v53  ;;  %6686 = vmatmul.msk.bf16.gmra.mxu0 %vm440_vm0, %v6431_v34  ;;  %3357 = vst.msk [vmem:[#allocation4 + $0x29] sm:$0x1] %vm3319_vm14, %v3339_v48  ;;  %v8491_v51 = vpack.c.bf16 %v4110_v31, %v4110_v31  ;;  %v7268_v41 = vld [vmem:[#allocation3 + $0x1d8] sm:$0xf0] }
 0x1ce   : > { %3441 = vst.msk [vmem:[#allocation5 + $0x3c] sm:$0xf] %vm560_vm15, %v8487_v30  ;;  %v4047_v58 = vpack.c.bf16 %v4015_v26, %v4015_v26  ;;  %v3376_v63 = vld [vmem:[#allocation4 + $0x18] sm:$0xff]  ;;  %v6450_v53 = vld [vmem:[#allocation3 + $0x1c8] sm:$0xf] }
 0x1cf   : > { %v3085_v52 = vadd.f32 %v3084_v49, %v2996_v50  ;;  %2948 = vmatmul.bf16.gmra.mxu2 %v6423_v42  ;;  %3037 = vmatmul.bf16.gmra.mxu3 %v6427_v23  ;;  %3760 = vst.msk [vmem:[#allocation5 + $0x2c] sm:$0xf] %vm560_vm15, %v8491_v51  ;;  %v8501_v10 = vpack.c.bf16 %v3376_v63, %v3376_v63  ;;  %v6442_v44 = vld [vmem:[#allocation3 + $0x1c0] sm:$0xf]  ;;  %v7265_v48 = vld [vmem:[#allocation3 + $0x1c4] sm:$0xf] }
 0x1d0   : > { %4079 = vst.msk [vmem:[#allocation5 + $0x1c] sm:$0xf] %vm560_vm15, %v4047_v58  ;;  %v2734_v42 = vadd.f32 %v8477_v13, %v8326_v27  ;;  %v7267_v31 = vld [vmem:[#allocation3 + $0x1d0] sm:$0xf0]  ;;  %v6444_v26 = vld [vmem:[#allocation3 + $0x1d4] sm:$0xf0]  ;;  %v6451_v61 = vor.u32 %v7268_v41, %v6450_v53 }
 0x1d1   : > { %vm3160_vm3 = vcmp.ge.f32.partialorder %v3085_v52, 0.0  ;;  %v3192_v0 = vmul.f32 0.2, %v3085_v52  ;;  %3440 = vst.msk [vmem:[#allocation5 + $0x28] sm:$0xf] %vm560_vm15, %v8501_v10  ;;  %v1583_v53 = vld [vmem:[#allocation2 + $0x171] sm:$0xff] }
 0x1d2   : > { %v2909_v38 = vpop.f32.mrf.mxu2  ;;  %v2998_v15 = vpop.f32.mrf.mxu3  ;;  %1868 = vst.msk [vmem:[#allocation3 + $0x1f0] sm:$0xf] %vm560_vm15, %v8510_v32 }
 0x1d3   : > { %v3303_v49 = vld [vmem:[#allocation4 + $0x32] sm:$0x1]  ;;  %v3224_v59 = vsel %vm3160_vm3, %v3085_v52, %v3192_v0  ;;  %v2910_v62 = vadd.f32 %v2909_v38, %v2821_v5  ;;  %v2822_v40 = vpop.f32.mrf.mxu1  ;;  %v3089_v17 = vpop.f32.mrf.mxu0  ;;  %v6443_v5 = vor.u32 %v7267_v31, %v6442_v44  ;;  %v6447_v38 = vor.u32 %v7265_v48, %v6444_v26 }
 0x1d4   : > { %v3287_v60 = vld [vmem:[#allocation4 + $0x30] sm:$0xff]  ;;  %3257 = vst.msk [vmem:[#allocation4 + $0x39] sm:$0xff] %vm440_vm0, %v3224_v59  ;;  %v4111_v1 = vld [vmem:[#allocation4 + $0x22] sm:$0xff]  ;;  %v2823_v50 = vadd.f32 %v2822_v40, %v2734_v42 }
 0x1d5   : > { %v4430_v33 = vld [vmem:[#allocation4 + $0x31] sm:$0xff]  ;;  %v2999_v34 = vadd.f32 %v2998_v15, %v2910_v62  ;;  %3290 = vst.msk [vmem:[#allocation4] sm:$0xff] %vm440_vm0, %v3287_v60  ;;  %v8512_v20 = vpack.c.bf16 %v4111_v1, %v4111_v1 }
 0x1d6   : > { %v8514_v16 = vpack.c.bf16 %v4430_v33, %v4430_v33  ;;  %3322 = vst.msk [vmem:[#allocation4 + $0x30] sm:$0x1] %vm3319_vm14, %v3303_v49  ;;  %v2737_v33 = vadd.f32 %v8477_v13, %v8337_v46 }
 0x1d7   : > { %v3088_v23 = vadd.f32 %v3087_v43, %v2999_v34  ;;  %3761 = vst.msk [vmem:[#allocation5 + $0x40] sm:$0xf] %vm560_vm15, %v8512_v20 }
 0x1d8   : > { %4080 = vst.msk [vmem:[#allocation5 + $0x30] sm:$0xf] %vm560_vm15, %v8514_v16 }
 0x1d9   : > { %vm3161_vm4 = vcmp.ge.f32.partialorder %v3088_v23, 0.0  ;;  %v3193_v58 = vmul.f32 0.2, %v3088_v23 }
 0x1da   : > { %v2911_v52 = vpop.f32.mrf.mxu2  ;;  %v3000_v27 = vpop.f32.mrf.mxu3 }
 0x1db   : > { %v4654_v43 = vld [vmem:[#allocation4 + $0x32] sm:$0xff]  ;;  %v3225_v18 = vsel %vm3161_vm4, %v3088_v23, %v3193_v58  ;;  %v2912_v63 = vadd.f32 %v2911_v52, %v2823_v50  ;;  %v2825_v0 = vpop.f32.mrf.mxu1  ;;  %v3092_v15 = vpop.f32.mrf.mxu0  ;;  %v3289_v59 = vld [vmem:[#allocation4 + $0x40] sm:$0x3]  ;;  %v3340_v62 = vld [vmem:[#allocation4 + $0x3f] sm:$0x1]  ;;  %v8535_v23 = vpack.c.bf16 %v1583_v53, %v1583_v53 }
 0x1dc   : > { %v3288_v2 = vld [vmem:[#allocation4 + $0x38] sm:$0xff]  ;;  %v4686_v49 = vpack.c.bf16 %v4654_v43, %v4654_v43  ;;  %3258 = vst.msk [vmem:[#allocation4 + $0x49] sm:$0xff] %vm440_vm0, %v3225_v18  ;;  %v3301_v1 = vld [vmem:[#allocation4 + $0x2] sm:$0x1]  ;;  %v2826_v44 = vadd.f32 %v2825_v0, %v2737_v33  ;;  %v274_v18 = vld [vmem:[%s7655_s9 + $0x190] sm:$0x3] }
 0x1dd   : > { %v3001_v40 = vadd.f32 %v3000_v27, %v2912_v63  ;;  %3291 = vst.msk [vmem:[#allocation4 + $0x8] sm:$0xff] %vm440_vm0, %v3288_v2  ;;  %6687 = vmatmul.msk.bf16.gmra.mxu0 %vm440_vm0, %v6451_v61  ;;  %v3379_v60 = vld [vmem:[#allocation4 + $0x38] sm:$0xff]  ;;  %v3378_v42 = vld [vmem:[#allocation4 + $0x30] sm:$0xff]  ;;  %vm328_vm6 = vcmp.ge.f32.partialorder %v274_v18, 0.0 }
 0x1de   : > { %4718 = vst.msk [vmem:[#allocation5 + $0x10] sm:$0xf] %vm560_vm15, %v4686_v49  ;;  %v8532_v41 = vpack.c.bf16 %v3379_v60, %v3379_v60  ;;  %v8540_v31 = vpack.c.bf16 %v3378_v42, %v3378_v42  ;;  %v1263_v27 = vld [vmem:[#allocation2 + $0x16a] sm:$0xff]  ;;  %v2739_v49 = vadd.f32 %v8477_v13, %v8351_v9 }
 0x1df   : > { %v3090_v34 = vadd.f32 %v3089_v17, %v3001_v40  ;;  %2953 = vmatmul.bf16.gmra.mxu2 %v6443_v5  ;;  %3042 = vmatmul.bf16.gmra.mxu3 %v6447_v38  ;;  %3292 = vst.msk [vmem:[#allocation4 + $0x10] sm:$0x3] %vm443_vm1, %v3289_v59  ;;  %v382_v38 = vmul.f32 0.2, %v274_v18  ;;  %v7272_v53 = vld [vmem:[#allocation3 + $0x1f8] sm:$0xf0] }
 0x1e0   : > { %3358 = vst.msk [vmem:[#allocation4 + $0x41] sm:$0x1] %vm3319_vm14, %v3340_v62  ;;  %v8549_v62 = vpack.c.bf16 %v1263_v27, %v1263_v27 }
 0x1e1   : > { %vm3162_vm5 = vcmp.ge.f32.partialorder %v3090_v34, 0.0  ;;  %v3194_v48 = vmul.f32 0.2, %v3090_v34  ;;  %3320 = vst.msk [vmem:[#allocation4] sm:$0x1] %vm3319_vm14, %v3301_v1  ;;  %v436_v33 = vsel %vm328_vm6, %v274_v18, %v382_v38 }
 0x1e2   : > { %v2914_v46 = vpop.f32.mrf.mxu2  ;;  %v3003_v17 = vpop.f32.mrf.mxu3  ;;  %1232 = vst.msk [vmem:[#allocation3 + $0x24c] sm:$0xf] %vm560_vm15, %v8535_v23  ;;  %v6462_v1 = vld [vmem:[#allocation3 + $0x1e8] sm:$0xf] }
 0x1e3   : > { %v3304_v26 = vld [vmem:[#allocation4 + $0x4a] sm:$0x1]  ;;  %v3226_v50 = vsel %vm3162_vm5, %v3090_v34, %v3194_v48  ;;  %v2915_v58 = vadd.f32 %v2914_v46, %v2826_v44  ;;  %v2827_v61 = vpop.f32.mrf.mxu1  ;;  %v3094_v52 = vpop.f32.mrf.mxu0  ;;  %3443 = vst.msk [vmem:[#allocation5 + $0x64] sm:$0xf] %vm560_vm15, %v8532_v41 }
 0x1e4   : > { %3259 = vst.msk [vmem:[#allocation4 + $0x51] sm:$0xff] %vm440_vm0, %v3226_v50  ;;  %v3470_v43 = vld [vmem:[#allocation4 + $0x1] sm:$0xff]  ;;  %v3338_v34 = vld [vmem:[#allocation4 + $0xf] sm:$0x1]  ;;  %v2828_v42 = vadd.f32 %v2827_v61, %v2739_v49 }
 0x1e5   : > { %v3375_v63 = vld [vmem:[#allocation4 + $0x8] sm:$0xff]  ;;  %3323 = vst.msk [vmem:[#allocation4 + $0x48] sm:$0x1] %vm3319_vm14, %v3304_v26  ;;  %v3004_v0 = vadd.f32 %v3003_v17, %v2915_v58  ;;  %v3502_v5 = vpack.c.bf16 %v3470_v43, %v3470_v43  ;;  %v4334_v17 = vld [vmem:[#allocation4 + $0x30] sm:$0xff] }
 0x1e6   : > { %v3407_v2 = vpack.c.bf16 %v3375_v63, %v3375_v63  ;;  %v3471_v59 = vld [vmem:[#allocation4 + $0x9] sm:$0xff]  ;;  %3442 = vst.msk [vmem:[#allocation5 + $0x50] sm:$0xf] %vm560_vm15, %v8540_v31  ;;  %v6463_v63 = vor.u32 %v7272_v53, %v6462_v1  ;;  %v2742_v53 = vadd.f32 %v8477_v13, %v8363_v25 }
 0x1e7   : > { %v3093_v40 = vadd.f32 %v3092_v15, %v3004_v0  ;;  %v3503_v60 = vpack.c.bf16 %v3471_v59, %v3471_v59  ;;  %3566 = vrot.lane.b32.xlu0 %v3502_v5, %s7569_s10  ;;  %492 = vst.msk [vmem:[#allocation2 + $0x190] sm:$0x3] %vm443_vm1, %v436_v33  ;;  %v3694_v26 = vld [vmem:[#allocation4 + $0x2] sm:$0xff] }
 0x1e8   : > { %3439 = vst.msk [vmem:[#allocation5 + $0x14] sm:$0xf] %vm560_vm15, %v3407_v2  ;;  %v3374_v9 = vld [vmem:[#allocation4] sm:$0xff]  ;;  %v3726_v1 = vpack.c.bf16 %v3694_v26, %v3694_v26 }
 0x1e9   : > { %vm3163_vm7 = vcmp.ge.f32.partialorder %v3093_v40, 0.0  ;;  %v3195_v44 = vmul.f32 0.2, %v3093_v40  ;;  %3568 = vrot.lane.b32.xlu1 %v3503_v60, %s7569_s10  ;;  %v3406_v48 = vpack.c.bf16 %v3374_v9, %v3374_v9  ;;  %1870 = vst.msk [vmem:[#allocation3 + $0x218] sm:$0xf] %vm560_vm15, %v8549_v62 }
 0x1ea   : > { %v2916_v15 = vpop.f32.mrf.mxu2  ;;  %v3005_v46 = vpop.f32.mrf.mxu3  ;;  %3356 = vst.msk [vmem:[#allocation4 + $0x11] sm:$0x1] %vm3319_vm14, %v3338_v34 }
 0x1eb   : > { %v3341_v50 = vld [vmem:[#allocation4 + $0x57] sm:$0x1]  ;;  %v4656_v58 = vld [vmem:[#allocation4 + $0x4a] sm:$0xff]  ;;  %v3227_v27 = vsel %vm3163_vm7, %v3093_v40, %v3195_v44  ;;  %v2917_v43 = vadd.f32 %v2916_v15, %v2828_v42  ;;  %v2830_v18 = vpop.f32.mrf.mxu1  ;;  %v3097_v0 = vpop.f32.mrf.mxu0  ;;  %3438 = vst.msk [vmem:[#allocation5] sm:$0xf] %vm560_vm15, %v3406_v48  ;;  %v4366_v40 = vpack.c.bf16 %v4334_v17, %v4334_v17  ;;  %v4113_v44 = vld [vmem:[#allocation4 + $0x3a] sm:$0xff] }
 0x1ec   : > { %v3477_v61 = vld [vmem:[#allocation4 + $0x51] sm:$0xff]  ;;  %3359 = vst.msk [vmem:[#allocation4 + $0x59] sm:$0x1] %vm3319_vm14, %v3341_v50  ;;  %v4688_v5 = vpack.c.bf16 %v4656_v58, %v4656_v58  ;;  %v3380_v49 = vld [vmem:[#allocation4 + $0x48] sm:$0xff]  ;;  %v2831_v48 = vadd.f32 %v2830_v18, %v2742_v53  ;;  %v4431_v18 = vld [vmem:[#allocation4 + $0x39] sm:$0xff] }
 0x1ed   : > { %v3509_v38 = vpack.c.bf16 %v3477_v61, %v3477_v61  ;;  %v3381_v2 = vld [vmem:[#allocation4 + $0x50] sm:$0xff]  ;;  %3260 = vst.msk [vmem:[#allocation4 + $0x61] sm:$0xff] %vm440_vm0, %v3227_v27  ;;  %v3006_v59 = vadd.f32 %v3005_v46, %v2917_v43  ;;  %v8563_v33 = vpack.c.bf16 %v3380_v49, %v3380_v49  ;;  %v4336_v34 = vld [vmem:[#allocation4 + $0x48] sm:$0xff]  ;;  %v4335_v17 = vld [vmem:[#allocation4 + $0x38] sm:$0xff] }
 0x1ee   : > { %v3413_v60 = vpack.c.bf16 %v3381_v2, %v3381_v2  ;;  %4720 = vst.msk [vmem:[#allocation5 + $0x38] sm:$0xf] %vm560_vm15, %v4688_v5  ;;  %v4368_v42 = vpack.c.bf16 %v4336_v34, %v4336_v34  ;;  %v3473_v5 = vld [vmem:[#allocation4 + $0x21] sm:$0xff]  ;;  %v8586_v34 = vpack.c.bf16 %v4431_v18, %v4431_v18 }
 0x1ef   : > { %3580 = vrot.lane.b32.xlu2 %v3509_v38, %s7569_s10  ;;  %v3095_v9 = vadd.f32 %v3094_v52, %v3006_v59  ;;  %1702 = vrot.lane.b32.xlu0 %v8499_v24, %s7569_s10  ;;  %3444 = vst.msk [vmem:[#allocation5 + $0x78] sm:$0xf] %vm560_vm15, %v8563_v33  ;;  %v3472_v24 = vld [vmem:[#allocation4 + $0x19] sm:$0xff]  ;;  %v8580_v38 = vpack.c.bf16 %v4113_v44, %v4113_v44 }
 0x1f0   : > { %2958 = vmatmul.bf16.gmra.mxu2 %v6463_v63  ;;  %3445 = vst.msk [vmem:[#allocation5 + $0x8c] sm:$0xf] %vm560_vm15, %v3413_v60  ;;  %v3504_v59 = vpack.c.bf16 %v3472_v24, %v3472_v24  ;;  %v4367_v60 = vpack.c.bf16 %v4335_v17, %v4335_v17  ;;  %v3505_v53 = vpack.c.bf16 %v3473_v5, %v3473_v5  ;;  %v4112_v17 = vld [vmem:[#allocation4 + $0x32] sm:$0xff] }
 0x1f1   : > { %vm3164_vm8 = vcmp.ge.f32.partialorder %v3095_v9, 0.0  ;;  %v3196_v15 = vmul.f32 0.2, %v3095_v9  ;;  %1383 = vrot.lane.b32.xlu1 %v8510_v32, %s7569_s10  ;;  %v3695_v46 = vld [vmem:[#allocation4 + $0xa] sm:$0xff]  ;;  %4398 = vst.msk [vmem:[#allocation5 + $0xc] sm:$0xf] %vm560_vm15, %v4366_v40  ;;  %v2744_v40 = vadd.f32 %v8477_v13, %v8375_v54 }
 0x1f2   : > { %v2919_v25 = vpop.f32.mrf.mxu2  ;;  %v3008_v52 = vpop.f32.mrf.mxu3  ;;  %3758 = vst.msk [vmem:[#allocation5 + $0x4] sm:$0xf] %vm560_vm15, %v3726_v1  ;;  %v3727_v61 = vpack.c.bf16 %v3695_v46, %v3695_v46 }
 0x1f3   : > { %v4657_v26 = vld [vmem:[#allocation4 + $0x52] sm:$0xff]  ;;  %v3228_v50 = vsel %vm3164_vm8, %v3095_v9, %v3196_v15  ;;  %v2920_v58 = vadd.f32 %v2919_v25, %v2831_v48  ;;  %v2832_v27 = vpop.f32.mrf.mxu1  ;;  %v3099_v43 = vpop.f32.mrf.mxu0  ;;  %4400 = vst.msk [vmem:[#allocation5 + $0x34] sm:$0xf] %vm560_vm15, %v4368_v42 }
 0x1f4   : > { %v4689_v63 = vpack.c.bf16 %v4657_v26, %v4657_v26  ;;  %v3305_v32 = vld [vmem:[#allocation4 + $0x62] sm:$0x1]  ;;  %3261 = vst.msk [vmem:[#allocation4 + $0x69] sm:$0xff] %vm440_vm0, %v3228_v50  ;;  %v4115_v2 = vld [vmem:[#allocation4 + $0x52] sm:$0xff]  ;;  %v2833_v42 = vadd.f32 %v2832_v27, %v2744_v40 }
 0x1f5   : > { %3324 = vst.msk [vmem:[#allocation4 + $0x60] sm:$0x1] %vm3319_vm14, %v3305_v32  ;;  %v3009_v49 = vadd.f32 %v3008_v52, %v2920_v58  ;;  %v8589_v9 = vpack.c.bf16 %v4115_v2, %v4115_v2  ;;  %v8607_v32 = vpack.c.bf16 %v4112_v17, %v4112_v17  ;;  %v2747_v2 = vadd.f32 %v8477_v13, %v8385_v14 }
 0x1f6   : > { %4721 = vst.msk [vmem:[#allocation5 + $0x4c] sm:$0xf] %vm560_vm15, %v4689_v63 }
 0x1f7   : > { %v3098_v1 = vadd.f32 %v3097_v0, %v3009_v49  ;;  %3570 = vrot.lane.b32.xlu0 %v3504_v59, %s7569_s10  ;;  %3759 = vst.msk [vmem:[#allocation5 + $0x18] sm:$0xf] %vm560_vm15, %v3727_v61  ;;  %v3795_v59 = vld [vmem:[#allocation4 + $0x50] sm:$0xff] }
 0x1f8   : > { %3763 = vst.msk [vmem:[#allocation5 + $0x68] sm:$0xf] %vm560_vm15, %v8580_v38 }
 0x1f9   : > { %vm3165_vm10 = vcmp.ge.f32.partialorder %v3098_v1, 0.0  ;;  %v3197_v44 = vmul.f32 0.2, %v3098_v1  ;;  %3572 = vrot.lane.b32.xlu1 %v3505_v53, %s7569_s10  ;;  %4399 = vst.msk [vmem:[#allocation5 + $0x20] sm:$0xf] %vm560_vm15, %v4367_v60  ;;  %v3475_v53 = vld [vmem:[#allocation4 + $0x39] sm:$0xff] }
 0x1fa   : > { %v2921_v54 = vpop.f32.mrf.mxu2  ;;  %v3010_v48 = vpop.f32.mrf.mxu3  ;;  %4081 = vst.msk [vmem:[#allocation5 + $0x44] sm:$0xf] %vm560_vm15, %v8586_v34 }
 0x1fb   : > { %v3342_v0 = vld [vmem:[#allocation4 + $0x6f] sm:$0x1]  ;;  %v4658_v15 = vld [vmem:[#allocation4 + $0x62] sm:$0xff]  ;;  %v3229_v46 = vsel %vm3165_vm10, %v3098_v1, %v3197_v44  ;;  %v2922_v25 = vadd.f32 %v2921_v54, %v2833_v42  ;;  %v2835_v52 = vpop.f32.mrf.mxu1  ;;  %v3102_v24 = vpop.f32.mrf.mxu0  ;;  %3765 = vst.msk [vmem:[#allocation5 + $0x90] sm:$0xf] %vm560_vm15, %v8589_v9  ;;  %v4433_v1 = vld [vmem:[#allocation4 + $0x51] sm:$0xff] }
 0x1fc   : > { %3360 = vst.msk [vmem:[#allocation4 + $0x71] sm:$0x1] %vm3319_vm14, %v3342_v0  ;;  %v4690_v26 = vpack.c.bf16 %v4658_v15, %v4658_v15  ;;  %v3383_v50 = vld [vmem:[#allocation4 + $0x68] sm:$0xff]  ;;  %v3382_v58 = vld [vmem:[#allocation4 + $0x60] sm:$0xff]  ;;  %v2836_v60 = vadd.f32 %v2835_v52, %v2747_v2 }
 0x1fd   : > { %3262 = vst.msk [vmem:[#allocation4 + $0x79] sm:$0xff] %vm440_vm0, %v3229_v46  ;;  %v3011_v27 = vadd.f32 %v3010_v48, %v2922_v25  ;;  %v8602_v18 = vpack.c.bf16 %v3383_v50, %v3383_v50  ;;  %v8604_v61 = vpack.c.bf16 %v3382_v58, %v3382_v58  ;;  %v4338_v63 = vld [vmem:[#allocation4 + $0x60] sm:$0xff]  ;;  %v4432_v15 = vld [vmem:[#allocation4 + $0x49] sm:$0xff]  ;;  %v8622_v46 = vpack.c.bf16 %v3795_v59, %v3795_v59 }
 0x1fe   : > { %4722 = vst.msk [vmem:[#allocation5 + $0x60] sm:$0xf] %vm560_vm15, %v4690_v26  ;;  %v4370_v5 = vpack.c.bf16 %v4338_v63, %v4338_v63  ;;  %v8627_v26 = vpop.permute.xlu2 %1700  ;;  %v8629_v50 = vpack.c.bf16 %v4433_v1, %v4433_v1  ;;  %v4114_v58 = vld [vmem:[#allocation4 + $0x4a] sm:$0xff]  ;;  %v8637_v59 = vpack.c.bf16 %v4432_v15, %v4432_v15 }
 0x1ff   : > { %v3100_v49 = vadd.f32 %v3099_v43, %v3011_v27  ;;  %1706 = vrot.lane.b32.xlu0 %v8535_v23, %s7569_s10  ;;  %3447 = vst.msk [vmem:[#allocation5 + $0xb4] sm:$0xf] %vm560_vm15, %v8602_v18  ;;  %v3474_v23 = vld [vmem:[#allocation4 + $0x31] sm:$0xff]  ;;  %v8641_v1 = vpack.c.bf16 %v4114_v58, %v4114_v58 }
 0x200   : > { %3446 = vst.msk [vmem:[#allocation5 + $0xa0] sm:$0xf] %vm560_vm15, %v8604_v61 }
 0x201   : > { %vm3166_vm11 = vcmp.ge.f32.partialorder %v3100_v49, 0.0  ;;  %v3198_v40 = vmul.f32 0.2, %v3100_v49  ;;  %1387 = vrot.lane.b32.xlu1 %v8549_v62, %s7569_s10  ;;  %4402 = vst.msk [vmem:[#allocation5 + $0x5c] sm:$0xf] %vm560_vm15, %v4370_v5  ;;  %v3506_v5 = vpack.c.bf16 %v3474_v23, %v3474_v23  ;;  %v3476_v23 = vld [vmem:[#allocation4 + $0x49] sm:$0xff] }
 0x202   : > { %v2924_v14 = vpop.f32.mrf.mxu2  ;;  %v3013_v43 = vpop.f32.mrf.mxu3  ;;  %3762 = vst.msk [vmem:[#allocation5 + $0x54] sm:$0xf] %vm560_vm15, %v8607_v32 }
 0x203   : > { %v4659_v42 = vld [vmem:[#allocation4 + $0x6a] sm:$0xff]  ;;  %v3230_v44 = vsel %vm3166_vm11, %v3100_v49, %v3198_v40  ;;  %v2925_v54 = vadd.f32 %v2924_v14, %v2836_v60  ;;  %v2837_v48 = vpop.f32.mrf.mxu1  ;;  %v3104_v0 = vpop.f32.mrf.mxu0  ;;  %4719 = vst.msk [vmem:[#allocation5 + $0x24] sm:$0xf] %vm560_vm15, %v8580_v38  ;;  %v2749_v49 = vadd.f32 %v8477_v13, %v8395_v6  ;;  %v3507_v40 = vpack.c.bf16 %v3475_v53, %v3475_v53  ;;  %v1585_v14 = vld [vmem:[#allocation2 + $0x189] sm:$0xff] }
 0x204   : > { %v4117_v25 = vld [vmem:[#allocation4 + $0x6a] sm:$0xff]  ;;  %v4691_v62 = vpack.c.bf16 %v4659_v42, %v4659_v42  ;;  %v3306_v52 = vld [vmem:[#allocation4 + $0x7a] sm:$0x1]  ;;  %3263 = vst.msk [vmem:[#allocation4 + $0x81] sm:$0xff] %vm440_vm0, %v3230_v44 }
 0x205   : > { %v3480_v17 = vld [vmem:[#allocation4 + $0x79] sm:$0xff]  ;;  %3325 = vst.msk [vmem:[#allocation4 + $0x78] sm:$0x1] %vm3319_vm14, %v3306_v52  ;;  %v3014_v27 = vadd.f32 %v3013_v43, %v2925_v54  ;;  %v8632_v2 = vpack.c.bf16 %v4117_v25, %v4117_v25  ;;  %v2838_v6 = vadd.f32 %v2837_v48, %v2749_v49  ;;  %v4339_v52 = vld [vmem:[#allocation4 + $0x68] sm:$0xff] }
 0x206   : > { %v3512_v63 = vpack.c.bf16 %v3480_v17, %v3480_v17  ;;  %4723 = vst.msk [vmem:[#allocation5 + $0x74] sm:$0xf] %vm560_vm15, %v4691_v62  ;;  %v1617_v62 = vpack.c.bf16 %v1585_v14, %v1585_v14  ;;  %v1386_v58 = vpop.permute.xlu2 %1385  ;;  %v2752_v14 = vadd.f32 %v8477_v13, %v8406_v4 }
 0x207   : > { %v3103_v60 = vadd.f32 %v3102_v24, %v3014_v27  ;;  %3574 = vrot.lane.b32.xlu0 %v3506_v5, %s7569_s10  ;;  %4401 = vst.msk [vmem:[#allocation5 + $0x48] sm:$0xf] %vm560_vm15, %v8622_v46 }
 0x208   : > { %3586 = vrot.lane.b32.xlu2 %v3512_v63, %s7569_s10  ;;  %4083 = vst.msk [vmem:[#allocation5 + $0x6c] sm:$0xf] %vm560_vm15, %v8629_v50 }
 0x209   : > { %vm3167_vm12 = vcmp.ge.f32.partialorder %v3103_v60, 0.0  ;;  %v3199_v43 = vmul.f32 0.2, %v3103_v60  ;;  %3576 = vrot.lane.b32.xlu1 %v3507_v40, %s7569_s10  ;;  %3767 = vst.msk [vmem:[#allocation5 + $0xb8] sm:$0xf] %vm560_vm15, %v8632_v2 }
 0x20a   : > { %v2926_v24 = vpop.f32.mrf.mxu2  ;;  %v3015_v53 = vpop.f32.mrf.mxu3  ;;  %4082 = vst.msk [vmem:[#allocation5 + $0x58] sm:$0xf] %vm560_vm15, %v8637_v59 }
 0x20b   : > { %v3343_v42 = vld [vmem:[#allocation4 + $0x87] sm:$0x1]  ;;  %v4660_v44 = vld [vmem:[#allocation4 + $0x7a] sm:$0xff]  ;;  %v3231_v54 = vsel %vm3167_vm12, %v3103_v60, %v3199_v43  ;;  %v2927_v15 = vadd.f32 %v2926_v24, %v2838_v6  ;;  %v2840_v25 = vpop.f32.mrf.mxu1  ;;  %v3107_v48 = vpop.f32.mrf.mxu0  ;;  %3764 = vst.msk [vmem:[#allocation5 + $0x7c] sm:$0xf] %vm560_vm15, %v8641_v1  ;;  %v3508_v24 = vpack.c.bf16 %v3476_v23, %v3476_v23 }
 0x20c   : > { %3361 = vst.msk [vmem:[#allocation4 + $0x89] sm:$0x1] %vm3319_vm14, %v3343_v42  ;;  %v4692_v17 = vpack.c.bf16 %v4660_v44, %v4660_v44  ;;  %v3384_v27 = vld [vmem:[#allocation4 + $0x78] sm:$0xff]  ;;  %v3385_v63 = vld [vmem:[#allocation4 + $0x80] sm:$0xff]  ;;  %v4371_v42 = vpack.c.bf16 %v4339_v52, %v4339_v52  ;;  %v2841_v44 = vadd.f32 %v2840_v25, %v2752_v14 }
 0x20d   : > { %v3798_v5 = vld [vmem:[#allocation4 + $0x78] sm:$0xff]  ;;  %3264 = vst.msk [vmem:[#allocation4 + $0x91] sm:$0xff] %vm440_vm0, %v3231_v54  ;;  %v3016_v49 = vadd.f32 %v3015_v53, %v2927_v15  ;;  %v3416_v40 = vpack.c.bf16 %v3384_v27, %v3384_v27  ;;  %v8656_v60 = vpack.c.bf16 %v3385_v63, %v3385_v63  ;;  %v4435_v53 = vld [vmem:[#allocation4 + $0x69] sm:$0xff]  ;;  %v4434_v27 = vld [vmem:[#allocation4 + $0x61] sm:$0xff] }
 0x20e   : > { %4724 = vst.msk [vmem:[#allocation5 + $0x88] sm:$0xf] %vm560_vm15, %v4692_v17  ;;  %v8661_v6 = vpack.c.bf16 %v3798_v5, %v3798_v5  ;;  %v8671_v25 = vpack.c.bf16 %v4435_v53, %v4435_v53  ;;  %v8675_v14 = vpop.permute.xlu2 %1704  ;;  %v2754_v53 = vadd.f32 %v8477_v13, %v8415_v28 }
 0x20f   : > { %9820 = vst [vmem:[#allocation11_spill] sm:$0xff] %v8656_v60  ;;  %v3105_v43 = vadd.f32 %v3104_v0, %v3016_v49  ;;  %1710 = vrot.lane.b32.xlu0 %v1617_v62, %s7569_s10  ;;  %v3478_v0 = vld [vmem:[#allocation4 + $0x61] sm:$0xff] }
 0x210   : > { %1454 = vst.msk [vmem:[#allocation3 + $0x224] sm:$0xf] %vm785_vm9, %v1386_v58 }
 0x211   : > { %3448 = vst.msk [vmem:[#allocation5 + $0xc8] sm:$0xf] %vm560_vm15, %v3416_v40  ;;  %vm3168_vm13 = vcmp.ge.f32.partialorder %v3105_v43, 0.0  ;;  %v3200_v54 = vmul.f32 0.2, %v3105_v43  ;;  %3578 = vrot.lane.b32.xlu1 %v3508_v24, %s7569_s10  ;;  %v3479_v40 = vld [vmem:[#allocation4 + $0x69] sm:$0xff] }
 0x212   : > { %3449 = vst.msk [vmem:[#allocation5 + $0xdc] sm:$0xf] %vm560_vm15, %v8656_v60  ;;  %v2929_v4 = vpop.f32.mrf.mxu2  ;;  %v3018_v15 = vpop.f32.mrf.mxu3 }
 0x213   : > { %4404 = vst.msk [vmem:[#allocation5 + $0x84] sm:$0xf] %vm560_vm15, %v8661_v6  ;;  %v4661_v23 = vld [vmem:[#allocation4 + $0x82] sm:$0xff]  ;;  %v3232_v62 = vsel %vm3168_vm13, %v3105_v43, %v3200_v54  ;;  %v2930_v52 = vadd.f32 %v2929_v4, %v2841_v44  ;;  %v2842_v17 = vpop.f32.mrf.mxu1  ;;  %v3109_v58 = vpop.f32.mrf.mxu0  ;;  %v3510_v44 = vpack.c.bf16 %v3478_v0, %v3478_v0 }
 0x214   : > { %v4119_v63 = vld [vmem:[#allocation4 + $0x82] sm:$0xff]  ;;  %4403 = vst.msk [vmem:[#allocation5 + $0x70] sm:$0xf] %vm560_vm15, %v4371_v42  ;;  %v4693_v5 = vpack.c.bf16 %v4661_v23, %v4661_v23  ;;  %v3307_v49 = vld [vmem:[#allocation4 + $0x92] sm:$0x1]  ;;  %v8683_v42 = vpack.c.bf16 %v4434_v27, %v4434_v27  ;;  %v3511_v23 = vpack.c.bf16 %v3479_v40, %v3479_v40 }
 0x215   : > { %3265 = vst.msk [vmem:[#allocation4 + $0x99] sm:$0xff] %vm440_vm0, %v3232_v62  ;;  %v8677_v24 = vpack.c.bf16 %v4119_v63, %v4119_v63  ;;  %v3019_v43 = vadd.f32 %v3018_v15, %v2930_v52  ;;  %v1484_v54 = vld [vmem:[#allocation2 + $0x150] sm:$0xff]  ;;  %v2843_v15 = vadd.f32 %v2842_v17, %v2754_v53 }
 0x216   : > { %3326 = vst.msk [vmem:[#allocation4 + $0x90] sm:$0x1] %vm3319_vm14, %v3307_v49  ;;  %v1516_v62 = vpack.c.bf16 %v1484_v54, %v1484_v54  ;;  %v4116_v27 = vld [vmem:[#allocation4 + $0x62] sm:$0xff] }
 0x217   : > { %4725 = vst.msk [vmem:[#allocation5 + $0x9c] sm:$0xf] %vm560_vm15, %v4693_v5  ;;  %v3108_v4 = vadd.f32 %v3107_v48, %v3019_v43  ;;  %3582 = vrot.lane.b32.xlu0 %v3510_v44, %s7569_s10  ;;  %v3481_v48 = vld [vmem:[#allocation4 + $0x81] sm:$0xff] }
 0x218   : > { %4085 = vst.msk [vmem:[#allocation5 + $0x94] sm:$0xf] %vm560_vm15, %v8671_v25  ;;  %v3513_v35 = vpack.c.bf16 %v3481_v48, %v3481_v48  ;;  %v4341_v48 = vld [vmem:[#allocation4 + $0x80] sm:$0xff] }
 0x219   : > { %3769 = vst.msk [vmem:[#allocation5 + $0xe0] sm:$0xf] %vm560_vm15, %v8677_v24  ;;  %vm3169_vm2 = vcmp.ge.f32.partialorder %v3108_v4, 0.0  ;;  %v3201_v0 = vmul.f32 0.2, %v3108_v4  ;;  %3584 = vrot.lane.b32.xlu1 %v3511_v23, %s7569_s10  ;;  %v3482_v23 = vld [vmem:[#allocation4 + $0x91] sm:$0xff] }
 0x21a   : > { %1548 = vst.msk [vmem:[#allocation3 + $0x1ec] sm:$0xf] %vm560_vm15, %v1516_v62  ;;  %v2931_v28 = vpop.f32.mrf.mxu2  ;;  %v3020_v52 = vpop.f32.mrf.mxu3 }
 0x21b   : > { %1772 = vst.msk [vmem:[#allocation3 + $0x1ec] sm:$0xf] %vm785_vm9, %v8627_v26  ;;  %v3233_v49 = vsel %vm3169_vm2, %v3108_v4, %v3201_v0  ;;  %v2932_v40 = vadd.f32 %v2931_v28, %v2843_v15  ;;  %v3112_v44 = vpop.f32.mrf.mxu0  ;;  %v2845_v53 = vpop.f32.mrf.mxu1  ;;  %v2757_v15 = vadd.f32 %v8477_v13, %v8426_v56 }
 0x21c   : > { %v3344_v63 = vld [vmem:[#allocation4 + $0x9f] sm:$0x1]  ;;  %v4662_v5 = vld [vmem:[#allocation4 + $0x92] sm:$0xff]  ;;  %4084 = vst.msk [vmem:[#allocation5 + $0x80] sm:$0xf] %vm560_vm15, %v8683_v42  ;;  %v1390_v0 = vpop.permute.xlu2 %1389 }
 0x21d   : > { %v3483_v43 = vld [vmem:[#allocation4 + $0x99] sm:$0xff]  ;;  %3362 = vst.msk [vmem:[#allocation4 + $0xa1] sm:$0x1] %vm3319_vm14, %v3344_v63  ;;  %v4694_v17 = vpack.c.bf16 %v4662_v5, %v4662_v5  ;;  %v3386_v11 = vld [vmem:[#allocation4 + $0x90] sm:$0xff]  ;;  %v3021_v26 = vadd.f32 %v3020_v52, %v2932_v40  ;;  %v3514_v63 = vpack.c.bf16 %v3482_v23, %v3482_v23  ;;  %v8706_v5 = vpack.c.bf16 %v4116_v27, %v4116_v27 }
 0x21e   : > { %v3515_v54 = vpack.c.bf16 %v3483_v43, %v3483_v43  ;;  %v3387_v62 = vld [vmem:[#allocation4 + $0x98] sm:$0xff]  ;;  %3266 = vst.msk [vmem:[#allocation4 + $0xa9] sm:$0xff] %vm440_vm0, %v3233_v49  ;;  %v8698_v4 = vpack.c.bf16 %v3386_v11, %v3386_v11  ;;  %v4342_v52 = vld [vmem:[#allocation4 + $0x90] sm:$0xff]  ;;  %v2846_v49 = vadd.f32 %v2845_v53, %v2757_v15 }
 0x21f   : > { %v3419_v60 = vpack.c.bf16 %v3387_v62, %v3387_v62  ;;  %4726 = vst.msk [vmem:[#allocation5 + $0xb0] sm:$0xf] %vm560_vm15, %v4694_v17  ;;  %v3110_v28 = vadd.f32 %v3109_v58, %v3021_v26  ;;  %3588 = vrot.lane.b32.xlu0 %v3513_v35, %s7569_s10  ;;  %v4374_v11 = vpack.c.bf16 %v4342_v52, %v4342_v52  ;;  %v4437_v58 = vld [vmem:[#allocation4 + $0x81] sm:$0xff] }
 0x220   : > { %3592 = vrot.lane.b32.xlu2 %v3515_v54, %s7569_s10  ;;  %1456 = vst.msk [vmem:[#allocation3 + $0x24c] sm:$0xf] %vm785_vm9, %v1390_v0  ;;  %v8716_v26 = vpack.c.bf16 %v4437_v58, %v4437_v58 }
 0x221   : > { %3451 = vst.msk [vmem:[#allocation5 + $0x104] sm:$0xf] %vm560_vm15, %v3419_v60  ;;  %vm3170_vm3 = vcmp.ge.f32.partialorder %v3110_v28, 0.0  ;;  %v3202_v56 = vmul.f32 0.2, %v3110_v28  ;;  %3590 = vrot.lane.b32.xlu1 %v3514_v63, %s7569_s10  ;;  %v4373_v60 = vpack.c.bf16 %v4341_v48, %v4341_v48  ;;  %v7412_v48 = vld [vmem:[%s9791_s3 + $0x38] sm:$0xff] }
 0x222   : > { %3450 = vst.msk [vmem:[#allocation5 + $0xf0] sm:$0xf] %vm560_vm15, %v8698_v4  ;;  %v2934_v40 = vpop.f32.mrf.mxu2  ;;  %v3023_v35 = vpop.f32.mrf.mxu3  ;;  %5619 = vmatpush.bf16.msrb.mxu1 %v7412_v48 }
 0x223   : > { %4406 = vst.msk [vmem:[#allocation5 + $0xac] sm:$0xf] %vm560_vm15, %v4374_v11  ;;  %v3234_v43 = vsel %vm3170_vm3, %v3110_v28, %v3202_v56  ;;  %v2935_v17 = vadd.f32 %v2934_v40, %v2846_v49  ;;  %v3114_v54 = vpop.f32.mrf.mxu0  ;;  %v2759_v28 = vadd.f32 %v8477_v13, %v8435_v8  ;;  %v2847_v52 = vpop.f32.mrf.mxu1  ;;  %v1486_v11 = vld [vmem:[#allocation2 + $0x168] sm:$0xff] }
 0x224   : > { %v4663_v27 = vld [vmem:[#allocation4 + $0x9a] sm:$0xff]  ;;  %3766 = vst.msk [vmem:[#allocation5 + $0xa4] sm:$0xf] %vm560_vm15, %v8706_v5  ;;  %v1518_v56 = vpack.c.bf16 %v1486_v11, %v1486_v11 }
 0x225   : > { %v4695_v53 = vpack.c.bf16 %v4663_v27, %v4663_v27  ;;  %v3308_v23 = vld [vmem:[#allocation4 + $0xaa] sm:$0x1]  ;;  %3267 = vst.msk [vmem:[#allocation4 + $0xb1] sm:$0xff] %vm440_vm0, %v3234_v43  ;;  %v4121_v15 = vld [vmem:[#allocation4 + $0x9a] sm:$0xff]  ;;  %v3024_v0 = vadd.f32 %v3023_v35, %v2935_v17  ;;  %v2848_v8 = vadd.f32 %v2847_v52, %v2759_v28 }
 0x226   : > { %v3484_v62 = vld [vmem:[#allocation4 + $0xa9] sm:$0xff]  ;;  %3327 = vst.msk [vmem:[#allocation4 + $0xa8] sm:$0x1] %vm3319_vm14, %v3308_v23  ;;  %v8726_v58 = vpack.c.bf16 %v4121_v15, %v4121_v15  ;;  %v4118_v27 = vld [vmem:[#allocation4 + $0x7a] sm:$0xff] }
 0x227   : > { %v3516_v63 = vpack.c.bf16 %v3484_v62, %v3484_v62  ;;  %4727 = vst.msk [vmem:[#allocation5 + $0xc4] sm:$0xf] %vm560_vm15, %v4695_v53  ;;  %v3113_v49 = vadd.f32 %v3112_v44, %v3024_v0  ;;  %v7411_v44 = vld [vmem:[%s9791_s3 + $0x30] sm:$0xff] }
 0x228   : > { %4405 = vst.msk [vmem:[#allocation5 + $0x98] sm:$0xf] %vm560_vm15, %v4373_v60  ;;  %v4022_v43 = vld [vmem:[#allocation4 + $0x79] sm:$0xff]  ;;  %5620 = vmatpush.bf16.msrb.mxu1 %v7411_v44 }
 0x229   : > { %3594 = vrot.lane.b32.xlu0 %v3516_v63, %s7569_s10  ;;  %4087 = vst.msk [vmem:[#allocation5 + $0xbc] sm:$0xf] %vm560_vm15, %v8716_v26  ;;  %vm3171_vm4 = vcmp.ge.f32.partialorder %v3113_v49, 0.0  ;;  %v3203_v13 = vmul.f32 0.2, %v3113_v49 }
 0x22a   : > { %1550 = vst.msk [vmem:[#allocation3 + $0x214] sm:$0xf] %vm560_vm15, %v1518_v56  ;;  %v2936_v40 = vpop.f32.mrf.mxu2  ;;  %v3025_v35 = vpop.f32.mrf.mxu3  ;;  %v7410_v56 = vld [vmem:[%s9791_s3 + $0x28] sm:$0xff] }
 0x22b   : > { %1774 = vst.msk [vmem:[#allocation3 + $0x214] sm:$0xf] %vm785_vm9, %v8675_v14  ;;  %v3235_v53 = vsel %vm3171_vm4, %v3113_v49, %v3203_v13  ;;  %v2937_v23 = vadd.f32 %v2936_v40, %v2848_v8  ;;  %v3117_v15 = vpop.f32.mrf.mxu0  ;;  %v4054_v49 = vpack.c.bf16 %v4022_v43, %v4022_v43  ;;  %v8750_v8 = vpack.c.bf16 %v4118_v27, %v4118_v27  ;;  %v3801_v40 = vld [vmem:[#allocation4 + $0x98] sm:$0xff] }
 0x22c   : > { %v3345_v17 = vld [vmem:[#allocation4 + $0xb7] sm:$0x1]  ;;  %v4664_v60 = vld [vmem:[#allocation4 + $0xaa] sm:$0xff]  ;;  %3771 = vst.msk [vmem:[#allocation5 + $0x108] sm:$0xf] %vm560_vm15, %v8726_v58  ;;  %5621 = vmatpush.bf16.msrb.mxu1 %v7410_v56  ;;  %v4439_v43 = vld [vmem:[#allocation4 + $0x99] sm:$0xff] }
 0x22d   : > { %v3485_v62 = vld [vmem:[#allocation4 + $0xb1] sm:$0xff]  ;;  %3363 = vst.msk [vmem:[#allocation4 + $0xb9] sm:$0x1] %vm3319_vm14, %v3345_v17  ;;  %v4696_v0 = vpack.c.bf16 %v4664_v60, %v4664_v60  ;;  %v3388_v14 = vld [vmem:[#allocation4 + $0xa8] sm:$0xff]  ;;  %v3026_v52 = vadd.f32 %v3025_v35, %v2937_v23 }
 0x22e   : > { %v3517_v63 = vpack.c.bf16 %v3485_v62, %v3485_v62  ;;  %v3389_v28 = vld [vmem:[#allocation4 + $0xb0] sm:$0xff]  ;;  %3268 = vst.msk [vmem:[#allocation4 + $0xc1] sm:$0xff] %vm440_vm0, %v3235_v53  ;;  %v8741_v11 = vpack.c.bf16 %v3388_v14, %v3388_v14  ;;  %v4344_v35 = vld [vmem:[#allocation4 + $0xa8] sm:$0xff] }
 0x22f   : > { %v8743_v48 = vpack.c.bf16 %v3389_v28, %v3389_v28  ;;  %4728 = vst.msk [vmem:[#allocation5 + $0xd8] sm:$0xf] %vm560_vm15, %v4696_v0  ;;  %v3115_v13 = vadd.f32 %v3114_v54, %v3026_v52  ;;  %v4376_v17 = vpack.c.bf16 %v4344_v35, %v4344_v35  ;;  %v7409_v54 = vld [vmem:[%s9791_s3 + $0x20] sm:$0xff] }
 0x230   : > { %9821 = vst [vmem:[#allocation12_spill] sm:$0xff] %v8741_v11  ;;  %3596 = vrot.lane.b32.xlu1 %v3517_v63, %s7569_s10  ;;  %v8763_v63 = vpack.c.bf16 %v3801_v40, %v3801_v40  ;;  %5622 = vmatpush.bf16.msrb.mxu1 %v7409_v54  ;;  %v7408_v40 = vld [vmem:[%s9791_s3 + $0x18] sm:$0xff] }
 0x231   : > { %9822 = vst [vmem:[#allocation13_spill] sm:$0xff] %v8743_v48  ;;  %vm3172_vm5 = vcmp.ge.f32.partialorder %v3115_v13, 0.0  ;;  %v3204_v44 = vmul.f32 0.2, %v3115_v13 }
 0x232   : > { %3452 = vst.msk [vmem:[#allocation5 + $0x118] sm:$0xf] %vm560_vm15, %v8741_v11  ;;  %v2939_v60 = vpop.f32.mrf.mxu2  ;;  %v3028_v53 = vpop.f32.mrf.mxu3 }
 0x233   : > { %3453 = vst.msk [vmem:[#allocation5 + $0x12c] sm:$0xf] %vm560_vm15, %v8743_v48  ;;  %v3236_v23 = vsel %vm3172_vm5, %v3115_v13, %v3204_v44  ;;  %v2940_v62 = vadd.f32 %v2939_v60, %v8268_v36  ;;  %v3119_v0 = vpop.f32.mrf.mxu0  ;;  %v1488_v36 = vld [vmem:[#allocation2 + $0x180] sm:$0xff] }
 0x234   : > { %4086 = vst.msk [vmem:[#allocation5 + $0xa8] sm:$0xf] %vm560_vm15, %v4054_v49  ;;  %v4665_v27 = vld [vmem:[#allocation4 + $0xb2] sm:$0xff]  ;;  %v8767_v49 = vpack.c.bf16 %v4439_v43, %v4439_v43  ;;  %5623 = vmatpush.bf16.msrb.mxu1 %v7408_v40 }
 0x235   : > { %3768 = vst.msk [vmem:[#allocation5 + $0xcc] sm:$0xf] %vm560_vm15, %v8750_v8  ;;  %v4697_v14 = vpack.c.bf16 %v4665_v27, %v4665_v27  ;;  %v3309_v28 = vld [vmem:[#allocation4 + $0xc2] sm:$0x1]  ;;  %v4123_v56 = vld [vmem:[#allocation4 + $0xb2] sm:$0xff]  ;;  %v3029_v35 = vadd.f32 %v3028_v53, %v2940_v62  ;;  %v1709_v53 = vpop.permute.xlu2 %1708 }
 0x236   : > { %4408 = vst.msk [vmem:[#allocation5 + $0xd4] sm:$0xf] %vm560_vm15, %v4376_v17  ;;  %v3486_v52 = vld [vmem:[#allocation4 + $0xc1] sm:$0xff]  ;;  %v1520_v17 = vpack.c.bf16 %v1488_v36, %v1488_v36  ;;  %v8775_v60 = vpack.c.bf16 %v4123_v56, %v4123_v56  ;;  %v4024_v62 = vld [vmem:[#allocation4 + $0x91] sm:$0xff] }
 0x237   : > { %3269 = vst.msk [vmem:[#allocation4 + $0xc9] sm:$0xff] %vm440_vm0, %v3236_v23  ;;  %v3518_v13 = vpack.c.bf16 %v3486_v52, %v3486_v52  ;;  %v3118_v44 = vadd.f32 %v3117_v15, %v3029_v35  ;;  %v7407_v15 = vld [vmem:[%s9791_s3 + $0x10] sm:$0xff]  ;;  %v4120_v23 = vld [vmem:[#allocation4 + $0x92] sm:$0xff] }
 0x238   : > { %9823 = vst [vmem:[#allocation14_spill] sm:$0xff] %v8767_v49  ;;  %5624 = vmatpush.bf16.msrb.mxu1 %v7407_v15  ;;  %v7406_v15 = vld [vmem:[%s9791_s3 + $0x8] sm:$0xff] }
 0x239   : > { %3328 = vst.msk [vmem:[#allocation4 + $0xc0] sm:$0x1] %vm3319_vm14, %v3309_v28  ;;  %3598 = vrot.lane.b32.xlu2 %v3518_v13, %s7569_s10  ;;  %vm3173_vm6 = vcmp.ge.f32.partialorder %v3118_v44, 0.0  ;;  %v3205_v43 = vmul.f32 0.2, %v3118_v44 }
 0x23a   : > { %4729 = vst.msk [vmem:[#allocation5 + $0xec] sm:$0xf] %vm560_vm15, %v4697_v14  ;;  %v2941_v54 = vpop.f32.mrf.mxu2  ;;  %v3030_v27 = vpop.f32.mrf.mxu3 }
 0x23b   : > { %4407 = vst.msk [vmem:[#allocation5 + $0xc0] sm:$0xf] %vm560_vm15, %v8763_v63  ;;  %v3237_v52 = vsel %vm3173_vm6, %v3118_v44, %v3205_v43  ;;  %v2942_v56 = vadd.f32 %v2941_v54, %v8284_v29  ;;  %v3122_v13 = vpop.f32.mrf.mxu0  ;;  %v4056_v29 = vpack.c.bf16 %v4024_v62, %v4024_v62 }
 0x23c   : > { %4089 = vst.msk [vmem:[#allocation5 + $0xe4] sm:$0xf] %vm560_vm15, %v8767_v49  ;;  %5625 = vmatpush.bf16.msrb.mxu1 %v7406_v15 }
 0x23d   : > { %1552 = vst.msk [vmem:[#allocation3 + $0x23c] sm:$0xf] %vm560_vm15, %v1520_v17  ;;  %v3031_v11 = vadd.f32 %v3030_v27, %v2942_v56  ;;  %v1485_v56 = vld [vmem:[#allocation2 + $0x158] sm:$0xff] }
 0x23e   : > { %1776 = vst.msk [vmem:[#allocation3 + $0x23c] sm:$0xf] %vm785_vm9, %v1709_v53  ;;  %v3346_v14 = vld [vmem:[#allocation4 + $0xcf] sm:$0x1]  ;;  %v4666_v28 = vld [vmem:[#allocation4 + $0xc2] sm:$0xff] }
 0x23f   : > { %v3487_v35 = vld [vmem:[#allocation4 + $0xc9] sm:$0xff]  ;;  %3773 = vst.msk [vmem:[#allocation5 + $0x130] sm:$0xf] %vm560_vm15, %v8775_v60  ;;  %v4698_v36 = vpack.c.bf16 %v4666_v28, %v4666_v28  ;;  %v3120_v54 = vadd.f32 %v3119_v0, %v3031_v11 }
 0x240   : > { %3364 = vst.msk [vmem:[#allocation4 + $0xd1] sm:$0x1] %vm3319_vm14, %v3346_v14  ;;  %v3519_v40 = vpack.c.bf16 %v3487_v35, %v3487_v35  ;;  %v3390_v17 = vld [vmem:[#allocation4 + $0xc0] sm:$0xff]  ;;  %v3391_v53 = vld [vmem:[#allocation4 + $0xc8] sm:$0xff]  ;;  %v8796_v14 = vpack.c.bf16 %v4120_v23, %v4120_v23  ;;  %v4345_v11 = vld [vmem:[#allocation4 + $0xb0] sm:$0xff] }
 0x241   : > { %v3804_v48 = vld [vmem:[#allocation4 + $0xc0] sm:$0xff]  ;;  %3270 = vst.msk [vmem:[#allocation4 + $0xd9] sm:$0xff] %vm440_vm0, %v3237_v52  ;;  %v3422_v49 = vpack.c.bf16 %v3390_v17, %v3390_v17  ;;  %v3423_v44 = vpack.c.bf16 %v3391_v53, %v3391_v53  ;;  %vm3174_vm7 = vcmp.ge.f32.partialorder %v3120_v54, 0.0  ;;  %v3206_v27 = vmul.f32 0.2, %v3120_v54  ;;  %v7405_v17 = vld [vmem:[%s9791_s3] sm:$0xff] }
 0x242   : > { %v8791_v43 = vpack.c.bf16 %v3804_v48, %v3804_v48  ;;  %4730 = vst.msk [vmem:[#allocation5 + $0x100] sm:$0xf] %vm560_vm15, %v4698_v36  ;;  %3600 = vrot.lane.b32.xlu0 %v3519_v40, %s7569_s10  ;;  %v2944_v48 = vpop.f32.mrf.mxu2  ;;  %v3033_v28 = vpop.f32.mrf.mxu3  ;;  %v1165_v52 = vld [vmem:[#allocation2 + $0x151] sm:$0xff]  ;;  %5626 = vmatpush.bf16.msrb.mxu1 %v7405_v17 }
 0x243   : > { %3454 = vst.msk [vmem:[#allocation5 + $0x140] sm:$0xf] %vm560_vm15, %v3422_v49  ;;  %v3238_v49 = vsel %vm3174_vm7, %v3120_v54, %v3206_v27  ;;  %v2945_v23 = vadd.f32 %v2944_v48, %v8300_v47  ;;  %v3124_v62 = vpop.f32.mrf.mxu0  ;;  %v1197_v53 = vpack.c.bf16 %v1165_v52, %v1165_v52  ;;  %v1805_v54 = vld [vmem:[#allocation2 + $0x15a] sm:$0xff]  ;;  %v4377_v48 = vpack.c.bf16 %v4345_v11, %v4345_v11 }
 0x244   : > { %3455 = vst.msk [vmem:[#allocation5 + $0x154] sm:$0xf] %vm560_vm15, %v3423_v44  ;;  %v1517_v44 = vpack.c.bf16 %v1485_v56, %v1485_v56  ;;  %v1837_v15 = vpack.c.bf16 %v1805_v54, %v1805_v54  ;;  %v4441_v52 = vld [vmem:[#allocation4 + $0xb1] sm:$0xff] }
 0x245   : > { %4410 = vst.msk [vmem:[#allocation5 + $0xfc] sm:$0xf] %vm560_vm15, %v8791_v43  ;;  %v3034_v47 = vadd.f32 %v3033_v28, %v2945_v23 }
 0x246   : > { %4088 = vst.msk [vmem:[#allocation5 + $0xd0] sm:$0xf] %vm560_vm15, %v4056_v29 }
 0x247   : > { %v4667_v0 = vld [vmem:[#allocation4 + $0xca] sm:$0xff]  ;;  %3770 = vst.msk [vmem:[#allocation5 + $0xf4] sm:$0xf] %vm560_vm15, %v8796_v14  ;;  %v3123_v27 = vadd.f32 %v3122_v13, %v3034_v47 }
 0x248   : > { %v4699_v35 = vpack.c.bf16 %v4667_v0, %v4667_v0  ;;  %v3310_v36 = vld [vmem:[#allocation4 + $0xda] sm:$0x1]  ;;  %3271 = vst.msk [vmem:[#allocation4 + $0xe1] sm:$0xff] %vm440_vm0, %v3238_v49 }
 0x249   : > { %v3488_v40 = vld [vmem:[#allocation4 + $0xd9] sm:$0xff]  ;;  %3329 = vst.msk [vmem:[#allocation4 + $0xd8] sm:$0x1] %vm3319_vm14, %v3310_v36  ;;  %v3581_v0 = vpop.permute.xlu2 %3580  ;;  %vm3175_vm8 = vcmp.ge.f32.partialorder %v3123_v27, 0.0  ;;  %v3207_v49 = vmul.f32 0.2, %v3123_v27 }
 0x24a   : > { %v3520_v29 = vpack.c.bf16 %v3488_v40, %v3488_v40  ;;  %4731 = vst.msk [vmem:[#allocation5 + $0x114] sm:$0xf] %vm560_vm15, %v4699_v35  ;;  %v2946_v28 = vpop.f32.mrf.mxu2  ;;  %v3035_v23 = vpop.f32.mrf.mxu3 }
 0x24b   : > { %1229 = vst.msk [vmem:[#allocation3 + $0x210] sm:$0xf] %vm560_vm15, %v1197_v53  ;;  %v3239_v13 = vsel %vm3175_vm8, %v3123_v27, %v3207_v49  ;;  %v2947_v36 = vadd.f32 %v2946_v28, %v8314_v12  ;;  %v3127_v53 = vpop.f32.mrf.mxu0  ;;  %v8828_v49 = vpack.c.bf16 %v4441_v52, %v4441_v52 }
 0x24c   : > { %3602 = vrot.lane.b32.xlu1 %v3520_v29, %s7569_s10  ;;  %1549 = vst.msk [vmem:[#allocation3 + $0x200] sm:$0xf] %vm560_vm15, %v1517_v44 }
 0x24d   : > { %3669 = vst.msk [vmem:[#allocation5 + $0x8c] sm:$0xf] %vm785_vm9, %v3581_v0  ;;  %v3036_v54 = vadd.f32 %v3035_v23, %v2947_v36 }
 0x24e   : > { %1869 = vst.msk [vmem:[#allocation3 + $0x204] sm:$0xf] %vm560_vm15, %v1837_v15 }
 0x24f   : > { %v3347_v56 = vld [vmem:[#allocation4 + $0xe7] sm:$0x1]  ;;  %v4668_v35 = vld [vmem:[#allocation4 + $0xda] sm:$0xff]  ;;  %4409 = vst.msk [vmem:[#allocation5 + $0xe8] sm:$0xf] %vm560_vm15, %v4377_v48  ;;  %v3125_v27 = vadd.f32 %v3124_v62, %v3036_v54 }
 0x250   : > { %v3489_v40 = vld [vmem:[#allocation4 + $0xe1] sm:$0xff]  ;;  %3365 = vst.msk [vmem:[#allocation4 + $0xe9] sm:$0x1] %vm3319_vm14, %v3347_v56  ;;  %v4700_v11 = vpack.c.bf16 %v4668_v35, %v4668_v35  ;;  %v3392_v47 = vld [vmem:[#allocation4 + $0xd8] sm:$0xff]  ;;  %v6470_v48 = vld [vmem:[#allocation3 + $0x1f0] sm:$0xf] }
 0x251   : > { %v3521_v17 = vpack.c.bf16 %v3489_v40, %v3489_v40  ;;  %v3393_v44 = vld [vmem:[#allocation4 + $0xe0] sm:$0xff]  ;;  %v3806_v29 = vld [vmem:[#allocation4 + $0xd8] sm:$0xff]  ;;  %3272 = vst.msk [vmem:[#allocation4 + $0xf1] sm:$0xff] %vm440_vm0, %v3239_v13  ;;  %v3424_v0 = vpack.c.bf16 %v3392_v47, %v3392_v47  ;;  %vm3176_vm10 = vcmp.ge.f32.partialorder %v3125_v27, 0.0  ;;  %v3208_v28 = vmul.f32 0.2, %v3125_v27 }
 0x252   : > { %v3425_v15 = vpack.c.bf16 %v3393_v44, %v3393_v44  ;;  %4732 = vst.msk [vmem:[#allocation5 + $0x128] sm:$0xf] %vm560_vm15, %v4700_v11  ;;  %v8825_v12 = vpack.c.bf16 %v3806_v29, %v3806_v29  ;;  %v2949_v23 = vpop.f32.mrf.mxu2  ;;  %v3038_v35 = vpop.f32.mrf.mxu3  ;;  %v1167_v11 = vld [vmem:[#allocation2 + $0x169] sm:$0xff] }
 0x253   : > { %3604 = vrot.lane.b32.xlu2 %v3521_v17, %s7569_s10  ;;  %3456 = vst.msk [vmem:[#allocation5 + $0x168] sm:$0xf] %vm560_vm15, %v3424_v0  ;;  %v3240_v40 = vsel %vm3176_vm10, %v3125_v27, %v3208_v28  ;;  %v2950_v62 = vadd.f32 %v2949_v23, %v8330_v22  ;;  %v1487_v17 = vld [vmem:[#allocation2 + $0x170] sm:$0xff]  ;;  %v1199_v29 = vpack.c.bf16 %v1167_v11, %v1167_v11  ;;  %v3129_v22 = vpop.f32.mrf.mxu0 }
 0x254   : > { %3457 = vst.msk [vmem:[#allocation5 + $0x17c] sm:$0xf] %vm560_vm15, %v3425_v15  ;;  %v1519_v54 = vpack.c.bf16 %v1487_v17, %v1487_v17  ;;  %v4125_v15 = vld [vmem:[#allocation4 + $0xca] sm:$0xff] }
 0x255   : > { %v7273_v56 = vld [vmem:[#allocation3 + $0x200] sm:$0xf0]  ;;  %4412 = vst.msk [vmem:[#allocation5 + $0x124] sm:$0xf] %vm560_vm15, %v8825_v12  ;;  %v3039_v0 = vadd.f32 %v3038_v35, %v2950_v62  ;;  %v8842_v23 = vpack.c.bf16 %v4125_v15, %v4125_v15 }
 0x256   : > { %v6471_v13 = vor.u32 %v7273_v56, %v6470_v48  ;;  %4091 = vst.msk [vmem:[#allocation5 + $0x10c] sm:$0xf] %vm560_vm15, %v8828_v49  ;;  %v1807_v48 = vld [vmem:[#allocation2 + $0x172] sm:$0xff] }
 0x257   : > { %v4669_v36 = vld [vmem:[#allocation4 + $0xe2] sm:$0xff]  ;;  %3273 = vst.msk [vmem:[#allocation4 + $0xf9] sm:$0xff] %vm440_vm0, %v3240_v40  ;;  %v3128_v28 = vadd.f32 %v3127_v53, %v3039_v0  ;;  %v1839_v56 = vpack.c.bf16 %v1807_v48, %v1807_v48 }
 0x258   : > { %v4701_v52 = vpack.c.bf16 %v4669_v36, %v4669_v36  ;;  %v3311_v44 = vld [vmem:[#allocation4 + $0xf2] sm:$0x1]  ;;  %6688 = vmatmul.msk.bf16.gmra.mxu0 %vm440_vm0, %v6471_v13  ;;  %1231 = vst.msk [vmem:[#allocation3 + $0x238] sm:$0xf] %vm560_vm15, %v1199_v29 }
 0x259   : > { %v3490_v47 = vld [vmem:[#allocation4 + $0xf1] sm:$0xff]  ;;  %3330 = vst.msk [vmem:[#allocation4 + $0xf0] sm:$0x1] %vm3319_vm14, %v3311_v44  ;;  %vm3177_vm11 = vcmp.ge.f32.partialorder %v3128_v28, 0.0  ;;  %v3209_v13 = vmul.f32 0.2, %v3128_v28  ;;  %v3567_v36 = vpop.permute.xlu0 %3566 }
 0x25a   : > { %v3522_v27 = vpack.c.bf16 %v3490_v47, %v3490_v47  ;;  %4733 = vst.msk [vmem:[#allocation5 + $0x13c] sm:$0xf] %vm560_vm15, %v4701_v52  ;;  %v2951_v35 = vpop.f32.mrf.mxu2  ;;  %v3040_v40 = vpop.f32.mrf.mxu3 }
 0x25b   : > { %1551 = vst.msk [vmem:[#allocation3 + $0x228] sm:$0xf] %vm560_vm15, %v1519_v54  ;;  %v3241_v11 = vsel %vm3177_vm11, %v3128_v28, %v3209_v13  ;;  %v3569_v17 = vpop.permute.xlu1 %3568  ;;  %v2952_v52 = vadd.f32 %v2951_v35, %v8341_v21  ;;  %v3132_v0 = vpop.f32.mrf.mxu0  ;;  %v6490_v21 = vld [vmem:[#allocation3 + $0x218] sm:$0xf] }
 0x25c   : > { %3606 = vrot.lane.b32.xlu0 %v3522_v27, %s7569_s10  ;;  %1871 = vst.msk [vmem:[#allocation3 + $0x22c] sm:$0xf] %vm560_vm15, %v1839_v56 }
 0x25d   : > { %3662 = vst.msk [vmem:[#allocation5] sm:$0xf] %vm785_vm9, %v3567_v36  ;;  %v3041_v54 = vadd.f32 %v3040_v40, %v2952_v52 }
 0x25e   : > { %v3348_v62 = vld [vmem:[#allocation4 + $0xff] sm:$0x1]  ;;  %v4670_v53 = vld [vmem:[#allocation4 + $0xf2] sm:$0xff]  ;;  %3775 = vst.msk [vmem:[#allocation5 + $0x158] sm:$0xf] %vm560_vm15, %v8842_v23 }
 0x25f   : > { %v3491_v44 = vld [vmem:[#allocation4 + $0xf9] sm:$0xff]  ;;  %3366 = vst.msk [vmem:[#allocation4 + $0x101] sm:$0x1] %vm3319_vm14, %v3348_v62  ;;  %v4702_v47 = vpack.c.bf16 %v4670_v53, %v4670_v53  ;;  %v3130_v15 = vadd.f32 %v3129_v22, %v3041_v54 }
 0x260   : > { %v3523_v29 = vpack.c.bf16 %v3491_v44, %v3491_v44  ;;  %3274 = vst.msk [vmem:[#allocation4 + $0x109] sm:$0xff] %vm440_vm0, %v3241_v11  ;;  %v3394_v22 = vld [vmem:[#allocation4 + $0xf0] sm:$0xff] }
 0x261   : > { %4734 = vst.msk [vmem:[#allocation5 + $0x150] sm:$0xf] %vm560_vm15, %v4702_v47  ;;  %vm3178_vm12 = vcmp.ge.f32.partialorder %v3130_v15, 0.0  ;;  %v3210_v27 = vmul.f32 0.2, %v3130_v15  ;;  %v1703_v28 = vpop.permute.xlu0 %1702 }
 0x262   : > { %3608 = vrot.lane.b32.xlu1 %v3523_v29, %s7569_s10  ;;  %3663 = vst.msk [vmem:[#allocation5 + $0x14] sm:$0xf] %vm785_vm9, %v3569_v17  ;;  %v3587_v48 = vpop.permute.xlu2 %3586  ;;  %v2954_v56 = vpop.f32.mrf.mxu2 }
 0x263   : > { %3672 = vst.msk [vmem:[#allocation5 + $0xc8] sm:$0xf] %vm785_vm9, %v3587_v48  ;;  %v3043_v13 = vpop.f32.mrf.mxu3  ;;  %v7278_v36 = vld [vmem:[#allocation3 + $0x228] sm:$0xf0]  ;;  %v3242_v40 = vsel %vm3178_vm12, %v3130_v15, %v3210_v27  ;;  %v1384_v62 = vpop.permute.xlu1 %1383  ;;  %v2955_v53 = vadd.f32 %v2954_v56, %v8355_v57  ;;  %v1489_v15 = vld [vmem:[#allocation2 + $0x188] sm:$0xff] }
 0x264   : > { %1773 = vst.msk [vmem:[#allocation3 + $0x200] sm:$0xf] %vm785_vm9, %v1703_v28  ;;  %v6491_v11 = vor.u32 %v7278_v36, %v6490_v21  ;;  %v6726_v44 = vld [vmem:[#allocation5] sm:$0xf]  ;;  %v1521_v48 = vpack.c.bf16 %v1489_v15, %v1489_v15  ;;  %v3426_v28 = vpack.c.bf16 %v3394_v22, %v3394_v22  ;;  %v7270_v56 = vld [vmem:[#allocation3 + $0x1ec] sm:$0xf] }
 0x265   : > { %3275 = vst.msk [vmem:[#allocation4 + $0x111] sm:$0xff] %vm440_vm0, %v3242_v40  ;;  %v3044_v29 = vadd.f32 %v3043_v13, %v2955_v53 }
 0x266   : > { %v4671_v35 = vld [vmem:[#allocation4 + $0xfa] sm:$0xff]  ;;  %1453 = vst.msk [vmem:[#allocation3 + $0x210] sm:$0xf] %vm785_vm9, %v1384_v62 }
 0x267   : > { %v4703_v17 = vpack.c.bf16 %v4671_v35, %v4671_v35  ;;  %v3312_v52 = vld [vmem:[#allocation4 + $0x10a] sm:$0x1]  ;;  %v3133_v21 = vadd.f32 %v3132_v0, %v3044_v29  ;;  %1553 = vst.msk [vmem:[#allocation3 + $0x250] sm:$0xf] %vm560_vm15, %v1521_v48  ;;  %v7277_v29 = vld [vmem:[#allocation3 + $0x220] sm:$0xf0] }
 0x268   : > { %v3492_v47 = vld [vmem:[#allocation4 + $0x109] sm:$0xff]  ;;  %3331 = vst.msk [vmem:[#allocation4 + $0x108] sm:$0x1] %vm3319_vm14, %v3312_v52  ;;  %6689 = vmatmul.msk.bf16.gmra.mxu0 %vm440_vm0, %v6491_v11 }
 0x269   : > { %v3524_v54 = vpack.c.bf16 %v3492_v47, %v3492_v47  ;;  %4735 = vst.msk [vmem:[#allocation5 + $0x164] sm:$0xf] %vm560_vm15, %v4703_v17  ;;  %v7327_v27 = vld [vmem:[#allocation5 + $0x10] sm:$0xf0]  ;;  %vm3179_vm13 = vcmp.ge.f32.partialorder %v3133_v21, 0.0  ;;  %v3571_v36 = vpop.permute.xlu0 %3570 }
 0x26a   : > { %v6727_v57 = vor.u32 %v7327_v27, %v6726_v44  ;;  %v3211_v13 = vmul.f32 0.2, %v3133_v21  ;;  %3664 = vst.msk [vmem:[#allocation5 + $0x28] sm:$0xf] %vm785_vm9, %v3571_v36  ;;  %v2956_v35 = vpop.f32.mrf.mxu2 }
 0x26b   : > { %3610 = vrot.lane.b32.xlu2 %v3524_v54, %s7569_s10  ;;  %v6464_v40 = vld [vmem:[#allocation3 + $0x1fc] sm:$0xf0]  ;;  %v3045_v53 = vpop.f32.mrf.mxu3  ;;  %v3573_v52 = vpop.permute.xlu1 %3572  ;;  %v2957_v0 = vadd.f32 %v2956_v35, %v8366_v39  ;;  %3458 = vst.msk [vmem:[#allocation5 + $0x190] sm:$0xf] %vm560_vm15, %v3426_v28  ;;  %v1808_v39 = vld [vmem:[#allocation2 + $0x182] sm:$0xff] }
 0x26c   : > { %5627 = vmatmul.bf16.vlgmr.msrb.gmra.mxu1 %v6727_v57  ;;  %v3349_v11 = vld [vmem:[#allocation4 + $0x117] sm:$0x1]  ;;  %v4672_v17 = vld [vmem:[#allocation4 + $0x10a] sm:$0xff]  ;;  %v3243_v62 = vsel %vm3179_vm13, %v3133_v21, %v3211_v13  ;;  %v6467_v44 = vor.u32 %v7270_v56, %v6464_v40  ;;  %v3134_v54 = vpop.f32.mrf.mxu0  ;;  %3665 = vst.msk [vmem:[#allocation5 + $0x3c] sm:$0xf] %vm785_vm9, %v3573_v52  ;;  %v8873_v13 = vpack.c.bf16 %v1808_v39, %v1808_v39  ;;  %v1809_v40 = vld [vmem:[#allocation2 + $0x18a] sm:$0xff] }
 0x26d   : > { %v3493_v22 = vld [vmem:[#allocation4 + $0x111] sm:$0xff]  ;;  %3367 = vst.msk [vmem:[#allocation4 + $0x119] sm:$0x1] %vm3319_vm14, %v3349_v11  ;;  %v4704_v47 = vpack.c.bf16 %v4672_v17, %v4672_v17  ;;  %v3046_v48 = vadd.f32 %v3045_v53, %v2957_v0 }
 0x26e   : > { %v3525_v15 = vpack.c.bf16 %v3493_v22, %v3493_v22  ;;  %3276 = vst.msk [vmem:[#allocation4 + $0x121] sm:$0xff] %vm440_vm0, %v3243_v62  ;;  %3047 = vmatmul.bf16.gmra.mxu3 %v6467_v44  ;;  %v6482_v21 = vld [vmem:[#allocation3 + $0x210] sm:$0xf]  ;;  %v3395_v62 = vld [vmem:[#allocation4 + $0xf8] sm:$0xff] }
 0x26f   : > { %v3396_v27 = vld [vmem:[#allocation4 + $0x108] sm:$0xff]  ;;  %4736 = vst.msk [vmem:[#allocation5 + $0x178] sm:$0xf] %vm560_vm15, %v4704_v47  ;;  %v6483_v28 = vor.u32 %v7277_v29, %v6482_v21  ;;  %v3135_v56 = vadd.f32 %v3134_v54, %v3046_v48  ;;  %v8880_v47 = vpack.c.bf16 %v1809_v40, %v1809_v40  ;;  %v3427_v48 = vpack.c.bf16 %v3395_v62, %v3395_v62 }
 0x270   : > { %v3428_v57 = vpack.c.bf16 %v3396_v27, %v3396_v27  ;;  %3612 = vrot.lane.b32.xlu0 %v3525_v15, %s7569_s10  ;;  %1872 = vst.msk [vmem:[#allocation3 + $0x240] sm:$0xf] %vm560_vm15, %v8873_v13  ;;  %v7275_v27 = vld [vmem:[#allocation3 + $0x214] sm:$0xf]  ;;  %v7282_v62 = vld [vmem:[#allocation3 + $0x248] sm:$0xf0] }
 0x271   : > { %2963 = vmatmul.bf16.gmra.mxu2 %v6483_v28  ;;  %vm3180_vm2 = vcmp.ge.f32.partialorder %v3135_v56, 0.0  ;;  %v3212_v36 = vmul.f32 0.2, %v3135_v56  ;;  %v1707_v35 = vpop.permute.xlu0 %1706  ;;  %v6746_v44 = vld [vmem:[#allocation5 + $0x28] sm:$0xf]  ;;  %v3397_v28 = vld [vmem:[#allocation4 + $0x110] sm:$0xff] }
 0x272   : > { %3460 = vst.msk [vmem:[#allocation5 + $0x1b8] sm:$0xf] %vm560_vm15, %v3428_v57 }
 0x273   : > { %1775 = vst.msk [vmem:[#allocation3 + $0x228] sm:$0xf] %vm785_vm9, %v1707_v35  ;;  %v3244_v11 = vsel %vm3180_vm2, %v3135_v56, %v3212_v36  ;;  %v1388_v17 = vpop.permute.xlu1 %1387  ;;  %v7332_v54 = vld [vmem:[#allocation5 + $0x38] sm:$0xf0] }
 0x274   : > { %v4673_v53 = vld [vmem:[#allocation4 + $0x112] sm:$0xff]  ;;  %3277 = vst.msk [vmem:[#allocation4 + $0x129] sm:$0xff] %vm440_vm0, %v3244_v11  ;;  %v6747_v15 = vor.u32 %v7332_v54, %v6746_v44  ;;  %v4026_v36 = vld [vmem:[#allocation4 + $0xa9] sm:$0xff]  ;;  %v3429_v44 = vpack.c.bf16 %v3397_v28, %v3397_v28 }
 0x275   : > { %v4705_v52 = vpack.c.bf16 %v4673_v53, %v4673_v53  ;;  %v3313_v0 = vld [vmem:[#allocation4 + $0x122] sm:$0x1]  ;;  %1455 = vst.msk [vmem:[#allocation3 + $0x238] sm:$0xf] %vm785_vm9, %v1388_v17  ;;  %v3808_v28 = vld [vmem:[#allocation4 + $0xf0] sm:$0xff] }
 0x276   : > { %v3494_v22 = vld [vmem:[#allocation4 + $0x121] sm:$0xff]  ;;  %3332 = vst.msk [vmem:[#allocation4 + $0x120] sm:$0x1] %vm3319_vm14, %v3313_v0 }
 0x277   : > { %v3526_v29 = vpack.c.bf16 %v3494_v22, %v3494_v22  ;;  %4737 = vst.msk [vmem:[#allocation5 + $0x18c] sm:$0xf] %vm560_vm15, %v4705_v52 }
 0x278   : > { %1873 = vst.msk [vmem:[#allocation3 + $0x254] sm:$0xf] %vm560_vm15, %v8880_v47 }
 0x279   : > { %3614 = vrot.lane.b32.xlu1 %v3526_v29, %s7569_s10  ;;  %v3575_v21 = vpop.permute.xlu0 %3574  ;;  %3459 = vst.msk [vmem:[#allocation5 + $0x1a4] sm:$0xf] %vm560_vm15, %v3427_v48  ;;  %v6510_v29 = vld [vmem:[#allocation3 + $0x240] sm:$0xf]  ;;  %v4122_v48 = vld [vmem:[#allocation4 + $0xaa] sm:$0xff] }
 0x27a   : > { %v3593_v57 = vpop.permute.xlu2 %3592  ;;  %v6484_v39 = vld [vmem:[#allocation3 + $0x224] sm:$0xf0]  ;;  %3666 = vst.msk [vmem:[#allocation5 + $0x50] sm:$0xf] %vm785_vm9, %v3575_v21 }
 0x27b   : > { %3675 = vst.msk [vmem:[#allocation5 + $0x104] sm:$0xf] %vm785_vm9, %v3593_v57  ;;  %v6487_v56 = vor.u32 %v7275_v27, %v6484_v39  ;;  %v3350_v35 = vld [vmem:[#allocation4 + $0x12f] sm:$0x1]  ;;  %v4674_v40 = vld [vmem:[#allocation4 + $0x122] sm:$0xff]  ;;  %v3577_v53 = vpop.permute.xlu1 %3576  ;;  %v4058_v39 = vpack.c.bf16 %v4026_v36, %v4026_v36  ;;  %v8902_v36 = vpack.c.bf16 %v3808_v28, %v3808_v28 }
 0x27c   : > { %5632 = vmatmul.bf16.gmra.mxu1 %v6747_v15  ;;  %v3495_v11 = vld [vmem:[#allocation4 + $0x129] sm:$0xff]  ;;  %3368 = vst.msk [vmem:[#allocation4 + $0x131] sm:$0x1] %vm3319_vm14, %v3350_v35  ;;  %v4706_v17 = vpack.c.bf16 %v4674_v40, %v4674_v40  ;;  %v6502_v27 = vld [vmem:[#allocation3 + $0x238] sm:$0xf]  ;;  %v8898_v40 = vpack.c.bf16 %v4122_v48, %v4122_v48 }
 0x27d   : > { %v3527_v52 = vpack.c.bf16 %v3495_v11, %v3495_v11  ;;  %v3399_v0 = vld [vmem:[#allocation4 + $0x128] sm:$0xff]  ;;  %v3398_v22 = vld [vmem:[#allocation4 + $0x120] sm:$0xff]  ;;  %3667 = vst.msk [vmem:[#allocation5 + $0x64] sm:$0xf] %vm785_vm9, %v3577_v53  ;;  %v6503_v57 = vor.u32 %v7282_v62, %v6502_v27  ;;  %v7280_v48 = vld [vmem:[#allocation3 + $0x23c] sm:$0xf] }
 0x27e   : > { %3052 = vmatmul.bf16.gmra.mxu3 %v6487_v56  ;;  %v3431_v54 = vpack.c.bf16 %v3399_v0, %v3399_v0  ;;  %v3430_v15 = vpack.c.bf16 %v3398_v22, %v3398_v22  ;;  %4738 = vst.msk [vmem:[#allocation5 + $0x1a0] sm:$0xf] %vm560_vm15, %v4706_v17  ;;  %v3805_v53 = vld [vmem:[#allocation4 + $0xc8] sm:$0xff] }
 0x27f   : > { %3616 = vrot.lane.b32.xlu2 %v3527_v52, %s7569_s10  ;;  %v7283_v21 = vld [vmem:[#allocation3 + $0x250] sm:$0xf0]  ;;  %3461 = vst.msk [vmem:[#allocation5 + $0x1cc] sm:$0xf] %vm560_vm15, %v3429_v44  ;;  %v4443_v17 = vld [vmem:[#allocation4 + $0xc9] sm:$0xff]  ;;  %v8906_v22 = vpack.c.bf16 %v3805_v53, %v3805_v53  ;;  %v4028_v27 = vld [vmem:[#allocation4 + $0xc1] sm:$0xff] }
 0x280   : > { %3463 = vst.msk [vmem:[#allocation5 + $0x1f4] sm:$0xf] %vm560_vm15, %v3431_v54  ;;  %v6511_v35 = vor.u32 %v7283_v21, %v6510_v29  ;;  %v4127_v29 = vld [vmem:[#allocation4 + $0xe2] sm:$0xff]  ;;  %v4060_v53 = vpack.c.bf16 %v4028_v27, %v4028_v27  ;;  %v4030_v27 = vld [vmem:[#allocation4 + $0xd9] sm:$0xff] }
 0x281   : > { %2968 = vmatmul.bf16.gmra.mxu2 %v6503_v57  ;;  %v1711_v56 = vpop.permute.xlu0 %1710  ;;  %3462 = vst.msk [vmem:[#allocation5 + $0x1e0] sm:$0xf] %vm560_vm15, %v3430_v15  ;;  %v6766_v11 = vld [vmem:[#allocation5 + $0x50] sm:$0xf]  ;;  %v8908_v15 = vpack.c.bf16 %v4443_v17, %v4443_v17  ;;  %v8913_v21 = vpack.c.bf16 %v4127_v29, %v4127_v29 }
 0x282   : > { %1777 = vst.msk [vmem:[#allocation3 + $0x250] sm:$0xf] %vm785_vm9, %v1711_v56  ;;  %6690 = vmatmul.msk.bf16.gmra.mxu0 %vm440_vm0, %v6511_v35  ;;  %v4124_v57 = vld [vmem:[#allocation4 + $0xc2] sm:$0xff] }
 0x283   : > { %v4675_v62 = vld [vmem:[#allocation4 + $0x12a] sm:$0xff]  ;;  %v3579_v52 = vpop.permute.xlu1 %3578  ;;  %9824 = vst [vmem:[#allocation15_spill] sm:$0xff] %v8902_v36  ;;  %v3807_v56 = vld [vmem:[#allocation4 + $0xe0] sm:$0xff]  ;;  %v8922_v17 = vpack.c.bf16 %v4124_v57, %v4124_v57 }
 0x284   : > { %4090 = vst.msk [vmem:[#allocation5 + $0xf8] sm:$0xf] %vm560_vm15, %v4058_v39  ;;  %v4707_v0 = vpack.c.bf16 %v4675_v62, %v4675_v62  ;;  %v7337_v44 = vld [vmem:[#allocation5 + $0x60] sm:$0xf0]  ;;  %v3810_v39 = vld [vmem:[#allocation4 + $0x108] sm:$0xff] }
 0x285   : > { %3668 = vst.msk [vmem:[#allocation5 + $0x78] sm:$0xf] %vm785_vm9, %v3579_v52  ;;  %v6767_v54 = vor.u32 %v7337_v44, %v6766_v11  ;;  %v4445_v62 = vld [vmem:[#allocation4 + $0xe1] sm:$0xff]  ;;  %v8929_v44 = vpack.c.bf16 %v3807_v56, %v3807_v56  ;;  %v3809_v56 = vld [vmem:[#allocation4 + $0xf8] sm:$0xff] }
 0x286   : > { %3772 = vst.msk [vmem:[#allocation5 + $0x11c] sm:$0xf] %vm560_vm15, %v8898_v40  ;;  %v8931_v29 = vpack.c.bf16 %v4445_v62, %v4445_v62 }
 0x287   : > { %4739 = vst.msk [vmem:[#allocation5 + $0x1b4] sm:$0xf] %vm560_vm15, %v4707_v0  ;;  %v8924_v0 = vpack.c.bf16 %v3810_v39, %v3810_v39 }
 0x288   : > { %9825 = vst [vmem:[#allocation16_spill] sm:$0xff] %v8913_v21 }
 0x289   : > { %4414 = vst.msk [vmem:[#allocation5 + $0x14c] sm:$0xf] %vm560_vm15, %v8902_v36  ;;  %v3583_v35 = vpop.permute.xlu0 %3582  ;;  %v6504_v28 = vld [vmem:[#allocation3 + $0x24c] sm:$0xf0] }
 0x28a   : > { %4411 = vst.msk [vmem:[#allocation5 + $0x110] sm:$0xf] %vm560_vm15, %v8906_v22  ;;  %v6507_v11 = vor.u32 %v7280_v48, %v6504_v28  ;;  %v4126_v48 = vld [vmem:[#allocation4 + $0xda] sm:$0xff] }
 0x28b   : > { %4093 = vst.msk [vmem:[#allocation5 + $0x134] sm:$0xf] %vm560_vm15, %v8908_v15  ;;  %v3585_v52 = vpop.permute.xlu1 %3584  ;;  %v3812_v28 = vld [vmem:[#allocation4 + $0x120] sm:$0xff]  ;;  %v8946_v62 = vpack.c.bf16 %v4126_v48, %v4126_v48  ;;  %v4128_v48 = vld [vmem:[#allocation4 + $0xf2] sm:$0xff] }
 0x28c   : > { %5637 = vmatmul.bf16.gmra.mxu1 %v6767_v54  ;;  %3670 = vst.msk [vmem:[#allocation5 + $0xa0] sm:$0xf] %vm785_vm9, %v3583_v35  ;;  %v4129_v54 = vld [vmem:[#allocation4 + $0xfa] sm:$0xff]  ;;  %v8949_v36 = vpack.c.bf16 %v3812_v28, %v3812_v28 }
 0x28d   : > { %9826 = vst [vmem:[#allocation17_spill] sm:$0xff] %v8922_v17  ;;  %v8940_v35 = vpack.c.bf16 %v4129_v54, %v4129_v54  ;;  %v8951_v54 = vpack.c.bf16 %v3809_v56, %v3809_v56 }
 0x28e   : > { %9827 = vst [vmem:[#allocation18_spill] sm:$0xff] %v8924_v0  ;;  %3057 = vmatmul.bf16.gmra.mxu3 %v6507_v11 }
 0x28f   : > { %3777 = vst.msk [vmem:[#allocation5 + $0x180] sm:$0xf] %vm560_vm15, %v8913_v21 }
 0x290   : > { %3671 = vst.msk [vmem:[#allocation5 + $0xb4] sm:$0xf] %vm785_vm9, %v3585_v52  ;;  %v6786_v52 = vld [vmem:[#allocation5 + $0x78] sm:$0xf] }
 0x291   : > { %9828 = vst [vmem:[#allocation19_spill] sm:$0xff] %v8929_v44  ;;  %v3589_v39 = vpop.permute.xlu0 %3588 }
 0x292   : > { %9829 = vst [vmem:[#allocation20_spill] sm:$0xff] %v8931_v29 }
 0x293   : > { %4092 = vst.msk [vmem:[#allocation5 + $0x120] sm:$0xf] %vm560_vm15, %v4060_v53  ;;  %v3599_v57 = vpop.permute.xlu2 %3598  ;;  %v4062_v53 = vpack.c.bf16 %v4030_v27, %v4030_v27  ;;  %v3591_v11 = vpop.permute.xlu1 %3590  ;;  %v4032_v27 = vld [vmem:[#allocation4 + $0xf1] sm:$0xff] }
 0x294   : > { %3774 = vst.msk [vmem:[#allocation5 + $0x144] sm:$0xf] %vm560_vm15, %v8922_v17 }
 0x295   : > { %4416 = vst.msk [vmem:[#allocation5 + $0x174] sm:$0xf] %vm560_vm15, %v8924_v0  ;;  %v4447_v0 = vld [vmem:[#allocation4 + $0xf9] sm:$0xff] }
 0x296   : > { %4413 = vst.msk [vmem:[#allocation5 + $0x138] sm:$0xf] %vm560_vm15, %v8929_v44  ;;  %v4131_v44 = vld [vmem:[#allocation4 + $0x112] sm:$0xff] }
 0x297   : > { %9830 = vst [vmem:[#allocation21_spill] sm:$0xff] %v8940_v35  ;;  %v8960_v28 = vpack.c.bf16 %v4131_v44, %v4131_v44 }
 0x298   : > { %4095 = vst.msk [vmem:[#allocation5 + $0x15c] sm:$0xf] %vm560_vm15, %v8931_v29 }
 0x299   : > { %3678 = vst.msk [vmem:[#allocation5 + $0x140] sm:$0xf] %vm785_vm9, %v3599_v57  ;;  %v7342_v57 = vld [vmem:[#allocation5 + $0x88] sm:$0xf0] }
 0x29a   : > { %3673 = vst.msk [vmem:[#allocation5 + $0xdc] sm:$0xf] %vm785_vm9, %v3589_v39  ;;  %v6787_v29 = vor.u32 %v7342_v57, %v6786_v52  ;;  %v8956_v39 = vpack.c.bf16 %v4447_v0, %v4447_v0  ;;  %v8967_v0 = vpack.c.bf16 %v4128_v48, %v4128_v48  ;;  %v4133_v57 = vld [vmem:[#allocation4 + $0x12a] sm:$0xff] }
 0x29b   : > { %9831 = vst [vmem:[#allocation22_spill] sm:$0xff] %v8946_v62  ;;  %v3595_v56 = vpop.permute.xlu0 %3594 }
 0x29c   : > { %3674 = vst.msk [vmem:[#allocation5 + $0xf0] sm:$0xf] %vm785_vm9, %v3591_v11  ;;  %v3811_v11 = vld [vmem:[#allocation4 + $0x110] sm:$0xff]  ;;  %5642 = vmatmul.bf16.gmra.mxu1 %v6787_v29 }
 0x29d   : > { %9832 = vst [vmem:[#allocation23_spill] sm:$0xff] %v8949_v36  ;;  %v8969_v52 = vpack.c.bf16 %v3811_v11, %v3811_v11  ;;  %v4130_v29 = vld [vmem:[#allocation4 + $0x10a] sm:$0xff] }
 0x29e   : > { %9833 = vst [vmem:[#allocation24_spill] sm:$0xff] %v8951_v54  ;;  %v8984_v11 = vpack.c.bf16 %v4130_v29, %v4130_v29 }
 0x29f   : > { %3779 = vst.msk [vmem:[#allocation5 + $0x1a8] sm:$0xf] %vm560_vm15, %v8940_v35  ;;  %v4449_v35 = vld [vmem:[#allocation4 + $0x111] sm:$0xff] }
 0x2a0   : > { %4094 = vst.msk [vmem:[#allocation5 + $0x148] sm:$0xf] %vm560_vm15, %v4062_v53  ;;  %v4064_v53 = vpack.c.bf16 %v4032_v27, %v4032_v27  ;;  %v8973_v44 = vpack.c.bf16 %v4449_v35, %v4449_v35  ;;  %v8978_v27 = vpack.c.bf16 %v4133_v57, %v4133_v57  ;;  %v4034_v35 = vld [vmem:[#allocation4 + $0x109] sm:$0xff] }
 0x2a1   : > { %9834 = vst [vmem:[#allocation25_spill] sm:$0xff] %v8956_v39  ;;  %v6806_v57 = vld [vmem:[#allocation5 + $0xa0] sm:$0xf] }
 0x2a2   : > { %3776 = vst.msk [vmem:[#allocation5 + $0x16c] sm:$0xf] %vm560_vm15, %v8946_v62  ;;  %v3597_v48 = vpop.permute.xlu1 %3596 }
 0x2a3   : > { %9835 = vst [vmem:[#allocation26_spill] sm:$0xff] %v8960_v28 }
 0x2a4   : > { %4418 = vst.msk [vmem:[#allocation5 + $0x19c] sm:$0xf] %vm560_vm15, %v8949_v36  ;;  %v3813_v36 = vld [vmem:[#allocation4 + $0x128] sm:$0xff] }
 0x2a5   : > { %4415 = vst.msk [vmem:[#allocation5 + $0x160] sm:$0xf] %vm560_vm15, %v8951_v54 }
 0x2a6   : > { %3676 = vst.msk [vmem:[#allocation5 + $0x118] sm:$0xf] %vm785_vm9, %v3595_v56  ;;  %v8989_v56 = vpack.c.bf16 %v3813_v36, %v3813_v36  ;;  %v7420_v36 = vld [vmem:[%s9791_s3 + $0x78] sm:$0xff] }
 0x2a7   : > { %9836 = vst [vmem:[#allocation27_spill] sm:$0xff] %v8967_v0  ;;  %5708 = vmatpush.bf16.msra.mxu2 %v7420_v36  ;;  %v7440_v36 = vld [vmem:[%s9791_s3 + $0x118] sm:$0xff] }
 0x2a8   : > { %9837 = vst [vmem:[#allocation28_spill] sm:$0xff] %v8969_v52  ;;  %5979 = vmatpush.bf16.msra.mxu1 %v7440_v36 }
 0x2a9   : > { %4097 = vst.msk [vmem:[#allocation5 + $0x184] sm:$0xf] %vm560_vm15, %v8956_v39 }
 0x2aa   : > { %9838 = vst [vmem:[#allocation29_spill] sm:$0xff] %v8973_v44 }
 0x2ab   : > { %3781 = vst.msk [vmem:[#allocation5 + $0x1d0] sm:$0xf] %vm560_vm15, %v8960_v28  ;;  %v7347_v28 = vld [vmem:[#allocation5 + $0xb0] sm:$0xf0] }
 0x2ac   : > { %4096 = vst.msk [vmem:[#allocation5 + $0x170] sm:$0xf] %vm560_vm15, %v4064_v53  ;;  %v4066_v53 = vpack.c.bf16 %v4034_v35, %v4034_v35  ;;  %v6807_v29 = vor.u32 %v7347_v28, %v6806_v57  ;;  %v7352_v28 = vld [vmem:[#allocation5 + $0xd8] sm:$0xf0]  ;;  %v6826_v57 = vld [vmem:[#allocation5 + $0xc8] sm:$0xf] }
 0x2ad   : > { %9839 = vst [vmem:[#allocation30_spill] sm:$0xff] %v8978_v27 }
 0x2ae   : > { %3778 = vst.msk [vmem:[#allocation5 + $0x194] sm:$0xf] %vm560_vm15, %v8967_v0  ;;  %5647 = vmatmul.bf16.gmra.mxu1 %v6807_v29  ;;  %v4037_v29 = vld [vmem:[#allocation4 + $0x129] sm:$0xff] }
 0x2af   : > { %4417 = vst.msk [vmem:[#allocation5 + $0x188] sm:$0xf] %vm560_vm15, %v8969_v52  ;;  %v7436_v52 = vld [vmem:[%s9791_s3 + $0xf8] sm:$0xff] }
 0x2b0   : > { %9840 = vst [vmem:[#allocation31_spill] sm:$0xff] %v8984_v11  ;;  %5886 = vmatpush.bf16.msra.mxu0 %v7436_v52 }
 0x2b1   : > { %4099 = vst.msk [vmem:[#allocation5 + $0x1ac] sm:$0xf] %vm560_vm15, %v8973_v44  ;;  %v3605_v44 = vpop.permute.xlu2 %3604 }
 0x2b2   : > { %3677 = vst.msk [vmem:[#allocation5 + $0x12c] sm:$0xf] %vm785_vm9, %v3597_v48  ;;  %v7428_v48 = vld [vmem:[%s9791_s3 + $0xb8] sm:$0xff] }
 0x2b3   : > { %9841 = vst [vmem:[#allocation32_spill] sm:$0xff] %v8989_v56  ;;  %5797 = vmatpush.bf16.msra.mxu3 %v7428_v48  ;;  %v4069_v48 = vpack.c.bf16 %v4037_v29, %v4037_v29  ;;  %v6866_v29 = vld [vmem:[#allocation5 + $0x118] sm:$0xf] }
 0x2b4   : > { %3783 = vst.msk [vmem:[#allocation5 + $0x1f8] sm:$0xf] %vm560_vm15, %v8978_v27  ;;  %v3601_v35 = vpop.permute.xlu0 %3600 }
 0x2b5   : > { %4098 = vst.msk [vmem:[#allocation5 + $0x198] sm:$0xf] %vm560_vm15, %v4066_v53  ;;  %v4036_v53 = vld [vmem:[#allocation4 + $0x121] sm:$0xff] }
 0x2b6   : > { %3780 = vst.msk [vmem:[#allocation5 + $0x1bc] sm:$0xf] %vm560_vm15, %v8984_v11  ;;  %v4068_v27 = vpack.c.bf16 %v4036_v53, %v4036_v53  ;;  %v6846_v53 = vld [vmem:[#allocation5 + $0xf0] sm:$0xf] }
 0x2b7   : > { %4419 = vst.msk [vmem:[#allocation5 + $0x1b0] sm:$0xf] %vm560_vm15, %v8989_v56  ;;  %v3718_v56 = vld [vmem:[#allocation4 + $0x122] sm:$0xff] }
 0x2b8   : > { %3681 = vst.msk [vmem:[#allocation5 + $0x17c] sm:$0xf] %vm785_vm9, %v3605_v44  ;;  %v6827_v44 = vor.u32 %v7352_v28, %v6826_v57  ;;  %v7357_v28 = vld [vmem:[#allocation5 + $0x100] sm:$0xf0] }
 0x2b9   : > { %3679 = vst.msk [vmem:[#allocation5 + $0x154] sm:$0xf] %vm785_vm9, %v3601_v35  ;;  %v3750_v35 = vpack.c.bf16 %v3718_v56, %v3718_v56  ;;  %v6847_v57 = vor.u32 %v7357_v28, %v6846_v53  ;;  %v7362_v56 = vld [vmem:[#allocation5 + $0x128] sm:$0xf0]  ;;  %v2959_v53 = vpop.f32.mrf.mxu2 }
 0x2ba   : > { %4100 = vst.msk [vmem:[#allocation5 + $0x1c0] sm:$0xf] %vm560_vm15, %v4068_v27  ;;  %v6867_v36 = vor.u32 %v7362_v56, %v6866_v29  ;;  %v7435_v56 = vld [vmem:[%s9791_s3 + $0xf0] sm:$0xff] }
 0x2bb   : > { %4101 = vst.msk [vmem:[#allocation5 + $0x1d4] sm:$0xf] %vm560_vm15, %v4069_v48  ;;  %5887 = vmatpush.bf16.msra.mxu0 %v7435_v56 }
 0x2bc   : > { %3782 = vst.msk [vmem:[#allocation5 + $0x1e4] sm:$0xf] %vm560_vm15, %v3750_v35  ;;  %v7427_v35 = vld [vmem:[%s9791_s3 + $0xb0] sm:$0xff] }
 0x2bd   : > { %5798 = vmatpush.bf16.msra.mxu3 %v7427_v35 }
 0x2be   : > { %5652 = vmatmul.bf16.gmra.mxu1 %v6827_v44  ;;  %v3603_v11 = vpop.permute.xlu1 %3602 }
 0x2bf   : > { %3680 = vst.msk [vmem:[#allocation5 + $0x168] sm:$0xf] %vm785_vm9, %v3603_v11  ;;  %v7419_v11 = vld [vmem:[%s9791_s3 + $0x70] sm:$0xff] }
 0x2c0   : > { %5709 = vmatpush.bf16.msra.mxu2 %v7419_v11  ;;  %v7367_v28 = vld [vmem:[#allocation5 + $0x150] sm:$0xf0] }
 0x2c1   : > { %v2961_v29 = vpop.f32.mrf.mxu2 }
 0x2c2   : > { %v2962_v54 = vadd.f32 %v2961_v29, %v8388_v19 }
 0x2c5   : > { %v3611_v27 = vpop.permute.xlu2 %3610 }
 0x2c6   : > { %3684 = vst.msk [vmem:[#allocation5 + $0x1b8] sm:$0xf] %vm785_vm9, %v3611_v27  ;;  %v6906_v39 = vld [vmem:[#allocation5 + $0x168] sm:$0xf] }
 0x2ce   : > { %5657 = vmatmul.bf16.gmra.mxu1 %v6847_v57  ;;  %v3607_v44 = vpop.permute.xlu0 %3606  ;;  %v6886_v57 = vld [vmem:[#allocation5 + $0x140] sm:$0xf] }
 0x2cf   : > { %3682 = vst.msk [vmem:[#allocation5 + $0x190] sm:$0xf] %vm785_vm9, %v3607_v44  ;;  %v6887_v44 = vor.u32 %v7367_v28, %v6886_v57 }
 0x2d4   : > { %v3609_v52 = vpop.permute.xlu1 %3608 }
 0x2d5   : > { %3683 = vst.msk [vmem:[#allocation5 + $0x1a4] sm:$0xf] %vm785_vm9, %v3609_v52  ;;  %v3137_v11 = vpop.f32.mrf.mxu0 }
 0x2d9   : > { %v3617_v48 = vpop.permute.xlu2 %3616 }
 0x2da   : > { %3687 = vst.msk [vmem:[#allocation5 + $0x1f4] sm:$0xf] %vm785_vm9, %v3617_v48 }
 0x2de   : > { %5662 = vmatmul.bf16.gmra.mxu1 %v6867_v36  ;;  %v2960_v36 = vadd.f32 %v2959_v53, %v8379_v55  ;;  %v7418_v55 = vld [vmem:[%s9791_s3 + $0x68] sm:$0xff] }
 0x2df   : > { %v7426_v53 = vld [vmem:[%s9791_s3 + $0xa8] sm:$0xff]  ;;  %5710 = vmatpush.bf16.msra.mxu2 %v7418_v55 }
 0x2e0   : > { %5799 = vmatpush.bf16.msra.mxu3 %v7426_v53 }
 0x2e2   : > { %v3613_v27 = vpop.permute.xlu0 %3612 }
 0x2e3   : > { %3685 = vst.msk [vmem:[#allocation5 + $0x1cc] sm:$0xf] %vm785_vm9, %v3613_v27  ;;  %v3139_v27 = vpop.f32.mrf.mxu0 }
 0x2eb   : > { %v3615_v52 = vpop.permute.xlu1 %3614 }
 0x2ec   : > { %3686 = vst.msk [vmem:[#allocation5 + $0x1e0] sm:$0xf] %vm785_vm9, %v3615_v52 }
 0x2ee   : > { %5667 = vmatmul.bf16.gmra.mxu1 %v6887_v44  ;;  %v7372_v44 = vld [vmem:[#allocation5 + $0x178] sm:$0xf0] }
 0x2ef   : > { %v6907_v62 = vor.u32 %v7372_v44, %v6906_v39 }
 0x2f1   : > { %v3048_v48 = vpop.f32.mrf.mxu3 }
 0x2f2   : > { %v3049_v35 = vadd.f32 %v3048_v48, %v2960_v36  ;;  %v3142_v36 = vpop.f32.mrf.mxu0 }
 0x2f4   : > { %v3138_v0 = vadd.f32 %v3137_v11, %v3049_v35  ;;  %v2964_v57 = vpop.f32.mrf.mxu2 }
 0x2f5   : > { %v2965_v39 = vadd.f32 %v2964_v57, %v8398_v45  ;;  %v7377_v57 = vld [vmem:[#allocation5 + $0x1a0] sm:$0xf0] }
 0x2f6   : > { %vm3181_vm3 = vcmp.ge.f32.partialorder %v3138_v0, 0.0  ;;  %v3213_v28 = vmul.f32 0.2, %v3138_v0 }
 0x2f8   : > { %v3245_v52 = vsel %vm3181_vm3, %v3138_v0, %v3213_v28  ;;  %v9046_v28 = vpop.f32.mrf.mxu1 }
 0x2f9   : > { %3278 = vst.msk [vmem:[#allocation4 + $0x139] sm:$0xff] %vm440_vm0, %v3245_v52  ;;  %v3050_v21 = vpop.f32.mrf.mxu3 }
 0x2fa   : > { %v3051_v56 = vadd.f32 %v3050_v21, %v2962_v54  ;;  %9842 = vst [vmem:[#allocation33_spill] sm:$0xff] %v9046_v28  ;;  %v3144_v52 = vpop.f32.mrf.mxu0 }
 0x2fc   : > { %v3140_v11 = vadd.f32 %v3139_v27, %v3051_v56  ;;  %v2966_v21 = vpop.f32.mrf.mxu2  ;;  %v7434_v27 = vld [vmem:[%s9791_s3 + $0xe8] sm:$0xff]  ;;  %v6926_v56 = vld [vmem:[#allocation5 + $0x190] sm:$0xf] }
 0x2fd   : > { %5888 = vmatpush.bf16.msra.mxu0 %v7434_v27  ;;  %v2967_v55 = vadd.f32 %v2966_v21, %v8409_v3 }
 0x2fe   : > { %5672 = vmatmul.bf16.gmra.mxu1 %v6907_v62  ;;  %vm3182_vm4 = vcmp.ge.f32.partialorder %v3140_v11, 0.0  ;;  %v3214_v19 = vmul.f32 0.2, %v3140_v11 }
 0x300   : > { %v3246_v0 = vsel %vm3182_vm4, %v3140_v11, %v3214_v19  ;;  %v3496_v29 = vld [vmem:[#allocation4 + $0x139] sm:$0xff]  ;;  %v6927_v19 = vor.u32 %v7377_v57, %v6926_v56 }
 0x301   : > { %v3314_v62 = vld [vmem:[#allocation4 + $0x13a] sm:$0x1]  ;;  %3279 = vst.msk [vmem:[#allocation4 + $0x141] sm:$0xff] %vm440_vm0, %v3246_v0  ;;  %v3053_v54 = vpop.f32.mrf.mxu3  ;;  %v3528_v48 = vpack.c.bf16 %v3496_v29, %v3496_v29  ;;  %v276_v0 = vld [vmem:[%s7655_s9 + $0x1a0] sm:$0xff] }
 0x302   : > { %v3054_v35 = vadd.f32 %v3053_v54, %v2965_v39  ;;  %3333 = vst.msk [vmem:[#allocation4 + $0x138] sm:$0x1] %vm3319_vm14, %v3314_v62  ;;  %vm330_vm6 = vcmp.ge.f32.partialorder %v276_v0, 0.0 }
 0x303   : > { %3618 = vrot.lane.b32.xlu0 %v3528_v48, %s7569_s10  ;;  %v384_v48 = vmul.f32 0.2, %v276_v0 }
 0x304   : > { %v3143_v45 = vadd.f32 %v3142_v36, %v3054_v35  ;;  %v277_v36 = vld [vmem:[%s7655_s9 + $0x1a8] sm:$0x3]  ;;  %v2969_v3 = vpop.f32.mrf.mxu2 }
 0x305   : > { %vm331_vm7 = vcmp.ge.f32.partialorder %v277_v36, 0.0  ;;  %v385_v28 = vmul.f32 0.2, %v277_v36  ;;  %v438_v21 = vsel %vm330_vm6, %v276_v0, %v384_v48 }
 0x306   : > { %vm3183_vm5 = vcmp.ge.f32.partialorder %v3143_v45, 0.0  ;;  %v3215_v44 = vmul.f32 0.2, %v3143_v45  ;;  %494 = vst.msk [vmem:[#allocation2 + $0x1a0] sm:$0xff] %vm440_vm0, %v438_v21  ;;  %v7439_v21 = vld [vmem:[%s9791_s3 + $0x110] sm:$0xff] }
 0x307   : > { %v439_v56 = vsel %vm331_vm7, %v277_v36, %v385_v28  ;;  %v275_v28 = vld [vmem:[%s7655_s9 + $0x198] sm:$0xff]  ;;  %5980 = vmatpush.bf16.msra.mxu1 %v7439_v21 }
 0x308   : > { %v4676_v53 = vld [vmem:[#allocation4 + $0x13a] sm:$0xff]  ;;  %v3247_v11 = vsel %vm3183_vm5, %v3143_v45, %v3215_v44  ;;  %495 = vst.msk [vmem:[#allocation2 + $0x1a8] sm:$0x3] %vm443_vm1, %v439_v56  ;;  %vm329_vm10 = vcmp.ge.f32.partialorder %v275_v28, 0.0 }
 0x309   : > { %v3497_v39 = vld [vmem:[#allocation4 + $0x141] sm:$0xff]  ;;  %v4708_v29 = vpack.c.bf16 %v4676_v53, %v4676_v53  ;;  %3280 = vst.msk [vmem:[#allocation4 + $0x151] sm:$0xff] %vm440_vm0, %v3247_v11  ;;  %v3055_v62 = vpop.f32.mrf.mxu3  ;;  %v3400_v35 = vld [vmem:[#allocation4 + $0x138] sm:$0xff]  ;;  %v3147_v11 = vpop.f32.mrf.mxu0 }
 0x30a   : > { %v3529_v54 = vpack.c.bf16 %v3497_v39, %v3497_v39  ;;  %v3056_v27 = vadd.f32 %v3055_v62, %v2967_v55  ;;  %v3401_v17 = vld [vmem:[#allocation4 + $0x140] sm:$0xff]  ;;  %v9055_v45 = vpack.c.bf16 %v3400_v35, %v3400_v35  ;;  %v9060_v55 = vpop.f32.mrf.mxu1  ;;  %v383_v62 = vmul.f32 0.2, %v275_v28  ;;  %v7382_v35 = vld [vmem:[#allocation5 + $0x1c8] sm:$0xf0] }
 0x30b   : > { %4740 = vst.msk [vmem:[#allocation5 + $0x1c8] sm:$0xf] %vm560_vm15, %v4708_v29  ;;  %v9057_v57 = vpack.c.bf16 %v3401_v17, %v3401_v17  ;;  %v2970_v17 = vadd.f32 %v2969_v3, %v8418_v37 }
 0x30c   : > { %3620 = vrot.lane.b32.xlu1 %v3529_v54, %s7569_s10  ;;  %v3145_v44 = vadd.f32 %v3144_v52, %v3056_v27  ;;  %3464 = vst.msk [vmem:[#allocation5 + $0x208] sm:$0xf] %vm560_vm15, %v9055_v45  ;;  %v3351_v54 = vld [vmem:[#allocation4 + $0x147] sm:$0x1]  ;;  %v437_v37 = vsel %vm329_vm10, %v275_v28, %v383_v62  ;;  %v2971_v3 = vpop.f32.mrf.mxu2 }
 0x30d   : > { %3465 = vst.msk [vmem:[#allocation5 + $0x21c] sm:$0xf] %vm560_vm15, %v9057_v57 }
 0x30e   : > { %5677 = vmatmul.bf16.gmra.mxu1 %v6927_v19  ;;  %vm3184_vm8 = vcmp.ge.f32.partialorder %v3145_v44, 0.0  ;;  %v3216_v53 = vmul.f32 0.2, %v3145_v44  ;;  %3369 = vst.msk [vmem:[#allocation4 + $0x149] sm:$0x1] %vm3319_vm14, %v3351_v54 }
 0x30f   : > { %v1587_v27 = vld [vmem:[#allocation2 + $0x1a1] sm:$0xff]  ;;  %493 = vst.msk [vmem:[#allocation2 + $0x198] sm:$0xff] %vm440_vm0, %v437_v37 }
 0x310   : > { %v3248_v19 = vsel %vm3184_vm8, %v3145_v44, %v3216_v53  ;;  %v3498_v52 = vld [vmem:[#allocation4 + $0x151] sm:$0xff] }
 0x311   : > { %v3315_v39 = vld [vmem:[#allocation4 + $0x152] sm:$0x1]  ;;  %3281 = vst.msk [vmem:[#allocation4 + $0x159] sm:$0xff] %vm440_vm0, %v3248_v19  ;;  %v3058_v0 = vpop.f32.mrf.mxu3  ;;  %v3530_v29 = vpack.c.bf16 %v3498_v52, %v3498_v52  ;;  %v2972_v19 = vadd.f32 %v2971_v3, %v8429_v7 }
 0x312   : > { %v3059_v36 = vadd.f32 %v3058_v0, %v2970_v17  ;;  %3334 = vst.msk [vmem:[#allocation4 + $0x150] sm:$0x1] %vm3319_vm14, %v3315_v39  ;;  %v7417_v44 = vld [vmem:[%s9791_s3 + $0x60] sm:$0xff]  ;;  %v9085_v53 = vpop.f32.mrf.mxu1  ;;  %v1619_v17 = vpack.c.bf16 %v1587_v27, %v1587_v27 }
 0x313   : > { %3622 = vrot.lane.b32.xlu2 %v3530_v29, %s7569_s10  ;;  %5711 = vmatpush.bf16.msra.mxu2 %v7417_v44  ;;  %v7433_v29 = vld [vmem:[%s9791_s3 + $0xe0] sm:$0xff] }
 0x314   : > { %1391 = vrot.lane.b32.xlu1 %v8873_v13, %s7569_s10  ;;  %v3148_v48 = vadd.f32 %v3147_v11, %v3059_v36  ;;  %v7425_v13 = vld [vmem:[%s9791_s3 + $0xa0] sm:$0xff]  ;;  %v6946_v11 = vld [vmem:[#allocation5 + $0x1b8] sm:$0xf]  ;;  %v3149_v36 = vpop.f32.mrf.mxu0  ;;  %5889 = vmatpush.bf16.msra.mxu0 %v7433_v29 }
 0x315   : > { %v6947_v39 = vor.u32 %v7382_v35, %v6946_v11  ;;  %5800 = vmatpush.bf16.msra.mxu3 %v7425_v13  ;;  %v4135_v35 = vld [vmem:[#allocation4 + $0x142] sm:$0xff] }
 0x316   : > { %vm3185_vm11 = vcmp.ge.f32.partialorder %v3148_v48, 0.0  ;;  %v3217_v56 = vmul.f32 0.2, %v3148_v48  ;;  %v9097_v3 = vpack.c.bf16 %v4135_v35, %v4135_v35 }
 0x318   : > { %v4678_v52 = vld [vmem:[#allocation4 + $0x152] sm:$0xff]  ;;  %v3249_v28 = vsel %vm3185_vm11, %v3148_v48, %v3217_v56  ;;  %v1586_v56 = vld [vmem:[#allocation2 + $0x199] sm:$0xff]  ;;  %3785 = vst.msk [vmem:[#allocation5 + $0x220] sm:$0xf] %vm560_vm15, %v9097_v3 }
 0x319   : > { %v3499_v0 = vld [vmem:[#allocation4 + $0x159] sm:$0xff]  ;;  %v4710_v62 = vpack.c.bf16 %v4678_v52, %v4678_v52  ;;  %3282 = vst.msk [vmem:[#allocation4 + $0x169] sm:$0xff] %vm440_vm0, %v3249_v28  ;;  %v3060_v54 = vpop.f32.mrf.mxu3  ;;  %v3402_v27 = vld [vmem:[#allocation4 + $0x150] sm:$0xff] }
 0x31a   : > { %v3531_v37 = vpack.c.bf16 %v3499_v0, %v3499_v0  ;;  %v3403_v21 = vld [vmem:[#allocation4 + $0x158] sm:$0xff]  ;;  %v3061_v44 = vadd.f32 %v3060_v54, %v2972_v19  ;;  %v3434_v7 = vpack.c.bf16 %v3402_v27, %v3402_v27  ;;  %v9106_v0 = vpop.f32.mrf.mxu1  ;;  %v3816_v29 = vld [vmem:[#allocation4 + $0x150] sm:$0xff] }
 0x31b   : > { %v9092_v48 = vpack.c.bf16 %v3403_v21, %v3403_v21  ;;  %4742 = vst.msk [vmem:[#allocation5 + $0x1f0] sm:$0xf] %vm560_vm15, %v4710_v62  ;;  %1393 = vrot.lane.b32.xlu2 %v8880_v47, %s7569_s10  ;;  %v9110_v62 = vpack.c.bf16 %v3816_v29, %v3816_v29  ;;  %v3352_v54 = vld [vmem:[#allocation4 + $0x15f] sm:$0x1]  ;;  %v6966_v27 = vld [vmem:[#allocation5 + $0x1e0] sm:$0xf] }
 0x31c   : > { %1714 = vrot.lane.b32.xlu1 %v1619_v17, %s7569_s10  ;;  %3624 = vrot.lane.b32.xlu0 %v3531_v37, %s7569_s10  ;;  %v3150_v13 = vadd.f32 %v3149_v36, %v3061_v44  ;;  %3466 = vst.msk [vmem:[#allocation5 + $0x230] sm:$0xf] %vm560_vm15, %v3434_v7  ;;  %v1618_v17 = vpack.c.bf16 %v1586_v56, %v1586_v56  ;;  %v4136_v36 = vld [vmem:[#allocation4 + $0x152] sm:$0xff]  ;;  %v7387_v21 = vld [vmem:[#allocation5 + $0x1f0] sm:$0xf0] }
 0x31d   : > { %3467 = vst.msk [vmem:[#allocation5 + $0x244] sm:$0xf] %vm560_vm15, %v9092_v48  ;;  %v9116_v37 = vpack.c.bf16 %v4136_v36, %v4136_v36  ;;  %v6967_v44 = vor.u32 %v7387_v21, %v6966_v27 }
 0x31e   : > { %5682 = vmatmul.bf16.gmra.mxu1 %v6947_v39  ;;  %vm3186_vm12 = vcmp.ge.f32.partialorder %v3150_v13, 0.0  ;;  %v3218_v11 = vmul.f32 0.2, %v3150_v13  ;;  %3370 = vst.msk [vmem:[#allocation4 + $0x161] sm:$0x1] %vm3319_vm14, %v3352_v54  ;;  %v7424_v54 = vld [vmem:[%s9791_s3 + $0x98] sm:$0xff] }
 0x31f   : > { %4422 = vst.msk [vmem:[#allocation5 + $0x1ec] sm:$0xf] %vm560_vm15, %v9110_v62  ;;  %5801 = vmatpush.bf16.msra.mxu3 %v7424_v54 }
 0x320   : > { %v3294_v19 = vld [vmem:[#allocation4 + $0x168] sm:$0xff]  ;;  %v3250_v28 = vsel %vm3186_vm12, %v3150_v13, %v3218_v11  ;;  %3786 = vst.msk [vmem:[#allocation5 + $0x234] sm:$0xf] %vm560_vm15, %v9116_v37 }
 0x321   : > { %v3316_v52 = vld [vmem:[#allocation4 + $0x16a] sm:$0x1]  ;;  %3298 = vst.msk [vmem:[#allocation4 + $0x198] sm:$0xff] %vm440_vm0, %v3294_v19 }
 0x322   : > { %v3500_v39 = vld [vmem:[#allocation4 + $0x169] sm:$0xff]  ;;  %3335 = vst.msk [vmem:[#allocation4 + $0x168] sm:$0x1] %vm3319_vm14, %v3316_v52 }
 0x323   : > { %v3532_v47 = vpack.c.bf16 %v3500_v39, %v3500_v39  ;;  %3283 = vst.msk [vmem:[#allocation4 + $0x171] sm:$0xff] %vm440_vm0, %v3250_v28 }
 0x324   : > { %1712 = vrot.lane.b32.xlu0 %v1618_v17, %s7569_s10  ;;  %3886 = vrot.lane.b32.xlu1 %v8501_v10, %s7569_s10  ;;  %v9124_v10 = vpop.f32.mrf.mxu1 }
 0x325   : > { %3626 = vrot.lane.b32.xlu2 %v3532_v47, %s7569_s10  ;;  %v4137_v52 = vld [vmem:[#allocation4 + $0x15a] sm:$0xff] }
 0x326   : > { %v9133_v29 = vpack.c.bf16 %v4137_v52, %v4137_v52  ;;  %v4040_v52 = vld [vmem:[#allocation4 + $0x151] sm:$0xff] }
 0x328   : > { %3787 = vst.msk [vmem:[#allocation5 + $0x248] sm:$0xf] %vm560_vm15, %v9133_v29 }
 0x329   : > { %v3404_v7 = vld [vmem:[#allocation4 + $0x168] sm:$0xff] }
 0x32a   : > { %v3295_v35 = vld [vmem:[#allocation4 + $0x170] sm:$0xff]  ;;  %v3296_v13 = vld [vmem:[#allocation4 + $0x178] sm:$0x3]  ;;  %v3436_v19 = vpack.c.bf16 %v3404_v7, %v3404_v7  ;;  %v3818_v36 = vld [vmem:[#allocation4 + $0x168] sm:$0xff] }
 0x32b   : > { %v3353_v56 = vld [vmem:[#allocation4 + $0x177] sm:$0x1]  ;;  %v4680_v11 = vld [vmem:[#allocation4 + $0x16a] sm:$0xff]  ;;  %3299 = vst.msk [vmem:[#allocation4 + $0x1a0] sm:$0xff] %vm440_vm0, %v3295_v35  ;;  %v3437_v47 = vpack.c.bf16 %v3295_v35, %v3295_v35  ;;  %v9149_v21 = vpack.c.bf16 %v3818_v36, %v3818_v36  ;;  %v7438_v35 = vld [vmem:[%s9791_s3 + $0x108] sm:$0xff] }
 0x32c   : > { %3371 = vst.msk [vmem:[#allocation4 + $0x179] sm:$0x1] %vm3319_vm14, %v3353_v56  ;;  %v3501_v17 = vld [vmem:[#allocation4 + $0x171] sm:$0xff]  ;;  %4208 = vrot.lane.b32.xlu1 %v8512_v20, %s7569_s10  ;;  %v4712_v28 = vpack.c.bf16 %v4680_v11, %v4680_v11  ;;  %v7416_v20 = vld [vmem:[%s9791_s3 + $0x58] sm:$0xff]  ;;  %5981 = vmatpush.bf16.msra.mxu1 %v7438_v35  ;;  %v7431_v36 = vld [vmem:[%s9791_s3 + $0xd0] sm:$0xff] }
 0x32d   : > { %v3533_v39 = vpack.c.bf16 %v3501_v17, %v3501_v17  ;;  %3888 = vrot.lane.b32.xlu2 %v8487_v30, %s7569_s10  ;;  %3300 = vst.msk [vmem:[#allocation4 + $0x1a8] sm:$0x3] %vm443_vm1, %v3296_v13  ;;  %5712 = vmatpush.bf16.msra.mxu2 %v7416_v20  ;;  %v7432_v7 = vld [vmem:[%s9791_s3 + $0xd8] sm:$0xff]  ;;  %v4357_v13 = vld [vmem:[#allocation4 + $0x140] sm:$0xff]  ;;  %v4457_v35 = vld [vmem:[#allocation4 + $0x171] sm:$0xff] }
 0x32e   : > { %5687 = vmatmul.bf16.gmra.mxu1 %v6967_v44  ;;  %4744 = vst.msk [vmem:[#allocation5 + $0x218] sm:$0xf] %vm560_vm15, %v4712_v28  ;;  %v9153_v44 = vpop.f32.mrf.mxu1  ;;  %5890 = vmatpush.bf16.msra.mxu0 %v7432_v7  ;;  %v4039_v56 = vld [vmem:[#allocation4 + $0x141] sm:$0xff] }
 0x32f   : > { %3628 = vrot.lane.b32.xlu0 %v3533_v39, %s7569_s10  ;;  %3468 = vst.msk [vmem:[#allocation5 + $0x258] sm:$0xf] %vm560_vm15, %v3436_v19  ;;  %v4071_v11 = vpack.c.bf16 %v4039_v56, %v4039_v56  ;;  %v3720_v17 = vld [vmem:[#allocation4 + $0x13a] sm:$0xff] }
 0x330   : > { %3469 = vst.msk [vmem:[#allocation5 + $0x26c] sm:$0xf] %vm560_vm15, %v3437_v47  ;;  %v3752_v19 = vpack.c.bf16 %v3720_v17, %v3720_v17  ;;  %v7415_v39 = vld [vmem:[%s9791_s3 + $0x50] sm:$0xff]  ;;  %v3318_v56 = vld [vmem:[#allocation4 + $0x19a] sm:$0x1] }
 0x331   : > { %4424 = vst.msk [vmem:[#allocation5 + $0x214] sm:$0xf] %vm560_vm15, %v9149_v21  ;;  %5713 = vmatpush.bf16.msra.mxu2 %v7415_v39  ;;  %v4041_v47 = vld [vmem:[#allocation4 + $0x159] sm:$0xff] }
 0x332   : > { %4103 = vst.msk [vmem:[#allocation5 + $0x1fc] sm:$0xf] %vm560_vm15, %v4071_v11  ;;  %v4073_v54 = vpack.c.bf16 %v4041_v47, %v4041_v47  ;;  %5891 = vmatpush.bf16.msra.mxu0 %v7431_v36  ;;  %v3355_v17 = vld [vmem:[#allocation4 + $0x1a7] sm:$0x1]  ;;  %v4684_v39 = vld [vmem:[#allocation4 + $0x19a] sm:$0xff]  ;;  %v4438_v47 = vld [vmem:[#allocation4 + $0x91] sm:$0xff] }
 0x333   : > { %v4681_v30 = vld [vmem:[#allocation4 + $0x172] sm:$0xff]  ;;  %3784 = vst.msk [vmem:[#allocation5 + $0x20c] sm:$0xf] %vm560_vm15, %v3752_v19 }
 0x334   : > { %v4713_v27 = vpack.c.bf16 %v4681_v30, %v4681_v30  ;;  %3890 = vrot.lane.b32.xlu1 %v8540_v31, %s7569_s10  ;;  %v4038_v31 = vld [vmem:[#allocation4 + $0x139] sm:$0xff]  ;;  %4105 = vst.msk [vmem:[#allocation5 + $0x224] sm:$0xf] %vm560_vm15, %v4073_v54 }
 0x335   : > { %4526 = vrot.lane.b32.xlu2 %v8514_v16, %s7569_s10  ;;  %v4070_v16 = vpack.c.bf16 %v4038_v31, %v4038_v31  ;;  %v1170_v30 = vld [vmem:[#allocation2 + $0x189] sm:$0xff]  ;;  %3337 = vst.msk [vmem:[#allocation4 + $0x198] sm:$0x1] %vm3319_vm14, %v3318_v56 }
 0x336   : > { %4745 = vst.msk [vmem:[#allocation5 + $0x22c] sm:$0xf] %vm560_vm15, %v4713_v27  ;;  %v4042_v27 = vld [vmem:[#allocation4 + $0x169] sm:$0xff]  ;;  %v3725_v19 = vld [vmem:[#allocation4 + $0x172] sm:$0xff] }
 0x337   : > { %4206 = vrot.lane.b32.xlu0 %v8491_v51, %s7569_s10  ;;  %4102 = vst.msk [vmem:[#allocation5 + $0x1e8] sm:$0xf] %vm560_vm15, %v4070_v16  ;;  %v9170_v51 = vpop.f32.mrf.mxu1  ;;  %v4074_v7 = vpack.c.bf16 %v4042_v27, %v4042_v27  ;;  %v4436_v16 = vld [vmem:[#allocation4 + $0x79] sm:$0xff] }
 0x338   : > { %3373 = vst.msk [vmem:[#allocation4 + $0x1a9] sm:$0x1] %vm3319_vm14, %v3355_v17  ;;  %v7414_v54 = vld [vmem:[%s9791_s3 + $0x48] sm:$0xff] }
 0x339   : > { %4106 = vst.msk [vmem:[#allocation5 + $0x238] sm:$0xf] %vm560_vm15, %v4074_v7  ;;  %5714 = vmatpush.bf16.msra.mxu2 %v7414_v54 }
 0x33c   : > { %4212 = vrot.lane.b32.xlu1 %v8580_v38, %s7569_s10  ;;  %v4356_v38 = vld [vmem:[#allocation4 + $0x138] sm:$0xff] }
 0x33d   : > { %3892 = vrot.lane.b32.xlu2 %v8532_v41, %s7569_s10  ;;  %v4388_v41 = vpack.c.bf16 %v4356_v38, %v4356_v38  ;;  %v3819_v38 = vld [vmem:[#allocation4 + $0x170] sm:$0xff] }
 0x33f   : > { %4528 = vrot.lane.b32.xlu0 %v8586_v34, %s7569_s10  ;;  %v4389_v34 = vpack.c.bf16 %v4357_v13, %v4357_v13  ;;  %4420 = vst.msk [vmem:[#allocation5 + $0x1c4] sm:$0xf] %vm560_vm15, %v4388_v41  ;;  %v9230_v13 = vpack.c.bf16 %v3819_v38, %v3819_v38  ;;  %v3724_v41 = vld [vmem:[#allocation4 + $0x16a] sm:$0xff]  ;;  %v9844_v38 = vld [vmem:[#allocation14_spill] sm:$0xff] }
 0x341   : > { %4421 = vst.msk [vmem:[#allocation5 + $0x1d8] sm:$0xf] %vm560_vm15, %v4389_v34  ;;  %v1169_v34 = vld [vmem:[#allocation2 + $0x181] sm:$0xff] }
 0x342   : > { %4425 = vst.msk [vmem:[#allocation5 + $0x228] sm:$0xf] %vm560_vm15, %v9230_v13  ;;  %v1201_v11 = vpack.c.bf16 %v1169_v34, %v1169_v34  ;;  %v1811_v34 = vld [vmem:[#allocation2 + $0x1a2] sm:$0xff] }
 0x344   : > { %3894 = vrot.lane.b32.xlu1 %v8563_v33, %s7569_s10  ;;  %v9184_v33 = vpop.f32.mrf.mxu1  ;;  %1233 = vst.msk [vmem:[#allocation3 + $0x260] sm:$0xf] %vm560_vm15, %v1201_v11 }
 0x345   : > { %4530 = vrot.lane.b32.xlu2 %v8637_v59, %s7569_s10  ;;  %v4677_v59 = vld [vmem:[#allocation4 + $0x142] sm:$0xff] }
 0x346   : > { %v4709_v28 = vpack.c.bf16 %v4677_v59, %v4677_v59  ;;  %v4364_v59 = vld [vmem:[#allocation4 + $0x198] sm:$0xff] }
 0x347   : > { %4210 = vrot.lane.b32.xlu0 %v8607_v32, %s7569_s10  ;;  %v4072_v32 = vpack.c.bf16 %v4040_v52, %v4040_v52 }
 0x348   : > { %4741 = vst.msk [vmem:[#allocation5 + $0x1dc] sm:$0xf] %vm560_vm15, %v4709_v28  ;;  %v3757_v28 = vpack.c.bf16 %v3725_v19, %v3725_v19  ;;  %v9845_v19 = vld [vmem:[#allocation12_spill] sm:$0xff] }
 0x349   : > { %4104 = vst.msk [vmem:[#allocation5 + $0x210] sm:$0xf] %vm560_vm15, %v4072_v32  ;;  %v4396_v32 = vpack.c.bf16 %v4364_v59, %v4364_v59 }
 0x34a   : > { %3789 = vst.msk [vmem:[#allocation5 + $0x270] sm:$0xf] %vm560_vm15, %v3757_v28 }
 0x34b   : > { %4428 = vst.msk [vmem:[#allocation5 + $0x264] sm:$0xf] %vm560_vm15, %v4396_v32 }
 0x34c   : > { %4216 = vrot.lane.b32.xlu1 %v8589_v9, %s7569_s10  ;;  %v7423_v9 = vld [vmem:[%s9791_s3 + $0x90] sm:$0xff] }
 0x34d   : > { %3896 = vrot.lane.b32.xlu2 %v8622_v46, %s7569_s10  ;;  %5802 = vmatpush.bf16.msra.mxu3 %v7423_v9  ;;  %v9201_v46 = vpop.f32.mrf.mxu1  ;;  %v4365_v9 = vld [vmem:[#allocation4 + $0x1a0] sm:$0xff] }
 0x34f   : > { %4532 = vrot.lane.b32.xlu0 %v8629_v50, %s7569_s10  ;;  %v4359_v50 = vld [vmem:[#allocation4 + $0x158] sm:$0xff] }
 0x350   : > { %v4391_v20 = vpack.c.bf16 %v4359_v50, %v4359_v50  ;;  %v4397_v50 = vpack.c.bf16 %v4365_v9, %v4365_v9 }
 0x352   : > { %4423 = vst.msk [vmem:[#allocation5 + $0x200] sm:$0xf] %vm560_vm15, %v4391_v20  ;;  %v1491_v20 = vld [vmem:[#allocation2 + $0x1a0] sm:$0xff] }
 0x353   : > { %4429 = vst.msk [vmem:[#allocation5 + $0x278] sm:$0xf] %vm560_vm15, %v4397_v50 }
 0x354   : > { %3898 = vrot.lane.b32.xlu1 %v8604_v61, %s7569_s10  ;;  %v1202_v61 = vpack.c.bf16 %v1170_v30, %v1170_v30  ;;  %v7422_v30 = vld [vmem:[%s9791_s3 + $0x88] sm:$0xff] }
 0x355   : > { %4534 = vrot.lane.b32.xlu2 %v8683_v42, %s7569_s10  ;;  %v4679_v42 = vld [vmem:[#allocation4 + $0x15a] sm:$0xff]  ;;  %v9219_v31 = vpop.f32.mrf.mxu1  ;;  %5803 = vmatpush.bf16.msra.mxu3 %v7422_v30 }
 0x356   : > { %1234 = vst.msk [vmem:[#allocation3 + $0x274] sm:$0xf] %vm560_vm15, %v1202_v61  ;;  %v4470_v61 = vpack.c.bf16 %v4438_v47, %v4438_v47  ;;  %v9846_v47 = vld [vmem:[#allocation13_spill] sm:$0xff] }
 0x357   : > { %4214 = vrot.lane.b32.xlu0 %v8641_v1, %s7569_s10  ;;  %v4711_v1 = vpack.c.bf16 %v4679_v42, %v4679_v42  ;;  %v4685_v42 = vld [vmem:[#allocation4 + $0x1a2] sm:$0xff] }
 0x358   : > { %v4717_v27 = vpack.c.bf16 %v4685_v42, %v4685_v42 }
 0x359   : > { %4743 = vst.msk [vmem:[#allocation5 + $0x204] sm:$0xf] %vm560_vm15, %v4711_v1 }
 0x35a   : > { %4749 = vst.msk [vmem:[#allocation5 + $0x27c] sm:$0xf] %vm560_vm15, %v4717_v27 }
 0x35c   : > { %4220 = vrot.lane.b32.xlu1 %v8632_v2, %s7569_s10  ;;  %v4468_v2 = vpack.c.bf16 %v4436_v16, %v4436_v16  ;;  %v1490_v16 = vld [vmem:[#allocation2 + $0x198] sm:$0xff] }
 0x35d   : > { %3900 = vrot.lane.b32.xlu2 %v8602_v18, %s7569_s10  ;;  %v9228_v18 = vpack.c.bf16 %v4457_v35, %v4457_v35 }
 0x35f   : > { %4536 = vrot.lane.b32.xlu0 %v8671_v25, %s7569_s10  ;;  %v3756_v25 = vpack.c.bf16 %v3724_v41, %v3724_v41  ;;  %4107 = vst.msk [vmem:[#allocation5 + $0x24c] sm:$0xf] %vm560_vm15, %v9228_v18  ;;  %v4440_v41 = vld [vmem:[#allocation4 + $0xa9] sm:$0xff] }
 0x360   : > { %v4472_v11 = vpack.c.bf16 %v4440_v41, %v4440_v41 }
 0x361   : > { %3788 = vst.msk [vmem:[#allocation5 + $0x25c] sm:$0xf] %vm560_vm15, %v3756_v25  ;;  %v7413_v25 = vld [vmem:[%s9791_s3 + $0x40] sm:$0xff] }
 0x362   : > { %5715 = vmatpush.bf16.msra.mxu2 %v7413_v25 }
 0x364   : > { %3902 = vrot.lane.b32.xlu1 %v8661_v6, %s7569_s10  ;;  %v9237_v6 = vpop.f32.mrf.mxu1 }
 0x365   : > { %4538 = vrot.lane.b32.xlu2 %v4468_v2, %s7569_s10  ;;  %v1522_v2 = vpack.c.bf16 %v1490_v16, %v1490_v16 }
 0x367   : > { %4218 = vrot.lane.b32.xlu0 %v8706_v5, %s7569_s10  ;;  %v9843_v5 = vld [vmem:[#allocation11_spill] sm:$0xff]  ;;  %1554 = vst.msk [vmem:[#allocation3 + $0x264] sm:$0xf] %vm560_vm15, %v1522_v2 }
 0x36c   : > { %4224 = vrot.lane.b32.xlu1 %v8677_v24, %s7569_s10  ;;  %v4716_v24 = vpack.c.bf16 %v4684_v39, %v4684_v39  ;;  %v9259_v36 = vpop.f32.mrf.mxu1 }
 0x36d   : > { %3904 = vrot.lane.b32.xlu2 %v9843_v5, %s7569_s10  ;;  %v3623_v52 = vpop.permute.xlu2 %3622  ;;  %v1843_v5 = vpack.c.bf16 %v1811_v34, %v1811_v34  ;;  %v4444_v34 = vld [vmem:[#allocation4 + $0xd9] sm:$0xff] }
 0x36e   : > { %3690 = vst.msk [vmem:[#allocation5 + $0x230] sm:$0xf] %vm785_vm9, %v3623_v52 }
 0x36f   : > { %4540 = vrot.lane.b32.xlu0 %v8716_v26, %s7569_s10  ;;  %v1523_v26 = vpack.c.bf16 %v1491_v20, %v1491_v20  ;;  %4748 = vst.msk [vmem:[#allocation5 + $0x268] sm:$0xf] %vm560_vm15, %v4716_v24 }
 0x370   : > { %1875 = vst.msk [vmem:[#allocation3 + $0x27c] sm:$0xf] %vm560_vm15, %v1843_v5 }
 0x371   : > { %1555 = vst.msk [vmem:[#allocation3 + $0x278] sm:$0xf] %vm560_vm15, %v1523_v26 }
 0x374   : > { %3906 = vrot.lane.b32.xlu1 %v8698_v4, %s7569_s10  ;;  %v7430_v4 = vld [vmem:[%s9791_s3 + $0xc8] sm:$0xff]  ;;  %v9275_v35 = vpop.f32.mrf.mxu1 }
 0x375   : > { %4542 = vrot.lane.b32.xlu2 %v4470_v61, %s7569_s10  ;;  %v3619_v1 = vpop.permute.xlu0 %3618  ;;  %v1394_v7 = vpop.permute.xlu2 %1393  ;;  %5892 = vmatpush.bf16.msra.mxu0 %v7430_v4  ;;  %v7429_v4 = vld [vmem:[%s9791_s3 + $0xc0] sm:$0xff] }
 0x376   : > { %3688 = vst.msk [vmem:[#allocation5 + $0x208] sm:$0xf] %vm785_vm9, %v3619_v1  ;;  %v7421_v1 = vld [vmem:[%s9791_s3 + $0x80] sm:$0xff] }
 0x377   : > { %4222 = vrot.lane.b32.xlu0 %v8750_v8, %s7569_s10  ;;  %1458 = vst.msk [vmem:[#allocation3 + $0x274] sm:$0xf] %vm785_vm9, %v1394_v7  ;;  %v7288_v20 = vld [vmem:[#allocation3 + $0x278] sm:$0xf0]  ;;  %5804 = vmatpush.bf16.msra.mxu3 %v7421_v1 }
 0x379   : > { %5893 = vmatpush.bf16.msra.mxu0 %v7429_v4 }
 0x37c   : > { %4228 = vrot.lane.b32.xlu1 %v8726_v58, %s7569_s10  ;;  %v7437_v58 = vld [vmem:[%s9791_s3 + $0x100] sm:$0xff]  ;;  %v9296_v59 = vpop.f32.mrf.mxu1 }
 0x37d   : > { %3908 = vrot.lane.b32.xlu2 %v8763_v63, %s7569_s10  ;;  %v1810_v63 = vld [vmem:[#allocation2 + $0x19a] sm:$0xff]  ;;  %5982 = vmatpush.bf16.msra.mxu1 %v7437_v58  ;;  %v6986_v28 = vld [vmem:[#allocation5 + $0x208] sm:$0xf] }
 0x37e   : > { %v3621_v8 = vpop.permute.xlu1 %3620  ;;  %v1842_v17 = vpack.c.bf16 %v1810_v63, %v1810_v63  ;;  %v7287_v24 = vld [vmem:[#allocation3 + $0x270] sm:$0xf0] }
 0x37f   : > { %4544 = vrot.lane.b32.xlu0 %v9844_v38, %s7569_s10  ;;  %3689 = vst.msk [vmem:[#allocation5 + $0x21c] sm:$0xf] %vm785_vm9, %v3621_v8  ;;  %v3627_v56 = vpop.permute.xlu2 %3626  ;;  %v7006_v8 = vld [vmem:[#allocation5 + $0x230] sm:$0xf] }
 0x380   : > { %3692 = vst.msk [vmem:[#allocation5 + $0x258] sm:$0xf] %vm785_vm9, %v3627_v56 }
 0x381   : > { %1874 = vst.msk [vmem:[#allocation3 + $0x268] sm:$0xf] %vm560_vm15, %v1842_v17 }
 0x384   : > { %3910 = vrot.lane.b32.xlu1 %v9845_v19, %s7569_s10  ;;  %v9310_v27 = vpop.f32.mrf.mxu1 }
 0x385   : > { %4546 = vrot.lane.b32.xlu2 %v4472_v11, %s7569_s10 }
 0x386   : > { %v1392_v52 = vpop.permute.xlu1 %1391  ;;  %v7392_v32 = vld [vmem:[#allocation5 + $0x218] sm:$0xf0] }
 0x387   : > { %4226 = vrot.lane.b32.xlu0 %v8796_v14, %s7569_s10  ;;  %1457 = vst.msk [vmem:[#allocation3 + $0x260] sm:$0xf] %vm785_vm9, %v1392_v52  ;;  %v3889_v39 = vpop.permute.xlu2 %3888  ;;  %v6987_v9 = vor.u32 %v7392_v32, %v6986_v28  ;;  %v9847_v52 = vld [vmem:[#allocation17_spill] sm:$0xff] }
 0x388   : > { %3983 = vst.msk [vmem:[#allocation5 + $0x18] sm:$0xf] %vm785_vm9, %v3889_v39  ;;  %v6530_v50 = vld [vmem:[#allocation3 + $0x268] sm:$0xf] }
 0x389   : > { %5692 = vmatmul.bf16.gmra.mxu1 %v6987_v9  ;;  %v6531_v14 = vor.u32 %v7288_v20, %v6530_v50  ;;  %v7026_v39 = vld [vmem:[#allocation5 + $0x258] sm:$0xf]  ;;  %v9849_v50 = vld [vmem:[#allocation19_spill] sm:$0xff] }
 0x38b   : > { %6691 = vmatmul.msk.bf16.gmra.mxu0 %vm440_vm0, %v6531_v14 }
 0x38c   : > { %4232 = vrot.lane.b32.xlu1 %v8775_v60, %s7569_s10  ;;  %v4442_v60 = vld [vmem:[#allocation4 + $0xc1] sm:$0xff]  ;;  %v9329_v56 = vpop.f32.mrf.mxu1 }
 0x38d   : > { %3912 = vrot.lane.b32.xlu2 %v9846_v47, %s7569_s10  ;;  %v4474_v7 = vpack.c.bf16 %v4442_v60, %v4442_v60 }
 0x38e   : > { %v1715_v54 = vpop.permute.xlu1 %1714  ;;  %v3625_v30 = vpop.permute.xlu0 %3624  ;;  %v6522_v26 = vld [vmem:[#allocation3 + $0x260] sm:$0xf] }
 0x38f   : > { %4548 = vrot.lane.b32.xlu0 %v8828_v49, %s7569_s10  ;;  %1779 = vst.msk [vmem:[#allocation3 + $0x278] sm:$0xf] %vm785_vm9, %v1715_v54  ;;  %v4527_v61 = vpop.permute.xlu2 %4526  ;;  %v6523_v42 = vor.u32 %v7287_v24, %v6522_v26  ;;  %v6728_v17 = vld [vmem:[#allocation5 + $0x14] sm:$0xf0] }
 0x390   : > { %4622 = vst.msk [vmem:[#allocation5 + $0xc] sm:$0xf] %vm785_vm9, %v4527_v61  ;;  %v9850_v26 = vld [vmem:[#allocation20_spill] sm:$0xff] }
 0x391   : > { %3691 = vst.msk [vmem:[#allocation5 + $0x244] sm:$0xf] %vm785_vm9, %v3625_v30  ;;  %2973 = vmatmul.bf16.gmra.mxu2 %v6523_v42  ;;  %v4446_v42 = vld [vmem:[#allocation4 + $0xf1] sm:$0xff] }
 0x394   : > { %3914 = vrot.lane.b32.xlu1 %v8791_v43, %s7569_s10  ;;  %v9340_v19 = vpop.f32.mrf.mxu1 }
 0x395   : > { %4550 = vrot.lane.b32.xlu2 %v4474_v7, %s7569_s10 }
 0x396   : > { %v1713_v49 = vpop.permute.xlu0 %1712  ;;  %v3887_v16 = vpop.permute.xlu1 %3886 }
 0x397   : > { %4230 = vrot.lane.b32.xlu0 %v8898_v40, %s7569_s10  ;;  %v3893_v2 = vpop.permute.xlu2 %3892  ;;  %1778 = vst.msk [vmem:[#allocation3 + $0x264] sm:$0xf] %vm785_vm9, %v1713_v49  ;;  %v6524_v40 = vld [vmem:[#allocation3 + $0x274] sm:$0xf0] }
 0x398   : > { %3985 = vst.msk [vmem:[#allocation5 + $0x40] sm:$0xf] %vm785_vm9, %v3893_v2  ;;  %v7397_v38 = vld [vmem:[#allocation5 + $0x240] sm:$0xf0]  ;;  %v9851_v2 = vld [vmem:[#allocation15_spill] sm:$0xff] }
 0x399   : > { %3982 = vst.msk [vmem:[#allocation5 + $0x4] sm:$0xf] %vm785_vm9, %v3887_v16  ;;  %v7007_v43 = vor.u32 %v7397_v38, %v7006_v8  ;;  %v4478_v16 = vpack.c.bf16 %v4446_v42, %v4446_v42  ;;  %v9852_v8 = vld [vmem:[#allocation22_spill] sm:$0xff] }
 0x39a   : > { %v7334_v42 = vld [vmem:[#allocation5 + $0x48] sm:$0xf0] }
 0x39b   : > { %5697 = vmatmul.bf16.gmra.mxu1 %v7007_v43  ;;  %v7329_v43 = vld [vmem:[#allocation5 + $0x20] sm:$0xf0] }
 0x39c   : > { %4236 = vrot.lane.b32.xlu1 %v8842_v23, %s7569_s10  ;;  %v9354_v47 = vpop.f32.mrf.mxu1 }
 0x39d   : > { %3916 = vrot.lane.b32.xlu2 %v8906_v22, %s7569_s10  ;;  %v4476_v22 = vpack.c.bf16 %v4444_v34, %v4444_v34 }
 0x39e   : > { %v4209_v41 = vpop.permute.xlu1 %4208  ;;  %v7285_v58 = vld [vmem:[#allocation3 + $0x264] sm:$0xf] }
 0x39f   : > { %4552 = vrot.lane.b32.xlu0 %v8908_v15, %s7569_s10  ;;  %v4531_v25 = vpop.permute.xlu2 %4530  ;;  %4303 = vst.msk [vmem:[#allocation5 + $0x1c] sm:$0xf] %vm785_vm9, %v4209_v41  ;;  %v6527_v63 = vor.u32 %v7285_v58, %v6524_v40  ;;  %v6748_v30 = vld [vmem:[#allocation5 + $0x3c] sm:$0xf0]  ;;  %v7326_v58 = vld [vmem:[#allocation5 + $0xc] sm:$0xf] }
 0x3a0   : > { %4624 = vst.msk [vmem:[#allocation5 + $0x34] sm:$0xf] %vm785_vm9, %v4531_v25  ;;  %v7325_v11 = vld [vmem:[#allocation5 + $0x4] sm:$0xf] }
 0x3a1   : > { %v3629_v5 = vpop.permute.xlu0 %3628  ;;  %3062 = vmatmul.bf16.gmra.mxu3 %v6527_v63  ;;  %v6731_v23 = vor.u32 %v7325_v11, %v6728_v17  ;;  %v6742_v63 = vld [vmem:[#allocation5 + $0x10] sm:$0xf]  ;;  %v9853_v17 = vld [vmem:[#allocation24_spill] sm:$0xff] }
 0x3a2   : > { %3693 = vst.msk [vmem:[#allocation5 + $0x26c] sm:$0xf] %vm785_vm9, %v3629_v5  ;;  %v6743_v11 = vor.u32 %v7329_v43, %v6742_v63  ;;  %v9854_v5 = vld [vmem:[#allocation21_spill] sm:$0xff] }
 0x3a3   : > { %5716 = vmatmul.bf16.vlgmr.msra.gmra.mxu2 %v6731_v23 }
 0x3a4   : > { %3918 = vrot.lane.b32.xlu1 %v8825_v12, %s7569_s10  ;;  %v9848_v12 = vld [vmem:[#allocation16_spill] sm:$0xff]  ;;  %v9367_v40 = vpop.f32.mrf.mxu1 }
 0x3a5   : > { %4554 = vrot.lane.b32.xlu2 %v4476_v22, %s7569_s10 }
 0x3a6   : > { %v3891_v15 = vpop.permute.xlu1 %3890  ;;  %v7328_v7 = vld [vmem:[#allocation5 + $0x18] sm:$0xf0] }
 0x3a7   : > { %4234 = vrot.lane.b32.xlu0 %v9847_v52, %s7569_s10  ;;  %v3897_v28 = vpop.permute.xlu2 %3896  ;;  %3984 = vst.msk [vmem:[#allocation5 + $0x2c] sm:$0xf] %vm785_vm9, %v3891_v15  ;;  %v9855_v52 = vld [vmem:[#allocation25_spill] sm:$0xff] }
 0x3a8   : > { %3987 = vst.msk [vmem:[#allocation5 + $0x68] sm:$0xf] %vm785_vm9, %v3897_v28 }
 0x3a9   : > { %v4207_v32 = vpop.permute.xlu0 %4206  ;;  %v7402_v9 = vld [vmem:[#allocation5 + $0x268] sm:$0xf0] }
 0x3aa   : > { %4302 = vst.msk [vmem:[#allocation5 + $0x8] sm:$0xf] %vm785_vm9, %v4207_v32  ;;  %v7027_v24 = vor.u32 %v7402_v9, %v7026_v39  ;;  %v4448_v39 = vld [vmem:[#allocation4 + $0x109] sm:$0xff] }
 0x3ac   : > { %5702 = vmatmul.bf16.gmra.mxu1 %v7027_v24  ;;  %4240 = vrot.lane.b32.xlu1 %v9848_v12, %s7569_s10 }
 0x3ad   : > { %3920 = vrot.lane.b32.xlu2 %v9849_v50, %s7569_s10  ;;  %v9380_v50 = vpop.f32.mrf.mxu1 }
 0x3ae   : > { %v4213_v20 = vpop.permute.xlu1 %4212  ;;  %v7330_v54 = vld [vmem:[#allocation5 + $0x2c] sm:$0xf] }
 0x3af   : > { %4556 = vrot.lane.b32.xlu0 %v9850_v26, %s7569_s10  ;;  %v4535_v14 = vpop.permute.xlu2 %4534  ;;  %4305 = vst.msk [vmem:[#allocation5 + $0x44] sm:$0xf] %vm785_vm9, %v4213_v20  ;;  %v6751_v61 = vor.u32 %v7330_v54, %v6748_v30  ;;  %v6768_v15 = vld [vmem:[#allocation5 + $0x64] sm:$0xf0]  ;;  %v4480_v54 = vpack.c.bf16 %v4448_v39, %v4448_v39  ;;  %v9862_v39 = vld [vmem:[#allocation31_spill] sm:$0xff] }
 0x3b0   : > { %4626 = vst.msk [vmem:[#allocation5 + $0x5c] sm:$0xf] %vm785_vm9, %v4535_v14  ;;  %v9856_v30 = vld [vmem:[#allocation18_spill] sm:$0xff]  ;;  %v9857_v14 = vld [vmem:[#allocation27_spill] sm:$0xff] }
 0x3b1   : > { %v4529_v60 = vpop.permute.xlu0 %4528  ;;  %v6734_v1 = vld [vmem:[#allocation5 + $0x8] sm:$0xf] }
 0x3b2   : > { %4623 = vst.msk [vmem:[#allocation5 + $0x20] sm:$0xf] %vm785_vm9, %v4529_v60  ;;  %v6735_v49 = vor.u32 %v7328_v7, %v6734_v1  ;;  %v7331_v1 = vld [vmem:[#allocation5 + $0x34] sm:$0xf] }
 0x3b3   : > { %5721 = vmatmul.bf16.gmra.mxu2 %v6751_v61 }
 0x3b4   : > { %5805 = vmatmul.bf16.vlgmr.msra.gmra.mxu3 %v6735_v49  ;;  %3922 = vrot.lane.b32.xlu1 %v9851_v2, %s7569_s10  ;;  %v6762_v49 = vld [vmem:[#allocation5 + $0x38] sm:$0xf] }
 0x3b5   : > { %4558 = vrot.lane.b32.xlu2 %v4478_v16, %s7569_s10  ;;  %v6763_v2 = vor.u32 %v7334_v42, %v6762_v49 }
 0x3b6   : > { %v3895_v4 = vpop.permute.xlu1 %3894  ;;  %v7333_v12 = vld [vmem:[#allocation5 + $0x40] sm:$0xf0] }
 0x3b7   : > { %4238 = vrot.lane.b32.xlu0 %v9852_v8, %s7569_s10  ;;  %v3901_v38 = vpop.permute.xlu2 %3900  ;;  %3986 = vst.msk [vmem:[#allocation5 + $0x54] sm:$0xf] %vm785_vm9, %v3895_v4  ;;  %v9391_v4 = vpop.f32.mrf.mxu1  ;;  %v9858_v8 = vld [vmem:[#allocation28_spill] sm:$0xff] }
 0x3b8   : > { %3989 = vst.msk [vmem:[#allocation5 + $0x90] sm:$0xf] %vm785_vm9, %v3901_v38  ;;  %v9859_v38 = vld [vmem:[#allocation26_spill] sm:$0xff] }
 0x3b9   : > { %v4211_v41 = vpop.permute.xlu0 %4210  ;;  %v6736_v25 = vld [vmem:[#allocation5 + $0x1c] sm:$0xf0] }
 0x3ba   : > { %4304 = vst.msk [vmem:[#allocation5 + $0x30] sm:$0xf] %vm785_vm9, %v4211_v41  ;;  %v6739_v34 = vor.u32 %v7326_v58, %v6736_v25  ;;  %v9860_v25 = vld [vmem:[#allocation29_spill] sm:$0xff] }
 0x3bc   : > { %5894 = vmatmul.bf16.vlgmr.msra.gmra.mxu0 %v6739_v34  ;;  %7188 = vmatmul.msk.bf16.vlgmr.msra.gmra.mxu1 %vm440_vm0, %v6743_v11  ;;  %v4450_v11 = vld [vmem:[#allocation4 + $0x121] sm:$0xff] }
 0x3bd   : > { %3924 = vrot.lane.b32.xlu2 %v9853_v17, %s7569_s10  ;;  %4244 = vrot.lane.b32.xlu1 %v9854_v5, %s7569_s10 }
 0x3be   : > { %v4217_v23 = vpop.permute.xlu1 %4216  ;;  %v7335_v22 = vld [vmem:[#allocation5 + $0x54] sm:$0xf] }
 0x3bf   : > { %4560 = vrot.lane.b32.xlu0 %v9855_v52, %s7569_s10  ;;  %v4539_v28 = vpop.permute.xlu2 %4538  ;;  %4307 = vst.msk [vmem:[#allocation5 + $0x6c] sm:$0xf] %vm785_vm9, %v4217_v23  ;;  %v6771_v32 = vor.u32 %v7335_v22, %v6768_v15  ;;  %v6788_v58 = vld [vmem:[#allocation5 + $0x8c] sm:$0xf0]  ;;  %v4482_v15 = vpack.c.bf16 %v4450_v11, %v4450_v11 }
 0x3c0   : > { %4628 = vst.msk [vmem:[#allocation5 + $0x84] sm:$0xf] %vm785_vm9, %v4539_v28  ;;  %v9861_v52 = vld [vmem:[#allocation23_spill] sm:$0xff]  ;;  %v9406_v28 = vpop.f32.mrf.mxu1 }
 0x3c1   : > { %v4533_v9 = vpop.permute.xlu0 %4532  ;;  %v6754_v24 = vld [vmem:[#allocation5 + $0x30] sm:$0xf] }
 0x3c2   : > { %4625 = vst.msk [vmem:[#allocation5 + $0x48] sm:$0xf] %vm785_vm9, %v4533_v9  ;;  %v6755_v20 = vor.u32 %v7333_v12, %v6754_v24  ;;  %v7339_v24 = vld [vmem:[#allocation5 + $0x70] sm:$0xf0] }
 0x3c3   : > { %5726 = vmatmul.bf16.gmra.mxu2 %v6771_v32 }
 0x3c4   : > { %5810 = vmatmul.bf16.gmra.mxu3 %v6755_v20  ;;  %v7336_v20 = vld [vmem:[#allocation5 + $0x5c] sm:$0xf] }
 0x3c5   : > { %4562 = vrot.lane.b32.xlu2 %v4480_v54, %s7569_s10  ;;  %3926 = vrot.lane.b32.xlu1 %v9856_v30, %s7569_s10  ;;  %v6782_v30 = vld [vmem:[#allocation5 + $0x60] sm:$0xf] }
 0x3c6   : > { %v3899_v26 = vpop.permute.xlu1 %3898  ;;  %v7338_v23 = vld [vmem:[#allocation5 + $0x68] sm:$0xf0] }
 0x3c7   : > { %4242 = vrot.lane.b32.xlu0 %v9857_v14, %s7569_s10  ;;  %v3905_v61 = vpop.permute.xlu2 %3904  ;;  %3988 = vst.msk [vmem:[#allocation5 + $0x7c] sm:$0xf] %vm785_vm9, %v3899_v26  ;;  %v6783_v14 = vor.u32 %v7339_v24, %v6782_v30 }
 0x3c8   : > { %3991 = vst.msk [vmem:[#allocation5 + $0xb8] sm:$0xf] %vm785_vm9, %v3905_v61  ;;  %v4451_v61 = vld [vmem:[#allocation4 + $0x129] sm:$0xff] }
 0x3c9   : > { %v4215_v60 = vpop.permute.xlu0 %4214  ;;  %v6756_v7 = vld [vmem:[#allocation5 + $0x44] sm:$0xf0]  ;;  %v4483_v42 = vpack.c.bf16 %v4451_v61, %v4451_v61 }
 0x3ca   : > { %4306 = vst.msk [vmem:[#allocation5 + $0x58] sm:$0xf] %vm785_vm9, %v4215_v60  ;;  %v6759_v16 = vor.u32 %v7331_v1, %v6756_v7  ;;  %v9863_v60 = vld [vmem:[#allocation32_spill] sm:$0xff]  ;;  %v9864_v1 = vld [vmem:[#allocation30_spill] sm:$0xff] }
 0x3cc   : > { %5899 = vmatmul.bf16.gmra.mxu0 %v6759_v16  ;;  %7189 = vmatmul.msk.bf16.gmra.mxu1 %vm440_vm0, %v6763_v2 }
 0x3cd   : > { %3928 = vrot.lane.b32.xlu2 %v9858_v8, %s7569_s10  ;;  %4248 = vrot.lane.b32.xlu1 %v9859_v38, %s7569_s10  ;;  %v9420_v38 = vpop.f32.mrf.mxu1 }
 0x3ce   : > { %v4221_v43 = vpop.permute.xlu1 %4220  ;;  %v7340_v41 = vld [vmem:[#allocation5 + $0x7c] sm:$0xf] }
 0x3cf   : > { %4564 = vrot.lane.b32.xlu0 %v9860_v25, %s7569_s10  ;;  %v4543_v63 = vpop.permute.xlu2 %4542  ;;  %4309 = vst.msk [vmem:[#allocation5 + $0x94] sm:$0xf] %vm785_vm9, %v4221_v43  ;;  %v6791_v34 = vor.u32 %v7340_v41, %v6788_v58  ;;  %v6808_v16 = vld [vmem:[#allocation5 + $0xb4] sm:$0xf0]  ;;  %v4452_v43 = vld [vmem:[#allocation4 + $0x139] sm:$0xff] }
 0x3d0   : > { %4630 = vst.msk [vmem:[#allocation5 + $0xac] sm:$0xf] %vm785_vm9, %v4543_v63  ;;  %v4484_v11 = vpack.c.bf16 %v4452_v43, %v4452_v43 }
 0x3d1   : > { %v4537_v17 = vpop.permute.xlu0 %4536  ;;  %v6774_v5 = vld [vmem:[#allocation5 + $0x58] sm:$0xf] }
 0x3d2   : > { %4627 = vst.msk [vmem:[#allocation5 + $0x70] sm:$0xf] %vm785_vm9, %v4537_v17  ;;  %v6775_v22 = vor.u32 %v7338_v23, %v6774_v5 }
 0x3d3   : > { %5731 = vmatmul.bf16.gmra.mxu2 %v6791_v34  ;;  %v4132_v34 = vld [vmem:[#allocation4 + $0x122] sm:$0xff] }
 0x3d4   : > { %5815 = vmatmul.bf16.gmra.mxu3 %v6775_v22  ;;  %v4164_v17 = vpack.c.bf16 %v4132_v34, %v4132_v34  ;;  %v7344_v22 = vld [vmem:[#allocation5 + $0x98] sm:$0xf0]  ;;  %v6822_v34 = vld [vmem:[#allocation5 + $0xb0] sm:$0xf] }
 0x3d5   : > { %4566 = vrot.lane.b32.xlu2 %v4482_v15, %s7569_s10  ;;  %3930 = vrot.lane.b32.xlu1 %v9861_v52, %s7569_s10  ;;  %v7341_v52 = vld [vmem:[#allocation5 + $0x84] sm:$0xf] }
 0x3d6   : > { %v3903_v32 = vpop.permute.xlu1 %3902  ;;  %v7343_v25 = vld [vmem:[#allocation5 + $0x90] sm:$0xf0] }
 0x3d7   : > { %4246 = vrot.lane.b32.xlu0 %v9862_v39, %s7569_s10  ;;  %v3909_v9 = vpop.permute.xlu2 %3908  ;;  %3990 = vst.msk [vmem:[#allocation5 + $0xa4] sm:$0xf] %vm785_vm9, %v3903_v32  ;;  %v6802_v39 = vld [vmem:[#allocation5 + $0x88] sm:$0xf] }
 0x3d8   : > { %3993 = vst.msk [vmem:[#allocation5 + $0xe0] sm:$0xf] %vm785_vm9, %v3909_v9  ;;  %v9430_v9 = vpop.f32.mrf.mxu1 }
 0x3d9   : > { %v4219_v12 = vpop.permute.xlu0 %4218  ;;  %v6776_v54 = vld [vmem:[#allocation5 + $0x6c] sm:$0xf0] }
 0x3da   : > { %4308 = vst.msk [vmem:[#allocation5 + $0x80] sm:$0xf] %vm785_vm9, %v4219_v12  ;;  %v6779_v26 = vor.u32 %v7336_v20, %v6776_v54  ;;  %v6803_v12 = vor.u32 %v7344_v22, %v6802_v39 }
 0x3dc   : > { %5904 = vmatmul.bf16.gmra.mxu0 %v6779_v26  ;;  %7190 = vmatmul.msk.bf16.gmra.mxu1 %vm440_vm0, %v6783_v14 }
 0x3dd   : > { %3932 = vrot.lane.b32.xlu2 %v9863_v60, %s7569_s10  ;;  %4252 = vrot.lane.b32.xlu1 %v9864_v1, %s7569_s10 }
 0x3de   : > { %v4225_v7 = vpop.permute.xlu1 %4224  ;;  %v7345_v49 = vld [vmem:[#allocation5 + $0xa4] sm:$0xf] }
 0x3df   : > { %4568 = vrot.lane.b32.xlu0 %v4483_v42, %s7569_s10  ;;  %v4547_v2 = vpop.permute.xlu2 %4546  ;;  %4311 = vst.msk [vmem:[#allocation5 + $0xbc] sm:$0xf] %vm785_vm9, %v4225_v7  ;;  %v6811_v8 = vor.u32 %v7345_v49, %v6808_v16  ;;  %v6828_v26 = vld [vmem:[#allocation5 + $0xdc] sm:$0xf0]  ;;  %v4134_v49 = vld [vmem:[#allocation4 + $0x13a] sm:$0xff] }
 0x3e0   : > { %4632 = vst.msk [vmem:[#allocation5 + $0xd4] sm:$0xf] %vm785_vm9, %v4547_v2  ;;  %v4454_v42 = vld [vmem:[#allocation4 + $0x151] sm:$0xff]  ;;  %v9442_v16 = vpop.f32.mrf.mxu1  ;;  %v4166_v2 = vpack.c.bf16 %v4134_v49, %v4134_v49 }
 0x3e1   : > { %v4541_v41 = vpop.permute.xlu0 %4540  ;;  %v6794_v58 = vld [vmem:[#allocation5 + $0x80] sm:$0xf] }
 0x3e2   : > { %4629 = vst.msk [vmem:[#allocation5 + $0x98] sm:$0xf] %vm785_vm9, %v4541_v41  ;;  %v6795_v63 = vor.u32 %v7343_v25, %v6794_v58  ;;  %v7349_v41 = vld [vmem:[#allocation5 + $0xc0] sm:$0xf0]  ;;  %v7346_v25 = vld [vmem:[#allocation5 + $0xac] sm:$0xf] }
 0x3e3   : > { %5736 = vmatmul.bf16.gmra.mxu2 %v6811_v8 }
 0x3e4   : > { %5820 = vmatmul.bf16.gmra.mxu3 %v6795_v63 }
 0x3e5   : > { %4570 = vrot.lane.b32.xlu2 %v4484_v11, %s7569_s10  ;;  %3934 = vrot.lane.b32.xlu1 %v9055_v45, %s7569_s10  ;;  %v4453_v45 = vld [vmem:[#allocation4 + $0x141] sm:$0xff] }
 0x3e6   : > { %v3907_v5 = vpop.permute.xlu1 %3906  ;;  %v4485_v20 = vpack.c.bf16 %v4453_v45, %v4453_v45  ;;  %v7348_v7 = vld [vmem:[#allocation5 + $0xb8] sm:$0xf0] }
 0x3e7   : > { %4250 = vrot.lane.b32.xlu0 %v4164_v17, %s7569_s10  ;;  %v3913_v23 = vpop.permute.xlu2 %3912  ;;  %3992 = vst.msk [vmem:[#allocation5 + $0xcc] sm:$0xf] %vm785_vm9, %v3907_v5  ;;  %v6823_v17 = vor.u32 %v7349_v41, %v6822_v34  ;;  %v4455_v5 = vld [vmem:[#allocation4 + $0x159] sm:$0xff]  ;;  %v4138_v34 = vld [vmem:[#allocation4 + $0x16a] sm:$0xff] }
 0x3e8   : > { %3995 = vst.msk [vmem:[#allocation5 + $0x108] sm:$0xf] %vm785_vm9, %v3913_v23  ;;  %v9456_v23 = vpop.f32.mrf.mxu1 }
 0x3e9   : > { %v4223_v15 = vpop.permute.xlu0 %4222  ;;  %v6796_v32 = vld [vmem:[#allocation5 + $0x94] sm:$0xf0] }
 0x3ea   : > { %4310 = vst.msk [vmem:[#allocation5 + $0xa8] sm:$0xf] %vm785_vm9, %v4223_v15  ;;  %v6799_v24 = vor.u32 %v7341_v52, %v6796_v32 }
 0x3ec   : > { %5909 = vmatmul.bf16.gmra.mxu0 %v6799_v24  ;;  %7191 = vmatmul.msk.bf16.gmra.mxu1 %vm440_vm0, %v6803_v12  ;;  %v4456_v24 = vld [vmem:[#allocation4 + $0x169] sm:$0xff] }
 0x3ed   : > { %3936 = vrot.lane.b32.xlu2 %v9057_v57, %s7569_s10  ;;  %4256 = vrot.lane.b32.xlu1 %v9097_v3, %s7569_s10  ;;  %v4486_v3 = vpack.c.bf16 %v4454_v42, %v4454_v42 }
 0x3ee   : > { %v4229_v54 = vpop.permute.xlu1 %4228  ;;  %v7350_v30 = vld [vmem:[#allocation5 + $0xcc] sm:$0xf] }
 0x3ef   : > { %4572 = vrot.lane.b32.xlu0 %v4485_v20, %s7569_s10  ;;  %v4551_v14 = vpop.permute.xlu2 %4550  ;;  %4313 = vst.msk [vmem:[#allocation5 + $0xe4] sm:$0xf] %vm785_vm9, %v4229_v54  ;;  %v6831_v61 = vor.u32 %v7350_v30, %v6828_v26  ;;  %v6848_v52 = vld [vmem:[#allocation5 + $0x104] sm:$0xf0]  ;;  %v4488_v20 = vpack.c.bf16 %v4456_v24, %v4456_v24 }
 0x3f0   : > { %4634 = vst.msk [vmem:[#allocation5 + $0xfc] sm:$0xf] %vm785_vm9, %v4551_v14  ;;  %v7354_v14 = vld [vmem:[#allocation5 + $0xe8] sm:$0xf0] }
 0x3f1   : > { %v4545_v60 = vpop.permute.xlu0 %4544  ;;  %v6814_v1 = vld [vmem:[#allocation5 + $0xa8] sm:$0xf] }
 0x3f2   : > { %4631 = vst.msk [vmem:[#allocation5 + $0xc0] sm:$0xf] %vm785_vm9, %v4545_v60  ;;  %v6815_v57 = vor.u32 %v7348_v7, %v6814_v1  ;;  %v7351_v60 = vld [vmem:[#allocation5 + $0xd4] sm:$0xf]  ;;  %v6842_v7 = vld [vmem:[#allocation5 + $0xd8] sm:$0xf] }
 0x3f3   : > { %5741 = vmatmul.bf16.gmra.mxu2 %v6831_v61  ;;  %v4139_v61 = vld [vmem:[#allocation4 + $0x172] sm:$0xff] }
 0x3f4   : > { %5825 = vmatmul.bf16.gmra.mxu3 %v6815_v57  ;;  %v6843_v57 = vor.u32 %v7354_v14, %v6842_v7  ;;  %v4171_v49 = vpack.c.bf16 %v4139_v61, %v4139_v61  ;;  %v9865_v7 = vld [vmem:[#allocation9_spill] sm:$0xff] }
 0x3f5   : > { %4574 = vrot.lane.b32.xlu2 %v4486_v3, %s7569_s10  ;;  %3938 = vrot.lane.b32.xlu1 %v9110_v62, %s7569_s10  ;;  %v4487_v62 = vpack.c.bf16 %v4455_v5, %v4455_v5 }
 0x3f6   : > { %v3911_v8 = vpop.permute.xlu1 %3910 }
 0x3f7   : > { %4254 = vrot.lane.b32.xlu0 %v4166_v2, %s7569_s10  ;;  %v3917_v43 = vpop.permute.xlu2 %3916  ;;  %3994 = vst.msk [vmem:[#allocation5 + $0xf4] sm:$0xf] %vm785_vm9, %v3911_v8 }
 0x3f8   : > { %3997 = vst.msk [vmem:[#allocation5 + $0x130] sm:$0xf] %vm785_vm9, %v3917_v43 }
 0x3f9   : > { %v4227_v58 = vpop.permute.xlu0 %4226  ;;  %v6816_v63 = vld [vmem:[#allocation5 + $0xbc] sm:$0xf0] }
 0x3fa   : > { %4312 = vst.msk [vmem:[#allocation5 + $0xd0] sm:$0xf] %vm785_vm9, %v4227_v58  ;;  %v6819_v11 = vor.u32 %v7346_v25, %v6816_v63 }
 0x3fc   : > { %5914 = vmatmul.bf16.gmra.mxu0 %v6819_v11  ;;  %7192 = vmatmul.msk.bf16.gmra.mxu1 %vm440_vm0, %v6823_v17  ;;  %v4170_v17 = vpack.c.bf16 %v4138_v34, %v4138_v34 }
 0x3fd   : > { %3940 = vrot.lane.b32.xlu2 %v9092_v48, %s7569_s10  ;;  %4260 = vrot.lane.b32.xlu1 %v9133_v29, %s7569_s10  ;;  %v7353_v48 = vld [vmem:[#allocation5 + $0xe0] sm:$0xf0] }
 0x3fe   : > { %v4233_v22 = vpop.permute.xlu1 %4232  ;;  %v7355_v15 = vld [vmem:[#allocation5 + $0xf4] sm:$0xf] }
 0x3ff   : > { %4576 = vrot.lane.b32.xlu0 %v4487_v62, %s7569_s10  ;;  %v4555_v32 = vpop.permute.xlu2 %4554  ;;  %4315 = vst.msk [vmem:[#allocation5 + $0x10c] sm:$0xf] %vm785_vm9, %v4233_v22  ;;  %v6851_v39 = vor.u32 %v7355_v15, %v6848_v52  ;;  %v6868_v8 = vld [vmem:[#allocation5 + $0x12c] sm:$0xf0]  ;;  %v7359_v62 = vld [vmem:[#allocation5 + $0x110] sm:$0xf0] }
 0x400   : > { %4636 = vst.msk [vmem:[#allocation5 + $0x124] sm:$0xf] %vm785_vm9, %v4555_v32  ;;  %v7356_v52 = vld [vmem:[#allocation5 + $0xfc] sm:$0xf] }
 0x401   : > { %v4549_v12 = vpop.permute.xlu0 %4548  ;;  %v6834_v45 = vld [vmem:[#allocation5 + $0xd0] sm:$0xf] }
 0x402   : > { %4633 = vst.msk [vmem:[#allocation5 + $0xe8] sm:$0xf] %vm785_vm9, %v4549_v12  ;;  %v6835_v29 = vor.u32 %v7353_v48, %v6834_v45 }
 0x403   : > { %5746 = vmatmul.bf16.gmra.mxu2 %v6851_v39  ;;  %v6862_v39 = vld [vmem:[#allocation5 + $0x100] sm:$0xf] }
 0x404   : > { %5830 = vmatmul.bf16.gmra.mxu3 %v6835_v29  ;;  %v6863_v12 = vor.u32 %v7359_v62, %v6862_v39  ;;  %v9866_v62 = vld [vmem:[#allocation10_spill] sm:$0xff] }
 0x405   : > { %4578 = vrot.lane.b32.xlu2 %v4488_v20, %s7569_s10  ;;  %3942 = vrot.lane.b32.xlu1 %v9149_v21, %s7569_s10 }
 0x406   : > { %v3915_v54 = vpop.permute.xlu1 %3914  ;;  %v9465_v30 = vpop.f32.mrf.mxu1  ;;  %v7358_v63 = vld [vmem:[#allocation5 + $0x108] sm:$0xf0] }
 0x407   : > { %4258 = vrot.lane.b32.xlu0 %v9116_v37, %s7569_s10  ;;  %v3921_v26 = vpop.permute.xlu2 %3920  ;;  %3996 = vst.msk [vmem:[#allocation5 + $0x11c] sm:$0xf] %vm785_vm9, %v3915_v54 }
 0x408   : > { %3999 = vst.msk [vmem:[#allocation5 + $0x158] sm:$0xf] %vm785_vm9, %v3921_v26 }
 0x409   : > { %v4231_v42 = vpop.permute.xlu0 %4230  ;;  %v6836_v1 = vld [vmem:[#allocation5 + $0xe4] sm:$0xf0] }
 0x40a   : > { %4314 = vst.msk [vmem:[#allocation5 + $0xf8] sm:$0xf] %vm785_vm9, %v4231_v42  ;;  %v6839_v21 = vor.u32 %v7351_v60, %v6836_v1 }
 0x40c   : > { %5919 = vmatmul.bf16.gmra.mxu0 %v6839_v21  ;;  %7193 = vmatmul.msk.bf16.gmra.mxu1 %vm440_vm0, %v6843_v57  ;;  %v3152_v57 = vpop.f32.mrf.mxu0 }
 0x40d   : > { %3944 = vrot.lane.b32.xlu2 %v9230_v13, %s7569_s10  ;;  %4264 = vrot.lane.b32.xlu1 %v4171_v49, %s7569_s10 }
 0x40e   : > { %v4237_v37 = vpop.permute.xlu1 %4236  ;;  %v9476_v3 = vpop.f32.mrf.mxu1  ;;  %v7360_v2 = vld [vmem:[#allocation5 + $0x11c] sm:$0xf] }
 0x40f   : > { %4580 = vrot.lane.b32.xlu0 %v9228_v18, %s7569_s10  ;;  %v4559_v43 = vpop.permute.xlu2 %4558  ;;  %4317 = vst.msk [vmem:[#allocation5 + $0x134] sm:$0xf] %vm785_vm9, %v4237_v37  ;;  %v6871_v41 = vor.u32 %v7360_v2, %v6868_v8  ;;  %v6888_v20 = vld [vmem:[#allocation5 + $0x154] sm:$0xf0] }
 0x410   : > { %4638 = vst.msk [vmem:[#allocation5 + $0x14c] sm:$0xf] %vm785_vm9, %v4559_v43 }
 0x411   : > { %v4553_v58 = vpop.permute.xlu0 %4552  ;;  %v6854_v25 = vld [vmem:[#allocation5 + $0xf8] sm:$0xf] }
 0x412   : > { %4635 = vst.msk [vmem:[#allocation5 + $0x110] sm:$0xf] %vm785_vm9, %v4553_v58  ;;  %v6855_v13 = vor.u32 %v7358_v63, %v6854_v25  ;;  %v7364_v58 = vld [vmem:[#allocation5 + $0x138] sm:$0xf0]  ;;  %v7361_v25 = vld [vmem:[#allocation5 + $0x124] sm:$0xf] }
 0x413   : > { %5751 = vmatmul.bf16.gmra.mxu2 %v6871_v41  ;;  %v6882_v63 = vld [vmem:[#allocation5 + $0x128] sm:$0xf] }
 0x414   : > { %5835 = vmatmul.bf16.gmra.mxu3 %v6855_v13  ;;  %v2974_v11 = vpop.f32.mrf.mxu2 }
 0x415   : > { %v2975_v21 = vadd.f32 %v2974_v11, %v9865_v7 }
 0x416   : > { %v3919_v5 = vpop.permute.xlu1 %3918  ;;  %v7363_v60 = vld [vmem:[#allocation5 + $0x130] sm:$0xf0] }
 0x417   : > { %4262 = vrot.lane.b32.xlu0 %v4170_v17, %s7569_s10  ;;  %v3925_v18 = vpop.permute.xlu2 %3924  ;;  %3998 = vst.msk [vmem:[#allocation5 + $0x144] sm:$0xf] %vm785_vm9, %v3919_v5 }
 0x418   : > { %4001 = vst.msk [vmem:[#allocation5 + $0x180] sm:$0xf] %vm785_vm9, %v3925_v18  ;;  %v9486_v22 = vpop.f32.mrf.mxu1  ;;  %v6883_v18 = vor.u32 %v7364_v58, %v6882_v63 }
 0x419   : > { %v4235_v15 = vpop.permute.xlu0 %4234  ;;  %v6856_v32 = vld [vmem:[#allocation5 + $0x10c] sm:$0xf0] }
 0x41a   : > { %4316 = vst.msk [vmem:[#allocation5 + $0x120] sm:$0xf] %vm785_vm9, %v4235_v15  ;;  %v6859_v24 = vor.u32 %v7356_v52, %v6856_v32 }
 0x41c   : > { %5924 = vmatmul.bf16.gmra.mxu0 %v6859_v24  ;;  %7194 = vmatmul.msk.bf16.gmra.mxu1 %vm440_vm0, %v6863_v12  ;;  %v2976_v45 = vpop.f32.mrf.mxu2  ;;  %v3154_v24 = vpop.f32.mrf.mxu0 }
 0x41d   : > { %v2977_v15 = vadd.f32 %v2976_v45, %v9866_v62  ;;  %v9509_v45 = vld [vmem:[%s9792_s4] ss:$0 sm:$0xff]  ;;  %v6902_v62 = vld [vmem:[#allocation5 + $0x150] sm:$0xf] }
 0x41e   : > { %v4241_v48 = vpop.permute.xlu1 %4240  ;;  %v7365_v29 = vld [vmem:[#allocation5 + $0x144] sm:$0xf] }
 0x41f   : > { %v4563_v54 = vpop.permute.xlu2 %4562  ;;  %4319 = vst.msk [vmem:[#allocation5 + $0x15c] sm:$0xf] %vm785_vm9, %v4241_v48  ;;  %v6891_v26 = vor.u32 %v7365_v29, %v6888_v20  ;;  %v6908_v29 = vld [vmem:[#allocation5 + $0x17c] sm:$0xf0] }
 0x420   : > { %4640 = vst.msk [vmem:[#allocation5 + $0x174] sm:$0xf] %vm785_vm9, %v4563_v54  ;;  %v9492_v14 = vpop.f32.mrf.mxu1 }
 0x421   : > { %v4557_v61 = vpop.permute.xlu0 %4556  ;;  %v6874_v42 = vld [vmem:[#allocation5 + $0x120] sm:$0xf] }
 0x422   : > { %4637 = vst.msk [vmem:[#allocation5 + $0x138] sm:$0xf] %vm785_vm9, %v4557_v61  ;;  %v6875_v1 = vor.u32 %v7363_v60, %v6874_v42 }
 0x423   : > { %5756 = vmatmul.bf16.gmra.mxu2 %v6891_v26 }
 0x424   : > { %5840 = vmatmul.bf16.gmra.mxu3 %v6875_v1  ;;  %v3063_v49 = vpop.f32.mrf.mxu3 }
 0x425   : > { %v3064_v37 = vadd.f32 %v3063_v49, %v2975_v21 }
 0x426   : > { %v5717_v2 = vpop.f32.mrf.mxu2  ;;  %v3923_v8 = vpop.permute.xlu1 %3922  ;;  %v7368_v21 = vld [vmem:[#allocation5 + $0x158] sm:$0xf0] }
 0x427   : > { %v3153_v43 = vadd.f32 %v3152_v57, %v3064_v37  ;;  %v3929_v41 = vpop.permute.xlu2 %3928  ;;  %4000 = vst.msk [vmem:[#allocation5 + $0x16c] sm:$0xf] %vm785_vm9, %v3923_v8 }
 0x428   : > { %4003 = vst.msk [vmem:[#allocation5 + $0x1a8] sm:$0xf] %vm785_vm9, %v3929_v41 }
 0x429   : > { %vm3187_vm1 = vcmp.ge.f32.partialorder %v3153_v43, 0.0  ;;  %v3219_v13 = vmul.f32 0.2, %v3153_v43  ;;  %v4239_v34 = vpop.permute.xlu0 %4238  ;;  %v9498_v11 = vpop.f32.mrf.mxu1  ;;  %v6876_v17 = vld [vmem:[#allocation5 + $0x134] sm:$0xf0] }
 0x42a   : > { %4318 = vst.msk [vmem:[#allocation5 + $0x148] sm:$0xf] %vm785_vm9, %v4239_v34  ;;  %v6879_v5 = vor.u32 %v7361_v25, %v6876_v17  ;;  %v7369_v17 = vld [vmem:[#allocation5 + $0x160] sm:$0xf0] }
 0x42b   : > { %v3251_v52 = vsel %vm3187_vm1, %v3153_v43, %v3219_v13  ;;  %v9867_v43 = vld [vmem:[#allocation33_spill] sm:$0xff] }
 0x42c   : > { %3284 = vst.msk [vmem:[#allocation4 + $0x181] sm:$0xff] %vm440_vm0, %v3251_v52  ;;  %5929 = vmatmul.bf16.gmra.mxu0 %v6879_v5  ;;  %7195 = vmatmul.msk.bf16.gmra.mxu1 %vm440_vm0, %v6883_v18  ;;  %v3065_v32 = vpop.f32.mrf.mxu3  ;;  %v5629_v41 = vadd.f32 %v9509_v45, %v9867_v43 }
 0x42d   : > { %v3066_v39 = vadd.f32 %v3065_v32, %v2977_v15 }
 0x42e   : > { %v9504_v12 = vpop.f32.mrf.mxu2  ;;  %v7370_v48 = vld [vmem:[#allocation5 + $0x16c] sm:$0xf]  ;;  %v5718_v25 = vadd.f32 %v5717_v2, %v5629_v41 }
 0x42f   : > { %v3155_v20 = vadd.f32 %v3154_v24, %v3066_v39  ;;  %v4567_v54 = vpop.permute.xlu2 %4566  ;;  %v4245_v26 = vpop.permute.xlu1 %4244  ;;  %v6911_v61 = vor.u32 %v7370_v48, %v6908_v29  ;;  %v7366_v2 = vld [vmem:[#allocation5 + $0x14c] sm:$0xf]  ;;  %v6903_v29 = vor.u32 %v7369_v17, %v6902_v62  ;;  %v6928_v17 = vld [vmem:[#allocation5 + $0x1a4] sm:$0xf0] }
 0x430   : > { %4642 = vst.msk [vmem:[#allocation5 + $0x19c] sm:$0xf] %vm785_vm9, %v4567_v54 }
 0x431   : > { %vm3188_vm13 = vcmp.ge.f32.partialorder %v3155_v20, 0.0  ;;  %v3220_v42 = vmul.f32 0.2, %v3155_v20  ;;  %v4561_v60 = vpop.permute.xlu0 %4560  ;;  %4321 = vst.msk [vmem:[#allocation5 + $0x184] sm:$0xf] %vm785_vm9, %v4245_v26  ;;  %v9513_v1 = vpop.f32.mrf.mxu1  ;;  %v5631_v26 = vadd.f32 %v9509_v45, %v9060_v55 }
 0x432   : > { %4639 = vst.msk [vmem:[#allocation5 + $0x160] sm:$0xf] %vm785_vm9, %v4561_v60  ;;  %v6894_v7 = vld [vmem:[#allocation5 + $0x148] sm:$0xf] }
 0x433   : > { %v3317_v57 = vld [vmem:[#allocation4 + $0x182] sm:$0x1]  ;;  %v3252_v49 = vsel %vm3188_vm13, %v3155_v20, %v3220_v42  ;;  %5761 = vmatmul.bf16.gmra.mxu2 %v6911_v61  ;;  %v6895_v37 = vor.u32 %v7368_v21, %v6894_v7  ;;  %v6692_v20 = vld [vmem:[%s7655_s9 + $0x19] sm:$0xff]  ;;  %v5720_v43 = vadd.f32 %v9504_v12, %v5631_v26 }
 0x434   : > { %v4458_v8 = vld [vmem:[#allocation4 + $0x181] sm:$0xff]  ;;  %3336 = vst.msk [vmem:[#allocation4 + $0x180] sm:$0x1] %vm3319_vm14, %v3317_v57 }
 0x435   : > { %v4490_v58 = vpack.c.bf16 %v4458_v8, %v4458_v8  ;;  %3285 = vst.msk [vmem:[#allocation4 + $0x189] sm:$0xff] %vm440_vm0, %v3252_v49  ;;  %5845 = vmatmul.bf16.gmra.mxu3 %v6895_v37 }
 0x436   : > { %v9520_v63 = vpop.f32.mrf.mxu2 }
 0x437   : > { %4582 = vrot.lane.b32.xlu2 %v4490_v58, %s7569_s10  ;;  %4108 = vst.msk [vmem:[#allocation5 + $0x260] sm:$0xf] %vm560_vm15, %v4490_v58  ;;  %v5806_v13 = vpop.f32.mrf.mxu3  ;;  %v3933_v34 = vpop.permute.xlu2 %3932 }
 0x438   : > { %v5807_v5 = vadd.f32 %v5806_v13, %v5718_v25  ;;  %4005 = vst.msk [vmem:[#allocation5 + $0x1d0] sm:$0xf] %vm785_vm9, %v3933_v34  ;;  %v3927_v18 = vpop.permute.xlu1 %3926 }
 0x439   : > { %v5895_v15 = vpop.f32.mrf.mxu0  ;;  %v4243_v52 = vpop.permute.xlu0 %4242  ;;  %4002 = vst.msk [vmem:[#allocation5 + $0x194] sm:$0xf] %vm785_vm9, %v3927_v18  ;;  %v6896_v32 = vld [vmem:[#allocation5 + $0x15c] sm:$0xf0] }
 0x43a   : > { %v5896_v39 = vadd.f32 %v5895_v15, %v5807_v5  ;;  %4320 = vst.msk [vmem:[#allocation5 + $0x170] sm:$0xf] %vm785_vm9, %v4243_v52  ;;  %v5984_v24 = vpop.f32.mrf.mxu1  ;;  %v6899_v48 = vor.u32 %v7366_v2, %v6896_v32  ;;  %v7373_v52 = vld [vmem:[#allocation5 + $0x180] sm:$0xf0] }
 0x43b   : > { %v3820_v54 = vld [vmem:[#allocation4 + $0x180] sm:$0xff] }
 0x43c   : > { %v4682_v61 = vld [vmem:[#allocation4 + $0x182] sm:$0xff]  ;;  %v5985_v42 = vadd.f32 %v5984_v24, %v5896_v39  ;;  %5934 = vmatmul.bf16.gmra.mxu0 %v6899_v48  ;;  %7196 = vmatmul.msk.bf16.gmra.mxu1 %vm440_vm0, %v6903_v29  ;;  %v3852_v21 = vpack.c.bf16 %v3820_v54, %v3820_v54  ;;  %v3354_v8 = vld [vmem:[#allocation4 + $0x18f] sm:$0x1]  ;;  %v4460_v24 = vld [vmem:[#allocation4 + $0x199] sm:$0xff]  ;;  %v5634_v29 = vadd.f32 %v9509_v45, %v9085_v53 }
 0x43d   : > { %v4459_v60 = vld [vmem:[#allocation4 + $0x189] sm:$0xff]  ;;  %v4714_v57 = vpack.c.bf16 %v4682_v61, %v4682_v61  ;;  %3372 = vst.msk [vmem:[#allocation4 + $0x191] sm:$0x1] %vm3319_vm14, %v3354_v8  ;;  %v6693_v48 = vld [vmem:[%s7655_s9 + $0x21] sm:$0xff]  ;;  %v4492_v54 = vpack.c.bf16 %v4460_v24, %v4460_v24  ;;  %v7374_v53 = vld [vmem:[#allocation5 + $0x188] sm:$0xf0] }
 0x43e   : > { %v3821_v7 = vld [vmem:[#allocation4 + $0x188] sm:$0xff]  ;;  %v4491_v49 = vpack.c.bf16 %v4459_v60, %v4459_v60  ;;  %v6064_v41 = vadd.f32 %v6692_v20, %v5985_v42  ;;  %v9535_v58 = vpop.f32.mrf.mxu2  ;;  %3946 = vrot.lane.b32.xlu1 %v3852_v21, %s7569_s10  ;;  %4426 = vst.msk [vmem:[#allocation5 + $0x23c] sm:$0xf] %vm560_vm15, %v3852_v21  ;;  %v5723_v61 = vadd.f32 %v9520_v63, %v5634_v29 }
 0x43f   : > { %v3853_v37 = vpack.c.bf16 %v3821_v7, %v3821_v7  ;;  %4746 = vst.msk [vmem:[#allocation5 + $0x240] sm:$0xf] %vm560_vm15, %v4714_v57  ;;  %v5808_v55 = vpop.f32.mrf.mxu3  ;;  %v4571_v25 = vpop.permute.xlu2 %4570  ;;  %v6922_v63 = vld [vmem:[#allocation5 + $0x178] sm:$0xf] }
 0x440   : > { %4584 = vrot.lane.b32.xlu0 %v4491_v49, %s7569_s10  ;;  %6096 = vst.msk [vmem:[%s9542_s7] sm:$0xff] %vm440_vm0, %v6064_v41  ;;  %v5809_v12 = vadd.f32 %v5808_v55, %v5720_v43  ;;  %v4249_v13 = vpop.permute.xlu1 %4248  ;;  %v7375_v34 = vld [vmem:[#allocation5 + $0x194] sm:$0xf] }
 0x441   : > { %3948 = vrot.lane.b32.xlu2 %v3853_v37, %s7569_s10  ;;  %4644 = vst.msk [vmem:[#allocation5 + $0x1c4] sm:$0xf] %vm785_vm9, %v4571_v25  ;;  %v5897_v5 = vpop.f32.mrf.mxu0  ;;  %v4565_v18 = vpop.permute.xlu0 %4564  ;;  %v6931_v62 = vor.u32 %v7375_v34, %v6928_v17  ;;  %v6914_v15 = vld [vmem:[#allocation5 + $0x170] sm:$0xf]  ;;  %v6923_v34 = vor.u32 %v7374_v53, %v6922_v63 }
 0x442   : > { %v5898_v2 = vadd.f32 %v5897_v5, %v5809_v12  ;;  %4641 = vst.msk [vmem:[#allocation5 + $0x188] sm:$0xf] %vm785_vm9, %v4565_v18  ;;  %v5986_v32 = vpop.f32.mrf.mxu1  ;;  %v6915_v39 = vor.u32 %v7373_v52, %v6914_v15  ;;  %v4461_v17 = vld [vmem:[#allocation4 + $0x1a1] sm:$0xff]  ;;  %v5636_v18 = vadd.f32 %v9509_v45, %v9106_v0 }
 0x443   : > { %4323 = vst.msk [vmem:[#allocation5 + $0x1ac] sm:$0xf] %vm785_vm9, %v4249_v13  ;;  %5766 = vmatmul.bf16.gmra.mxu2 %v6931_v62  ;;  %v6694_v5 = vld [vmem:[%s7655_s9 + $0x31] sm:$0xff]  ;;  %v4493_v15 = vpack.c.bf16 %v4461_v17, %v4461_v17 }
 0x444   : > { %v5987_v20 = vadd.f32 %v5986_v32, %v5898_v2  ;;  %v4141_v26 = vld [vmem:[#allocation4 + $0x18a] sm:$0xff]  ;;  %4427 = vst.msk [vmem:[#allocation5 + $0x250] sm:$0xf] %vm560_vm15, %v3853_v37  ;;  %v5725_v52 = vadd.f32 %v9535_v58, %v5636_v18 }
 0x445   : > { %5850 = vmatmul.bf16.gmra.mxu3 %v6915_v39  ;;  %v4173_v7 = vpack.c.bf16 %v4141_v26, %v4141_v26  ;;  %4109 = vst.msk [vmem:[#allocation5 + $0x274] sm:$0xf] %vm560_vm15, %v4491_v49  ;;  %v7371_v49 = vld [vmem:[#allocation5 + $0x174] sm:$0xf] }
 0x446   : > { %v6065_v42 = vadd.f32 %v6693_v48, %v5987_v20  ;;  %v5727_v60 = vpop.f32.mrf.mxu2 }
 0x447   : > { %v5811_v8 = vpop.f32.mrf.mxu3  ;;  %v3937_v43 = vpop.permute.xlu2 %3936  ;;  %4268 = vrot.lane.b32.xlu1 %v4173_v7, %s7569_s10  ;;  %4747 = vst.msk [vmem:[#allocation5 + $0x254] sm:$0xf] %vm560_vm15, %v4173_v7  ;;  %v6948_v7 = vld [vmem:[#allocation5 + $0x1cc] sm:$0xf0] }
 0x448   : > { %4266 = vrot.lane.b32.xlu0 %v4714_v57, %s7569_s10  ;;  %6097 = vst.msk [vmem:[%s9542_s7 + $0x8] sm:$0xff] %vm440_vm0, %v6065_v42  ;;  %v5812_v21 = vadd.f32 %v5811_v8, %v5723_v61  ;;  %v3931_v37 = vpop.permute.xlu1 %3930 }
 0x449   : > { %4586 = vrot.lane.b32.xlu2 %v4492_v54, %s7569_s10  ;;  %4007 = vst.msk [vmem:[#allocation5 + $0x1f8] sm:$0xf] %vm785_vm9, %v3937_v43  ;;  %v5900_v41 = vpop.f32.mrf.mxu0  ;;  %v4247_v55 = vpop.permute.xlu0 %4246  ;;  %v6916_v25 = vld [vmem:[#allocation5 + $0x184] sm:$0xf0]  ;;  %v6695_v43 = vld [vmem:[%s7655_s9 + $0x39] sm:$0xff] }
 0x44a   : > { %v5901_v12 = vadd.f32 %v5900_v41, %v5812_v21  ;;  %4322 = vst.msk [vmem:[#allocation5 + $0x198] sm:$0xf] %vm785_vm9, %v4247_v55  ;;  %v5989_v57 = vpop.f32.mrf.mxu1  ;;  %v6919_v13 = vor.u32 %v7371_v49, %v6916_v25  ;;  %v7378_v26 = vld [vmem:[#allocation5 + $0x1a8] sm:$0xf0]  ;;  %v5639_v21 = vadd.f32 %v9509_v45, %v9124_v10  ;;  %v7376_v10 = vld [vmem:[#allocation5 + $0x19c] sm:$0xf] }
 0x44b   : > { %4004 = vst.msk [vmem:[#allocation5 + $0x1bc] sm:$0xf] %vm785_vm9, %v3931_v37 }
 0x44c   : > { %v5990_v62 = vadd.f32 %v5989_v57, %v5901_v12  ;;  %5939 = vmatmul.bf16.gmra.mxu0 %v6919_v13  ;;  %7197 = vmatmul.msk.bf16.gmra.mxu1 %vm440_vm0, %v6923_v34  ;;  %v5728_v63 = vadd.f32 %v5727_v60, %v5639_v21  ;;  %v7379_v12 = vld [vmem:[#allocation5 + $0x1b0] sm:$0xf0]  ;;  %v6942_v34 = vld [vmem:[#allocation5 + $0x1a0] sm:$0xf] }
 0x44e   : > { %v6066_v2 = vadd.f32 %v6694_v5, %v5990_v62  ;;  %v5729_v32 = vpop.f32.mrf.mxu2 }
 0x44f   : > { %v5813_v39 = vpop.f32.mrf.mxu3  ;;  %v4575_v24 = vpop.permute.xlu2 %4574 }
 0x450   : > { %4588 = vrot.lane.b32.xlu0 %v4493_v15, %s7569_s10  ;;  %6098 = vst.msk [vmem:[%s9542_s7 + $0x10] sm:$0xff] %vm440_vm0, %v6066_v2  ;;  %v5814_v48 = vadd.f32 %v5813_v39, %v5725_v52  ;;  %v4253_v0 = vpop.permute.xlu1 %4252  ;;  %v6943_v52 = vor.u32 %v7379_v12, %v6942_v34  ;;  %v6696_v2 = vld [vmem:[%s7655_s9 + $0x49] sm:$0xff]  ;;  %v5641_v39 = vadd.f32 %v9509_v45, %v9153_v44 }
 0x451   : > { %4646 = vst.msk [vmem:[#allocation5 + $0x1ec] sm:$0xf] %vm785_vm9, %v4575_v24  ;;  %v5902_v29 = vpop.f32.mrf.mxu0  ;;  %v4569_v20 = vpop.permute.xlu0 %4568  ;;  %v6934_v54 = vld [vmem:[#allocation5 + $0x198] sm:$0xf] }
 0x452   : > { %v5903_v61 = vadd.f32 %v5902_v29, %v5814_v48  ;;  %4643 = vst.msk [vmem:[#allocation5 + $0x1b0] sm:$0xf] %vm785_vm9, %v4569_v20  ;;  %v5991_v58 = vpop.f32.mrf.mxu1  ;;  %v7380_v42 = vld [vmem:[#allocation5 + $0x1bc] sm:$0xf]  ;;  %v6935_v8 = vor.u32 %v7378_v26, %v6934_v54  ;;  %v5730_v48 = vadd.f32 %v5729_v32, %v5641_v39 }
 0x453   : > { %4325 = vst.msk [vmem:[#allocation5 + $0x1d4] sm:$0xf] %vm785_vm9, %v4253_v0  ;;  %v6951_v53 = vor.u32 %v7380_v42, %v6948_v7 }
 0x454   : > { %v5992_v37 = vadd.f32 %v5991_v58, %v5903_v61 }
 0x455   : > { %5771 = vmatmul.bf16.gmra.mxu2 %v6951_v53  ;;  %5855 = vmatmul.bf16.gmra.mxu3 %v6935_v8  ;;  %v6968_v53 = vld [vmem:[#allocation5 + $0x1f4] sm:$0xf0] }
 0x456   : > { %v6067_v41 = vadd.f32 %v6695_v43, %v5992_v37  ;;  %v5732_v55 = vpop.f32.mrf.mxu2  ;;  %v6697_v37 = vld [vmem:[%s7655_s9 + $0x51] sm:$0xff] }
 0x457   : > { %v5816_v49 = vpop.f32.mrf.mxu3  ;;  %v3941_v25 = vpop.permute.xlu2 %3940 }
 0x458   : > { %6099 = vst.msk [vmem:[%s9542_s7 + $0x18] sm:$0xff] %vm440_vm0, %v6067_v41  ;;  %v5817_v57 = vadd.f32 %v5816_v49, %v5728_v63  ;;  %v3935_v13 = vpop.permute.xlu1 %3934  ;;  %v5644_v41 = vadd.f32 %v9509_v45, %v9170_v51  ;;  %v7381_v51 = vld [vmem:[#allocation5 + $0x1c4] sm:$0xf] }
 0x459   : > { %4009 = vst.msk [vmem:[#allocation5 + $0x220] sm:$0xf] %vm785_vm9, %v3941_v25  ;;  %v5905_v17 = vpop.f32.mrf.mxu0  ;;  %v4251_v5 = vpop.permute.xlu0 %4250  ;;  %v6936_v18 = vld [vmem:[#allocation5 + $0x1ac] sm:$0xf0] }
 0x45a   : > { %v5906_v62 = vadd.f32 %v5905_v17, %v5817_v57  ;;  %4324 = vst.msk [vmem:[#allocation5 + $0x1c0] sm:$0xf] %vm785_vm9, %v4251_v5  ;;  %v5994_v60 = vpop.f32.mrf.mxu1  ;;  %v6939_v15 = vor.u32 %v7376_v10, %v6936_v18  ;;  %v7383_v44 = vld [vmem:[#allocation5 + $0x1d0] sm:$0xf0]  ;;  %v5733_v25 = vadd.f32 %v5732_v55, %v5644_v41  ;;  %v7384_v17 = vld [vmem:[#allocation5 + $0x1d8] sm:$0xf0]  ;;  %v5649_v41 = vadd.f32 %v9509_v45, %v9201_v46 }
 0x45b   : > { %4006 = vst.msk [vmem:[#allocation5 + $0x1e4] sm:$0xf] %vm785_vm9, %v3935_v13  ;;  %v6962_v18 = vld [vmem:[#allocation5 + $0x1c8] sm:$0xf] }
 0x45c   : > { %v5995_v24 = vadd.f32 %v5994_v60, %v5906_v62  ;;  %5944 = vmatmul.bf16.gmra.mxu0 %v6939_v15  ;;  %7198 = vmatmul.msk.bf16.gmra.mxu1 %vm440_vm0, %v6943_v52  ;;  %v6963_v39 = vor.u32 %v7384_v17, %v6962_v18  ;;  %v7389_v17 = vld [vmem:[#allocation5 + $0x200] sm:$0xf0]  ;;  %v6982_v18 = vld [vmem:[#allocation5 + $0x1f0] sm:$0xf] }
 0x45e   : > { %v6068_v0 = vadd.f32 %v6696_v2, %v5995_v24  ;;  %v5734_v29 = vpop.f32.mrf.mxu2  ;;  %v6698_v24 = vld [vmem:[%s7655_s9 + $0x61] sm:$0xff] }
 0x45f   : > { %v5818_v20 = vpop.f32.mrf.mxu3  ;;  %v4579_v54 = vpop.permute.xlu2 %4578 }
 0x460   : > { %6100 = vst.msk [vmem:[%s9542_s7 + $0x20] sm:$0xff] %vm440_vm0, %v6068_v0  ;;  %v5819_v26 = vadd.f32 %v5818_v20, %v5730_v48  ;;  %v4257_v61 = vpop.permute.xlu1 %4256  ;;  %v5646_v48 = vadd.f32 %v9509_v45, %v9184_v33 }
 0x461   : > { %4648 = vst.msk [vmem:[#allocation5 + $0x214] sm:$0xf] %vm785_vm9, %v4579_v54  ;;  %v5907_v58 = vpop.f32.mrf.mxu0  ;;  %v4573_v42 = vpop.permute.xlu0 %4572  ;;  %v6954_v7 = vld [vmem:[#allocation5 + $0x1c0] sm:$0xf] }
 0x462   : > { %v5908_v8 = vadd.f32 %v5907_v58, %v5819_v26  ;;  %4645 = vst.msk [vmem:[#allocation5 + $0x1d8] sm:$0xf] %vm785_vm9, %v4573_v42  ;;  %v5996_v43 = vpop.f32.mrf.mxu1  ;;  %v7385_v32 = vld [vmem:[#allocation5 + $0x1e4] sm:$0xf]  ;;  %v6955_v21 = vor.u32 %v7383_v44, %v6954_v7  ;;  %v5735_v20 = vadd.f32 %v5734_v29, %v5646_v48 }
 0x463   : > { %4327 = vst.msk [vmem:[#allocation5 + $0x1fc] sm:$0xf] %vm785_vm9, %v4257_v61  ;;  %v6971_v63 = vor.u32 %v7385_v32, %v6968_v53  ;;  %v6988_v53 = vld [vmem:[#allocation5 + $0x21c] sm:$0xf0] }
 0x464   : > { %v5997_v49 = vadd.f32 %v5996_v43, %v5908_v8 }
 0x465   : > { %5776 = vmatmul.bf16.gmra.mxu2 %v6971_v63  ;;  %5860 = vmatmul.bf16.gmra.mxu3 %v6955_v21 }
 0x466   : > { %v6069_v12 = vadd.f32 %v6697_v37, %v5997_v49  ;;  %v5737_v57 = vpop.f32.mrf.mxu2  ;;  %v6699_v37 = vld [vmem:[%s7655_s9 + $0x69] sm:$0xff] }
 0x467   : > { %v5821_v13 = vpop.f32.mrf.mxu3  ;;  %v3945_v34 = vpop.permute.xlu2 %3944 }
 0x468   : > { %6101 = vst.msk [vmem:[%s9542_s7 + $0x28] sm:$0xff] %vm440_vm0, %v6069_v12  ;;  %v5822_v5 = vadd.f32 %v5821_v13, %v5733_v25  ;;  %v3939_v10 = vpop.permute.xlu1 %3938  ;;  %v5738_v25 = vadd.f32 %v5737_v57, %v5649_v41 }
 0x469   : > { %4011 = vst.msk [vmem:[#allocation5 + $0x248] sm:$0xf] %vm785_vm9, %v3945_v34  ;;  %v5910_v62 = vpop.f32.mrf.mxu0  ;;  %v4255_v60 = vpop.permute.xlu0 %4254  ;;  %v6956_v15 = vld [vmem:[#allocation5 + $0x1d4] sm:$0xf0] }
 0x46a   : > { %v5911_v52 = vadd.f32 %v5910_v62, %v5822_v5  ;;  %4326 = vst.msk [vmem:[#allocation5 + $0x1e8] sm:$0xf] %vm785_vm9, %v4255_v60  ;;  %v5999_v55 = vpop.f32.mrf.mxu1  ;;  %v6959_v2 = vor.u32 %v7381_v51, %v6956_v15  ;;  %v7388_v43 = vld [vmem:[#allocation5 + $0x1f8] sm:$0xf0]  ;;  %v7386_v51 = vld [vmem:[#allocation5 + $0x1ec] sm:$0xf] }
 0x46b   : > { %4008 = vst.msk [vmem:[#allocation5 + $0x20c] sm:$0xf] %vm785_vm9, %v3939_v10 }
 0x46c   : > { %v6000_v0 = vadd.f32 %v5999_v55, %v5911_v52  ;;  %5949 = vmatmul.bf16.gmra.mxu0 %v6959_v2  ;;  %7199 = vmatmul.msk.bf16.gmra.mxu1 %vm440_vm0, %v6963_v39  ;;  %v6983_v55 = vor.u32 %v7389_v17, %v6982_v18  ;;  %v6700_v2 = vld [vmem:[%s7655_s9 + $0x79] sm:$0xff]  ;;  %v5651_v39 = vadd.f32 %v9509_v45, %v9219_v31 }
 0x46e   : > { %v6070_v54 = vadd.f32 %v6698_v24, %v6000_v0  ;;  %v5739_v26 = vpop.f32.mrf.mxu2 }
 0x46f   : > { %v5823_v61 = vpop.f32.mrf.mxu3  ;;  %v5740_v48 = vadd.f32 %v5739_v26, %v5651_v39 }
 0x470   : > { %6102 = vst.msk [vmem:[%s9542_s7 + $0x30] sm:$0xff] %vm440_vm0, %v6070_v54  ;;  %v5824_v58 = vadd.f32 %v5823_v61, %v5735_v20  ;;  %v4261_v42 = vpop.permute.xlu1 %4260 }
 0x471   : > { %v5912_v7 = vpop.f32.mrf.mxu0  ;;  %v4577_v44 = vpop.permute.xlu0 %4576  ;;  %4329 = vst.msk [vmem:[#allocation5 + $0x224] sm:$0xf] %vm785_vm9, %v4261_v42  ;;  %v6974_v8 = vld [vmem:[#allocation5 + $0x1e8] sm:$0xf] }
 0x472   : > { %v5913_v33 = vadd.f32 %v5912_v7, %v5824_v58  ;;  %4647 = vst.msk [vmem:[#allocation5 + $0x200] sm:$0xf] %vm785_vm9, %v4577_v44  ;;  %v6001_v32 = vpop.f32.mrf.mxu1  ;;  %v7390_v29 = vld [vmem:[#allocation5 + $0x20c] sm:$0xf]  ;;  %v6975_v21 = vor.u32 %v7388_v43, %v6974_v8  ;;  %v7008_v7 = vld [vmem:[#allocation5 + $0x244] sm:$0xf0] }
 0x473   : > { %v6991_v63 = vor.u32 %v7390_v29, %v6988_v53  ;;  %v6701_v53 = vld [vmem:[%s7655_s9 + $0x81] sm:$0xff] }
 0x474   : > { %v6002_v49 = vadd.f32 %v6001_v32, %v5913_v33 }
 0x475   : > { %5781 = vmatmul.bf16.gmra.mxu2 %v6991_v63  ;;  %5865 = vmatmul.bf16.gmra.mxu3 %v6975_v21  ;;  %v5654_v21 = vadd.f32 %v9509_v45, %v9237_v6 }
 0x476   : > { %v6071_v12 = vadd.f32 %v6699_v37, %v6002_v49  ;;  %v5742_v13 = vpop.f32.mrf.mxu2 }
 0x477   : > { %v5826_v34 = vpop.f32.mrf.mxu3  ;;  %v5743_v63 = vadd.f32 %v5742_v13, %v5654_v21  ;;  %v7022_v21 = vld [vmem:[#allocation5 + $0x240] sm:$0xf] }
 0x478   : > { %6103 = vst.msk [vmem:[%s9542_s7 + $0x38] sm:$0xff] %vm440_vm0, %v6071_v12  ;;  %v5827_v5 = vadd.f32 %v5826_v34, %v5738_v25  ;;  %v3943_v10 = vpop.permute.xlu1 %3942  ;;  %v7393_v33 = vld [vmem:[#allocation5 + $0x220] sm:$0xf0]  ;;  %v7394_v12 = vld [vmem:[#allocation5 + $0x228] sm:$0xf0] }
 0x479   : > { %v5915_v62 = vpop.f32.mrf.mxu0  ;;  %v4259_v60 = vpop.permute.xlu0 %4258  ;;  %4010 = vst.msk [vmem:[#allocation5 + $0x234] sm:$0xf] %vm785_vm9, %v3943_v10  ;;  %v6976_v46 = vld [vmem:[#allocation5 + $0x1fc] sm:$0xf0]  ;;  %v7391_v10 = vld [vmem:[#allocation5 + $0x214] sm:$0xf] }
 0x47a   : > { %v5916_v15 = vadd.f32 %v5915_v62, %v5827_v5  ;;  %4328 = vst.msk [vmem:[#allocation5 + $0x210] sm:$0xf] %vm785_vm9, %v4259_v60  ;;  %v6004_v57 = vpop.f32.mrf.mxu1  ;;  %v6979_v52 = vor.u32 %v7386_v51, %v6976_v46  ;;  %v7002_v62 = vld [vmem:[#allocation5 + $0x218] sm:$0xf] }
 0x47b   : > { %v7003_v13 = vor.u32 %v7394_v12, %v7002_v62  ;;  %v6702_v46 = vld [vmem:[%s7655_s9 + $0x91] sm:$0xff] }
 0x47c   : > { %v6005_v24 = vadd.f32 %v6004_v57, %v5916_v15  ;;  %5954 = vmatmul.bf16.gmra.mxu0 %v6979_v52  ;;  %7200 = vmatmul.msk.bf16.gmra.mxu1 %vm440_vm0, %v6983_v55  ;;  %v5656_v15 = vadd.f32 %v9509_v45, %v9259_v36 }
 0x47e   : > { %v6072_v0 = vadd.f32 %v6700_v2, %v6005_v24  ;;  %v5744_v20 = vpop.f32.mrf.mxu2 }
 0x47f   : > { %v5828_v54 = vpop.f32.mrf.mxu3  ;;  %v5745_v52 = vadd.f32 %v5744_v20, %v5656_v15  ;;  %v5659_v20 = vadd.f32 %v9509_v45, %v9275_v35 }
 0x480   : > { %6104 = vst.msk [vmem:[%s9542_s7 + $0x40] sm:$0xff] %vm440_vm0, %v6072_v0  ;;  %v5829_v61 = vadd.f32 %v5828_v54, %v5740_v48  ;;  %v4265_v58 = vpop.permute.xlu1 %4264  ;;  %v7395_v42 = vld [vmem:[#allocation5 + $0x234] sm:$0xf] }
 0x481   : > { %v5917_v44 = vpop.f32.mrf.mxu0  ;;  %v4581_v8 = vpop.permute.xlu0 %4580  ;;  %4331 = vst.msk [vmem:[#allocation5 + $0x24c] sm:$0xf] %vm785_vm9, %v4265_v58  ;;  %v7011_v31 = vor.u32 %v7395_v42, %v7008_v7  ;;  %v6994_v43 = vld [vmem:[#allocation5 + $0x210] sm:$0xf]  ;;  %v6703_v7 = vld [vmem:[%s7655_s9 + $0x99] sm:$0xff] }
 0x482   : > { %v5918_v32 = vadd.f32 %v5917_v44, %v5829_v61  ;;  %4649 = vst.msk [vmem:[#allocation5 + $0x228] sm:$0xf] %vm785_vm9, %v4581_v8  ;;  %v6006_v26 = vpop.f32.mrf.mxu1  ;;  %v6995_v29 = vor.u32 %v7393_v33, %v6994_v43 }
 0x484   : > { %v6007_v37 = vadd.f32 %v6006_v26, %v5918_v32  ;;  %v7399_v32 = vld [vmem:[#allocation5 + $0x250] sm:$0xf0] }
 0x485   : > { %5786 = vmatmul.bf16.gmra.mxu2 %v7011_v31  ;;  %5870 = vmatmul.bf16.gmra.mxu3 %v6995_v29  ;;  %v7023_v35 = vor.u32 %v7399_v32, %v7022_v21 }
 0x486   : > { %v6073_v41 = vadd.f32 %v6701_v53, %v6007_v37  ;;  %v5747_v49 = vpop.f32.mrf.mxu2 }
 0x487   : > { %v5831_v25 = vpop.f32.mrf.mxu3  ;;  %v5748_v8 = vadd.f32 %v5747_v49, %v5659_v20  ;;  %v5661_v49 = vadd.f32 %v9509_v45, %v9296_v59  ;;  %v5664_v59 = vadd.f32 %v9509_v45, %v9310_v27 }
 0x488   : > { %6105 = vst.msk [vmem:[%s9542_s7 + $0x48] sm:$0xff] %vm440_vm0, %v6073_v41  ;;  %v5832_v34 = vadd.f32 %v5831_v25, %v5743_v63  ;;  %v7398_v61 = vld [vmem:[#allocation5 + $0x248] sm:$0xf0] }
 0x489   : > { %v5920_v17 = vpop.f32.mrf.mxu0  ;;  %v4263_v5 = vpop.permute.xlu0 %4262  ;;  %v6996_v18 = vld [vmem:[#allocation5 + $0x224] sm:$0xf0] }
 0x48a   : > { %v5921_v60 = vadd.f32 %v5920_v17, %v5832_v34  ;;  %4330 = vst.msk [vmem:[#allocation5 + $0x238] sm:$0xf] %vm785_vm9, %v4263_v5  ;;  %v6009_v6 = vpop.f32.mrf.mxu1  ;;  %v6999_v51 = vor.u32 %v7391_v10, %v6996_v18  ;;  %v6704_v41 = vld [vmem:[%s7655_s9 + $0xa9] sm:$0xff] }
 0x48c   : > { %v6010_v57 = vadd.f32 %v6009_v6, %v5921_v60  ;;  %5959 = vmatmul.bf16.gmra.mxu0 %v6999_v51  ;;  %7201 = vmatmul.msk.bf16.gmra.mxu1 %vm440_vm0, %v7003_v13  ;;  %v6705_v51 = vld [vmem:[%s7655_s9 + $0xb1] sm:$0xff] }
 0x48e   : > { %v6074_v55 = vadd.f32 %v6702_v46, %v6010_v57  ;;  %v5749_v2 = vpop.f32.mrf.mxu2 }
 0x48f   : > { %v5833_v39 = vpop.f32.mrf.mxu3  ;;  %v5750_v12 = vadd.f32 %v5749_v2, %v5661_v49 }
 0x490   : > { %6106 = vst.msk [vmem:[%s9542_s7 + $0x50] sm:$0xff] %vm440_vm0, %v6074_v55  ;;  %v5834_v24 = vadd.f32 %v5833_v39, %v5745_v52  ;;  %v7404_v55 = vld [vmem:[#allocation5 + $0x278] sm:$0xf0] }
 0x491   : > { %v4583_v48 = vpop.permute.xlu2 %4582  ;;  %v5922_v0 = vpop.f32.mrf.mxu0  ;;  %v7014_v54 = vld [vmem:[#allocation5 + $0x238] sm:$0xf] }
 0x492   : > { %4650 = vst.msk [vmem:[#allocation5 + $0x23c] sm:$0xf] %vm785_vm9, %v4583_v48  ;;  %v5923_v36 = vadd.f32 %v5922_v0, %v5834_v24  ;;  %v6011_v58 = vpop.f32.mrf.mxu1  ;;  %v7015_v42 = vor.u32 %v7398_v61, %v7014_v54  ;;  %v7042_v24 = vld [vmem:[#allocation5 + $0x268] sm:$0xf] }
 0x493   : > { %v7043_v54 = vor.u32 %v7404_v55, %v7042_v24  ;;  %v6706_v61 = vld [vmem:[%s7655_s9 + $0xc1] sm:$0xff] }
 0x494   : > { %v6012_v44 = vadd.f32 %v6011_v58, %v5923_v36  ;;  %v5666_v36 = vadd.f32 %v9509_v45, %v9329_v56  ;;  %v6707_v56 = vld [vmem:[%s7655_s9 + $0xc9] sm:$0xff] }
 0x495   : > { %5875 = vmatmul.bf16.gmra.mxu3 %v7015_v42 }
 0x496   : > { %v6075_v31 = vadd.f32 %v6703_v7, %v6012_v44  ;;  %v5752_v43 = vpop.f32.mrf.mxu2 }
 0x497   : > { %v5836_v33 = vpop.f32.mrf.mxu3  ;;  %v5753_v46 = vadd.f32 %v5752_v43, %v5664_v59 }
 0x498   : > { %6107 = vst.msk [vmem:[%s9542_s7 + $0x58] sm:$0xff] %vm440_vm0, %v6075_v31  ;;  %v5837_v26 = vadd.f32 %v5836_v33, %v5748_v8 }
 0x499   : > { %v5925_v29 = vpop.f32.mrf.mxu0 }
 0x49a   : > { %v5926_v37 = vadd.f32 %v5925_v29, %v5837_v26  ;;  %v6014_v63 = vpop.f32.mrf.mxu1  ;;  %v5669_v29 = vadd.f32 %v9509_v45, %v9340_v19 }
 0x49b   : > { %v3949_v53 = vpop.permute.xlu2 %3948 }
 0x49c   : > { %4013 = vst.msk [vmem:[#allocation5 + $0x270] sm:$0xf] %vm785_vm9, %v3949_v53  ;;  %v6015_v25 = vadd.f32 %v6014_v63, %v5926_v37  ;;  %7202 = vmatmul.msk.bf16.gmra.mxu1 %vm440_vm0, %v7023_v35 }
 0x49e   : > { %v6076_v34 = vadd.f32 %v6704_v41, %v6015_v25  ;;  %v5754_v17 = vpop.f32.mrf.mxu2 }
 0x49f   : > { %v5838_v5 = vpop.f32.mrf.mxu3  ;;  %v5755_v58 = vadd.f32 %v5754_v17, %v5666_v36  ;;  %v7396_v17 = vld [vmem:[#allocation5 + $0x23c] sm:$0xf] }
 0x4a0   : > { %6108 = vst.msk [vmem:[%s9542_s7 + $0x60] sm:$0xff] %vm440_vm0, %v6076_v34  ;;  %v5839_v10 = vadd.f32 %v5838_v5, %v5750_v12 }
 0x4a1   : > { %v5927_v18 = vpop.f32.mrf.mxu0 }
 0x4a2   : > { %v5928_v60 = vadd.f32 %v5927_v18, %v5839_v10  ;;  %v6016_v6 = vpop.f32.mrf.mxu1 }
 0x4a3   : > { %v4587_v62 = vpop.permute.xlu2 %4586  ;;  %v7028_v41 = vld [vmem:[#allocation5 + $0x26c] sm:$0xf0] }
 0x4a4   : > { %4652 = vst.msk [vmem:[#allocation5 + $0x264] sm:$0xf] %vm785_vm9, %v4587_v62  ;;  %v6017_v13 = vadd.f32 %v6016_v6, %v5928_v60  ;;  %v6708_v60 = vld [vmem:[%s7655_s9 + $0xd9] sm:$0xff]  ;;  %v5671_v6 = vadd.f32 %v9509_v45, %v9354_v47  ;;  %v6709_v47 = vld [vmem:[%s7655_s9 + $0xe1] sm:$0xff] }
 0x4a6   : > { %v6077_v15 = vadd.f32 %v6705_v51, %v6017_v13  ;;  %v5757_v57 = vpop.f32.mrf.mxu2 }
 0x4a7   : > { %v5841_v52 = vpop.f32.mrf.mxu3  ;;  %v5758_v37 = vadd.f32 %v5757_v57, %v5669_v29 }
 0x4a8   : > { %6109 = vst.msk [vmem:[%s9542_s7 + $0x68] sm:$0xff] %vm440_vm0, %v6077_v15  ;;  %v5842_v2 = vadd.f32 %v5841_v52, %v5753_v46 }
 0x4a9   : > { %v5930_v39 = vpop.f32.mrf.mxu0 }
 0x4aa   : > { %v5931_v48 = vadd.f32 %v5930_v39, %v5842_v2  ;;  %v6019_v0 = vpop.f32.mrf.mxu1 }
 0x4ac   : > { %v6020_v27 = vadd.f32 %v6019_v0, %v5931_v48  ;;  %7203 = vmatmul.msk.bf16.gmra.mxu1 %vm440_vm0, %v7043_v54  ;;  %v5674_v54 = vadd.f32 %v9509_v45, %v9367_v40  ;;  %v5676_v40 = vadd.f32 %v9509_v45, %v9380_v50 }
 0x4ae   : > { %v6078_v42 = vadd.f32 %v6706_v61, %v6020_v27  ;;  %v5759_v7 = vpop.f32.mrf.mxu2 }
 0x4af   : > { %v5843_v20 = vpop.f32.mrf.mxu3  ;;  %v5760_v13 = vadd.f32 %v5759_v7, %v5671_v6  ;;  %v5681_v6 = vadd.f32 %v9509_v45, %v9406_v28 }
 0x4b0   : > { %6110 = vst.msk [vmem:[%s9542_s7 + $0x70] sm:$0xff] %vm440_vm0, %v6078_v42  ;;  %v5844_v44 = vadd.f32 %v5843_v20, %v5755_v58  ;;  %v3947_v8 = vpop.permute.xlu1 %3946 }
 0x4b1   : > { %v5932_v31 = vpop.f32.mrf.mxu0  ;;  %4012 = vst.msk [vmem:[#allocation5 + $0x25c] sm:$0xf] %vm785_vm9, %v3947_v8 }
 0x4b2   : > { %v4585_v43 = vpop.permute.xlu0 %4584  ;;  %v5933_v33 = vadd.f32 %v5932_v31, %v5844_v44  ;;  %v6021_v32 = vpop.f32.mrf.mxu1  ;;  %v7401_v44 = vld [vmem:[#allocation5 + $0x264] sm:$0xf] }
 0x4b3   : > { %4651 = vst.msk [vmem:[#allocation5 + $0x250] sm:$0xf] %vm785_vm9, %v4585_v43 }
 0x4b4   : > { %v6022_v26 = vadd.f32 %v6021_v32, %v5933_v33  ;;  %v6710_v32 = vld [vmem:[%s7655_s9 + $0xf1] sm:$0xff] }
 0x4b6   : > { %v6079_v53 = vadd.f32 %v6707_v56, %v6022_v26  ;;  %v5762_v21 = vpop.f32.mrf.mxu2 }
 0x4b7   : > { %v5763_v27 = vadd.f32 %v5762_v21, %v5674_v54 }
 0x4b8   : > { %6111 = vst.msk [vmem:[%s9542_s7 + $0x78] sm:$0xff] %vm440_vm0, %v6079_v53  ;;  %v5846_v63 = vpop.f32.mrf.mxu3  ;;  %v7400_v35 = vld [vmem:[#allocation5 + $0x25c] sm:$0xf] }
 0x4b9   : > { %v5847_v49 = vadd.f32 %v5846_v63, %v5758_v37  ;;  %v5935_v25 = vpop.f32.mrf.mxu0  ;;  %v7031_v34 = vor.u32 %v7400_v35, %v7028_v41  ;;  %v4269_v19 = vpop.permute.xlu1 %4268 }
 0x4ba   : > { %v4267_v12 = vpop.permute.xlu0 %4266  ;;  %v7016_v5 = vld [vmem:[#allocation5 + $0x24c] sm:$0xf0]  ;;  %v6024_v10 = vpop.f32.mrf.mxu1  ;;  %4333 = vst.msk [vmem:[#allocation5 + $0x274] sm:$0xf] %vm785_vm9, %v4269_v19 }
 0x4bb   : > { %4332 = vst.msk [vmem:[#allocation5 + $0x260] sm:$0xf] %vm785_vm9, %v4267_v12  ;;  %v7019_v18 = vor.u32 %v7396_v17, %v7016_v5  ;;  %v5936_v62 = vadd.f32 %v5935_v25, %v5847_v49  ;;  %5791 = vmatmul.bf16.gmra.mxu2 %v7031_v34  ;;  %v6711_v49 = vld [vmem:[%s7655_s9 + $0xf9] sm:$0xff]  ;;  %v5679_v25 = vadd.f32 %v9509_v45, %v9391_v4 }
 0x4bd   : > { %5964 = vmatmul.bf16.gmra.mxu0 %v7019_v18  ;;  %v6025_v51 = vadd.f32 %v6024_v10, %v5936_v62 }
 0x4be   : > { %v5764_v59 = vpop.f32.mrf.mxu2 }
 0x4bf   : > { %v6080_v46 = vadd.f32 %v6708_v60, %v6025_v51  ;;  %v5765_v26 = vadd.f32 %v5764_v59, %v5676_v40  ;;  %v6712_v60 = vld [vmem:[%s7655_s9 + $0x109] sm:$0xff] }
 0x4c0   : > { %v5848_v15 = vpop.f32.mrf.mxu3 }
 0x4c1   : > { %6112 = vst.msk [vmem:[%s9542_s7 + $0x80] sm:$0xff] %vm440_vm0, %v6080_v46  ;;  %v5849_v57 = vadd.f32 %v5848_v15, %v5760_v13  ;;  %v5937_v52 = vpop.f32.mrf.mxu0  ;;  %v7403_v24 = vld [vmem:[#allocation5 + $0x270] sm:$0xf0] }
 0x4c2   : > { %v4589_v55 = vpop.permute.xlu0 %4588  ;;  %v7034_v2 = vld [vmem:[#allocation5 + $0x260] sm:$0xf]  ;;  %v6026_v39 = vpop.f32.mrf.mxu1 }
 0x4c3   : > { %4653 = vst.msk [vmem:[#allocation5 + $0x278] sm:$0xf] %vm785_vm9, %v4589_v55  ;;  %v5938_v48 = vadd.f32 %v5937_v52, %v5849_v57  ;;  %v7035_v0 = vor.u32 %v7403_v24, %v7034_v2  ;;  %v6713_v2 = vld [vmem:[%s7655_s9 + $0x111] sm:$0xff] }
 0x4c5   : > { %v6027_v61 = vadd.f32 %v6026_v39, %v5938_v48  ;;  %5880 = vmatmul.bf16.gmra.mxu3 %v7035_v0  ;;  %v5684_v39 = vadd.f32 %v9509_v45, %v9420_v38 }
 0x4c6   : > { %v5767_v36 = vpop.f32.mrf.mxu2 }
 0x4c7   : > { %v6081_v58 = vadd.f32 %v6709_v47, %v6027_v61  ;;  %v5768_v50 = vadd.f32 %v5767_v36, %v5679_v25 }
 0x4c8   : > { %v5851_v42 = vpop.f32.mrf.mxu3 }
 0x4c9   : > { %6113 = vst.msk [vmem:[%s9542_s7 + $0x88] sm:$0xff] %vm440_vm0, %v6081_v58  ;;  %v5852_v7 = vadd.f32 %v5851_v42, %v5763_v27  ;;  %v5940_v20 = vpop.f32.mrf.mxu0  ;;  %v6714_v27 = vld [vmem:[%s7655_s9 + $0x121] sm:$0xff]  ;;  %v9705_v58 = vld [vmem:[%s9792_s4] ss:$0 sm:$0xff] }
 0x4ca   : > { %v7036_v8 = vld [vmem:[#allocation5 + $0x274] sm:$0xf0]  ;;  %v6029_v31 = vpop.f32.mrf.mxu1  ;;  %v5686_v38 = vadd.f32 %v9705_v58, %v9430_v9  ;;  %v5689_v40 = vadd.f32 %v9705_v58, %v9442_v16 }
 0x4cb   : > { %v7039_v43 = vor.u32 %v7401_v44, %v7036_v8  ;;  %v5941_v33 = vadd.f32 %v5940_v20, %v5852_v7 }
 0x4cd   : > { %5969 = vmatmul.bf16.gmra.mxu0 %v7039_v43  ;;  %v6030_v56 = vadd.f32 %v6029_v31, %v5941_v33 }
 0x4ce   : > { %v5769_v53 = vpop.f32.mrf.mxu2 }
 0x4cf   : > { %v6082_v29 = vadd.f32 %v6710_v32, %v6030_v56  ;;  %v5770_v4 = vadd.f32 %v5769_v53, %v5681_v6  ;;  %v6715_v32 = vld [vmem:[%s7655_s9 + $0x129] sm:$0xff] }
 0x4d0   : > { %v5853_v21 = vpop.f32.mrf.mxu3 }
 0x4d1   : > { %6114 = vst.msk [vmem:[%s9542_s7 + $0x90] sm:$0xff] %vm440_vm0, %v6082_v29  ;;  %v5854_v37 = vadd.f32 %v5853_v21, %v5765_v26  ;;  %v5942_v63 = vpop.f32.mrf.mxu0 }
 0x4d2   : > { %v6031_v35 = vpop.f32.mrf.mxu1 }
 0x4d3   : > { %v5943_v41 = vadd.f32 %v5942_v63, %v5854_v37 }
 0x4d5   : > { %v6032_v12 = vadd.f32 %v6031_v35, %v5943_v41  ;;  %v6716_v41 = vld [vmem:[%s7655_s9 + $0x139] sm:$0xff] }
 0x4d7   : > { %v6083_v34 = vadd.f32 %v6711_v49, %v6032_v12  ;;  %v5691_v49 = vadd.f32 %v9705_v58, %v9456_v23 }
 0x4d8   : > { %v5856_v17 = vpop.f32.mrf.mxu3  ;;  %v5772_v19 = vpop.f32.mrf.mxu2 }
 0x4d9   : > { %6115 = vst.msk [vmem:[%s9542_s7 + $0x98] sm:$0xff] %vm440_vm0, %v6083_v34  ;;  %v5857_v5 = vadd.f32 %v5856_v17, %v5768_v50  ;;  %v5945_v10 = vpop.f32.mrf.mxu0  ;;  %v5773_v48 = vadd.f32 %v5772_v19, %v5684_v39 }
 0x4da   : > { %v6034_v18 = vpop.f32.mrf.mxu1 }
 0x4db   : > { %v5946_v62 = vadd.f32 %v5945_v10, %v5857_v5 }
 0x4dd   : > { %v6035_v51 = vadd.f32 %v6034_v18, %v5946_v62  ;;  %v6717_v18 = vld [vmem:[%s7655_s9 + $0x141] sm:$0xff]  ;;  %v5694_v62 = vadd.f32 %v9705_v58, %v9465_v30 }
 0x4df   : > { %v6084_v59 = vadd.f32 %v6712_v60, %v6035_v51 }
 0x4e0   : > { %v5858_v13 = vpop.f32.mrf.mxu3  ;;  %v5774_v55 = vpop.f32.mrf.mxu2 }
 0x4e1   : > { %6116 = vst.msk [vmem:[%s9542_s7 + $0xa0] sm:$0xff] %vm440_vm0, %v6084_v59  ;;  %v5859_v46 = vadd.f32 %v5858_v13, %v5770_v4  ;;  %v5947_v15 = vpop.f32.mrf.mxu0  ;;  %v5775_v7 = vadd.f32 %v5774_v55, %v5686_v38 }
 0x4e2   : > { %v6036_v57 = vpop.f32.mrf.mxu1 }
 0x4e3   : > { %v5948_v52 = vadd.f32 %v5947_v15, %v5859_v46 }
 0x4e5   : > { %v6037_v24 = vadd.f32 %v6036_v57, %v5948_v52  ;;  %v6718_v57 = vld [vmem:[%s7655_s9 + $0x151] sm:$0xff]  ;;  %v5696_v52 = vadd.f32 %v9705_v58, %v9476_v3  ;;  %v5699_v3 = vadd.f32 %v9705_v58, %v9486_v22 }
 0x4e7   : > { %v6085_v28 = vadd.f32 %v6713_v2, %v6037_v24 }
 0x4e8   : > { %v5861_v0 = vpop.f32.mrf.mxu3  ;;  %v5777_v42 = vpop.f32.mrf.mxu2 }
 0x4e9   : > { %6117 = vst.msk [vmem:[%s9542_s7 + $0xa8] sm:$0xff] %vm440_vm0, %v6085_v28  ;;  %v5862_v47 = vadd.f32 %v5861_v0, %v5773_v48  ;;  %v5950_v54 = vpop.f32.mrf.mxu0  ;;  %v5778_v9 = vadd.f32 %v5777_v42, %v5689_v40  ;;  %v6719_v0 = vld [vmem:[%s7655_s9 + $0x159] sm:$0xff] }
 0x4ea   : > { %v6039_v61 = vpop.f32.mrf.mxu1 }
 0x4eb   : > { %v5951_v36 = vadd.f32 %v5950_v54, %v5862_v47 }
 0x4ed   : > { %v6040_v45 = vadd.f32 %v6039_v61, %v5951_v36 }
 0x4ef   : > { %v6086_v20 = vadd.f32 %v6714_v27, %v6040_v45 }
 0x4f0   : > { %v5863_v44 = vpop.f32.mrf.mxu3  ;;  %v5779_v29 = vpop.f32.mrf.mxu2 }
 0x4f1   : > { %6118 = vst.msk [vmem:[%s9542_s7 + $0xb0] sm:$0xff] %vm440_vm0, %v6086_v20  ;;  %v5864_v8 = vadd.f32 %v5863_v44, %v5775_v7  ;;  %v5952_v31 = vpop.f32.mrf.mxu0  ;;  %v5780_v16 = vadd.f32 %v5779_v29, %v5691_v49 }
 0x4f2   : > { %v6041_v43 = vpop.f32.mrf.mxu1 }
 0x4f3   : > { %v5953_v33 = vadd.f32 %v5952_v31, %v5864_v8  ;;  %v6720_v8 = vld [vmem:[%s7655_s9 + $0x169] sm:$0xff]  ;;  %v5701_v31 = vadd.f32 %v9705_v58, %v9492_v14 }
 0x4f5   : > { %v6042_v56 = vadd.f32 %v6041_v43, %v5953_v33 }
 0x4f7   : > { %v6087_v26 = vadd.f32 %v6715_v32, %v6042_v56 }
 0x4f8   : > { %v5866_v53 = vpop.f32.mrf.mxu3  ;;  %v5782_v5 = vpop.f32.mrf.mxu2 }
 0x4f9   : > { %6119 = vst.msk [vmem:[%s9542_s7 + $0xb8] sm:$0xff] %vm440_vm0, %v6087_v26  ;;  %v5867_v21 = vadd.f32 %v5866_v53, %v5778_v9  ;;  %v5955_v37 = vpop.f32.mrf.mxu0  ;;  %v5783_v23 = vadd.f32 %v5782_v5, %v5694_v62  ;;  %v6721_v53 = vld [vmem:[%s7655_s9 + $0x171] sm:$0xff] }
 0x4fa   : > { %v6044_v63 = vpop.f32.mrf.mxu1 }
 0x4fb   : > { %v5956_v35 = vadd.f32 %v5955_v37, %v5867_v21  ;;  %v5704_v37 = vadd.f32 %v9705_v58, %v9498_v11 }
 0x4fd   : > { %v6045_v25 = vadd.f32 %v6044_v63, %v5956_v35 }
 0x4ff   : > { %v6088_v12 = vadd.f32 %v6716_v41, %v6045_v25 }
 0x500   : > { %v5868_v50 = vpop.f32.mrf.mxu3  ;;  %v5784_v15 = vpop.f32.mrf.mxu2 }
 0x501   : > { %6120 = vst.msk [vmem:[%s9542_s7 + $0xc0] sm:$0xff] %vm440_vm0, %v6088_v12  ;;  %v5869_v34 = vadd.f32 %v5868_v50, %v5780_v16  ;;  %v5957_v17 = vpop.f32.mrf.mxu0  ;;  %v5785_v30 = vadd.f32 %v5784_v15, %v5696_v52  ;;  %v6722_v50 = vld [vmem:[%s7655_s9 + $0x181] sm:$0xff] }
 0x502   : > { %v6046_v10 = vpop.f32.mrf.mxu1 }
 0x503   : > { %v5958_v19 = vadd.f32 %v5957_v17, %v5869_v34  ;;  %v5706_v34 = vadd.f32 %v9705_v58, %v9513_v1  ;;  %v6723_v58 = vld [vmem:[%s7655_s9 + $0x189] sm:$0xff] }
 0x505   : > { %v6047_v60 = vadd.f32 %v6046_v10, %v5958_v19 }
 0x507   : > { %v6089_v6 = vadd.f32 %v6717_v18, %v6047_v60 }
 0x508   : > { %v5871_v51 = vpop.f32.mrf.mxu3  ;;  %v5787_v36 = vpop.f32.mrf.mxu2 }
 0x509   : > { %6121 = vst.msk [vmem:[%s9542_s7 + $0xc8] sm:$0xff] %vm440_vm0, %v6089_v6  ;;  %v5872_v4 = vadd.f32 %v5871_v51, %v5783_v23  ;;  %v5960_v59 = vpop.f32.mrf.mxu0  ;;  %v5788_v38 = vadd.f32 %v5787_v36, %v5699_v3 }
 0x50a   : > { %v6049_v13 = vpop.f32.mrf.mxu1 }
 0x50b   : > { %v5961_v46 = vadd.f32 %v5960_v59, %v5872_v4 }
 0x50d   : > { %v6050_v55 = vadd.f32 %v6049_v13, %v5961_v46 }
 0x50f   : > { %v6090_v2 = vadd.f32 %v6718_v57, %v6050_v55 }
 0x510   : > { %v5873_v39 = vpop.f32.mrf.mxu3  ;;  %v5789_v20 = vpop.f32.mrf.mxu2 }
 0x511   : > { %6122 = vst.msk [vmem:[%s9542_s7 + $0xd0] sm:$0xff] %vm440_vm0, %v6090_v2  ;;  %v5874_v24 = vadd.f32 %v5873_v39, %v5785_v30  ;;  %v5962_v48 = vpop.f32.mrf.mxu0  ;;  %v5790_v32 = vadd.f32 %v5789_v20, %v5701_v31 }
 0x512   : > { %v6051_v47 = vpop.f32.mrf.mxu1 }
 0x513   : > { %v5963_v28 = vadd.f32 %v5962_v48, %v5874_v24 }
 0x515   : > { %v6052_v54 = vadd.f32 %v6051_v47, %v5963_v28 }
 0x517   : > { %v6091_v61 = vadd.f32 %v6719_v0, %v6052_v54 }
 0x518   : > { %v5876_v27 = vpop.f32.mrf.mxu3 }
 0x519   : > { %6123 = vst.msk [vmem:[%s9542_s7 + $0xd8] sm:$0xff] %vm440_vm0, %v6091_v61  ;;  %v5877_v42 = vadd.f32 %v5876_v27, %v5788_v38 }
 0x51a   : > { %v6054_v45 = vpop.f32.mrf.mxu1 }
 0x520   : > { %v5878_v33 = vpop.f32.mrf.mxu3 }
 0x521   : > { %v5879_v56 = vadd.f32 %v5878_v33, %v5790_v32 }
 0x522   : > { %v6056_v9 = vpop.f32.mrf.mxu1 }
 0x52a   : > { %v6059_v25 = vpop.f32.mrf.mxu1 }
 0x532   : > { %v6061_v1 = vpop.f32.mrf.mxu1 }
 0x53a   : > { %v5965_v7 = vpop.f32.mrf.mxu0 }
 0x53b   : > { %v5966_v44 = vadd.f32 %v5965_v7, %v5877_v42 }
 0x53d   : > { %v6055_v43 = vadd.f32 %v6054_v45, %v5966_v44 }
 0x53e   : > { %v5792_v26 = vpop.f32.mrf.mxu2 }
 0x53f   : > { %v6092_v40 = vadd.f32 %v6720_v8, %v6055_v43  ;;  %v5793_v63 = vadd.f32 %v5792_v26, %v5704_v37 }
 0x541   : > { %6124 = vst.msk [vmem:[%s9542_s7 + $0xe0] sm:$0xff] %vm440_vm0, %v6092_v40 }
 0x542   : > { %v5967_v22 = vpop.f32.mrf.mxu0 }
 0x543   : > { %v5968_v29 = vadd.f32 %v5967_v22, %v5879_v56 }
 0x545   : > { %v6057_v21 = vadd.f32 %v6056_v9, %v5968_v29 }
 0x546   : > { %v5794_v12 = vpop.f32.mrf.mxu2 }
 0x547   : > { %v6093_v14 = vadd.f32 %v6721_v53, %v6057_v21  ;;  %v5795_v11 = vadd.f32 %v5794_v12, %v5706_v34 }
 0x548   : > { %v5881_v35 = vpop.f32.mrf.mxu3 }
 0x549   : > { %6125 = vst.msk [vmem:[%s9542_s7 + $0xe8] sm:$0xff] %vm440_vm0, %v6093_v14  ;;  %v5882_v41 = vadd.f32 %v5881_v35, %v5793_v63 }
 0x54a   : > { %v5970_v49 = vpop.f32.mrf.mxu0 }
 0x54b   : > { %v5971_v16 = vadd.f32 %v5970_v49, %v5882_v41 }
 0x54d   : > { %v6060_v17 = vadd.f32 %v6059_v25, %v5971_v16 }
 0x54f   : > { %v6094_v5 = vadd.f32 %v6722_v50, %v6060_v17 }
 0x550   : > { %v5883_v10 = vpop.f32.mrf.mxu3 }
 0x551   : > { %6126 = vst.msk [vmem:[%s9542_s7 + $0xf0] sm:$0xff] %vm440_vm0, %v6094_v5  ;;  %v5884_v19 = vadd.f32 %v5883_v10, %v5795_v11 }
 0x552   : > { %v5972_v18 = vpop.f32.mrf.mxu0 }
 0x553   : > { %v5973_v62 = vadd.f32 %v5972_v18, %v5884_v19 }
 0x555   : > { %v6062_v60 = vadd.f32 %v6061_v1, %v5973_v62 }
 0x557   : > { %v6095_v23 = vadd.f32 %v6723_v58, %v6062_v60 }
 0x559   : > { %6127 = vst.msk [vmem:[%s9542_s7 + $0xf8] sm:$0xff] %vm440_vm0, %v6095_v23 }
 0x55a   : > { %7532 = shalt.err (!%p7529_p3)
}
 0x55b   : > { %s7570_s30 = smov 128   ;;  %s7571_s7 = smov 8  }
 0x55c   : > { %7459 = dma.vmem_to_hbm [thread:$0]  (%p7640_p5), %s6142_s15, 4096, %s6144_s16, %s6129_s22, %s7570_s30, %s7570_s30, %s7571_s7  }
 0x55d PF: > { %p7465_p4 = scmp.ge.s32.totalorder %s7567_s21, 2  ;;  %s6158_s8 = sand.u32 1, %s7555_s18  }
 0x55e   : > { %s6159_s11 = scalar_lea.sflag [#allocation7], %s6158_s8 }
 0x55f   : > { %p7462_p7 = pnand %p7465_p4, %p7644_p6 }
 0x561   : > { %p7463_p8 = pneg %p7462_p7 }
 0x563   : > { %7550 = dma.done.wait (%p7463_p8), %s6159_s11, 4096  }
 0x564   : > { %7552 = vsyncadd (%p7463_p8), %s6159_s11, 4294963200  ;;  %p15_p9 = scmp.ge.s32.totalorder %s7627_s24, 4   ;;  %s9868_s18 = smov %s7559_s19 }
 0x565   : > { %s9869_s19 = smov %s7563_s20  ;;  %s9870_s20 = smov %s7638_s27 }
 0x566   : > { %s9871_s21 = smov %s7627_s24  ;;  %17 = sbr.rel (!%p15_p9) target bundleno = 3 (0x3), region = 82 }
 0x56b   :  { %6165 = vsyncpa [#allocation7], 1 }
 0x56c   :  { %6167 = vsyncpa [#allocation7 + $0x1], 1 }

</bundles_post_ra>
